<compile_context>
chip_gen: v5e
topology: v5e:2x2
jax: 0.10.0
libtpu: 0.0.40
codegen_flags: <defaults>
</compile_context>

<pallas_src>
import functools

import jax
import jax.numpy as jnp
from jax.experimental import pallas as pl
from jax.experimental.pallas import tpu as pltpu

BASIC_INPUT_SIZE = 768
NUM_AUDIO_FEATURES = 1025
NUM_CLASSES = 29

HIDDEN1, HIDDEN2, HIDDEN3 = 1024, 512, 256

LANE = 128      # lane width (last dim)
SUBLANE = 8     # f32 sublane count (second-to-last dim)


def _round_up(x, m):
    return (x + m - 1) // m * m


# ---------------------------------------------------------------------------
# Kernels
# ---------------------------------------------------------------------------
def _mlp_kernel(x_ref, w1_ref, b1_ref, w2_ref, b2_ref,
                w3_ref, b3_ref, w4_ref, b4_ref, o_ref):
    """Fused fc1->ReLU->fc2->ReLU->fc3->ReLU->fc4 (bf16 weights, f32 accum)."""
    h = x_ref[...].astype(jnp.bfloat16)
    h = jnp.dot(h, w1_ref[...], preferred_element_type=jnp.float32)
    h = jnp.maximum(h + b1_ref[...], 0.0).astype(jnp.bfloat16)
    h = jnp.dot(h, w2_ref[...], preferred_element_type=jnp.float32)
    h = jnp.maximum(h + b2_ref[...], 0.0).astype(jnp.bfloat16)
    h = jnp.dot(h, w3_ref[...], preferred_element_type=jnp.float32)
    h = jnp.maximum(h + b3_ref[...], 0.0).astype(jnp.bfloat16)
    h = jnp.dot(h, w4_ref[...], preferred_element_type=jnp.float32)
    o_ref[...] = (h + b4_ref[...]).astype(o_ref.dtype)


def _linear_kernel(x_ref, w_ref, b_ref, o_ref):
    """Single linear layer (used when num_audio_processing_features == 0)."""
    h = jnp.dot(x_ref[...].astype(jnp.bfloat16), w_ref[...],
                preferred_element_type=jnp.float32)
    o_ref[...] = (h + b_ref[...]).astype(o_ref.dtype)


# ---------------------------------------------------------------------------
# Parameter init (PyTorch-Linear-style uniform), stored padded + bf16 weights.
# Weights are [in, out] (transposed vs. torch.nn.Linear.weight); padded
# rows/cols are zero. Biases are [1, out_padded] and stay f32.
# ---------------------------------------------------------------------------
def init_params(key, basic_input_size=BASIC_INPUT_SIZE,
                num_audio_features=NUM_AUDIO_FEATURES,
                num_classes=NUM_CLASSES, weight_dtype=jnp.bfloat16):
    in_dim = basic_input_size + num_audio_features
    in_pad = _round_up(in_dim, LANE)        # 1793 -> 1920
    cls_pad = _round_up(num_classes, LANE)  # 29   -> 128

    def make_layer(k, fan_in, fan_out, pad_in, pad_out):
        kw, kb = jax.random.split(k)
        bound = 1.0 / float(fan_in) ** 0.5
        w = jax.random.uniform(kw, (fan_in, fan_out), jnp.float32,
                               minval=-bound, maxval=bound)
        b = jax.random.uniform(kb, (1, fan_out), jnp.float32,
                               minval=-bound, maxval=bound)
        w = jnp.pad(w, ((0, pad_in - fan_in), (0, pad_out - fan_out)))
        b = jnp.pad(b, ((0, 0), (0, pad_out - fan_out)))
        return w.astype(weight_dtype), b

    keys = jax.random.split(key, 5)
    params = {}
    params["fc1_w"], params["fc1_b"] = make_layer(keys[0], in_dim, HIDDEN1,
                                                  in_pad, HIDDEN1)
    params["fc2_w"], params["fc2_b"] = make_layer(keys[1], HIDDEN1, HIDDEN2,
                                                  HIDDEN1, HIDDEN2)
    params["fc3_w"], params["fc3_b"] = make_layer(keys[2], HIDDEN2, HIDDEN3,
                                                  HIDDEN2, HIDDEN3)
    params["fc4_w"], params["fc4_b"] = make_layer(keys[3], HIDDEN3, num_classes,
                                                  HIDDEN3, cls_pad)
    params["linear_w"], params["linear_b"] = make_layer(
        keys[4], basic_input_size, num_classes, basic_input_size, cls_pad)
    return params


# ---------------------------------------------------------------------------
# Forward
# ---------------------------------------------------------------------------
@functools.partial(jax.jit, static_argnames=("num_audio_features",))
def custom_classifier_forward(x, params, *,
                              num_audio_features=NUM_AUDIO_FEATURES):
    batch = x.shape[0]
    batch_p = _round_up(batch, SUBLANE)
    vmem = pl.BlockSpec(memory_space=pltpu.MemorySpace.VMEM)
    cparams = pltpu.CompilerParams(vmem_limit_bytes=32 * 1024 * 1024)

    if num_audio_features == 0:
        w, b = params["linear_w"], params["linear_b"]
        cls_pad = w.shape[1]
        xp = jnp.pad(x, ((0, batch_p - batch), (0, 0)))
        flops = 2 * batch_p * xp.shape[1] * cls_pad
        bytes_accessed = int(xp.size * 4 + w.size * 2 + b.size * 4
                             + batch_p * cls_pad * 4)
        out = pl.pallas_call(
            _linear_kernel,
            out_shape=jax.ShapeDtypeStruct((batch_p, cls_pad), jnp.float32),
            in_specs=[vmem] * 3,
            out_specs=vmem,
            compiler_params=cparams,
            cost_estimate=pl.CostEstimate(flops=flops, transcendentals=0,
                                          bytes_accessed=bytes_accessed),
        )(xp, w, b)
        return out[:batch, :NUM_CLASSES]

    in_pad = params["fc1_w"].shape[0]
    cls_pad = params["fc4_w"].shape[1]
    # Pad batch -> multiple of 8 and features 1793 -> 1920 with zeros.
    xp = jnp.pad(x, ((0, batch_p - batch), (0, in_pad - x.shape[1])))

    args = (xp,
            params["fc1_w"], params["fc1_b"],
            params["fc2_w"], params["fc2_b"],
            params["fc3_w"], params["fc3_b"],
            params["fc4_w"], params["fc4_b"])

    flops = 2 * batch_p * (in_pad * HIDDEN1 + HIDDEN1 * HIDDEN2
                           + HIDDEN2 * HIDDEN3 + HIDDEN3 * cls_pad)
    weight_bytes = sum(int(params[k].size) * params[k].dtype.itemsize
                       for k in ("fc1_w", "fc2_w", "fc3_w", "fc4_w",
                                 "fc1_b", "fc2_b", "fc3_b", "fc4_b"))
    bytes_accessed = int(xp.size * 4 + weight_bytes + batch_p * cls_pad * 4)

    out = pl.pallas_call(
        _mlp_kernel,
        out_shape=jax.ShapeDtypeStruct((batch_p, cls_pad), jnp.float32),
        in_specs=[vmem] * len(args),
        out_specs=vmem,
        compiler_params=cparams,
        cost_estimate=pl.CostEstimate(flops=flops, transcendentals=0,
                                      bytes_accessed=bytes_accessed),
    )(*args)
    return out[:batch, :NUM_CLASSES]


# ---------------------------------------------------------------------------
# Pure-JAX reference (same bf16 weights / bf16-rounded activations so the
# comparison against the kernel is tight).
# ---------------------------------------------------------------------------
def reference_forward(x, params, num_audio_features=NUM_AUDIO_FEATURES):
    def bf16(a):
        return a.astype(jnp.bfloat16).astype(jnp.float32)

    if num_audio_features == 0:
        w = params["linear_w"].astype(jnp.float32)
        out = bf16(x) @ w + params["linear_b"]
        return out[:, :NUM_CLASSES]

    in_pad = params["fc1_w"].shape[0]
    xp = jnp.pad(x, ((0, 0), (0, in_pad - x.shape[1])))
    h = bf16(xp) @ params["fc1_w"].astype(jnp.float32) + params["fc1_b"]
    h = bf16(jnp.maximum(h, 0.0))
    h = h @ params["fc2_w"].astype(jnp.float32) + params["fc2_b"]
    h = bf16(jnp.maximum(h, 0.0))
    h = h @ params["fc3_w"].astype(jnp.float32) + params["fc3_b"]
    h = bf16(jnp.maximum(h, 0.0))
    out = h @ params["fc4_w"].astype(jnp.float32) + params["fc4_b"]
    return out[:, :NUM_CLASSES]


if __name__ == "__main__":
    key = jax.random.PRNGKey(0)
    k_params, k_x, k_x2 = jax.random.split(key, 3)

    params = init_params(k_params)

    # --- MLP path (num_audio_processing_features = 1025) ---
    batch = 2
    in_dim = BASIC_INPUT_SIZE + NUM_AUDIO_FEATURES  # 1793
    x = jax.random.normal(k_x, (batch, in_dim), dtype=jnp.float32)

    out = custom_classifier_forward(x, params)
    out = jax.block_until_ready(out)
    ref = reference_forward(x, params)

    assert out.shape == (batch, NUM_CLASSES), out.shape
    assert jnp.allclose(out, ref, atol=1e-2, rtol=1e-2), \
        float(jnp.max(jnp.abs(out - ref)))

    # --- Linear-only path (num_audio_processing_features = 0) ---
    x2 = jax.random.normal(k_x2, (batch, BASIC_INPUT_SIZE), dtype=jnp.float32)
    out2 = custom_classifier_forward(x2, params, num_audio_features=0)
    out2 = jax.block_until_ready(out2)
    ref2 = reference_forward(x2, params, num_audio_features=0)

    assert out2.shape == (batch, NUM_CLASSES), out2.shape
    assert jnp.allclose(out2, ref2, atol=1e-2, rtol=1e-2), \
        float(jnp.max(jnp.abs(out2 - ref2)))

    print("KERNEL_OK")
</pallas_src>

<mosaic_0001>
module attributes {stable_mosaic.version = 11 : i64} {
  func.func @_mlp_kernel(%arg0: memref<8x1920xf32, #tpu.memory_space<vmem>>, %arg1: memref<1920x1024xbf16, #tpu.memory_space<vmem>>, %arg2: memref<1x1024xf32, #tpu.memory_space<vmem>>, %arg3: memref<1024x512xbf16, #tpu.memory_space<vmem>>, %arg4: memref<1x512xf32, #tpu.memory_space<vmem>>, %arg5: memref<512x256xbf16, #tpu.memory_space<vmem>>, %arg6: memref<1x256xf32, #tpu.memory_space<vmem>>, %arg7: memref<256x128xbf16, #tpu.memory_space<vmem>>, %arg8: memref<1x128xf32, #tpu.memory_space<vmem>>, %arg9: memref<8x128xf32, #tpu.memory_space<vmem>>) attributes {dimension_semantics = [], scalar_prefetch = 0 : i64, scratch_operands = 0 : i64, tpu.core_type = #tpu.core_type<tc>} {
    %c0 = arith.constant 0 : index
    %c0_0 = arith.constant 0 : index
    %0 = vector.load %arg0[%c0, %c0_0] : memref<8x1920xf32, #tpu.memory_space<vmem>>, vector<8x1920xf32>
    %1 = arith.truncf %0 : vector<8x1920xf32> to vector<8x1920xbf16>
    %c0_1 = arith.constant 0 : index
    %c0_2 = arith.constant 0 : index
    %2 = vector.load %arg1[%c0_1, %c0_2] : memref<1920x1024xbf16, #tpu.memory_space<vmem>>, vector<1920x1024xbf16>
    %cst = arith.constant dense<0.000000e+00> : vector<8x1024xf32>
    %3 = tpu.matmul %1, %2, %cst {dimension_numbers = #tpu.dot_dimension_numbers<[1], [0], [0], [1], [0, 0, 1, 1], [], []>} : vector<8x1920xbf16>, vector<1920x1024xbf16>, vector<8x1024xf32> -> vector<8x1024xf32>
    %c0_3 = arith.constant 0 : index
    %c0_4 = arith.constant 0 : index
    %4 = vector.load %arg2[%c0_3, %c0_4] : memref<1x1024xf32, #tpu.memory_space<vmem>>, vector<1x1024xf32>
    %5 = vector.broadcast %4 : vector<1x1024xf32> to vector<8x1024xf32>
    %6 = arith.addf %3, %5 : vector<8x1024xf32>
    %cst_5 = arith.constant 0.000000e+00 : f32
    %7 = vector.broadcast %cst_5 : f32 to vector<8x1024xf32>
    %8 = arith.maximumf %6, %7 : vector<8x1024xf32>
    %9 = arith.truncf %8 : vector<8x1024xf32> to vector<8x1024xbf16>
    %c0_6 = arith.constant 0 : index
    %c0_7 = arith.constant 0 : index
    %10 = vector.load %arg3[%c0_6, %c0_7] : memref<1024x512xbf16, #tpu.memory_space<vmem>>, vector<1024x512xbf16>
    %cst_8 = arith.constant dense<0.000000e+00> : vector<8x512xf32>
    %11 = tpu.matmul %9, %10, %cst_8 {dimension_numbers = #tpu.dot_dimension_numbers<[1], [0], [0], [1], [0, 0, 1, 1], [], []>} : vector<8x1024xbf16>, vector<1024x512xbf16>, vector<8x512xf32> -> vector<8x512xf32>
    %c0_9 = arith.constant 0 : index
    %c0_10 = arith.constant 0 : index
    %12 = vector.load %arg4[%c0_9, %c0_10] : memref<1x512xf32, #tpu.memory_space<vmem>>, vector<1x512xf32>
    %13 = vector.broadcast %12 : vector<1x512xf32> to vector<8x512xf32>
    %14 = arith.addf %11, %13 : vector<8x512xf32>
    %cst_11 = arith.constant 0.000000e+00 : f32
    %15 = vector.broadcast %cst_11 : f32 to vector<8x512xf32>
    %16 = arith.maximumf %14, %15 : vector<8x512xf32>
    %17 = arith.truncf %16 : vector<8x512xf32> to vector<8x512xbf16>
    %c0_12 = arith.constant 0 : index
    %c0_13 = arith.constant 0 : index
    %18 = vector.load %arg5[%c0_12, %c0_13] : memref<512x256xbf16, #tpu.memory_space<vmem>>, vector<512x256xbf16>
    %cst_14 = arith.constant dense<0.000000e+00> : vector<8x256xf32>
    %19 = tpu.matmul %17, %18, %cst_14 {dimension_numbers = #tpu.dot_dimension_numbers<[1], [0], [0], [1], [0, 0, 1, 1], [], []>} : vector<8x512xbf16>, vector<512x256xbf16>, vector<8x256xf32> -> vector<8x256xf32>
    %c0_15 = arith.constant 0 : index
    %c0_16 = arith.constant 0 : index
    %20 = vector.load %arg6[%c0_15, %c0_16] : memref<1x256xf32, #tpu.memory_space<vmem>>, vector<1x256xf32>
    %21 = vector.broadcast %20 : vector<1x256xf32> to vector<8x256xf32>
    %22 = arith.addf %19, %21 : vector<8x256xf32>
    %cst_17 = arith.constant 0.000000e+00 : f32
    %23 = vector.broadcast %cst_17 : f32 to vector<8x256xf32>
    %24 = arith.maximumf %22, %23 : vector<8x256xf32>
    %25 = arith.truncf %24 : vector<8x256xf32> to vector<8x256xbf16>
    %c0_18 = arith.constant 0 : index
    %c0_19 = arith.constant 0 : index
    %26 = vector.load %arg7[%c0_18, %c0_19] : memref<256x128xbf16, #tpu.memory_space<vmem>>, vector<256x128xbf16>
    %cst_20 = arith.constant dense<0.000000e+00> : vector<8x128xf32>
    %27 = tpu.matmul %25, %26, %cst_20 {dimension_numbers = #tpu.dot_dimension_numbers<[1], [0], [0], [1], [0, 0, 1, 1], [], []>} : vector<8x256xbf16>, vector<256x128xbf16>, vector<8x128xf32> -> vector<8x128xf32>
    %c0_21 = arith.constant 0 : index
    %c0_22 = arith.constant 0 : index
    %28 = vector.load %arg8[%c0_21, %c0_22] : memref<1x128xf32, #tpu.memory_space<vmem>>, vector<1x128xf32>
    %29 = vector.broadcast %28 : vector<1x128xf32> to vector<8x128xf32>
    %30 = arith.addf %27, %29 : vector<8x128xf32>
    %c0_23 = arith.constant 0 : index
    %c0_24 = arith.constant 0 : index
    %31 = vector.load %arg9[%c0_23, %c0_24] : memref<8x128xf32, #tpu.memory_space<vmem>>, vector<8x128xf32>
    tpu.vector_store %arg9[%c0_23, %c0_24], %30 {strides = array<i32>} : memref<8x128xf32, #tpu.memory_space<vmem>>, vector<8x128xf32>,
    return
  }
}

</mosaic_0001>

<bundles_post_ra>
// kernel: custom_classifier_forward.1
= control target key start
LH: loop header
LB: loop body
LE: loop exit
PB: predicated region body
PF: predicated region fallthrough
CT: control target
= control target key end

     0   :  { %14 = vsyncpa [#allocation3], 0  ;;  %s17406_s0 = inlined_call_operand.vmem [shape: f32[8,1920], index: 0, kind: input, shape index: {}]   ;;  %s17407_s1 = inlined_call_operand.hbm [shape: bf16[1920,1024], index: 1, kind: input, shape index: {}]   ;;  %s17408_s2 = inlined_call_operand.hbm [shape: f32[1,1024], index: 2, kind: input, shape index: {}]   ;;  %s17409_s3 = inlined_call_operand.hbm [shape: bf16[1024,512], index: 3, kind: input, shape index: {}]   ;;  %s17410_s4 = inlined_call_operand.hbm [shape: f32[1,512], index: 4, kind: input, shape index: {}]   ;;  %s17411_s5 = inlined_call_operand.hbm [shape: bf16[512,256], index: 5, kind: input, shape index: {}]   ;;  %s17412_s6 = inlined_call_operand.hbm [shape: f32[1,256], index: 6, kind: input, shape index: {}]   ;;  %s17413_s7 = inlined_call_operand.hbm [shape: bf16[256,128], index: 7, kind: input, shape index: {}]   ;;  %s17414_s8 = inlined_call_operand.hbm [shape: f32[1,128], index: 8, kind: input, shape index: {}]   ;;  %s17415_s9 = inlined_call_operand.vmem [shape: f32[8,128], index: 9, kind: output, shape index: {}]  }
   0x1   :  { %15 = vsyncpa [#allocation5], 0 }
   0x2   :  { %16 = vsyncpa [#allocation8], 0 }
   0x3   :  { %17 = vsyncpa [#allocation11], 0  ;;  %s39_s11 = sshll.u32 %s17408_s2, 4  ;;  %s40_s11 = int_to_ptr.hbm [resolvable:$true] %s39_s11 }
   0x4   :  { %18 = vsyncpa [#allocation14], 0  ;;  %s16874_s12 = smov [#allocation4]   ;;  %s63_s16 = sshll.u32 %s17410_s4, 4  ;;  %s64_s16 = int_to_ptr.hbm [resolvable:$true] %s63_s16 }
   0x5   :  { %s41_s13 = sshll.u32 %s16874_s12, 4  ;;  %s16875_s17 = smov [#allocation7]   ;;  %s42_s13 = int_to_ptr.vmem [resolvable:$true] %s41_s13 }
   0x6   :  { %44 = dma.hbm_to_vmem [thread:$0]  %s40_s11, 128, %s42_s13, [#allocation5]  }
   0x7   :  { %s65_s18 = sshll.u32 %s16875_s17, 4  ;;  %s87_s21 = sshll.u32 %s17412_s6, 4  ;;  %s66_s18 = int_to_ptr.vmem [resolvable:$true] %s65_s18  ;;  %s88_s21 = int_to_ptr.hbm [resolvable:$true] %s87_s21 }
   0x8   :  { %68 = dma.hbm_to_vmem [thread:$0]  %s64_s16, 64, %s66_s18, [#allocation8]  }
   0x9   :  { %s25_s23 = sshll.u32 %s17407_s1, 4  ;;  %s16876_s24 = smov [#allocation10]   ;;  %s26_s23 = int_to_ptr.hbm [resolvable:$true] %s25_s23 }
   0xa   :  { %s89_s25 = sshll.u32 %s16876_s24, 4  ;;  %s16877_s4 = smov [#allocation2]   ;;  %s90_s25 = int_to_ptr.vmem [resolvable:$true] %s89_s25 }
   0xb   :  { %92 = dma.hbm_to_vmem [thread:$0]  %s88_s21, 32, %s90_s25, [#allocation11]  }
   0xc   :  { %s27_s26 = sshll.u32 %s16877_s4, 4  ;;  %s16878_s27 = smov 512   ;;  %s28_s26 = int_to_ptr.vmem [resolvable:$true] %s27_s26 }
   0xd   :  { %s16879_s28 = smov 32   ;;  %s49_s30 = sshll.u32 %s17409_s3, 4  ;;  %s50_s30 = int_to_ptr.hbm [resolvable:$true] %s49_s30 }
   0xe   :  { %33 = dma.hbm_to_vmem [thread:$0]  %s26_s23, 122880, %s28_s26, [#allocation3], %s16878_s27, %s16878_s27, %s16879_s28  }
   0xf   :  { %s16880_s10 = smov [#allocation6]   ;;  %s73_s13 = sshll.u32 %s17411_s5, 4  ;;  %s74_s13 = int_to_ptr.hbm [resolvable:$true] %s73_s13 }
  0x10   :  { %s51_s11 = sshll.u32 %s16880_s10, 4  ;;  %s16881_s14 = smov 256   ;;  %s52_s11 = int_to_ptr.vmem [resolvable:$true] %s51_s11 }
  0x11   :  { %s16882_s15 = smov 16   ;;  %s16883_s16 = smov [#allocation9]  }
  0x12   :  { %57 = dma.hbm_to_vmem [thread:$0]  %s50_s30, 32768, %s52_s11, [#allocation5], %s16881_s14, %s16881_s14, %s16882_s15  }
  0x13   :  { %s75_s17 = sshll.u32 %s16883_s16, 4  ;;  %s16884_s18 = smov 128   ;;  %s76_s17 = int_to_ptr.vmem [resolvable:$true] %s75_s17 }
  0x14   :  { %s16885_s19 = smov 8   ;;  %s97_s21 = sshll.u32 %s17413_s7, 4  ;;  %s98_s21 = int_to_ptr.hbm [resolvable:$true] %s97_s21 }
  0x15   :  { %81 = dma.hbm_to_vmem [thread:$0]  %s74_s13, 8192, %s76_s17, [#allocation8], %s16884_s18, %s16884_s18, %s16885_s19  }
  0x16   :  { %s16886_s2 = smov [#allocation12]   ;;  %s111_s24 = sshll.u32 %s17414_s8, 4  ;;  %s112_s24 = int_to_ptr.hbm [resolvable:$true] %s111_s24 }
  0x17   :  { %s99_s22 = sshll.u32 %s16886_s2, 4  ;;  %s16887_s25 = smov 64   ;;  %s100_s22 = int_to_ptr.vmem [resolvable:$true] %s99_s22 }
  0x18   :  { %s16888_s4 = smov 4   ;;  %s16889_s26 = smov [#allocation13]  }
  0x19   :  { %105 = dma.hbm_to_vmem [thread:$0]  %s98_s21, 2048, %s100_s22, [#allocation11], %s16887_s25, %s16887_s25, %s16888_s4  }
  0x1a   :  { %s113_s27 = sshll.u32 %s16889_s26, 4  ;;  %s114_s27 = int_to_ptr.vmem [resolvable:$true] %s113_s27 }
  0x1b   :  { %116 = dma.hbm_to_vmem [thread:$0]  %s112_s24, 16, %s114_s27, [#allocation14]  }
  0x1c   :  { %16864 = dma.done.wait [#allocation3], 122880  }
  0x1d   :  { %16865 = vsyncadd [#allocation3], 4294844416 }
  0x1e   :  { %16866 = dma.done.wait [#allocation5], 32896  }
  0x1f   :  { %16867 = vsyncadd [#allocation5], 4294934400 }
  0x20   :  { %16868 = dma.done.wait [#allocation8], 8256  }
  0x21   :  { %16869 = vsyncadd [#allocation8], 4294959040 }
  0x22   :  { %16870 = dma.done.wait [#allocation11], 2080  }
  0x23   :  { %16871 = vsyncadd [#allocation11], 4294965216 }
  0x24   :  { %16872 = dma.done.wait [#allocation14], 16  }
  0x25   :  { %16873 = vsyncadd [#allocation14], 4294967280  ;;  %v10395_v0 = vld [vmem:[#allocation2 + $0x1c0] sm:$0xf] }
  0x26   :  { %v15413_v1 = vld [vmem:[#allocation2 + $0x1dc] sm:$0xf0] }
  0x27   :  { %v10651_v2 = vld [vmem:[#allocation2 + $0x3c0] sm:$0xf]  ;;  %v10396_v3 = vor.u32 %v15413_v1, %v10395_v0 }
  0x28   :  { %v15477_v4 = vld [vmem:[#allocation2 + $0x3dc] sm:$0xf0] }
  0x29   :  { %v10907_v5 = vld [vmem:[#allocation2 + $0x5c0] sm:$0xf]  ;;  %v10652_v7 = vor.u32 %v15477_v4, %v10651_v2  ;;  %5957 = vmatpush.bf16.msra.mxu0 %v10396_v3 }
  0x2a   :  { %v15541_v6 = vld [vmem:[#allocation2 + $0x5dc] sm:$0xf0] }
  0x2b   :  { %v10908_v8 = vor.u32 %v15541_v6, %v10907_v5  ;;  %v11163_v9 = vld [vmem:[#allocation2 + $0x7c0] sm:$0xf]  ;;  %5970 = vmatpush.bf16.msra.mxu1 %v10652_v7 }
  0x2c   :  { %v15605_v10 = vld [vmem:[#allocation2 + $0x7dc] sm:$0xf0] }
  0x2d   :  { %v10363_v11 = vld [vmem:[#allocation2 + $0x180] sm:$0xf]  ;;  %v11164_v12 = vor.u32 %v15605_v10, %v11163_v9  ;;  %5983 = vmatpush.bf16.msra.mxu2 %v10908_v8 }
  0x2e   :  { %v15405_v13 = vld [vmem:[#allocation2 + $0x19c] sm:$0xf0] }
  0x2f   :  { %v10619_v14 = vld [vmem:[#allocation2 + $0x380] sm:$0xf]  ;;  %v10364_v16 = vor.u32 %v15405_v13, %v10363_v11  ;;  %5996 = vmatpush.bf16.msra.mxu3 %v11164_v12 }
  0x30   :  { %v15469_v15 = vld [vmem:[#allocation2 + $0x39c] sm:$0xf0] }
  0x31   :  { %v10620_v17 = vor.u32 %v15469_v15, %v10619_v14  ;;  %v10875_v18 = vld [vmem:[#allocation2 + $0x580] sm:$0xf]  ;;  %5958 = vmatpush.bf16.msra.mxu0 %v10364_v16 }
  0x32   :  { %v15533_v19 = vld [vmem:[#allocation2 + $0x59c] sm:$0xf0] }
  0x33   :  { %v11131_v20 = vld [vmem:[#allocation2 + $0x780] sm:$0xf]  ;;  %v10876_v21 = vor.u32 %v15533_v19, %v10875_v18  ;;  %5971 = vmatpush.bf16.msra.mxu1 %v10620_v17 }
  0x34   :  { %v15597_v22 = vld [vmem:[#allocation2 + $0x79c] sm:$0xf0] }
  0x35   :  { %v10331_v23 = vld [vmem:[#allocation2 + $0x140] sm:$0xf]  ;;  %v11132_v25 = vor.u32 %v15597_v22, %v11131_v20  ;;  %5984 = vmatpush.bf16.msra.mxu2 %v10876_v21 }
  0x36   :  { %v15397_v24 = vld [vmem:[#allocation2 + $0x15c] sm:$0xf0] }
  0x37   :  { %v10587_v26 = vld [vmem:[#allocation2 + $0x340] sm:$0xf]  ;;  %v10332_v29 = vor.u32 %v15397_v24, %v10331_v23  ;;  %5997 = vmatpush.bf16.msra.mxu3 %v11132_v25 }
  0x38   :  { %v15461_v27 = vld [vmem:[#allocation2 + $0x35c] sm:$0xf0] }
  0x39   :  { %v10843_v28 = vld [vmem:[#allocation2 + $0x540] sm:$0xf]  ;;  %v10588_v33 = vor.u32 %v15461_v27, %v10587_v26  ;;  %5959 = vmatpush.bf16.msra.mxu0 %v10332_v29 }
  0x3a   :  { %v15525_v30 = vld [vmem:[#allocation2 + $0x55c] sm:$0xf0] }
  0x3b   :  { %v11099_v31 = vld [vmem:[#allocation2 + $0x740] sm:$0xf]  ;;  %v10844_v34 = vor.u32 %v15525_v30, %v10843_v28  ;;  %5972 = vmatpush.bf16.msra.mxu1 %v10588_v33 }
  0x3c   :  { %v15589_v32 = vld [vmem:[#allocation2 + $0x75c] sm:$0xf0] }
  0x3d   :  { %v10299_v35 = vld [vmem:[#allocation2 + $0x100] sm:$0xf]  ;;  %v11100_v38 = vor.u32 %v15589_v32, %v11099_v31  ;;  %5985 = vmatpush.bf16.msra.mxu2 %v10844_v34 }
  0x3e   :  { %v15389_v36 = vld [vmem:[#allocation2 + $0x11c] sm:$0xf0] }
  0x3f   :  { %v10555_v37 = vld [vmem:[#allocation2 + $0x300] sm:$0xf]  ;;  %v10300_v44 = vor.u32 %v15389_v36, %v10299_v35  ;;  %5998 = vmatpush.bf16.msra.mxu3 %v11100_v38 }
  0x40   :  { %v15453_v39 = vld [vmem:[#allocation2 + $0x31c] sm:$0xf0] }
  0x41   :  { %v10811_v40 = vld [vmem:[#allocation2 + $0x500] sm:$0xf]  ;;  %v10556_v45 = vor.u32 %v15453_v39, %v10555_v37  ;;  %5960 = vmatpush.bf16.msra.mxu0 %v10300_v44 }
  0x42   :  { %v15517_v41 = vld [vmem:[#allocation2 + $0x51c] sm:$0xf0] }
  0x43   :  { %v11067_v42 = vld [vmem:[#allocation2 + $0x700] sm:$0xf]  ;;  %v10812_v46 = vor.u32 %v15517_v41, %v10811_v40  ;;  %5973 = vmatpush.bf16.msra.mxu1 %v10556_v45 }
  0x44   :  { %v15581_v43 = vld [vmem:[#allocation2 + $0x71c] sm:$0xf0] }
  0x45   :  { %v10267_v47 = vld [vmem:[#allocation2 + $0xc0] sm:$0xf]  ;;  %v11068_v50 = vor.u32 %v15581_v43, %v11067_v42  ;;  %5986 = vmatpush.bf16.msra.mxu2 %v10812_v46 }
  0x46   :  { %v15381_v48 = vld [vmem:[#allocation2 + $0xdc] sm:$0xf0] }
  0x47   :  { %v10523_v49 = vld [vmem:[#allocation2 + $0x2c0] sm:$0xf]  ;;  %v10268_v56 = vor.u32 %v15381_v48, %v10267_v47  ;;  %5999 = vmatpush.bf16.msra.mxu3 %v11068_v50 }
  0x48   :  { %v15445_v51 = vld [vmem:[#allocation2 + $0x2dc] sm:$0xf0] }
  0x49   :  { %v10779_v52 = vld [vmem:[#allocation2 + $0x4c0] sm:$0xf]  ;;  %v10524_v57 = vor.u32 %v15445_v51, %v10523_v49  ;;  %5961 = vmatpush.bf16.msra.mxu0 %v10268_v56 }
  0x4a   :  { %v15509_v53 = vld [vmem:[#allocation2 + $0x4dc] sm:$0xf0] }
  0x4b   :  { %v11035_v54 = vld [vmem:[#allocation2 + $0x6c0] sm:$0xf]  ;;  %v10780_v58 = vor.u32 %v15509_v53, %v10779_v52  ;;  %5974 = vmatpush.bf16.msra.mxu1 %v10524_v57 }
  0x4c   :  { %v15573_v55 = vld [vmem:[#allocation2 + $0x6dc] sm:$0xf0] }
  0x4d   :  { %v10235_v59 = vld [vmem:[#allocation2 + $0x80] sm:$0xf]  ;;  %v11036_v62 = vor.u32 %v15573_v55, %v11035_v54  ;;  %5987 = vmatpush.bf16.msra.mxu2 %v10780_v58 }
  0x4e   :  { %v15373_v60 = vld [vmem:[#allocation2 + $0x9c] sm:$0xf0] }
  0x4f   :  { %v10491_v61 = vld [vmem:[#allocation2 + $0x280] sm:$0xf]  ;;  %v10236_v4 = vor.u32 %v15373_v60, %v10235_v59  ;;  %6000 = vmatpush.bf16.msra.mxu3 %v11036_v62 }
  0x50   :  { %v15437_v63 = vld [vmem:[#allocation2 + $0x29c] sm:$0xf0] }
  0x51   :  { %v10747_v0 = vld [vmem:[#allocation2 + $0x480] sm:$0xf]  ;;  %v10492_v5 = vor.u32 %v15437_v63, %v10491_v61  ;;  %5962 = vmatpush.bf16.msra.mxu0 %v10236_v4 }
  0x52   :  { %v15501_v1 = vld [vmem:[#allocation2 + $0x49c] sm:$0xf0] }
  0x53   :  { %v11003_v2 = vld [vmem:[#allocation2 + $0x680] sm:$0xf]  ;;  %v10748_v6 = vor.u32 %v15501_v1, %v10747_v0  ;;  %5975 = vmatpush.bf16.msra.mxu1 %v10492_v5 }
  0x54   :  { %v15565_v3 = vld [vmem:[#allocation2 + $0x69c] sm:$0xf0] }
  0x55   :  { %v10203_v7 = vld [vmem:[#allocation2 + $0x40] sm:$0xf]  ;;  %v11004_v10 = vor.u32 %v15565_v3, %v11003_v2  ;;  %5988 = vmatpush.bf16.msra.mxu2 %v10748_v6  ;;  %v151_v3 = vld [vmem:[%s17406_s0 + $0x10] sm:$0xff] }
  0x56   :  { %v15365_v8 = vld [vmem:[#allocation2 + $0x5c] sm:$0xf0] }
  0x57   :  { %v10459_v9 = vld [vmem:[#allocation2 + $0x240] sm:$0xf]  ;;  %v10204_v16 = vor.u32 %v15365_v8, %v10203_v7  ;;  %6001 = vmatpush.bf16.msra.mxu3 %v11004_v10  ;;  %v16970_v8 = vpack.c.bf16 %v151_v3, %v151_v3  ;;  %v152_v10 = vld [vmem:[%s17406_s0 + $0x18] sm:$0xff] }
  0x58   :  { %v15429_v11 = vld [vmem:[#allocation2 + $0x25c] sm:$0xf0] }
  0x59   :  { %v10715_v12 = vld [vmem:[#allocation2 + $0x440] sm:$0xf]  ;;  %v10460_v19 = vor.u32 %v15429_v11, %v10459_v9  ;;  %5963 = vmatpush.bf16.msra.mxu0 %v10204_v16 }
  0x5a   :  { %v15493_v13 = vld [vmem:[#allocation2 + $0x45c] sm:$0xf0] }
  0x5b   :  { %v10971_v14 = vld [vmem:[#allocation2 + $0x640] sm:$0xf]  ;;  %v10716_v20 = vor.u32 %v15493_v13, %v10715_v12  ;;  %5976 = vmatpush.bf16.msra.mxu1 %v10460_v19  ;;  %v150_v19 = vld [vmem:[%s17406_s0 + $0x8] sm:$0xff] }
  0x5c   :  { %v15557_v15 = vld [vmem:[#allocation2 + $0x65c] sm:$0xf0] }
  0x5d   :  { %v10171_v17 = vld [vmem:[#allocation2] sm:$0xf]  ;;  %v10972_v24 = vor.u32 %v15557_v15, %v10971_v14  ;;  %5989 = vmatpush.bf16.msra.mxu2 %v10716_v20  ;;  %v16977_v15 = vpack.c.bf16 %v152_v10, %v152_v10 }
  0x5e   :  { %v15357_v18 = vld [vmem:[#allocation2 + $0x1c] sm:$0xf0] }
  0x5f   :  { %v10427_v21 = vld [vmem:[#allocation2 + $0x200] sm:$0xf]  ;;  %v10172_v31 = vor.u32 %v15357_v18, %v10171_v17  ;;  %6002 = vmatpush.bf16.msra.mxu3 %v10972_v24 }
  0x60   :  { %v15421_v22 = vld [vmem:[#allocation2 + $0x21c] sm:$0xf0] }
  0x61   :  { %v10683_v23 = vld [vmem:[#allocation2 + $0x400] sm:$0xf]  ;;  %v10428_v35 = vor.u32 %v15421_v22, %v10427_v21  ;;  %5964 = vmatpush.bf16.msra.mxu0 %v10172_v31 }
  0x62   :  { %v15485_v25 = vld [vmem:[#allocation2 + $0x41c] sm:$0xf0] }
  0x63   :  { %v10939_v26 = vld [vmem:[#allocation2 + $0x600] sm:$0xf]  ;;  %v10684_v36 = vor.u32 %v15485_v25, %v10683_v23  ;;  %5977 = vmatpush.bf16.msra.mxu1 %v10428_v35  ;;  %v16985_v25 = vpack.c.bf16 %v150_v19, %v150_v19 }
  0x64   :  { %v15549_v27 = vld [vmem:[#allocation2 + $0x61c] sm:$0xf0] }
  0x65   :  { %v11419_v28 = vld [vmem:[#allocation2 + $0x9c0] sm:$0xf]  ;;  %v10940_v39 = vor.u32 %v15549_v27, %v10939_v26  ;;  %5990 = vmatpush.bf16.msra.mxu2 %v10684_v36 }
  0x66   :  { %v15669_v29 = vld [vmem:[#allocation2 + $0x9dc] sm:$0xf0]  ;;  %5978 = vmatmul.bf16.vlgmr.msra.gmra.mxu1 %v16985_v25 }
  0x67   :  { %v11675_v30 = vld [vmem:[#allocation2 + $0xbc0] sm:$0xf]  ;;  %v11420_v40 = vor.u32 %v15669_v29, %v11419_v28  ;;  %6003 = vmatpush.bf16.msra.mxu3 %v10940_v39 }
  0x68   :  { %v15733_v32 = vld [vmem:[#allocation2 + $0xbdc] sm:$0xf0]  ;;  %5991 = vmatmul.bf16.vlgmr.msra.gmra.mxu2 %v16970_v8 }
  0x69   :  { %v11931_v33 = vld [vmem:[#allocation2 + $0xdc0] sm:$0xf]  ;;  %v11676_v41 = vor.u32 %v15733_v32, %v11675_v30  ;;  %6009 = vmatpush.bf16.msrb.mxu0 %v11420_v40 }
  0x6a   :  { %v15797_v34 = vld [vmem:[#allocation2 + $0xddc] sm:$0xf0]  ;;  %6004 = vmatmul.bf16.vlgmr.msra.gmra.mxu3 %v16977_v15 }
  0x6b   :  { %v12187_v37 = vld [vmem:[#allocation2 + $0xfc0] sm:$0xf]  ;;  %v11932_v42 = vor.u32 %v15797_v34, %v11931_v33  ;;  %6022 = vmatpush.bf16.msrb.mxu1 %v11676_v41 }
  0x6c   :  { %v15861_v38 = vld [vmem:[#allocation2 + $0xfdc] sm:$0xf0] }
  0x6d   :  { %v11387_v43 = vld [vmem:[#allocation2 + $0x980] sm:$0xf]  ;;  %v12188_v46 = vor.u32 %v15861_v38, %v12187_v37  ;;  %6035 = vmatpush.bf16.msrb.mxu2 %v11932_v42 }
  0x6e   :  { %v15661_v44 = vld [vmem:[#allocation2 + $0x99c] sm:$0xf0] }
  0x6f   :  { %v11643_v45 = vld [vmem:[#allocation2 + $0xb80] sm:$0xf]  ;;  %v11388_v52 = vor.u32 %v15661_v44, %v11387_v43  ;;  %6048 = vmatpush.bf16.msrb.mxu3 %v12188_v46 }
  0x70   :  { %v15725_v47 = vld [vmem:[#allocation2 + $0xb9c] sm:$0xf0] }
  0x71   :  { %v11899_v48 = vld [vmem:[#allocation2 + $0xd80] sm:$0xf]  ;;  %v11644_v54 = vor.u32 %v15725_v47, %v11643_v45  ;;  %6010 = vmatpush.bf16.msrb.mxu0 %v11388_v52 }
  0x72   :  { %v15789_v49 = vld [vmem:[#allocation2 + $0xd9c] sm:$0xf0] }
  0x73   :  { %v12155_v50 = vld [vmem:[#allocation2 + $0xf80] sm:$0xf]  ;;  %v11900_v55 = vor.u32 %v15789_v49, %v11899_v48  ;;  %6023 = vmatpush.bf16.msrb.mxu1 %v11644_v54 }
  0x74   :  { %v15853_v51 = vld [vmem:[#allocation2 + $0xf9c] sm:$0xf0] }
  0x75   :  { %v11355_v53 = vld [vmem:[#allocation2 + $0x940] sm:$0xf]  ;;  %v12156_v59 = vor.u32 %v15853_v51, %v12155_v50  ;;  %6036 = vmatpush.bf16.msrb.mxu2 %v11900_v55 }
  0x76   :  { %v15653_v56 = vld [vmem:[#allocation2 + $0x95c] sm:$0xf0] }
  0x77   :  { %v11611_v57 = vld [vmem:[#allocation2 + $0xb40] sm:$0xf]  ;;  %v11356_v0 = vor.u32 %v15653_v56, %v11355_v53  ;;  %6049 = vmatpush.bf16.msrb.mxu3 %v12156_v59 }
  0x78   :  { %v15717_v58 = vld [vmem:[#allocation2 + $0xb5c] sm:$0xf0] }
  0x79   :  { %v11867_v60 = vld [vmem:[#allocation2 + $0xd40] sm:$0xf]  ;;  %v11612_v1 = vor.u32 %v15717_v58, %v11611_v57  ;;  %6011 = vmatpush.bf16.msrb.mxu0 %v11356_v0 }
  0x7a   :  { %v15781_v61 = vld [vmem:[#allocation2 + $0xd5c] sm:$0xf0] }
  0x7b   :  { %v12123_v62 = vld [vmem:[#allocation2 + $0xf40] sm:$0xf]  ;;  %v11868_v5 = vor.u32 %v15781_v61, %v11867_v60  ;;  %6024 = vmatpush.bf16.msrb.mxu1 %v11612_v1 }
  0x7c   :  { %v15845_v63 = vld [vmem:[#allocation2 + $0xf5c] sm:$0xf0] }
  0x7d   :  { %v11323_v2 = vld [vmem:[#allocation2 + $0x900] sm:$0xf]  ;;  %v12124_v11 = vor.u32 %v15845_v63, %v12123_v62  ;;  %6037 = vmatpush.bf16.msrb.mxu2 %v11868_v5 }
  0x7e   :  { %v149_v4 = vld [vmem:[%s17406_s0] sm:$0xff] }
  0x7f   :  { %v15645_v6 = vld [vmem:[#allocation2 + $0x91c] sm:$0xf0]  ;;  %v16972_v9 = vpack.c.bf16 %v149_v4, %v149_v4  ;;  %6050 = vmatpush.bf16.msrb.mxu3 %v12124_v11 }
  0x80   :  { %v11579_v7 = vld [vmem:[#allocation2 + $0xb00] sm:$0xf]  ;;  %v11324_v18 = vor.u32 %v15645_v6, %v11323_v2 }
  0x81   :  { %v15709_v12 = vld [vmem:[#allocation2 + $0xb1c] sm:$0xf0]  ;;  %5965 = vmatmul.bf16.vlgmr.msra.gmra.mxu0 %v16972_v9 }
  0x82   :  { %v11835_v13 = vld [vmem:[#allocation2 + $0xd00] sm:$0xf]  ;;  %v11580_v20 = vor.u32 %v15709_v12, %v11579_v7  ;;  %6012 = vmatpush.bf16.msrb.mxu0 %v11324_v18  ;;  %v155_v18 = vld [vmem:[%s17406_s0 + $0x30] sm:$0xff] }
  0x83   :  { %v15773_v14 = vld [vmem:[#allocation2 + $0xd1c] sm:$0xf0] }
  0x84   :  { %v12091_v16 = vld [vmem:[#allocation2 + $0xf00] sm:$0xf]  ;;  %v11836_v21 = vor.u32 %v15773_v14, %v11835_v13  ;;  %6025 = vmatpush.bf16.msrb.mxu1 %v11580_v20 }
  0x85   :  { %v15837_v17 = vld [vmem:[#allocation2 + $0xf1c] sm:$0xf0] }
  0x86   :  { %v11291_v22 = vld [vmem:[#allocation2 + $0x8c0] sm:$0xf]  ;;  %v12092_v26 = vor.u32 %v15837_v17, %v12091_v16  ;;  %6038 = vmatpush.bf16.msrb.mxu2 %v11836_v21 }
  0x87   :  { %v15637_v23 = vld [vmem:[#allocation2 + $0x8dc] sm:$0xf0] }
  0x88   :  { %v11547_v24 = vld [vmem:[#allocation2 + $0xac0] sm:$0xf]  ;;  %v11292_v32 = vor.u32 %v15637_v23, %v11291_v22  ;;  %6051 = vmatpush.bf16.msrb.mxu3 %v12092_v26  ;;  %v156_v23 = vld [vmem:[%s17406_s0 + $0x38] sm:$0xff] }
  0x89   :  { %v15701_v27 = vld [vmem:[#allocation2 + $0xadc] sm:$0xf0] }
  0x8a   :  { %v11803_v28 = vld [vmem:[#allocation2 + $0xcc0] sm:$0xf]  ;;  %v11548_v33 = vor.u32 %v15701_v27, %v11547_v24  ;;  %6013 = vmatpush.bf16.msrb.mxu0 %v11292_v32 }
  0x8b   :  { %v15765_v29 = vld [vmem:[#allocation2 + $0xcdc] sm:$0xf0] }
  0x8c   :  { %v12059_v30 = vld [vmem:[#allocation2 + $0xec0] sm:$0xf]  ;;  %v11804_v34 = vor.u32 %v15765_v29, %v11803_v28  ;;  %6026 = vmatpush.bf16.msrb.mxu1 %v11548_v33  ;;  %v154_v29 = vld [vmem:[%s17406_s0 + $0x28] sm:$0xff] }
  0x8d   :  { %v15829_v31 = vld [vmem:[#allocation2 + $0xedc] sm:$0xf0] }
  0x8e   :  { %v11259_v35 = vld [vmem:[#allocation2 + $0x880] sm:$0xf]  ;;  %v12060_v38 = vor.u32 %v15829_v31, %v12059_v30  ;;  %6039 = vmatpush.bf16.msrb.mxu2 %v11804_v34  ;;  %v17000_v34 = vpack.c.bf16 %v155_v18, %v155_v18 }
  0x8f   :  { %v15629_v36 = vld [vmem:[#allocation2 + $0x89c] sm:$0xf0] }
  0x90   :  { %v11515_v37 = vld [vmem:[#allocation2 + $0xa80] sm:$0xf]  ;;  %v11260_v44 = vor.u32 %v15629_v36, %v11259_v35  ;;  %6052 = vmatpush.bf16.msrb.mxu3 %v12060_v38  ;;  %v17004_v38 = vpack.c.bf16 %v156_v23, %v156_v23 }
  0x91   :  { %v15693_v39 = vld [vmem:[#allocation2 + $0xa9c] sm:$0xf0] }
  0x92   :  { %v11771_v40 = vld [vmem:[#allocation2 + $0xc80] sm:$0xf]  ;;  %v11516_v45 = vor.u32 %v15693_v39, %v11515_v37  ;;  %6014 = vmatpush.bf16.msrb.mxu0 %v11260_v44 }
  0x93   :  { %v15757_v41 = vld [vmem:[#allocation2 + $0xc9c] sm:$0xf0] }
  0x94   :  { %v12027_v42 = vld [vmem:[#allocation2 + $0xe80] sm:$0xf]  ;;  %v11772_v46 = vor.u32 %v15757_v41, %v11771_v40  ;;  %6027 = vmatpush.bf16.msrb.mxu1 %v11516_v45  ;;  %v17006_v40 = vpack.c.bf16 %v154_v29, %v154_v29 }
  0x95   :  { %v15821_v43 = vld [vmem:[#allocation2 + $0xe9c] sm:$0xf0] }
  0x96   :  { %v11227_v47 = vld [vmem:[#allocation2 + $0x840] sm:$0xf]  ;;  %v12028_v50 = vor.u32 %v15821_v43, %v12027_v42  ;;  %6040 = vmatpush.bf16.msrb.mxu2 %v11772_v46 }
  0x97   :  { %v15621_v48 = vld [vmem:[#allocation2 + $0x85c] sm:$0xf0] }
  0x98   :  { %v11483_v49 = vld [vmem:[#allocation2 + $0xa40] sm:$0xf]  ;;  %v11228_v56 = vor.u32 %v15621_v48, %v11227_v47  ;;  %6053 = vmatpush.bf16.msrb.mxu3 %v12028_v50 }
  0x99   :  { %v15685_v51 = vld [vmem:[#allocation2 + $0xa5c] sm:$0xf0] }
  0x9a   :  { %v11739_v52 = vld [vmem:[#allocation2 + $0xc40] sm:$0xf]  ;;  %v11484_v59 = vor.u32 %v15685_v51, %v11483_v49  ;;  %6015 = vmatpush.bf16.msrb.mxu0 %v11228_v56 }
  0x9b   :  { %v15749_v53 = vld [vmem:[#allocation2 + $0xc5c] sm:$0xf0] }
  0x9c   :  { %v11995_v54 = vld [vmem:[#allocation2 + $0xe40] sm:$0xf]  ;;  %v11740_v60 = vor.u32 %v15749_v53, %v11739_v52  ;;  %6028 = vmatpush.bf16.msrb.mxu1 %v11484_v59 }
  0x9d   :  { %v15813_v55 = vld [vmem:[#allocation2 + $0xe5c] sm:$0xf0] }
  0x9e   :  { %v11195_v57 = vld [vmem:[#allocation2 + $0x800] sm:$0xf]  ;;  %v11996_v0 = vor.u32 %v15813_v55, %v11995_v54  ;;  %6041 = vmatpush.bf16.msrb.mxu2 %v11740_v60 }
  0x9f   :  { %v15613_v58 = vld [vmem:[#allocation2 + $0x81c] sm:$0xf0] }
  0xa0   :  { %v11451_v61 = vld [vmem:[#allocation2 + $0xa00] sm:$0xf]  ;;  %v11196_v7 = vor.u32 %v15613_v58, %v11195_v57  ;;  %6054 = vmatpush.bf16.msrb.mxu3 %v11996_v0 }
  0xa1   :  { %v15677_v62 = vld [vmem:[#allocation2 + $0xa1c] sm:$0xf0] }
  0xa2   :  { %v11707_v63 = vld [vmem:[#allocation2 + $0xc00] sm:$0xf]  ;;  %v11452_v13 = vor.u32 %v15677_v62, %v11451_v61  ;;  %6016 = vmatpush.bf16.msrb.mxu0 %v11196_v7 }
  0xa3   :  { %v15741_v1 = vld [vmem:[#allocation2 + $0xc1c] sm:$0xf0] }
  0xa4   :  { %v11963_v2 = vld [vmem:[#allocation2 + $0xe00] sm:$0xf]  ;;  %v11708_v14 = vor.u32 %v15741_v1, %v11707_v63  ;;  %6029 = vmatpush.bf16.msrb.mxu1 %v11452_v13 }
  0xa5   :  { %v15805_v3 = vld [vmem:[#allocation2 + $0xe1c] sm:$0xf0] }
  0xa6   :  { %v12443_v4 = vld [vmem:[#allocation2 + $0x11c0] sm:$0xf]  ;;  %v11964_v19 = vor.u32 %v15805_v3, %v11963_v2  ;;  %6042 = vmatpush.bf16.msrb.mxu2 %v11708_v14 }
  0xa7   :  { %v15925_v5 = vld [vmem:[#allocation2 + $0x11dc] sm:$0xf0]  ;;  %6030 = vmatmul.bf16.vlgmr.msrb.gmra.mxu1 %v17006_v40 }
  0xa8   :  { %v12699_v6 = vld [vmem:[#allocation2 + $0x13c0] sm:$0xf]  ;;  %v12444_v20 = vor.u32 %v15925_v5, %v12443_v4  ;;  %6055 = vmatpush.bf16.msrb.mxu3 %v11964_v19 }
  0xa9   :  { %v15989_v10 = vld [vmem:[#allocation2 + $0x13dc] sm:$0xf0]  ;;  %6043 = vmatmul.bf16.vlgmr.msrb.gmra.mxu2 %v17000_v34 }
  0xaa   :  { %v12955_v11 = vld [vmem:[#allocation2 + $0x15c0] sm:$0xf]  ;;  %v12700_v24 = vor.u32 %v15989_v10, %v12699_v6  ;;  %6061 = vmatpush.bf16.msra.mxu0 %v12444_v20 }
  0xab   :  { %v16053_v12 = vld [vmem:[#allocation2 + $0x15dc] sm:$0xf0]  ;;  %6056 = vmatmul.bf16.vlgmr.msrb.gmra.mxu3 %v17004_v38 }
  0xac   :  { %v13211_v16 = vld [vmem:[#allocation2 + $0x17c0] sm:$0xf]  ;;  %v12956_v26 = vor.u32 %v16053_v12, %v12955_v11  ;;  %6074 = vmatpush.bf16.msra.mxu1 %v12700_v24 }
  0xad   :  { %v16117_v17 = vld [vmem:[#allocation2 + $0x17dc] sm:$0xf0] }
  0xae   :  { %v12411_v21 = vld [vmem:[#allocation2 + $0x1180] sm:$0xf]  ;;  %v13212_v30 = vor.u32 %v16117_v17, %v13211_v16  ;;  %6087 = vmatpush.bf16.msra.mxu2 %v12956_v26 }
  0xaf   :  { %v153_v22 = vld [vmem:[%s17406_s0 + $0x20] sm:$0xff] }
  0xb0   :  { %v15917_v27 = vld [vmem:[#allocation2 + $0x119c] sm:$0xf0]  ;;  %v17002_v37 = vpack.c.bf16 %v153_v22, %v153_v22  ;;  %6100 = vmatpush.bf16.msra.mxu3 %v13212_v30 }
  0xb1   :  { %v12667_v28 = vld [vmem:[#allocation2 + $0x1380] sm:$0xf]  ;;  %v12412_v39 = vor.u32 %v15917_v27, %v12411_v21 }
  0xb2   :  { %v15981_v31 = vld [vmem:[#allocation2 + $0x139c] sm:$0xf0]  ;;  %6017 = vmatmul.bf16.vlgmr.msrb.gmra.mxu0 %v17002_v37 }
  0xb3   :  { %v12923_v32 = vld [vmem:[#allocation2 + $0x1580] sm:$0xf]  ;;  %v12668_v41 = vor.u32 %v15981_v31, %v12667_v28  ;;  %6062 = vmatpush.bf16.msra.mxu0 %v12412_v39 }
  0xb4   :  { %v16045_v33 = vld [vmem:[#allocation2 + $0x159c] sm:$0xf0] }
  0xb5   :  { %v13179_v35 = vld [vmem:[#allocation2 + $0x1780] sm:$0xf]  ;;  %v12924_v42 = vor.u32 %v16045_v33, %v12923_v32  ;;  %6075 = vmatpush.bf16.msra.mxu1 %v12668_v41 }
  0xb6   :  { %v16109_v36 = vld [vmem:[#allocation2 + $0x179c] sm:$0xf0] }
  0xb7   :  { %v12379_v43 = vld [vmem:[#allocation2 + $0x1140] sm:$0xf]  ;;  %v13180_v46 = vor.u32 %v16109_v36, %v13179_v35  ;;  %6088 = vmatpush.bf16.msra.mxu2 %v12924_v42 }
  0xb8   :  { %v15909_v44 = vld [vmem:[#allocation2 + $0x115c] sm:$0xf0] }
  0xb9   :  { %v12635_v45 = vld [vmem:[#allocation2 + $0x1340] sm:$0xf]  ;;  %v12380_v52 = vor.u32 %v15909_v44, %v12379_v43  ;;  %6101 = vmatpush.bf16.msra.mxu3 %v13180_v46 }
  0xba   :  { %v15973_v47 = vld [vmem:[#allocation2 + $0x135c] sm:$0xf0] }
  0xbb   :  { %v12891_v48 = vld [vmem:[#allocation2 + $0x1540] sm:$0xf]  ;;  %v12636_v53 = vor.u32 %v15973_v47, %v12635_v45  ;;  %6063 = vmatpush.bf16.msra.mxu0 %v12380_v52 }
  0xbc   :  { %v16037_v49 = vld [vmem:[#allocation2 + $0x155c] sm:$0xf0] }
  0xbd   :  { %v13147_v50 = vld [vmem:[#allocation2 + $0x1740] sm:$0xf]  ;;  %v12892_v54 = vor.u32 %v16037_v49, %v12891_v48  ;;  %6076 = vmatpush.bf16.msra.mxu1 %v12636_v53 }
  0xbe   :  { %v16101_v51 = vld [vmem:[#allocation2 + $0x175c] sm:$0xf0] }
  0xbf   :  { %v12347_v55 = vld [vmem:[#allocation2 + $0x1100] sm:$0xf]  ;;  %v13148_v58 = vor.u32 %v16101_v51, %v13147_v50  ;;  %6089 = vmatpush.bf16.msra.mxu2 %v12892_v54 }
  0xc0   :  { %v15901_v56 = vld [vmem:[#allocation2 + $0x111c] sm:$0xf0] }
  0xc1   :  { %v12603_v57 = vld [vmem:[#allocation2 + $0x1300] sm:$0xf]  ;;  %v12348_v0 = vor.u32 %v15901_v56, %v12347_v55  ;;  %6102 = vmatpush.bf16.msra.mxu3 %v13148_v58 }
  0xc2   :  { %v15965_v59 = vld [vmem:[#allocation2 + $0x131c] sm:$0xf0] }
  0xc3   :  { %v12859_v60 = vld [vmem:[#allocation2 + $0x1500] sm:$0xf]  ;;  %v12604_v1 = vor.u32 %v15965_v59, %v12603_v57  ;;  %6064 = vmatpush.bf16.msra.mxu0 %v12348_v0 }
  0xc4   :  { %v16029_v61 = vld [vmem:[#allocation2 + $0x151c] sm:$0xf0] }
  0xc5   :  { %v13115_v62 = vld [vmem:[#allocation2 + $0x1700] sm:$0xf]  ;;  %v12860_v2 = vor.u32 %v16029_v61, %v12859_v60  ;;  %6077 = vmatpush.bf16.msra.mxu1 %v12604_v1  ;;  %v15409_v1 = vld [vmem:[#allocation2 + $0x1c4] sm:$0xf] }
  0xc6   :  { %v16093_v63 = vld [vmem:[#allocation2 + $0x171c] sm:$0xf0] }
  0xc7   :  { %v12315_v3 = vld [vmem:[#allocation2 + $0x10c0] sm:$0xf]  ;;  %v13116_v6 = vor.u32 %v16093_v63, %v13115_v62  ;;  %6090 = vmatpush.bf16.msra.mxu2 %v12860_v2  ;;  %v10397_v2 = vld [vmem:[#allocation2 + $0x1e0] sm:$0xf0] }
  0xc8   :  { %v15893_v4 = vld [vmem:[#allocation2 + $0x10dc] sm:$0xf0] }
  0xc9   :  { %v12571_v5 = vld [vmem:[#allocation2 + $0x12c0] sm:$0xf]  ;;  %v12316_v14 = vor.u32 %v15893_v4, %v12315_v3  ;;  %6103 = vmatpush.bf16.msra.mxu3 %v13116_v6  ;;  %v159_v6 = vld [vmem:[%s17406_s0 + $0x50] sm:$0xff] }
  0xca   :  { %v15957_v7 = vld [vmem:[#allocation2 + $0x12dc] sm:$0xf0] }
  0xcb   :  { %v12827_v10 = vld [vmem:[#allocation2 + $0x14c0] sm:$0xf]  ;;  %v12572_v16 = vor.u32 %v15957_v7, %v12571_v5  ;;  %6065 = vmatpush.bf16.msra.mxu0 %v12316_v14  ;;  %v158_v7 = vld [vmem:[%s17406_s0 + $0x48] sm:$0xff] }
  0xcc   :  { %v16021_v11 = vld [vmem:[#allocation2 + $0x14dc] sm:$0xf0] }
  0xcd   :  { %v13083_v12 = vld [vmem:[#allocation2 + $0x16c0] sm:$0xf]  ;;  %v12828_v17 = vor.u32 %v16021_v11, %v12827_v10  ;;  %6078 = vmatpush.bf16.msra.mxu1 %v12572_v16  ;;  %v160_v10 = vld [vmem:[%s17406_s0 + $0x58] sm:$0xff] }
  0xce   :  { %v16085_v13 = vld [vmem:[#allocation2 + $0x16dc] sm:$0xf0] }
  0xcf   :  { %v12283_v18 = vld [vmem:[#allocation2 + $0x1080] sm:$0xf]  ;;  %v13084_v21 = vor.u32 %v16085_v13, %v13083_v12  ;;  %6091 = vmatpush.bf16.msra.mxu2 %v12828_v17  ;;  %v10400_v17 = vor.u32 %v15409_v1, %v10397_v2  ;;  %v15377_v2 = vld [vmem:[#allocation2 + $0xc4] sm:$0xf] }
  0xd0   :  { %v15885_v19 = vld [vmem:[#allocation2 + $0x109c] sm:$0xf0] }
  0xd1   :  { %v12539_v20 = vld [vmem:[#allocation2 + $0x1280] sm:$0xf]  ;;  %v12284_v28 = vor.u32 %v15885_v19, %v12283_v18  ;;  %6104 = vmatpush.bf16.msra.mxu3 %v13084_v21 }
  0xd2   :  { %v15949_v22 = vld [vmem:[#allocation2 + $0x129c] sm:$0xf0] }
  0xd3   :  { %v12795_v23 = vld [vmem:[#allocation2 + $0x1480] sm:$0xf]  ;;  %v12540_v29 = vor.u32 %v15949_v22, %v12539_v20  ;;  %6066 = vmatpush.bf16.msra.mxu0 %v12284_v28  ;;  %v17026_v22 = vpack.c.bf16 %v159_v6, %v159_v6 }
  0xd4   :  { %v16013_v24 = vld [vmem:[#allocation2 + $0x149c] sm:$0xf0] }
  0xd5   :  { %v13051_v26 = vld [vmem:[#allocation2 + $0x1680] sm:$0xf]  ;;  %v12796_v30 = vor.u32 %v16013_v24, %v12795_v23  ;;  %6079 = vmatpush.bf16.msra.mxu1 %v12540_v29  ;;  %v17028_v23 = vpack.c.bf16 %v158_v7, %v158_v7  ;;  %v15401_v24 = vld [vmem:[#allocation2 + $0x184] sm:$0xf] }
  0xd6   :  { %v16077_v27 = vld [vmem:[#allocation2 + $0x169c] sm:$0xf0] }
  0xd7   :  { %v12251_v31 = vld [vmem:[#allocation2 + $0x1040] sm:$0xf]  ;;  %v13052_v35 = vor.u32 %v16077_v27, %v13051_v26  ;;  %6092 = vmatpush.bf16.msra.mxu2 %v12796_v30  ;;  %v10365_v26 = vld [vmem:[#allocation2 + $0x1a0] sm:$0xf0]  ;;  %v17030_v27 = vpack.c.bf16 %v160_v10, %v160_v10 }
  0xd8   :  { %v15877_v32 = vld [vmem:[#allocation2 + $0x105c] sm:$0xf0] }
  0xd9   :  { %v12507_v33 = vld [vmem:[#allocation2 + $0x1240] sm:$0xf]  ;;  %v12252_v44 = vor.u32 %v15877_v32, %v12251_v31  ;;  %6105 = vmatpush.bf16.msra.mxu3 %v13052_v35  ;;  %v10368_v35 = vor.u32 %v15401_v24, %v10365_v26 }
  0xda   :  { %v15941_v36 = vld [vmem:[#allocation2 + $0x125c] sm:$0xf0] }
  0xdb   :  { %v12763_v39 = vld [vmem:[#allocation2 + $0x1440] sm:$0xf]  ;;  %v12508_v48 = vor.u32 %v15941_v36, %v12507_v33  ;;  %6067 = vmatpush.bf16.msra.mxu0 %v12252_v44 }
  0xdc   :  { %v16005_v41 = vld [vmem:[#allocation2 + $0x145c] sm:$0xf0] }
  0xdd   :  { %v13019_v42 = vld [vmem:[#allocation2 + $0x1640] sm:$0xf]  ;;  %v12764_v49 = vor.u32 %v16005_v41, %v12763_v39  ;;  %6080 = vmatpush.bf16.msra.mxu1 %v12508_v48 }
  0xde   :  { %v16069_v43 = vld [vmem:[#allocation2 + $0x165c] sm:$0xf0] }
  0xdf   :  { %v12219_v45 = vld [vmem:[#allocation2 + $0x1000] sm:$0xf]  ;;  %v13020_v53 = vor.u32 %v16069_v43, %v13019_v42  ;;  %6093 = vmatpush.bf16.msra.mxu2 %v12764_v49  ;;  %v15393_v42 = vld [vmem:[#allocation2 + $0x144] sm:$0xf] }
  0xe0   :  { %v15869_v46 = vld [vmem:[#allocation2 + $0x101c] sm:$0xf0]  ;;  %v10333_v43 = vld [vmem:[#allocation2 + $0x160] sm:$0xf0] }
  0xe1   :  { %v12475_v47 = vld [vmem:[#allocation2 + $0x1200] sm:$0xf]  ;;  %v12220_v59 = vor.u32 %v15869_v46, %v12219_v45  ;;  %6106 = vmatpush.bf16.msra.mxu3 %v13020_v53 }
  0xe2   :  { %v15933_v50 = vld [vmem:[#allocation2 + $0x121c] sm:$0xf0] }
  0xe3   :  { %v12731_v51 = vld [vmem:[#allocation2 + $0x1400] sm:$0xf]  ;;  %v12476_v63 = vor.u32 %v15933_v50, %v12475_v47  ;;  %6068 = vmatpush.bf16.msra.mxu0 %v12220_v59  ;;  %v10336_v50 = vor.u32 %v15393_v42, %v10333_v43 }
  0xe4   :  { %v15997_v52 = vld [vmem:[#allocation2 + $0x141c] sm:$0xf0] }
  0xe5   :  { %v12987_v54 = vld [vmem:[#allocation2 + $0x1600] sm:$0xf]  ;;  %v12732_v0 = vor.u32 %v15997_v52, %v12731_v51  ;;  %6081 = vmatpush.bf16.msra.mxu1 %v12476_v63 }
  0xe6   :  { %v16061_v55 = vld [vmem:[#allocation2 + $0x161c] sm:$0xf0] }
  0xe7   :  { %v13467_v56 = vld [vmem:[#allocation2 + $0x19c0] sm:$0xf]  ;;  %v12988_v4 = vor.u32 %v16061_v55, %v12987_v54  ;;  %6094 = vmatpush.bf16.msra.mxu2 %v12732_v0  ;;  %v15385_v54 = vld [vmem:[#allocation2 + $0x104] sm:$0xf] }
  0xe8   :  { %v16181_v57 = vld [vmem:[#allocation2 + $0x19dc] sm:$0xf0]  ;;  %6082 = vmatmul.bf16.vlgmr.msra.gmra.mxu1 %v17028_v23  ;;  %v10301_v55 = vld [vmem:[#allocation2 + $0x120] sm:$0xf0] }
  0xe9   :  { %v13723_v58 = vld [vmem:[#allocation2 + $0x1bc0] sm:$0xf]  ;;  %v13468_v5 = vor.u32 %v16181_v57, %v13467_v56  ;;  %6107 = vmatpush.bf16.msra.mxu3 %v12988_v4 }
  0xea   :  { %v16245_v60 = vld [vmem:[#allocation2 + $0x1bdc] sm:$0xf0]  ;;  %6095 = vmatmul.bf16.vlgmr.msra.gmra.mxu2 %v17026_v22 }
  0xeb   :  { %v13979_v61 = vld [vmem:[#allocation2 + $0x1dc0] sm:$0xf]  ;;  %v13724_v11 = vor.u32 %v16245_v60, %v13723_v58  ;;  %6113 = vmatpush.bf16.msrb.mxu0 %v13468_v5 }
  0xec   :  { %v16309_v62 = vld [vmem:[#allocation2 + $0x1ddc] sm:$0xf0]  ;;  %6108 = vmatmul.bf16.vlgmr.msra.gmra.mxu3 %v17030_v27 }
  0xed   :  { %v157_v3 = vld [vmem:[%s17406_s0 + $0x40] sm:$0xff]  ;;  %v13980_v12 = vor.u32 %v16309_v62, %v13979_v61  ;;  %6126 = vmatpush.bf16.msrb.mxu1 %v13724_v11  ;;  %6152 = vmatpush.bf16.msrb.mxu3 %v10400_v17  ;;  %v10304_v62 = vor.u32 %v15385_v54, %v10301_v55 }
  0xee   :  { %v13435_v13 = vld [vmem:[#allocation2 + $0x1980] sm:$0xf]  ;;  %v17024_v18 = vpack.c.bf16 %v157_v3, %v157_v3  ;;  %v10269_v3 = vld [vmem:[#allocation2 + $0xe0] sm:$0xf0] }
  0xef   :  { %v16173_v14 = vld [vmem:[#allocation2 + $0x199c] sm:$0xf0]  ;;  %6139 = vmatpush.bf16.msrb.mxu2 %v13980_v12  ;;  %v10272_v12 = vor.u32 %v15377_v2, %v10269_v3  ;;  %v15369_v17 = vld [vmem:[#allocation2 + $0x84] sm:$0xf]  ;;  %v163_v2 = vld [vmem:[%s17406_s0 + $0x70] sm:$0xff] }
  0xf0   :  { %v13691_v16 = vld [vmem:[#allocation2 + $0x1b80] sm:$0xf]  ;;  %v13436_v28 = vor.u32 %v16173_v14, %v13435_v13  ;;  %6069 = vmatmul.bf16.vlgmr.msra.gmra.mxu0 %v17024_v18  ;;  %v15537_v54 = vld [vmem:[#allocation2 + $0x5c4] sm:$0xf]  ;;  %v162_v3 = vld [vmem:[%s17406_s0 + $0x68] sm:$0xff] }
  0xf1   :  { %v16237_v19 = vld [vmem:[#allocation2 + $0x1b9c] sm:$0xf0]  ;;  %6153 = vmatpush.bf16.msrb.mxu3 %v10368_v35  ;;  %v15361_v35 = vld [vmem:[#allocation2 + $0x44] sm:$0xf] }
  0xf2   :  { %v13947_v20 = vld [vmem:[#allocation2 + $0x1d80] sm:$0xf]  ;;  %v13692_v29 = vor.u32 %v16237_v19, %v13691_v16  ;;  %6114 = vmatpush.bf16.msrb.mxu0 %v13436_v28  ;;  %v10237_v19 = vld [vmem:[#allocation2 + $0xa0] sm:$0xf0] }
  0xf3   :  { %v16301_v21 = vld [vmem:[#allocation2 + $0x1d9c] sm:$0xf0] }
  0xf4   :  { %v13948_v30 = vor.u32 %v16301_v21, %v13947_v20  ;;  %v13403_v31 = vld [vmem:[#allocation2 + $0x1940] sm:$0xf]  ;;  %6127 = vmatpush.bf16.msrb.mxu1 %v13692_v29 }
  0xf5   :  { %v16165_v32 = vld [vmem:[#allocation2 + $0x195c] sm:$0xf0]  ;;  %6154 = vmatpush.bf16.msrb.mxu3 %v10336_v50  ;;  %v15353_v50 = vld [vmem:[#allocation2 + $0x4] sm:$0xf] }
  0xf6   :  { %v13659_v33 = vld [vmem:[#allocation2 + $0x1b40] sm:$0xf]  ;;  %v13404_v44 = vor.u32 %v16165_v32, %v13403_v31  ;;  %6140 = vmatpush.bf16.msrb.mxu2 %v13948_v30  ;;  %v10240_v30 = vor.u32 %v15369_v17, %v10237_v19  ;;  %v17047_v17 = vpack.c.bf16 %v163_v2, %v163_v2  ;;  %v17049_v19 = vpack.c.bf16 %v162_v3, %v162_v3 }
  0xf7   :  { %v16229_v36 = vld [vmem:[#allocation2 + $0x1b5c] sm:$0xf0] }
  0xf8   :  { %v13915_v39 = vld [vmem:[#allocation2 + $0x1d40] sm:$0xf]  ;;  %v13660_v45 = vor.u32 %v16229_v36, %v13659_v33  ;;  %6115 = vmatpush.bf16.msrb.mxu0 %v13404_v44  ;;  %v10205_v36 = vld [vmem:[#allocation2 + $0x60] sm:$0xf0] }
  0xf9   :  { %v16293_v41 = vld [vmem:[#allocation2 + $0x1d5c] sm:$0xf0]  ;;  %6155 = vmatpush.bf16.msrb.mxu3 %v10304_v62  ;;  %v11421_v62 = vld [vmem:[#allocation2 + $0x9e0] sm:$0xf0] }
  0xfa   :  { %v13916_v46 = vor.u32 %v16293_v41, %v13915_v39  ;;  %v13371_v47 = vld [vmem:[#allocation2 + $0x1900] sm:$0xf]  ;;  %6128 = vmatpush.bf16.msrb.mxu1 %v13660_v45 }
  0xfb   :  { %v16157_v48 = vld [vmem:[#allocation2 + $0x191c] sm:$0xf0] }
  0xfc   :  { %v13627_v49 = vld [vmem:[#allocation2 + $0x1b00] sm:$0xf]  ;;  %v13372_v56 = vor.u32 %v16157_v48, %v13371_v47  ;;  %6141 = vmatpush.bf16.msrb.mxu2 %v13916_v46  ;;  %v10208_v48 = vor.u32 %v15361_v35, %v10205_v36  ;;  %v15585_v35 = vld [vmem:[#allocation2 + $0x744] sm:$0xf] }
  0xfd   :  { %v16221_v51 = vld [vmem:[#allocation2 + $0x1b1c] sm:$0xf0]  ;;  %6156 = vmatpush.bf16.msrb.mxu3 %v10272_v12  ;;  %v11101_v36 = vld [vmem:[#allocation2 + $0x760] sm:$0xf0] }
  0xfe   :  { %v13883_v52 = vld [vmem:[#allocation2 + $0x1d00] sm:$0xf]  ;;  %v13628_v57 = vor.u32 %v16221_v51, %v13627_v49  ;;  %6116 = vmatpush.bf16.msrb.mxu0 %v13372_v56  ;;  %v10173_v51 = vld [vmem:[#allocation2 + $0x20] sm:$0xf0] }
  0xff   :  { %v16285_v53 = vld [vmem:[#allocation2 + $0x1d1c] sm:$0xf0]  ;;  %v10909_v56 = vld [vmem:[#allocation2 + $0x5e0] sm:$0xf0] }
 0x100   :  { %v13884_v58 = vor.u32 %v16285_v53, %v13883_v52  ;;  %v13339_v59 = vld [vmem:[#allocation2 + $0x18c0] sm:$0xf]  ;;  %6129 = vmatpush.bf16.msrb.mxu1 %v13628_v57  ;;  %v15473_v52 = vld [vmem:[#allocation2 + $0x3c4] sm:$0xf] }
 0x101   :  { %v16149_v60 = vld [vmem:[#allocation2 + $0x18dc] sm:$0xf0]  ;;  %6157 = vmatpush.bf16.msrb.mxu3 %v10240_v30  ;;  %v10653_v53 = vld [vmem:[#allocation2 + $0x3e0] sm:$0xf0] }
 0x102   :  { %v13595_v61 = vld [vmem:[#allocation2 + $0x1ac0] sm:$0xf]  ;;  %v13340_v4 = vor.u32 %v16149_v60, %v13339_v59  ;;  %6142 = vmatpush.bf16.msrb.mxu2 %v13884_v58  ;;  %v15601_v57 = vld [vmem:[#allocation2 + $0x7c4] sm:$0xf] }
 0x103   :  { %v16213_v63 = vld [vmem:[#allocation2 + $0x1adc] sm:$0xf0]  ;;  %v11165_v58 = vld [vmem:[#allocation2 + $0x7e0] sm:$0xf0] }
 0x104   :  { %v13851_v0 = vld [vmem:[#allocation2 + $0x1cc0] sm:$0xf]  ;;  %v13596_v5 = vor.u32 %v16213_v63, %v13595_v61  ;;  %6117 = vmatpush.bf16.msrb.mxu0 %v13340_v4  ;;  %v15665_v61 = vld [vmem:[#allocation2 + $0x9c4] sm:$0xf]  ;;  %v10912_v4 = vor.u32 %v15537_v54, %v10909_v56 }
 0x105   :  { %v16277_v1 = vld [vmem:[#allocation2 + $0x1cdc] sm:$0xf0]  ;;  %6158 = vmatpush.bf16.msrb.mxu3 %v10208_v48  ;;  %v10589_v30 = vld [vmem:[#allocation2 + $0x360] sm:$0xf0] }
 0x106   :  { %v13852_v6 = vor.u32 %v16277_v1, %v13851_v0  ;;  %v13307_v7 = vld [vmem:[#allocation2 + $0x1880] sm:$0xf]  ;;  %6130 = vmatpush.bf16.msrb.mxu1 %v13596_v5  ;;  %v10176_v0 = vor.u32 %v15353_v50, %v10173_v51  ;;  %v10656_v1 = vor.u32 %v15473_v52, %v10653_v53  ;;  %v11168_v5 = vor.u32 %v15601_v57, %v11165_v58  ;;  %v15577_v50 = vld [vmem:[#allocation2 + $0x704] sm:$0xf] }
 0x107   :  { %v16141_v10 = vld [vmem:[#allocation2 + $0x189c] sm:$0xf0]  ;;  %v11069_v51 = vld [vmem:[#allocation2 + $0x720] sm:$0xf0] }
 0x108   :  { %v13563_v11 = vld [vmem:[#allocation2 + $0x1a80] sm:$0xf]  ;;  %v13308_v20 = vor.u32 %v16141_v10, %v13307_v7  ;;  %6143 = vmatpush.bf16.msrb.mxu2 %v13852_v6  ;;  %v15465_v6 = vld [vmem:[#allocation2 + $0x384] sm:$0xf]  ;;  %v11072_v56 = vor.u32 %v15577_v50, %v11069_v51 }
 0x109   :  { %v16205_v13 = vld [vmem:[#allocation2 + $0x1a9c] sm:$0xf0]  ;;  %v10621_v7 = vld [vmem:[#allocation2 + $0x3a0] sm:$0xf0]  ;;  %6159 = vmatpush.bf16.msrb.mxu3 %v10176_v0 }
 0x10a   :  { %v13819_v14 = vld [vmem:[#allocation2 + $0x1c80] sm:$0xf]  ;;  %v13564_v21 = vor.u32 %v16205_v13, %v13563_v11  ;;  %6118 = vmatpush.bf16.msrb.mxu0 %v13308_v20  ;;  %v15529_v10 = vld [vmem:[#allocation2 + $0x584] sm:$0xf]  ;;  %v11424_v11 = vor.u32 %v15665_v61, %v11421_v62 }
 0x10b   :  { %v16269_v16 = vld [vmem:[#allocation2 + $0x1c9c] sm:$0xf0]  ;;  %v10877_v13 = vld [vmem:[#allocation2 + $0x5a0] sm:$0xf0] }
 0x10c   :  { %v13820_v24 = vor.u32 %v16269_v16, %v13819_v14  ;;  %v13275_v26 = vld [vmem:[#allocation2 + $0x1840] sm:$0xf]  ;;  %6131 = vmatpush.bf16.msrb.mxu1 %v13564_v21  ;;  %v15593_v14 = vld [vmem:[#allocation2 + $0x784] sm:$0xf]  ;;  %6160 = vmatmul.bf16.vlgmr.msrb.gmra.mxu3 %v16972_v9 }
 0x10d   :  { %v16133_v28 = vld [vmem:[#allocation2 + $0x185c] sm:$0xf0]  ;;  %v11133_v16 = vld [vmem:[#allocation2 + $0x7a0] sm:$0xf0]  ;;  %6204 = vmatpush.bf16.msra.mxu3 %v11424_v11 }
 0x10e   :  { %v13531_v29 = vld [vmem:[#allocation2 + $0x1a40] sm:$0xf]  ;;  %v13276_v39 = vor.u32 %v16133_v28, %v13275_v26  ;;  %6144 = vmatpush.bf16.msrb.mxu2 %v13820_v24  ;;  %v15657_v20 = vld [vmem:[#allocation2 + $0x984] sm:$0xf]  ;;  %v10624_v24 = vor.u32 %v15465_v6, %v10621_v7  ;;  %v10880_v26 = vor.u32 %v15529_v10, %v10877_v13  ;;  %v11136_v28 = vor.u32 %v15593_v14, %v11133_v16 }
 0x10f   :  { %v16197_v31 = vld [vmem:[#allocation2 + $0x1a5c] sm:$0xf0]  ;;  %v11389_v21 = vld [vmem:[#allocation2 + $0x9a0] sm:$0xf0] }
 0x110   :  { %v13787_v32 = vld [vmem:[#allocation2 + $0x1c40] sm:$0xf]  ;;  %v13532_v43 = vor.u32 %v16197_v31, %v13531_v29  ;;  %6119 = vmatpush.bf16.msrb.mxu0 %v13276_v39  ;;  %v15457_v29 = vld [vmem:[#allocation2 + $0x344] sm:$0xf] }
 0x111   :  { %v16261_v33 = vld [vmem:[#allocation2 + $0x1c5c] sm:$0xf0]  ;;  %v15521_v31 = vld [vmem:[#allocation2 + $0x544] sm:$0xf] }
 0x112   :  { %v13243_v41 = vld [vmem:[#allocation2 + $0x1800] sm:$0xf]  ;;  %v13788_v44 = vor.u32 %v16261_v33, %v13787_v32  ;;  %6132 = vmatpush.bf16.msrb.mxu1 %v13532_v43  ;;  %v11392_v32 = vor.u32 %v15657_v20, %v11389_v21  ;;  %v10845_v33 = vld [vmem:[#allocation2 + $0x560] sm:$0xf0] }
 0x113   :  { %v16125_v42 = vld [vmem:[#allocation2 + $0x181c] sm:$0xf0]  ;;  %v15649_v39 = vld [vmem:[#allocation2 + $0x944] sm:$0xf]  ;;  %v10848_v43 = vor.u32 %v15521_v31, %v10845_v33 }
 0x114   :  { %v13499_v45 = vld [vmem:[#allocation2 + $0x1a00] sm:$0xf]  ;;  %v13244_v55 = vor.u32 %v16125_v42, %v13243_v41  ;;  %6145 = vmatpush.bf16.msrb.mxu2 %v13788_v44  ;;  %v11357_v41 = vld [vmem:[#allocation2 + $0x960] sm:$0xf0]  ;;  %v10592_v42 = vor.u32 %v15457_v29, %v10589_v30  ;;  %v11104_v44 = vor.u32 %v15585_v35, %v11101_v36  ;;  %6205 = vmatpush.bf16.msra.mxu3 %v11392_v32 }
 0x115   :  { %v16189_v46 = vld [vmem:[#allocation2 + $0x1a1c] sm:$0xf0]  ;;  %v11360_v48 = vor.u32 %v15649_v39, %v11357_v41  ;;  %v15641_v52 = vld [vmem:[#allocation2 + $0x904] sm:$0xf] }
 0x116   :  { %v13755_v47 = vld [vmem:[#allocation2 + $0x1c00] sm:$0xf]  ;;  %v13500_v59 = vor.u32 %v16189_v46, %v13499_v45  ;;  %6120 = vmatpush.bf16.msrb.mxu0 %v13244_v55  ;;  %v15449_v45 = vld [vmem:[#allocation2 + $0x304] sm:$0xf] }
 0x117   :  { %v16253_v49 = vld [vmem:[#allocation2 + $0x1c1c] sm:$0xf0]  ;;  %v10557_v46 = vld [vmem:[#allocation2 + $0x320] sm:$0xf0] }
 0x118   :  { %v13756_v60 = vor.u32 %v16253_v49, %v13755_v47  ;;  %v161_v63 = vld [vmem:[%s17406_s0 + $0x60] sm:$0xff]  ;;  %6133 = vmatpush.bf16.msrb.mxu1 %v13500_v59  ;;  %v10560_v54 = vor.u32 %v15449_v45, %v10557_v46  ;;  %6206 = vmatpush.bf16.msra.mxu3 %v11360_v48 }
 0x119   :  { %v17045_v12 = vpack.c.bf16 %v161_v63, %v161_v63  ;;  %v15513_v47 = vld [vmem:[#allocation2 + $0x504] sm:$0xf] }
 0x11a   :  { %6146 = vmatpush.bf16.msrb.mxu2 %v13756_v60  ;;  %6165 = vmatpush.bf16.msra.mxu0 %v10656_v1  ;;  %v10813_v49 = vld [vmem:[#allocation2 + $0x520] sm:$0xf0] }
 0x11b   :  { %6121 = vmatmul.bf16.vlgmr.msrb.gmra.mxu0 %v17045_v12  ;;  %6134 = vmatmul.bf16.vlgmr.msrb.gmra.mxu1 %v17049_v19  ;;  %v11325_v53 = vld [vmem:[#allocation2 + $0x920] sm:$0xf0]  ;;  %v10816_v55 = vor.u32 %v15513_v47, %v10813_v49 }
 0x11c   :  { %6178 = vmatpush.bf16.msra.mxu1 %v10912_v4  ;;  %v15441_v57 = vld [vmem:[#allocation2 + $0x2c4] sm:$0xf]  ;;  %v11328_v60 = vor.u32 %v15641_v52, %v11325_v53 }
 0x11d   :  { %6147 = vmatmul.bf16.vlgmr.msrb.gmra.mxu2 %v17047_v17  ;;  %v10525_v58 = vld [vmem:[#allocation2 + $0x2e0] sm:$0xf0] }
 0x11e   :  { %6191 = vmatpush.bf16.msra.mxu2 %v11168_v5  ;;  %6166 = vmatpush.bf16.msra.mxu0 %v10624_v24  ;;  %v15505_v59 = vld [vmem:[#allocation2 + $0x4c4] sm:$0xf]  ;;  %v10528_v2 = vor.u32 %v15441_v57, %v10525_v58 }
 0x11f   :  { %v10781_v61 = vld [vmem:[#allocation2 + $0x4e0] sm:$0xf0]  ;;  %6207 = vmatpush.bf16.msra.mxu3 %v11328_v60 }
 0x120   :  { %6179 = vmatpush.bf16.msra.mxu1 %v10880_v26  ;;  %v15569_v62 = vld [vmem:[#allocation2 + $0x6c4] sm:$0xf]  ;;  %v10784_v3 = vor.u32 %v15505_v59, %v10781_v61 }
 0x121   :  { %v11037_v63 = vld [vmem:[#allocation2 + $0x6e0] sm:$0xf0] }
 0x122   :  { %6192 = vmatpush.bf16.msra.mxu2 %v11136_v28  ;;  %6167 = vmatpush.bf16.msra.mxu0 %v10592_v42  ;;  %v15633_v0 = vld [vmem:[#allocation2 + $0x8c4] sm:$0xf]  ;;  %v11040_v4 = vor.u32 %v15569_v62, %v11037_v63 }
 0x123   :  { %v11293_v1 = vld [vmem:[#allocation2 + $0x8e0] sm:$0xf0] }
 0x124   :  { %6180 = vmatpush.bf16.msra.mxu1 %v10848_v43  ;;  %v15433_v5 = vld [vmem:[#allocation2 + $0x284] sm:$0xf]  ;;  %v11296_v10 = vor.u32 %v15633_v0, %v11293_v1 }
 0x125   :  { %v10493_v6 = vld [vmem:[#allocation2 + $0x2a0] sm:$0xf0] }
 0x126   :  { %6193 = vmatpush.bf16.msra.mxu2 %v11104_v44  ;;  %6168 = vmatpush.bf16.msra.mxu0 %v10560_v54  ;;  %v15497_v7 = vld [vmem:[#allocation2 + $0x484] sm:$0xf]  ;;  %v10496_v21 = vor.u32 %v15433_v5, %v10493_v6 }
 0x127   :  { %v10749_v11 = vld [vmem:[#allocation2 + $0x4a0] sm:$0xf0]  ;;  %6208 = vmatpush.bf16.msra.mxu3 %v11296_v10 }
 0x128   :  { %6181 = vmatpush.bf16.msra.mxu1 %v10816_v55  ;;  %v15561_v13 = vld [vmem:[#allocation2 + $0x684] sm:$0xf]  ;;  %v10752_v24 = vor.u32 %v15497_v7, %v10749_v11 }
 0x129   :  { %v11005_v14 = vld [vmem:[#allocation2 + $0x6a0] sm:$0xf0] }
 0x12a   :  { %6194 = vmatpush.bf16.msra.mxu2 %v11072_v56  ;;  %v15625_v16 = vld [vmem:[#allocation2 + $0x884] sm:$0xf]  ;;  %6169 = vmatpush.bf16.msra.mxu0 %v10528_v2  ;;  %v11008_v26 = vor.u32 %v15561_v13, %v11005_v14 }
 0x12b   :  { %v11261_v20 = vld [vmem:[#allocation2 + $0x8a0] sm:$0xf0] }
 0x12c   :  { %6182 = vmatpush.bf16.msra.mxu1 %v10784_v3  ;;  %v15425_v28 = vld [vmem:[#allocation2 + $0x244] sm:$0xf]  ;;  %v11264_v31 = vor.u32 %v15625_v16, %v11261_v20 }
 0x12d   :  { %v10461_v29 = vld [vmem:[#allocation2 + $0x260] sm:$0xf0] }
 0x12e   :  { %6195 = vmatpush.bf16.msra.mxu2 %v11040_v4  ;;  %v15489_v30 = vld [vmem:[#allocation2 + $0x444] sm:$0xf]  ;;  %6170 = vmatpush.bf16.msra.mxu0 %v10496_v21  ;;  %v10464_v41 = vor.u32 %v15425_v28, %v10461_v29 }
 0x12f   :  { %v10717_v32 = vld [vmem:[#allocation2 + $0x460] sm:$0xf0]  ;;  %6209 = vmatpush.bf16.msra.mxu3 %v11264_v31 }
 0x130   :  { %v15553_v33 = vld [vmem:[#allocation2 + $0x644] sm:$0xf]  ;;  %6183 = vmatpush.bf16.msra.mxu1 %v10752_v24  ;;  %v10720_v44 = vor.u32 %v15489_v30, %v10717_v32 }
 0x131   :  { %v10973_v35 = vld [vmem:[#allocation2 + $0x660] sm:$0xf0] }
 0x132   :  { %v15617_v36 = vld [vmem:[#allocation2 + $0x844] sm:$0xf]  ;;  %6196 = vmatpush.bf16.msra.mxu2 %v11008_v26  ;;  %v10976_v45 = vor.u32 %v15553_v33, %v10973_v35  ;;  %6171 = vmatpush.bf16.msra.mxu0 %v10464_v41 }
 0x133   :  { %v11229_v39 = vld [vmem:[#allocation2 + $0x860] sm:$0xf0] }
 0x134   :  { %v15417_v42 = vld [vmem:[#allocation2 + $0x204] sm:$0xf]  ;;  %v11232_v49 = vor.u32 %v15617_v36, %v11229_v39  ;;  %6184 = vmatpush.bf16.msra.mxu1 %v10720_v44 }
 0x135   :  { %v10429_v43 = vld [vmem:[#allocation2 + $0x220] sm:$0xf0] }
 0x136   :  { %v15481_v46 = vld [vmem:[#allocation2 + $0x404] sm:$0xf]  ;;  %v10432_v56 = vor.u32 %v15417_v42, %v10429_v43  ;;  %6197 = vmatpush.bf16.msra.mxu2 %v10976_v45  ;;  %6210 = vmatpush.bf16.msra.mxu3 %v11232_v49 }
 0x137   :  { %v10685_v47 = vld [vmem:[#allocation2 + $0x420] sm:$0xf0] }
 0x138   :  { %v15545_v48 = vld [vmem:[#allocation2 + $0x604] sm:$0xf]  ;;  %v10688_v60 = vor.u32 %v15481_v46, %v10685_v47  ;;  %6172 = vmatpush.bf16.msra.mxu0 %v10432_v56 }
 0x139   :  { %v10941_v50 = vld [vmem:[#allocation2 + $0x620] sm:$0xf0] }
 0x13a   :  { %v15609_v51 = vld [vmem:[#allocation2 + $0x804] sm:$0xf]  ;;  %v10944_v61 = vor.u32 %v15545_v48, %v10941_v50  ;;  %6185 = vmatpush.bf16.msra.mxu1 %v10688_v60 }
 0x13b   :  { %v11197_v52 = vld [vmem:[#allocation2 + $0x820] sm:$0xf0]  ;;  %6173 = vmatmul.bf16.vlgmr.msra.gmra.mxu0 %v16985_v25 }
 0x13c   :  { %v15729_v53 = vld [vmem:[#allocation2 + $0xbc4] sm:$0xf]  ;;  %v11200_v0 = vor.u32 %v15609_v51, %v11197_v52  ;;  %6198 = vmatpush.bf16.msra.mxu2 %v10944_v61 }
 0x13d   :  { %v11677_v54 = vld [vmem:[#allocation2 + $0xbe0] sm:$0xf0]  ;;  %6186 = vmatmul.bf16.vlgmr.msra.gmra.mxu1 %v16970_v8 }
 0x13e   :  { %v15793_v55 = vld [vmem:[#allocation2 + $0xdc4] sm:$0xf]  ;;  %v11680_v1 = vor.u32 %v15729_v53, %v11677_v54  ;;  %6211 = vmatpush.bf16.msra.mxu3 %v11200_v0 }
 0x13f   :  { %v11933_v57 = vld [vmem:[#allocation2 + $0xde0] sm:$0xf0]  ;;  %6199 = vmatmul.bf16.vlgmr.msra.gmra.mxu2 %v16977_v15 }
 0x140   :  { %v15857_v58 = vld [vmem:[#allocation2 + $0xfc4] sm:$0xf]  ;;  %v11936_v2 = vor.u32 %v15793_v55, %v11933_v57  ;;  %6217 = vmatpush.bf16.msrb.mxu0 %v11680_v1 }
 0x141   :  { %v12189_v59 = vld [vmem:[#allocation2 + $0xfe0] sm:$0xf0]  ;;  %6212 = vmatmul.bf16.vlgmr.msra.gmra.mxu3 %v17002_v37 }
 0x142   :  { %v15921_v62 = vld [vmem:[#allocation2 + $0x11c4] sm:$0xf]  ;;  %v12192_v3 = vor.u32 %v15857_v58, %v12189_v59  ;;  %6230 = vmatpush.bf16.msrb.mxu1 %v11936_v2 }
 0x143   :  { %v12445_v63 = vld [vmem:[#allocation2 + $0x11e0] sm:$0xf0] }
 0x144   :  { %v15721_v4 = vld [vmem:[#allocation2 + $0xb84] sm:$0xf]  ;;  %v12448_v7 = vor.u32 %v15921_v62, %v12445_v63  ;;  %6243 = vmatpush.bf16.msrb.mxu2 %v12192_v3  ;;  %v5966_v3 = vpop.f32.mrf.mxu0 }
 0x145   :  { %v11645_v5 = vld [vmem:[#allocation2 + $0xba0] sm:$0xf0] }
 0x146   :  { %v15785_v6 = vld [vmem:[#allocation2 + $0xd84] sm:$0xf]  ;;  %v11648_v20 = vor.u32 %v15721_v4, %v11645_v5  ;;  %6256 = vmatpush.bf16.msrb.mxu3 %v12448_v7 }
 0x147   :  { %v11901_v10 = vld [vmem:[#allocation2 + $0xda0] sm:$0xf0] }
 0x148   :  { %v15849_v11 = vld [vmem:[#allocation2 + $0xf84] sm:$0xf]  ;;  %v11904_v21 = vor.u32 %v15785_v6, %v11901_v10  ;;  %6218 = vmatpush.bf16.msrb.mxu0 %v11648_v20 }
 0x149   :  { %v12157_v13 = vld [vmem:[#allocation2 + $0xfa0] sm:$0xf0] }
 0x14a   :  { %v15913_v14 = vld [vmem:[#allocation2 + $0x1184] sm:$0xf]  ;;  %v12160_v24 = vor.u32 %v15849_v11, %v12157_v13  ;;  %6231 = vmatpush.bf16.msrb.mxu1 %v11904_v21 }
 0x14b   :  { %v12413_v16 = vld [vmem:[#allocation2 + $0x11a0] sm:$0xf0] }
 0x14c   :  { %v15713_v26 = vld [vmem:[#allocation2 + $0xb44] sm:$0xf]  ;;  %v12416_v30 = vor.u32 %v15913_v14, %v12413_v16  ;;  %6244 = vmatpush.bf16.msrb.mxu2 %v12160_v24 }
 0x14d   :  { %v11613_v28 = vld [vmem:[#allocation2 + $0xb60] sm:$0xf0] }
 0x14e   :  { %v15777_v29 = vld [vmem:[#allocation2 + $0xd44] sm:$0xf]  ;;  %v11616_v39 = vor.u32 %v15713_v26, %v11613_v28  ;;  %6257 = vmatpush.bf16.msrb.mxu3 %v12416_v30  ;;  %v5979_v28 = vpop.f32.mrf.mxu1 }
 0x14f   :  { %v11869_v31 = vld [vmem:[#allocation2 + $0xd60] sm:$0xf0] }
 0x150   :  { %v15841_v32 = vld [vmem:[#allocation2 + $0xf44] sm:$0xf]  ;;  %v11872_v42 = vor.u32 %v15777_v29, %v11869_v31  ;;  %6219 = vmatpush.bf16.msrb.mxu0 %v11616_v39 }
 0x151   :  { %v12125_v33 = vld [vmem:[#allocation2 + $0xf60] sm:$0xf0] }
 0x152   :  { %v15905_v35 = vld [vmem:[#allocation2 + $0x1144] sm:$0xf]  ;;  %v12128_v43 = vor.u32 %v15841_v32, %v12125_v33  ;;  %6232 = vmatpush.bf16.msrb.mxu1 %v11872_v42 }
 0x153   :  { %v12381_v36 = vld [vmem:[#allocation2 + $0x1160] sm:$0xf0] }
 0x154   :  { %v15705_v41 = vld [vmem:[#allocation2 + $0xb04] sm:$0xf]  ;;  %v12384_v47 = vor.u32 %v15905_v35, %v12381_v36  ;;  %6245 = vmatpush.bf16.msrb.mxu2 %v12128_v43  ;;  %v5992_v43 = vpop.f32.mrf.mxu2 }
 0x155   :  { %v11581_v44 = vld [vmem:[#allocation2 + $0xb20] sm:$0xf0] }
 0x156   :  { %v15769_v45 = vld [vmem:[#allocation2 + $0xd04] sm:$0xf]  ;;  %v11584_v53 = vor.u32 %v15705_v41, %v11581_v44  ;;  %6258 = vmatpush.bf16.msrb.mxu3 %v12384_v47  ;;  %v6005_v47 = vpop.f32.mrf.mxu3 }
 0x157   :  { %v11837_v46 = vld [vmem:[#allocation2 + $0xd20] sm:$0xf0] }
 0x158   :  { %v15833_v48 = vld [vmem:[#allocation2 + $0xf04] sm:$0xf]  ;;  %v11840_v55 = vor.u32 %v15769_v45, %v11837_v46  ;;  %6220 = vmatpush.bf16.msrb.mxu0 %v11584_v53 }
 0x159   :  { %v12093_v49 = vld [vmem:[#allocation2 + $0xf20] sm:$0xf0] }
 0x15a   :  { %v1139_v50 = vld [vmem:[#allocation4] sm:$0xff]  ;;  %v12096_v56 = vor.u32 %v15833_v48, %v12093_v49  ;;  %6233 = vmatpush.bf16.msrb.mxu1 %v11840_v55 }
 0x15b   :  { %v15897_v51 = vld [vmem:[#allocation2 + $0x1104] sm:$0xf]  ;;  %v1141_v59 = vperm.slane %v1139_v50, 0 }
 0x15c   :  { %v12349_v52 = vld [vmem:[#allocation2 + $0x1120] sm:$0xf0]  ;;  %6246 = vmatpush.bf16.msrb.mxu2 %v12096_v56 }
 0x15d   :  { %v15697_v54 = vld [vmem:[#allocation2 + $0xac4] sm:$0xf]  ;;  %v12352_v60 = vor.u32 %v15897_v51, %v12349_v52  ;;  %v5967_v11 = vadd.f32 %v5966_v3, %v1141_v59  ;;  %v5968_v51 = vpop.f32.mrf.mxu0 }
 0x15e   :  { %v11549_v57 = vld [vmem:[#allocation2 + $0xae0] sm:$0xf0] }
 0x15f   :  { %v15761_v58 = vld [vmem:[#allocation2 + $0xcc4] sm:$0xf]  ;;  %v11552_v2 = vor.u32 %v15697_v54, %v11549_v57  ;;  %6259 = vmatpush.bf16.msrb.mxu3 %v12352_v60  ;;  %v5980_v35 = vadd.f32 %v5979_v28, %v5967_v11 }
 0x160   :  { %v11805_v61 = vld [vmem:[#allocation2 + $0xce0] sm:$0xf0] }
 0x161   :  { %v15825_v62 = vld [vmem:[#allocation2 + $0xec4] sm:$0xf]  ;;  %v11808_v4 = vor.u32 %v15761_v58, %v11805_v61  ;;  %6221 = vmatpush.bf16.msrb.mxu0 %v11552_v2  ;;  %v5993_v46 = vadd.f32 %v5992_v43, %v5980_v35 }
 0x162   :  { %v12061_v63 = vld [vmem:[#allocation2 + $0xee0] sm:$0xf0] }
 0x163   :  { %v15889_v0 = vld [vmem:[#allocation2 + $0x10c4] sm:$0xf]  ;;  %v12064_v5 = vor.u32 %v15825_v62, %v12061_v63  ;;  %6234 = vmatpush.bf16.msrb.mxu1 %v11808_v4  ;;  %v17059_v57 = vadd.f32 %v6005_v47, %v5993_v46 }
 0x164   :  { %v12317_v1 = vld [vmem:[#allocation2 + $0x10e0] sm:$0xf0] }
 0x165   :  { %v15689_v6 = vld [vmem:[#allocation2 + $0xa84] sm:$0xf]  ;;  %v12320_v13 = vor.u32 %v15889_v0, %v12317_v1  ;;  %6247 = vmatpush.bf16.msrb.mxu2 %v12064_v5  ;;  %v5981_v5 = vpop.f32.mrf.mxu1 }
 0x166   :  { %v11517_v7 = vld [vmem:[#allocation2 + $0xaa0] sm:$0xf0] }
 0x167   :  { %v15753_v10 = vld [vmem:[#allocation2 + $0xc84] sm:$0xf]  ;;  %v11520_v26 = vor.u32 %v15689_v6, %v11517_v7  ;;  %6260 = vmatpush.bf16.msrb.mxu3 %v12320_v13 }
 0x168   :  { %v11773_v14 = vld [vmem:[#allocation2 + $0xca0] sm:$0xf0] }
 0x169   :  { %v15817_v16 = vld [vmem:[#allocation2 + $0xe84] sm:$0xf]  ;;  %v11776_v29 = vor.u32 %v15753_v10, %v11773_v14  ;;  %6222 = vmatpush.bf16.msrb.mxu0 %v11520_v26 }
 0x16a   :  { %v12029_v20 = vld [vmem:[#allocation2 + $0xea0] sm:$0xf0] }
 0x16b   :  { %v15881_v21 = vld [vmem:[#allocation2 + $0x1084] sm:$0xf]  ;;  %v12032_v30 = vor.u32 %v15817_v16, %v12029_v20  ;;  %6235 = vmatpush.bf16.msrb.mxu1 %v11776_v29  ;;  %v5994_v16 = vpop.f32.mrf.mxu2  ;;  %v6007_v29 = vpop.f32.mrf.mxu3 }
 0x16c   :  { %v12285_v24 = vld [vmem:[#allocation2 + $0x10a0] sm:$0xf0] }
 0x16d   :  { %v15681_v31 = vld [vmem:[#allocation2 + $0xa44] sm:$0xf]  ;;  %v12288_v36 = vor.u32 %v15881_v21, %v12285_v24  ;;  %6248 = vmatpush.bf16.msrb.mxu2 %v12032_v30 }
 0x16e   :  { %v11485_v32 = vld [vmem:[#allocation2 + $0xa60] sm:$0xf0] }
 0x16f   :  { %v15745_v33 = vld [vmem:[#allocation2 + $0xc44] sm:$0xf]  ;;  %v11488_v48 = vor.u32 %v15681_v31, %v11485_v32  ;;  %6261 = vmatpush.bf16.msrb.mxu3 %v12288_v36 }
 0x170   :  { %v11741_v39 = vld [vmem:[#allocation2 + $0xc60] sm:$0xf0] }
 0x171   :  { %v15809_v41 = vld [vmem:[#allocation2 + $0xe44] sm:$0xf]  ;;  %v11744_v52 = vor.u32 %v15745_v33, %v11741_v39  ;;  %6223 = vmatpush.bf16.msrb.mxu0 %v11488_v48 }
 0x172   :  { %v11997_v42 = vld [vmem:[#allocation2 + $0xe60] sm:$0xf0] }
 0x173   :  { %v15873_v44 = vld [vmem:[#allocation2 + $0x1044] sm:$0xf]  ;;  %v12000_v53 = vor.u32 %v15809_v41, %v11997_v42  ;;  %6236 = vmatpush.bf16.msrb.mxu1 %v11744_v52 }
 0x174   :  { %v12253_v45 = vld [vmem:[#allocation2 + $0x1060] sm:$0xf0] }
 0x175   :  { %v15673_v49 = vld [vmem:[#allocation2 + $0xa04] sm:$0xf]  ;;  %v12256_v58 = vor.u32 %v15873_v44, %v12253_v45  ;;  %6249 = vmatpush.bf16.msrb.mxu2 %v12000_v53 }
 0x176   :  { %v11453_v50 = vld [vmem:[#allocation2 + $0xa20] sm:$0xf0] }
 0x177   :  { %v15737_v54 = vld [vmem:[#allocation2 + $0xc04] sm:$0xf]  ;;  %v11456_v1 = vor.u32 %v15673_v49, %v11453_v50  ;;  %6262 = vmatpush.bf16.msrb.mxu3 %v12256_v58 }
 0x178   :  { %v11709_v55 = vld [vmem:[#allocation2 + $0xc20] sm:$0xf0] }
 0x179   :  { %v15801_v56 = vld [vmem:[#allocation2 + $0xe04] sm:$0xf]  ;;  %v11712_v6 = vor.u32 %v15737_v54, %v11709_v55  ;;  %6224 = vmatpush.bf16.msrb.mxu0 %v11456_v1 }
 0x17a   :  { %v11965_v59 = vld [vmem:[#allocation2 + $0xe20] sm:$0xf0] }
 0x17b   :  { %v15865_v60 = vld [vmem:[#allocation2 + $0x1004] sm:$0xf]  ;;  %v11968_v7 = vor.u32 %v15801_v56, %v11965_v59  ;;  %6237 = vmatpush.bf16.msrb.mxu1 %v11712_v6 }
 0x17c   :  { %v12221_v61 = vld [vmem:[#allocation2 + $0x1020] sm:$0xf0]  ;;  %6225 = vmatmul.bf16.vlgmr.msrb.gmra.mxu0 %v17006_v40 }
 0x17d   :  { %v15985_v62 = vld [vmem:[#allocation2 + $0x13c4] sm:$0xf]  ;;  %v12224_v13 = vor.u32 %v15865_v60, %v12221_v61  ;;  %6250 = vmatpush.bf16.msrb.mxu2 %v11968_v7 }
 0x17e   :  { %v12701_v63 = vld [vmem:[#allocation2 + $0x13e0] sm:$0xf0]  ;;  %6238 = vmatmul.bf16.vlgmr.msrb.gmra.mxu1 %v17000_v34 }
 0x17f   :  { %v16049_v0 = vld [vmem:[#allocation2 + $0x15c4] sm:$0xf]  ;;  %v12704_v14 = vor.u32 %v15985_v62, %v12701_v63  ;;  %6263 = vmatpush.bf16.msrb.mxu3 %v12224_v13 }
 0x180   :  { %v12957_v2 = vld [vmem:[#allocation2 + $0x15e0] sm:$0xf0]  ;;  %6251 = vmatmul.bf16.vlgmr.msrb.gmra.mxu2 %v17004_v38 }
 0x181   :  { %v16113_v3 = vld [vmem:[#allocation2 + $0x17c4] sm:$0xf]  ;;  %v12960_v20 = vor.u32 %v16049_v0, %v12957_v2  ;;  %6269 = vmatpush.bf16.msra.mxu0 %v12704_v14  ;;  %v6018_v2 = vpop.f32.mrf.mxu0 }
 0x182   :  { %v13213_v4 = vld [vmem:[#allocation2 + $0x17e0] sm:$0xf0]  ;;  %6264 = vmatmul.bf16.vlgmr.msrb.gmra.mxu3 %v17024_v18 }
 0x183   :  { %v16177_v10 = vld [vmem:[#allocation2 + $0x19c4] sm:$0xf]  ;;  %v13216_v21 = vor.u32 %v16113_v3, %v13213_v4  ;;  %6282 = vmatpush.bf16.msra.mxu1 %v12960_v20 }
 0x184   :  { %v13469_v11 = vld [vmem:[#allocation2 + $0x19e0] sm:$0xf0] }
 0x185   :  { %v15977_v24 = vld [vmem:[#allocation2 + $0x1384] sm:$0xf]  ;;  %v13472_v30 = vor.u32 %v16177_v10, %v13469_v11  ;;  %6295 = vmatpush.bf16.msra.mxu2 %v13216_v21  ;;  %v6019_v10 = vadd.f32 %v6018_v2, %v17059_v57  ;;  %v6031_v11 = vpop.f32.mrf.mxu1 }
 0x186   :  { %v12669_v26 = vld [vmem:[#allocation2 + $0x13a0] sm:$0xf0] }
 0x187   :  { %v16041_v28 = vld [vmem:[#allocation2 + $0x1584] sm:$0xf]  ;;  %v12672_v39 = vor.u32 %v15977_v24, %v12669_v26  ;;  %6308 = vmatpush.bf16.msra.mxu3 %v13472_v30  ;;  %v6032_v26 = vadd.f32 %v6031_v11, %v6019_v10 }
 0x188   :  { %v12925_v31 = vld [vmem:[#allocation2 + $0x15a0] sm:$0xf0] }
 0x189   :  { %v16105_v32 = vld [vmem:[#allocation2 + $0x1784] sm:$0xf]  ;;  %v12928_v41 = vor.u32 %v16041_v28, %v12925_v31  ;;  %6270 = vmatpush.bf16.msra.mxu0 %v12672_v39 }
 0x18a   :  { %v13181_v33 = vld [vmem:[#allocation2 + $0x17a0] sm:$0xf0] }
 0x18b   :  { %v16169_v35 = vld [vmem:[#allocation2 + $0x1984] sm:$0xf]  ;;  %v13184_v42 = vor.u32 %v16105_v32, %v13181_v33  ;;  %6283 = vmatpush.bf16.msra.mxu1 %v12928_v41 }
 0x18c   :  { %v13437_v36 = vld [vmem:[#allocation2 + $0x19a0] sm:$0xf0] }
 0x18d   :  { %v15969_v43 = vld [vmem:[#allocation2 + $0x1344] sm:$0xf]  ;;  %v13440_v46 = vor.u32 %v16169_v35, %v13437_v36  ;;  %6296 = vmatpush.bf16.msra.mxu2 %v13184_v42  ;;  %v6044_v35 = vpop.f32.mrf.mxu2 }
 0x18e   :  { %v12637_v44 = vld [vmem:[#allocation2 + $0x1360] sm:$0xf0]  ;;  %v6045_v42 = vadd.f32 %v6044_v35, %v6032_v26 }
 0x18f   :  { %v16033_v45 = vld [vmem:[#allocation2 + $0x1544] sm:$0xf]  ;;  %v12640_v52 = vor.u32 %v15969_v43, %v12637_v44  ;;  %6309 = vmatpush.bf16.msra.mxu3 %v13440_v46  ;;  %v6057_v43 = vpop.f32.mrf.mxu3 }
 0x190   :  { %v12893_v47 = vld [vmem:[#allocation2 + $0x1560] sm:$0xf0] }
 0x191   :  { %v16097_v48 = vld [vmem:[#allocation2 + $0x1744] sm:$0xf]  ;;  %v12896_v53 = vor.u32 %v16033_v45, %v12893_v47  ;;  %6271 = vmatpush.bf16.msra.mxu0 %v12640_v52  ;;  %v17066_v47 = vadd.f32 %v6057_v43, %v6045_v42 }
 0x192   :  { %v13149_v49 = vld [vmem:[#allocation2 + $0x1760] sm:$0xf0] }
 0x193   :  { %v16161_v50 = vld [vmem:[#allocation2 + $0x1944] sm:$0xf]  ;;  %v13152_v54 = vor.u32 %v16097_v48, %v13149_v49  ;;  %6284 = vmatpush.bf16.msra.mxu1 %v12896_v53  ;;  %v6020_v48 = vpop.f32.mrf.mxu0 }
 0x194   :  { %v13405_v51 = vld [vmem:[#allocation2 + $0x1960] sm:$0xf0]  ;;  %v15406_v48 = vld [vmem:[#allocation2 + $0x1a4] sm:$0xf0] }
 0x195   :  { %v15961_v55 = vld [vmem:[#allocation2 + $0x1304] sm:$0xf]  ;;  %v13408_v59 = vor.u32 %v16161_v50, %v13405_v51  ;;  %6297 = vmatpush.bf16.msra.mxu2 %v13152_v54  ;;  %v6033_v54 = vpop.f32.mrf.mxu1 }
 0x196   :  { %v12605_v56 = vld [vmem:[#allocation2 + $0x1320] sm:$0xf0] }
 0x197   :  { %v16025_v58 = vld [vmem:[#allocation2 + $0x1504] sm:$0xf]  ;;  %v12608_v1 = vor.u32 %v15961_v55, %v12605_v56  ;;  %6310 = vmatpush.bf16.msra.mxu3 %v13408_v59 }
 0x198   :  { %v12861_v60 = vld [vmem:[#allocation2 + $0x1520] sm:$0xf0] }
 0x199   :  { %v16089_v61 = vld [vmem:[#allocation2 + $0x1704] sm:$0xf]  ;;  %v12864_v3 = vor.u32 %v16025_v58, %v12861_v60  ;;  %6272 = vmatpush.bf16.msra.mxu0 %v12608_v1 }
 0x19a   :  { %v13117_v62 = vld [vmem:[#allocation2 + $0x1720] sm:$0xf0] }
 0x19b   :  { %v16153_v63 = vld [vmem:[#allocation2 + $0x1904] sm:$0xf]  ;;  %v13120_v4 = vor.u32 %v16089_v61, %v13117_v62  ;;  %6285 = vmatpush.bf16.msra.mxu1 %v12864_v3 }
 0x19c   :  { %v13373_v0 = vld [vmem:[#allocation2 + $0x1920] sm:$0xf0] }
 0x19d   :  { %v15953_v5 = vld [vmem:[#allocation2 + $0x12c4] sm:$0xf]  ;;  %v13376_v13 = vor.u32 %v16153_v63, %v13373_v0  ;;  %6298 = vmatpush.bf16.msra.mxu2 %v13120_v4 }
 0x19e   :  { %v12573_v6 = vld [vmem:[#allocation2 + $0x12e0] sm:$0xf0] }
 0x19f   :  { %v16017_v7 = vld [vmem:[#allocation2 + $0x14c4] sm:$0xf]  ;;  %v12576_v28 = vor.u32 %v15953_v5, %v12573_v6  ;;  %6311 = vmatpush.bf16.msra.mxu3 %v13376_v13  ;;  %v6046_v6 = vpop.f32.mrf.mxu2 }
 0x1a0   :  { %v12829_v14 = vld [vmem:[#allocation2 + $0x14e0] sm:$0xf0] }
 0x1a1   :  { %v16081_v16 = vld [vmem:[#allocation2 + $0x16c4] sm:$0xf]  ;;  %v12832_v29 = vor.u32 %v16017_v7, %v12829_v14  ;;  %6273 = vmatpush.bf16.msra.mxu0 %v12576_v28  ;;  %v6059_v14 = vpop.f32.mrf.mxu3  ;;  %v10403_v28 = vld [vmem:[#allocation2 + $0x1c8] sm:$0xf] }
 0x1a2   :  { %v13085_v20 = vld [vmem:[#allocation2 + $0x16e0] sm:$0xf0]  ;;  %v10563_v14 = vld [vmem:[#allocation2 + $0x308] sm:$0xf] }
 0x1a3   :  { %v16145_v21 = vld [vmem:[#allocation2 + $0x18c4] sm:$0xf]  ;;  %v13088_v30 = vor.u32 %v16081_v16, %v13085_v20  ;;  %6286 = vmatpush.bf16.msra.mxu1 %v12832_v29  ;;  %v15414_v29 = vld [vmem:[#allocation2 + $0x1e4] sm:$0xf0] }
 0x1a4   :  { %v13341_v24 = vld [vmem:[#allocation2 + $0x18e0] sm:$0xf0] }
 0x1a5   :  { %v15945_v31 = vld [vmem:[#allocation2 + $0x1284] sm:$0xf]  ;;  %v13344_v57 = vor.u32 %v16145_v21, %v13341_v24  ;;  %6299 = vmatpush.bf16.msra.mxu2 %v13088_v30 }
 0x1a6   :  { %v12541_v32 = vld [vmem:[#allocation2 + $0x12a0] sm:$0xf0] }
 0x1a7   :  { %v16009_v33 = vld [vmem:[#allocation2 + $0x1484] sm:$0xf]  ;;  %v12544_v46 = vor.u32 %v15945_v31, %v12541_v32  ;;  %6312 = vmatpush.bf16.msra.mxu3 %v13344_v57  ;;  %v10659_v32 = vld [vmem:[#allocation2 + $0x3c8] sm:$0xf] }
 0x1a8   :  { %v12797_v36 = vld [vmem:[#allocation2 + $0x14a0] sm:$0xf0] }
 0x1a9   :  { %v16073_v39 = vld [vmem:[#allocation2 + $0x1684] sm:$0xf]  ;;  %v12800_v49 = vor.u32 %v16009_v33, %v12797_v36  ;;  %6274 = vmatpush.bf16.msra.mxu0 %v12544_v46  ;;  %v15478_v33 = vld [vmem:[#allocation2 + $0x3e4] sm:$0xf0] }
 0x1aa   :  { %v13053_v41 = vld [vmem:[#allocation2 + $0x16a0] sm:$0xf0]  ;;  %v10371_v46 = vld [vmem:[#allocation2 + $0x188] sm:$0xf] }
 0x1ab   :  { %v16137_v44 = vld [vmem:[#allocation2 + $0x1884] sm:$0xf]  ;;  %v13056_v50 = vor.u32 %v16073_v39, %v13053_v41  ;;  %6287 = vmatpush.bf16.msra.mxu1 %v12800_v49  ;;  %v10404_v39 = vor.u32 %v15414_v29, %v10403_v28  ;;  %v10627_v49 = vld [vmem:[#allocation2 + $0x388] sm:$0xf] }
 0x1ac   :  { %v13309_v45 = vld [vmem:[#allocation2 + $0x18a0] sm:$0xf0] }
 0x1ad   :  { %v15937_v51 = vld [vmem:[#allocation2 + $0x1244] sm:$0xf]  ;;  %v13312_v55 = vor.u32 %v16137_v44, %v13309_v45  ;;  %6300 = vmatpush.bf16.msra.mxu2 %v13056_v50  ;;  %v10660_v44 = vor.u32 %v15478_v33, %v10659_v32  ;;  %v15470_v50 = vld [vmem:[#allocation2 + $0x3a4] sm:$0xf0] }
 0x1ae   :  { %v12509_v52 = vld [vmem:[#allocation2 + $0x1260] sm:$0xf0] }
 0x1af   :  { %v16001_v53 = vld [vmem:[#allocation2 + $0x1444] sm:$0xf]  ;;  %v12512_v62 = vor.u32 %v15937_v51, %v12509_v52  ;;  %6313 = vmatpush.bf16.msra.mxu3 %v13312_v55 }
 0x1b0   :  { %v12765_v56 = vld [vmem:[#allocation2 + $0x1460] sm:$0xf0] }
 0x1b1   :  { %v16065_v58 = vld [vmem:[#allocation2 + $0x1644] sm:$0xf]  ;;  %v12768_v1 = vor.u32 %v16001_v53, %v12765_v56  ;;  %6275 = vmatpush.bf16.msra.mxu0 %v12512_v62  ;;  %v10372_v53 = vor.u32 %v15406_v48, %v10371_v46  ;;  %v10595_v62 = vld [vmem:[#allocation2 + $0x348] sm:$0xf] }
 0x1b2   :  { %v13021_v59 = vld [vmem:[#allocation2 + $0x1660] sm:$0xf0] }
 0x1b3   :  { %v16129_v60 = vld [vmem:[#allocation2 + $0x1844] sm:$0xf]  ;;  %v13024_v2 = vor.u32 %v16065_v58, %v13021_v59  ;;  %6288 = vmatpush.bf16.msra.mxu1 %v12768_v1  ;;  %v10628_v58 = vor.u32 %v15470_v50, %v10627_v49  ;;  %v6096_v49 = vpop.f32.mrf.mxu2 }
 0x1b4   :  { %v13277_v61 = vld [vmem:[#allocation2 + $0x1860] sm:$0xf0] }
 0x1b5   :  { %v15929_v63 = vld [vmem:[#allocation2 + $0x1204] sm:$0xf]  ;;  %v13280_v7 = vor.u32 %v16129_v60, %v13277_v61  ;;  %6301 = vmatpush.bf16.msra.mxu2 %v13024_v2  ;;  %v10339_v60 = vld [vmem:[#allocation2 + $0x148] sm:$0xf] }
 0x1b6   :  { %v12477_v0 = vld [vmem:[#allocation2 + $0x1220] sm:$0xf0]  ;;  %v15398_v61 = vld [vmem:[#allocation2 + $0x164] sm:$0xf0] }
 0x1b7   :  { %v15993_v3 = vld [vmem:[#allocation2 + $0x1404] sm:$0xf]  ;;  %v12480_v24 = vor.u32 %v15929_v63, %v12477_v0  ;;  %6314 = vmatpush.bf16.msra.mxu3 %v13280_v7  ;;  %v15462_v63 = vld [vmem:[#allocation2 + $0x364] sm:$0xf0]  ;;  %v10340_v2 = vor.u32 %v15398_v61, %v10339_v60 }
 0x1b8   :  { %v12733_v4 = vld [vmem:[#allocation2 + $0x1420] sm:$0xf0]  ;;  %v10596_v6 = vor.u32 %v15462_v63, %v10595_v62 }
 0x1b9   :  { %v16057_v5 = vld [vmem:[#allocation2 + $0x1604] sm:$0xf]  ;;  %v12736_v30 = vor.u32 %v15993_v3, %v12733_v4  ;;  %6276 = vmatpush.bf16.msra.mxu0 %v12480_v24  ;;  %v6083_v24 = vpop.f32.mrf.mxu1 }
 0x1ba   :  { %v12989_v10 = vld [vmem:[#allocation2 + $0x1620] sm:$0xf0] }
 0x1bb   :  { %v16121_v11 = vld [vmem:[#allocation2 + $0x1804] sm:$0xf]  ;;  %v12992_v31 = vor.u32 %v16057_v5, %v12989_v10  ;;  %6289 = vmatpush.bf16.msra.mxu1 %v12736_v30  ;;  %v10307_v10 = vld [vmem:[#allocation2 + $0x108] sm:$0xf] }
 0x1bc   :  { %v13245_v13 = vld [vmem:[#allocation2 + $0x1820] sm:$0xf0]  ;;  %6277 = vmatmul.bf16.vlgmr.msra.gmra.mxu0 %v17028_v23 }
 0x1bd   :  { %v16241_v16 = vld [vmem:[#allocation2 + $0x1bc4] sm:$0xf]  ;;  %v13248_v35 = vor.u32 %v16121_v11, %v13245_v13  ;;  %6302 = vmatpush.bf16.msra.mxu2 %v12992_v31  ;;  %v15390_v11 = vld [vmem:[#allocation2 + $0x124] sm:$0xf0]  ;;  %v6070_v13 = vpop.f32.mrf.mxu0 }
 0x1be   :  { %v13725_v20 = vld [vmem:[#allocation2 + $0x1be0] sm:$0xf0]  ;;  %6290 = vmatmul.bf16.vlgmr.msra.gmra.mxu1 %v17026_v22  ;;  %v10308_v28 = vor.u32 %v15390_v11, %v10307_v10  ;;  %v15430_v10 = vld [vmem:[#allocation2 + $0x264] sm:$0xf0] }
 0x1bf   :  { %v16305_v21 = vld [vmem:[#allocation2 + $0x1dc4] sm:$0xf]  ;;  %v13728_v57 = vor.u32 %v16241_v16, %v13725_v20  ;;  %6315 = vmatpush.bf16.msra.mxu3 %v13248_v35  ;;  %v15454_v16 = vld [vmem:[#allocation2 + $0x324] sm:$0xf0]  ;;  %v6071_v20 = vadd.f32 %v6070_v13, %v17066_v47 }
 0x1c0   :  { %v13981_v26 = vld [vmem:[#allocation2 + $0x1de0] sm:$0xf0]  ;;  %6303 = vmatmul.bf16.vlgmr.msra.gmra.mxu2 %v17030_v27  ;;  %v10564_v32 = vor.u32 %v15454_v16, %v10563_v14 }
 0x1c1   :  { %v13984_v36 = vor.u32 %v16305_v21, %v13981_v26  ;;  %v16233_v41 = vld [vmem:[#allocation2 + $0x1b84] sm:$0xf]  ;;  %6321 = vmatpush.bf16.msrb.mxu0 %v13728_v57  ;;  %6347 = vmatpush.bf16.msrb.mxu2 %v10404_v39  ;;  %v6084_v33 = vadd.f32 %v6083_v24, %v6071_v20  ;;  %v10275_v57 = vld [vmem:[#allocation2 + $0xc8] sm:$0xf]  ;;  %v6085_v60 = vpop.f32.mrf.mxu1 }
 0x1c2   :  { %v13693_v42 = vld [vmem:[#allocation2 + $0x1ba0] sm:$0xf0]  ;;  %6316 = vmatmul.bf16.vlgmr.msra.gmra.mxu3 %v17045_v12  ;;  %v10531_v39 = vld [vmem:[#allocation2 + $0x2c8] sm:$0xf] }
 0x1c3   :  { %v16297_v43 = vld [vmem:[#allocation2 + $0x1d84] sm:$0xf]  ;;  %v13696_v51 = vor.u32 %v16233_v41, %v13693_v42  ;;  %6334 = vmatpush.bf16.msrb.mxu1 %v13984_v36  ;;  %6360 = vmatpush.bf16.msrb.mxu3 %v10660_v44  ;;  %v15382_v36 = vld [vmem:[#allocation2 + $0xe4] sm:$0xf0] }
 0x1c4   :  { %v13949_v45 = vld [vmem:[#allocation2 + $0x1da0] sm:$0xf0]  ;;  %v15446_v41 = vld [vmem:[#allocation2 + $0x2e4] sm:$0xf0] }
 0x1c5   :  { %v13952_v52 = vor.u32 %v16297_v43, %v13949_v45  ;;  %v16225_v54 = vld [vmem:[#allocation2 + $0x1b44] sm:$0xf]  ;;  %6322 = vmatpush.bf16.msrb.mxu0 %v13696_v51  ;;  %6348 = vmatpush.bf16.msrb.mxu2 %v10372_v53  ;;  %v10276_v43 = vor.u32 %v15382_v36, %v10275_v57  ;;  %v10532_v48 = vor.u32 %v15446_v41, %v10531_v39  ;;  %v10243_v51 = vld [vmem:[#allocation2 + $0x88] sm:$0xf] }
 0x1c6   :  { %v13661_v55 = vld [vmem:[#allocation2 + $0x1b60] sm:$0xf0]  ;;  %v6097_v53 = vadd.f32 %v6096_v49, %v6084_v33  ;;  %v10915_v33 = vld [vmem:[#allocation2 + $0x5c8] sm:$0xf] }
 0x1c7   :  { %v16289_v56 = vld [vmem:[#allocation2 + $0x1d44] sm:$0xf]  ;;  %v13664_v0 = vor.u32 %v16225_v54, %v13661_v55  ;;  %6335 = vmatpush.bf16.msrb.mxu1 %v13952_v52  ;;  %6361 = vmatpush.bf16.msrb.mxu3 %v10628_v58  ;;  %v15374_v52 = vld [vmem:[#allocation2 + $0xa4] sm:$0xf0]  ;;  %v6109_v54 = vpop.f32.mrf.mxu3  ;;  %v6072_v58 = vpop.f32.mrf.mxu0 }
 0x1c8   :  { %v13917_v59 = vld [vmem:[#allocation2 + $0x1d60] sm:$0xf0]  ;;  %v10499_v55 = vld [vmem:[#allocation2 + $0x288] sm:$0xf]  ;;  %v17073_v61 = vadd.f32 %v6109_v54, %v6097_v53  ;;  %v10244_v63 = vor.u32 %v15374_v52, %v10243_v51 }
 0x1c9   :  { %v13920_v1 = vor.u32 %v16289_v56, %v13917_v59  ;;  %v16217_v3 = vld [vmem:[#allocation2 + $0x1b04] sm:$0xf]  ;;  %6323 = vmatpush.bf16.msrb.mxu0 %v13664_v0  ;;  %6349 = vmatpush.bf16.msrb.mxu2 %v10340_v2  ;;  %v15438_v56 = vld [vmem:[#allocation2 + $0x2a4] sm:$0xf0] }
 0x1ca   :  { %v13629_v4 = vld [vmem:[#allocation2 + $0x1b20] sm:$0xf0]  ;;  %v11171_v57 = vld [vmem:[#allocation2 + $0x7c8] sm:$0xf] }
 0x1cb   :  { %v16281_v5 = vld [vmem:[#allocation2 + $0x1d04] sm:$0xf]  ;;  %v13632_v21 = vor.u32 %v16217_v3, %v13629_v4  ;;  %6336 = vmatpush.bf16.msrb.mxu1 %v13920_v1  ;;  %6362 = vmatpush.bf16.msrb.mxu3 %v10596_v6  ;;  %v10500_v3 = vor.u32 %v15438_v56, %v10499_v55  ;;  %v15366_v6 = vld [vmem:[#allocation2 + $0x64] sm:$0xf0] }
 0x1cc   :  { %v13885_v7 = vld [vmem:[#allocation2 + $0x1d20] sm:$0xf0]  ;;  %v15606_v41 = vld [vmem:[#allocation2 + $0x7e4] sm:$0xf0] }
 0x1cd   :  { %v13888_v26 = vor.u32 %v16281_v5, %v13885_v7  ;;  %v16209_v29 = vld [vmem:[#allocation2 + $0x1ac4] sm:$0xf]  ;;  %6324 = vmatpush.bf16.msrb.mxu0 %v13632_v21  ;;  %6350 = vmatpush.bf16.msrb.mxu2 %v10308_v28  ;;  %v10211_v5 = vld [vmem:[#allocation2 + $0x48] sm:$0xf] }
 0x1ce   :  { %v13597_v30 = vld [vmem:[#allocation2 + $0x1ae0] sm:$0xf0]  ;;  %v10467_v7 = vld [vmem:[#allocation2 + $0x248] sm:$0xf]  ;;  %v10212_v20 = vor.u32 %v15366_v6, %v10211_v5 }
 0x1cf   :  { %v16273_v31 = vld [vmem:[#allocation2 + $0x1cc4] sm:$0xf]  ;;  %v13600_v42 = vor.u32 %v16209_v29, %v13597_v30  ;;  %6337 = vmatpush.bf16.msrb.mxu1 %v13888_v26  ;;  %6363 = vmatpush.bf16.msrb.mxu3 %v10564_v32  ;;  %v10179_v26 = vld [vmem:[#allocation2 + $0x8] sm:$0xf]  ;;  %v10468_v28 = vor.u32 %v15430_v10, %v10467_v7  ;;  %v6098_v32 = vpop.f32.mrf.mxu2  ;;  %v6111_v36 = vpop.f32.mrf.mxu3 }
 0x1d0   :  { %v13853_v35 = vld [vmem:[#allocation2 + $0x1ce0] sm:$0xf0]  ;;  %v15358_v29 = vld [vmem:[#allocation2 + $0x24] sm:$0xf0]  ;;  %v6122_v32 = vpop.f32.mrf.mxu0 }
 0x1d1   :  { %v13856_v47 = vor.u32 %v16273_v31, %v13853_v35  ;;  %v16201_v44 = vld [vmem:[#allocation2 + $0x1a84] sm:$0xf]  ;;  %6325 = vmatpush.bf16.msrb.mxu0 %v13600_v42  ;;  %6351 = vmatpush.bf16.msrb.mxu2 %v10276_v43  ;;  %v10435_v30 = vld [vmem:[#allocation2 + $0x208] sm:$0xf] }
 0x1d2   :  { %v13565_v45 = vld [vmem:[#allocation2 + $0x1aa0] sm:$0xf0]  ;;  %v15422_v31 = vld [vmem:[#allocation2 + $0x224] sm:$0xf0] }
 0x1d3   :  { %v16265_v46 = vld [vmem:[#allocation2 + $0x1c84] sm:$0xf]  ;;  %v13568_v59 = vor.u32 %v16201_v44, %v13565_v45  ;;  %6338 = vmatpush.bf16.msrb.mxu1 %v13856_v47  ;;  %6364 = vmatpush.bf16.msrb.mxu3 %v10532_v48  ;;  %v15542_v35 = vld [vmem:[#allocation2 + $0x5e4] sm:$0xf0]  ;;  %v10180_v44 = vor.u32 %v15358_v29, %v10179_v26  ;;  %v10436_v48 = vor.u32 %v15422_v31, %v10435_v30 }
 0x1d4   :  { %v13821_v50 = vld [vmem:[#allocation2 + $0x1ca0] sm:$0xf0]  ;;  %v11427_v42 = vld [vmem:[#allocation2 + $0x9c8] sm:$0xf]  ;;  %v10916_v49 = vor.u32 %v15542_v35, %v10915_v33 }
 0x1d5   :  { %v13824_v62 = vor.u32 %v16265_v46, %v13821_v50  ;;  %v16193_v0 = vld [vmem:[#allocation2 + $0x1a44] sm:$0xf]  ;;  %6326 = vmatpush.bf16.msrb.mxu0 %v13568_v59  ;;  %6352 = vmatpush.bf16.msrb.mxu2 %v10244_v63  ;;  %v15670_v47 = vld [vmem:[#allocation2 + $0x9e4] sm:$0xf0]  ;;  %v11172_v50 = vor.u32 %v15606_v41, %v11171_v57  ;;  %v6123_v57 = vadd.f32 %v6122_v32, %v17073_v61 }
 0x1d6   :  { %v13533_v1 = vld [vmem:[#allocation2 + $0x1a60] sm:$0xf0]  ;;  %v11683_v45 = vld [vmem:[#allocation2 + $0xbc8] sm:$0xf]  ;;  %v11428_v51 = vor.u32 %v15670_v47, %v11427_v42 }
 0x1d7   :  { %v16257_v2 = vld [vmem:[#allocation2 + $0x1c44] sm:$0xf]  ;;  %v13536_v11 = vor.u32 %v16193_v0, %v13533_v1  ;;  %6339 = vmatpush.bf16.msrb.mxu1 %v13824_v62  ;;  %6365 = vmatpush.bf16.msrb.mxu3 %v10500_v3  ;;  %v15734_v46 = vld [vmem:[#allocation2 + $0xbe4] sm:$0xf0] }
 0x1d8   :  { %v13789_v4 = vld [vmem:[#allocation2 + $0x1c60] sm:$0xf0]  ;;  %v10883_v52 = vld [vmem:[#allocation2 + $0x588] sm:$0xf]  ;;  %v11684_v55 = vor.u32 %v15734_v46, %v11683_v45 }
 0x1d9   :  { %v16185_v13 = vld [vmem:[#allocation2 + $0x1a04] sm:$0xf]  ;;  %v13792_v16 = vor.u32 %v16257_v2, %v13789_v4  ;;  %6327 = vmatpush.bf16.msrb.mxu0 %v13536_v11  ;;  %6353 = vmatpush.bf16.msrb.mxu2 %v10212_v20  ;;  %v15534_v53 = vld [vmem:[#allocation2 + $0x5a4] sm:$0xf0] }
 0x1da   :  { %v13501_v14 = vld [vmem:[#allocation2 + $0x1a20] sm:$0xf0]  ;;  %v11139_v54 = vld [vmem:[#allocation2 + $0x788] sm:$0xf]  ;;  %v10884_v63 = vor.u32 %v15534_v53, %v10883_v52 }
 0x1db   :  { %v16249_v21 = vld [vmem:[#allocation2 + $0x1c04] sm:$0xf]  ;;  %v13504_v39 = vor.u32 %v16185_v13, %v13501_v14  ;;  %6340 = vmatpush.bf16.msrb.mxu1 %v13792_v16  ;;  %6366 = vmatpush.bf16.msrb.mxu3 %v10468_v28  ;;  %v15598_v56 = vld [vmem:[#allocation2 + $0x7a4] sm:$0xf0] }
 0x1dc   :  { %v13757_v24 = vld [vmem:[#allocation2 + $0x1c20] sm:$0xf0]  ;;  %v11395_v58 = vld [vmem:[#allocation2 + $0x988] sm:$0xf]  ;;  %v11140_v0 = vor.u32 %v15598_v56, %v11139_v54 }
 0x1dd   :  { %v13760_v43 = vor.u32 %v16249_v21, %v13757_v24  ;;  %6328 = vmatpush.bf16.msrb.mxu0 %v13504_v39  ;;  %v15662_v59 = vld [vmem:[#allocation2 + $0x9a4] sm:$0xf0]  ;;  %6354 = vmatpush.bf16.msrb.mxu2 %v10180_v44  ;;  %v6135_v39 = vpop.f32.mrf.mxu1 }
 0x1de   :  { %v11651_v60 = vld [vmem:[#allocation2 + $0xb88] sm:$0xf]  ;;  %v11396_v1 = vor.u32 %v15662_v59, %v11395_v58  ;;  %v6136_v46 = vadd.f32 %v6135_v39, %v6123_v57 }
 0x1df   :  { %6341 = vmatpush.bf16.msrb.mxu1 %v13760_v43  ;;  %v15726_v62 = vld [vmem:[#allocation2 + $0xba4] sm:$0xf0]  ;;  %6367 = vmatpush.bf16.msrb.mxu3 %v10436_v48 }
 0x1e0   :  { %v10851_v2 = vld [vmem:[#allocation2 + $0x548] sm:$0xf]  ;;  %6329 = vmatmul.bf16.vlgmr.msrb.gmra.mxu0 %v17049_v19  ;;  %v11652_v5 = vor.u32 %v15726_v62, %v11651_v60  ;;  %6355 = vmatmul.bf16.vlgmr.msrb.gmra.mxu2 %v16972_v9  ;;  %v6148_v60 = vpop.f32.mrf.mxu2 }
 0x1e1   :  { %6373 = vmatpush.bf16.msra.mxu0 %v10916_v49  ;;  %6399 = vmatpush.bf16.msra.mxu2 %v11428_v51  ;;  %v15526_v3 = vld [vmem:[#allocation2 + $0x564] sm:$0xf0] }
 0x1e2   :  { %v11107_v4 = vld [vmem:[#allocation2 + $0x748] sm:$0xf]  ;;  %6342 = vmatmul.bf16.vlgmr.msrb.gmra.mxu1 %v17047_v17  ;;  %v10852_v14 = vor.u32 %v15526_v3, %v10851_v2  ;;  %6368 = vmatmul.bf16.vlgmr.msrb.gmra.mxu3 %v16985_v25 }
 0x1e3   :  { %6386 = vmatpush.bf16.msra.mxu1 %v11172_v50  ;;  %6412 = vmatpush.bf16.msra.mxu3 %v11684_v55  ;;  %v15590_v6 = vld [vmem:[#allocation2 + $0x764] sm:$0xf0] }
 0x1e4   :  { %v11363_v7 = vld [vmem:[#allocation2 + $0x948] sm:$0xf]  ;;  %v11108_v16 = vor.u32 %v15590_v6, %v11107_v4  ;;  %v17082_v4 = vpop.f32.mrf.mxu3 }
 0x1e5   :  { %v15654_v10 = vld [vmem:[#allocation2 + $0x964] sm:$0xf0]  ;;  %6374 = vmatpush.bf16.msra.mxu0 %v10884_v63  ;;  %6400 = vmatpush.bf16.msra.mxu2 %v11396_v1  ;;  %v17080_v1 = vadd.f32 %v6148_v60, %v6136_v46 }
 0x1e6   :  { %v11619_v11 = vld [vmem:[#allocation2 + $0xb48] sm:$0xf]  ;;  %v11364_v20 = vor.u32 %v15654_v10, %v11363_v7  ;;  %v6137_v7 = vpop.f32.mrf.mxu1 }
 0x1e7   :  { %v15718_v13 = vld [vmem:[#allocation2 + $0xb64] sm:$0xf0]  ;;  %6387 = vmatpush.bf16.msra.mxu1 %v11140_v0  ;;  %6413 = vmatpush.bf16.msra.mxu3 %v11652_v5  ;;  %v6124_v5 = vpop.f32.mrf.mxu0 }
 0x1e8   :  { %v10819_v21 = vld [vmem:[#allocation2 + $0x508] sm:$0xf]  ;;  %v11620_v28 = vor.u32 %v15718_v13, %v11619_v11 }
 0x1e9   :  { %v15518_v24 = vld [vmem:[#allocation2 + $0x524] sm:$0xf0]  ;;  %6375 = vmatpush.bf16.msra.mxu0 %v10852_v14  ;;  %6401 = vmatpush.bf16.msra.mxu2 %v11364_v20 }
 0x1ea   :  { %v11075_v26 = vld [vmem:[#allocation2 + $0x708] sm:$0xf]  ;;  %v10820_v36 = vor.u32 %v15518_v24, %v10819_v21 }
 0x1eb   :  { %v15582_v29 = vld [vmem:[#allocation2 + $0x724] sm:$0xf0]  ;;  %6388 = vmatpush.bf16.msra.mxu1 %v11108_v16  ;;  %6414 = vmatpush.bf16.msra.mxu3 %v11620_v28 }
 0x1ec   :  { %v11331_v30 = vld [vmem:[#allocation2 + $0x908] sm:$0xf]  ;;  %v11076_v41 = vor.u32 %v15582_v29, %v11075_v26 }
 0x1ed   :  { %v15646_v31 = vld [vmem:[#allocation2 + $0x924] sm:$0xf0]  ;;  %6376 = vmatpush.bf16.msra.mxu0 %v10820_v36 }
 0x1ee   :  { %v11587_v33 = vld [vmem:[#allocation2 + $0xb08] sm:$0xf]  ;;  %v11332_v42 = vor.u32 %v15646_v31, %v11331_v30 }
 0x1ef   :  { %v15710_v35 = vld [vmem:[#allocation2 + $0xb24] sm:$0xf0]  ;;  %6389 = vmatpush.bf16.msra.mxu1 %v11076_v41 }
 0x1f0   :  { %v10787_v47 = vld [vmem:[#allocation2 + $0x4c8] sm:$0xf]  ;;  %v11588_v45 = vor.u32 %v15710_v35, %v11587_v33  ;;  %6402 = vmatpush.bf16.msra.mxu2 %v11332_v42 }
 0x1f1   :  { %v15510_v43 = vld [vmem:[#allocation2 + $0x4e4] sm:$0xf0] }
 0x1f2   :  { %v11043_v44 = vld [vmem:[#allocation2 + $0x6c8] sm:$0xf]  ;;  %v10788_v53 = vor.u32 %v15510_v43, %v10787_v47  ;;  %6415 = vmatpush.bf16.msra.mxu3 %v11588_v45 }
 0x1f3   :  { %v15574_v48 = vld [vmem:[#allocation2 + $0x6e4] sm:$0xf0] }
 0x1f4   :  { %v11299_v49 = vld [vmem:[#allocation2 + $0x8c8] sm:$0xf]  ;;  %v11044_v61 = vor.u32 %v15574_v48, %v11043_v44  ;;  %6377 = vmatpush.bf16.msra.mxu0 %v10788_v53  ;;  %v6150_v44 = vpop.f32.mrf.mxu2 }
 0x1f5   :  { %v15638_v50 = vld [vmem:[#allocation2 + $0x8e4] sm:$0xf0] }
 0x1f6   :  { %v11555_v51 = vld [vmem:[#allocation2 + $0xac8] sm:$0xf]  ;;  %v11300_v54 = vor.u32 %v15638_v50, %v11299_v49  ;;  %6390 = vmatpush.bf16.msra.mxu1 %v11044_v61  ;;  %v6163_v49 = vpop.f32.mrf.mxu3 }
 0x1f7   :  { %v15702_v52 = vld [vmem:[#allocation2 + $0xae4] sm:$0xf0] }
 0x1f8   :  { %v10755_v55 = vld [vmem:[#allocation2 + $0x488] sm:$0xf]  ;;  %v11556_v59 = vor.u32 %v15702_v52, %v11555_v51  ;;  %6403 = vmatpush.bf16.msra.mxu2 %v11300_v54 }
 0x1f9   :  { %v15502_v56 = vld [vmem:[#allocation2 + $0x4a4] sm:$0xf0] }
 0x1fa   :  { %v11011_v58 = vld [vmem:[#allocation2 + $0x688] sm:$0xf]  ;;  %v10756_v6 = vor.u32 %v15502_v56, %v10755_v55  ;;  %6416 = vmatpush.bf16.msra.mxu3 %v11556_v59 }
 0x1fb   :  { %v15566_v62 = vld [vmem:[#allocation2 + $0x6a4] sm:$0xf0] }
 0x1fc   :  { %v11267_v63 = vld [vmem:[#allocation2 + $0x888] sm:$0xf]  ;;  %v11012_v10 = vor.u32 %v15566_v62, %v11011_v58  ;;  %6378 = vmatpush.bf16.msra.mxu0 %v10756_v6 }
 0x1fd   :  { %v15630_v0 = vld [vmem:[#allocation2 + $0x8a4] sm:$0xf0] }
 0x1fe   :  { %v11523_v2 = vld [vmem:[#allocation2 + $0xa88] sm:$0xf]  ;;  %v11268_v11 = vor.u32 %v15630_v0, %v11267_v63  ;;  %6391 = vmatpush.bf16.msra.mxu1 %v11012_v10 }
 0x1ff   :  { %v15694_v3 = vld [vmem:[#allocation2 + $0xaa4] sm:$0xf0] }
 0x200   :  { %v10723_v13 = vld [vmem:[#allocation2 + $0x448] sm:$0xf]  ;;  %v11524_v20 = vor.u32 %v15694_v3, %v11523_v2  ;;  %6404 = vmatpush.bf16.msra.mxu2 %v11268_v11 }
 0x201   :  { %v15494_v14 = vld [vmem:[#allocation2 + $0x464] sm:$0xf0] }
 0x202   :  { %v10979_v16 = vld [vmem:[#allocation2 + $0x648] sm:$0xf]  ;;  %v10724_v30 = vor.u32 %v15494_v14, %v10723_v13  ;;  %6417 = vmatpush.bf16.msra.mxu3 %v11524_v20 }
 0x203   :  { %v15558_v21 = vld [vmem:[#allocation2 + $0x664] sm:$0xf0] }
 0x204   :  { %v11235_v24 = vld [vmem:[#allocation2 + $0x848] sm:$0xf]  ;;  %v10980_v33 = vor.u32 %v15558_v21, %v10979_v16  ;;  %6379 = vmatpush.bf16.msra.mxu0 %v10724_v30 }
 0x205   :  { %v15622_v26 = vld [vmem:[#allocation2 + $0x864] sm:$0xf0] }
 0x206   :  { %v11491_v28 = vld [vmem:[#allocation2 + $0xa48] sm:$0xf]  ;;  %v11236_v35 = vor.u32 %v15622_v26, %v11235_v24  ;;  %6392 = vmatpush.bf16.msra.mxu1 %v10980_v33  ;;  %v17084_v26 = vld [vmem:[#allocation4] sm:$0xff] }
 0x207   :  { %v15686_v29 = vld [vmem:[#allocation2 + $0xa64] sm:$0xf0] }
 0x208   :  { %v10691_v31 = vld [vmem:[#allocation2 + $0x408] sm:$0xf]  ;;  %v11492_v41 = vor.u32 %v15686_v29, %v11491_v28  ;;  %6405 = vmatpush.bf16.msra.mxu2 %v11236_v35  ;;  %v1142_v28 = vperm.slane %v17084_v26, 1 }
 0x209   :  { %v15486_v32 = vld [vmem:[#allocation2 + $0x424] sm:$0xf0] }
 0x20a   :  { %v10947_v57 = vld [vmem:[#allocation2 + $0x608] sm:$0xf]  ;;  %v10692_v50 = vor.u32 %v15486_v32, %v10691_v31  ;;  %6418 = vmatpush.bf16.msra.mxu3 %v11492_v41  ;;  %v6162_v41 = vadd.f32 %v17082_v4, %v1142_v28 }
 0x20b   :  { %v15550_v36 = vld [vmem:[#allocation2 + $0x624] sm:$0xf0] }
 0x20c   :  { %v11203_v39 = vld [vmem:[#allocation2 + $0x808] sm:$0xf]  ;;  %v10948_v61 = vor.u32 %v15550_v36, %v10947_v57  ;;  %6380 = vmatpush.bf16.msra.mxu0 %v10692_v50 }
 0x20d   :  { %v15614_v42 = vld [vmem:[#allocation2 + $0x824] sm:$0xf0] }
 0x20e   :  { %v11459_v47 = vld [vmem:[#allocation2 + $0xa08] sm:$0xf]  ;;  %v11204_v54 = vor.u32 %v15614_v42, %v11203_v39  ;;  %6393 = vmatpush.bf16.msra.mxu1 %v10948_v61 }
 0x20f   :  { %v15678_v43 = vld [vmem:[#allocation2 + $0xa24] sm:$0xf0]  ;;  %6381 = vmatmul.bf16.vlgmr.msra.gmra.mxu0 %v16970_v8 }
 0x210   :  { %v11939_v45 = vld [vmem:[#allocation2 + $0xdc8] sm:$0xf]  ;;  %v11460_v58 = vor.u32 %v15678_v43, %v11459_v47  ;;  %6406 = vmatpush.bf16.msra.mxu2 %v11204_v54 }
 0x211   :  { %v15798_v46 = vld [vmem:[#allocation2 + $0xde4] sm:$0xf0]  ;;  %6394 = vmatmul.bf16.vlgmr.msra.gmra.mxu1 %v16977_v15 }
 0x212   :  { %v12195_v48 = vld [vmem:[#allocation2 + $0xfc8] sm:$0xf]  ;;  %v11940_v59 = vor.u32 %v15798_v46, %v11939_v45  ;;  %6419 = vmatpush.bf16.msra.mxu3 %v11460_v58  ;;  %v6187_v58 = vpop.f32.mrf.mxu1 }
 0x213   :  { %v15862_v51 = vld [vmem:[#allocation2 + $0xfe4] sm:$0xf0]  ;;  %6407 = vmatmul.bf16.vlgmr.msra.gmra.mxu2 %v17002_v37 }
 0x214   :  { %v12451_v52 = vld [vmem:[#allocation2 + $0x11c8] sm:$0xf]  ;;  %v12196_v60 = vor.u32 %v15862_v51, %v12195_v48  ;;  %6425 = vmatpush.bf16.msrb.mxu0 %v11940_v59 }
 0x215   :  { %v15926_v53 = vld [vmem:[#allocation2 + $0x11e4] sm:$0xf0]  ;;  %6420 = vmatmul.bf16.vlgmr.msra.gmra.mxu3 %v17006_v40 }
 0x216   :  { %v12707_v55 = vld [vmem:[#allocation2 + $0x13c8] sm:$0xf]  ;;  %v12452_v62 = vor.u32 %v15926_v53, %v12451_v52  ;;  %6438 = vmatpush.bf16.msrb.mxu1 %v12196_v60  ;;  %v6174_v52 = vpop.f32.mrf.mxu0 }
 0x217   :  { %v15990_v56 = vld [vmem:[#allocation2 + $0x13e4] sm:$0xf0] }
 0x218   :  { %v11907_v63 = vld [vmem:[#allocation2 + $0xd88] sm:$0xf]  ;;  %v12708_v3 = vor.u32 %v15990_v56, %v12707_v55  ;;  %6451 = vmatpush.bf16.msrb.mxu2 %v12452_v62  ;;  %v6175_v56 = vadd.f32 %v6174_v52, %v6162_v41 }
 0x219   :  { %v15790_v0 = vld [vmem:[#allocation2 + $0xda4] sm:$0xf0] }
 0x21a   :  { %v12163_v2 = vld [vmem:[#allocation2 + $0xf88] sm:$0xf]  ;;  %v11908_v13 = vor.u32 %v15790_v0, %v11907_v63  ;;  %6464 = vmatpush.bf16.msrb.mxu3 %v12708_v3  ;;  %v6188_v3 = vadd.f32 %v6187_v58, %v6175_v56 }
 0x21b   :  { %v15854_v5 = vld [vmem:[#allocation2 + $0xfa4] sm:$0xf0] }
 0x21c   :  { %v12419_v6 = vld [vmem:[#allocation2 + $0x1188] sm:$0xf]  ;;  %v12164_v16 = vor.u32 %v15854_v5, %v12163_v2  ;;  %6426 = vmatpush.bf16.msrb.mxu0 %v11908_v13 }
 0x21d   :  { %v15918_v7 = vld [vmem:[#allocation2 + $0x11a4] sm:$0xf0] }
 0x21e   :  { %v12675_v10 = vld [vmem:[#allocation2 + $0x1388] sm:$0xf]  ;;  %v12420_v20 = vor.u32 %v15918_v7, %v12419_v6  ;;  %6439 = vmatpush.bf16.msrb.mxu1 %v12164_v16 }
 0x21f   :  { %v15982_v11 = vld [vmem:[#allocation2 + $0x13a4] sm:$0xf0] }
 0x220   :  { %v11875_v14 = vld [vmem:[#allocation2 + $0xd48] sm:$0xf]  ;;  %v12676_v29 = vor.u32 %v15982_v11, %v12675_v10  ;;  %6452 = vmatpush.bf16.msrb.mxu2 %v12420_v20 }
 0x221   :  { %v15782_v21 = vld [vmem:[#allocation2 + $0xd64] sm:$0xf0] }
 0x222   :  { %v12131_v24 = vld [vmem:[#allocation2 + $0xf48] sm:$0xf]  ;;  %v11876_v57 = vor.u32 %v15782_v21, %v11875_v14  ;;  %6465 = vmatpush.bf16.msrb.mxu3 %v12676_v29  ;;  %v6200_v14 = vpop.f32.mrf.mxu2  ;;  %v6213_v29 = vpop.f32.mrf.mxu3 }
 0x223   :  { %v15846_v30 = vld [vmem:[#allocation2 + $0xf64] sm:$0xf0]  ;;  %v6201_v28 = vadd.f32 %v6200_v14, %v6188_v3 }
 0x224   :  { %v12387_v31 = vld [vmem:[#allocation2 + $0x1148] sm:$0xf]  ;;  %v12132_v36 = vor.u32 %v15846_v30, %v12131_v24  ;;  %6427 = vmatpush.bf16.msrb.mxu0 %v11876_v57 }
 0x225   :  { %v15910_v32 = vld [vmem:[#allocation2 + $0x1164] sm:$0xf0] }
 0x226   :  { %v12643_v33 = vld [vmem:[#allocation2 + $0x1348] sm:$0xf]  ;;  %v12388_v39 = vor.u32 %v15910_v32, %v12387_v31  ;;  %6440 = vmatpush.bf16.msrb.mxu1 %v12132_v36 }
 0x227   :  { %v15974_v35 = vld [vmem:[#allocation2 + $0x1364] sm:$0xf0] }
 0x228   :  { %v11843_v42 = vld [vmem:[#allocation2 + $0xd08] sm:$0xf]  ;;  %v12644_v44 = vor.u32 %v15974_v35, %v12643_v33  ;;  %6453 = vmatpush.bf16.msrb.mxu2 %v12388_v39  ;;  %v17092_v33 = vadd.f32 %v6213_v29, %v6201_v28  ;;  %v6176_v35 = vpop.f32.mrf.mxu0 }
 0x229   :  { %v15774_v47 = vld [vmem:[#allocation2 + $0xd24] sm:$0xf0] }
 0x22a   :  { %v12099_v43 = vld [vmem:[#allocation2 + $0xf08] sm:$0xf]  ;;  %v11844_v51 = vor.u32 %v15774_v47, %v11843_v42  ;;  %6466 = vmatpush.bf16.msrb.mxu3 %v12644_v44  ;;  %v6189_v47 = vpop.f32.mrf.mxu1  ;;  %v6202_v56 = vpop.f32.mrf.mxu2 }
 0x22b   :  { %v15838_v45 = vld [vmem:[#allocation2 + $0xf24] sm:$0xf0] }
 0x22c   :  { %v12355_v46 = vld [vmem:[#allocation2 + $0x1108] sm:$0xf]  ;;  %v12100_v53 = vor.u32 %v15838_v45, %v12099_v43  ;;  %6428 = vmatpush.bf16.msrb.mxu0 %v11844_v51 }
 0x22d   :  { %v15902_v48 = vld [vmem:[#allocation2 + $0x1124] sm:$0xf0] }
 0x22e   :  { %v12611_v49 = vld [vmem:[#allocation2 + $0x1308] sm:$0xf]  ;;  %v12356_v61 = vor.u32 %v15902_v48, %v12355_v46  ;;  %6441 = vmatpush.bf16.msrb.mxu1 %v12100_v53 }
 0x22f   :  { %v15966_v50 = vld [vmem:[#allocation2 + $0x1324] sm:$0xf0] }
 0x230   :  { %v11811_v54 = vld [vmem:[#allocation2 + $0xcc8] sm:$0xf]  ;;  %v12612_v59 = vor.u32 %v15966_v50, %v12611_v49  ;;  %6454 = vmatpush.bf16.msrb.mxu2 %v12356_v61 }
 0x231   :  { %v15766_v55 = vld [vmem:[#allocation2 + $0xce4] sm:$0xf0] }
 0x232   :  { %v12067_v4 = vld [vmem:[#allocation2 + $0xec8] sm:$0xf]  ;;  %v11812_v5 = vor.u32 %v15766_v55, %v11811_v54  ;;  %6467 = vmatpush.bf16.msrb.mxu3 %v12612_v59 }
 0x233   :  { %v15830_v60 = vld [vmem:[#allocation2 + $0xee4] sm:$0xf0] }
 0x234   :  { %v12323_v62 = vld [vmem:[#allocation2 + $0x10c8] sm:$0xf]  ;;  %v12068_v6 = vor.u32 %v15830_v60, %v12067_v4  ;;  %6429 = vmatpush.bf16.msrb.mxu0 %v11812_v5 }
 0x235   :  { %v15894_v63 = vld [vmem:[#allocation2 + $0x10e4] sm:$0xf0] }
 0x236   :  { %v12579_v0 = vld [vmem:[#allocation2 + $0x12c8] sm:$0xf]  ;;  %v12324_v7 = vor.u32 %v15894_v63, %v12323_v62  ;;  %6442 = vmatpush.bf16.msrb.mxu1 %v12068_v6  ;;  %v6215_v63 = vpop.f32.mrf.mxu3 }
 0x237   :  { %v15958_v2 = vld [vmem:[#allocation2 + $0x12e4] sm:$0xf0] }
 0x238   :  { %v11779_v10 = vld [vmem:[#allocation2 + $0xc88] sm:$0xf]  ;;  %v12580_v16 = vor.u32 %v15958_v2, %v12579_v0  ;;  %6455 = vmatpush.bf16.msrb.mxu2 %v12324_v7 }
 0x239   :  { %v15758_v11 = vld [vmem:[#allocation2 + $0xca4] sm:$0xf0] }
 0x23a   :  { %v12035_v13 = vld [vmem:[#allocation2 + $0xe88] sm:$0xf]  ;;  %v11780_v32 = vor.u32 %v15758_v11, %v11779_v10  ;;  %6468 = vmatpush.bf16.msrb.mxu3 %v12580_v16 }
 0x23b   :  { %v15822_v20 = vld [vmem:[#allocation2 + $0xea4] sm:$0xf0] }
 0x23c   :  { %v12291_v21 = vld [vmem:[#allocation2 + $0x1088] sm:$0xf]  ;;  %v12036_v57 = vor.u32 %v15822_v20, %v12035_v13  ;;  %6430 = vmatpush.bf16.msrb.mxu0 %v11780_v32 }
 0x23d   :  { %v15886_v24 = vld [vmem:[#allocation2 + $0x10a4] sm:$0xf0] }
 0x23e   :  { %v12547_v30 = vld [vmem:[#allocation2 + $0x1288] sm:$0xf]  ;;  %v12292_v36 = vor.u32 %v15886_v24, %v12291_v21  ;;  %6443 = vmatpush.bf16.msrb.mxu1 %v12036_v57 }
 0x23f   :  { %v15950_v31 = vld [vmem:[#allocation2 + $0x12a4] sm:$0xf0] }
 0x240   :  { %v11747_v39 = vld [vmem:[#allocation2 + $0xc48] sm:$0xf]  ;;  %v12548_v43 = vor.u32 %v15950_v31, %v12547_v30  ;;  %6456 = vmatpush.bf16.msrb.mxu2 %v12292_v36 }
 0x241   :  { %v15750_v41 = vld [vmem:[#allocation2 + $0xc64] sm:$0xf0] }
 0x242   :  { %v12003_v42 = vld [vmem:[#allocation2 + $0xe48] sm:$0xf]  ;;  %v11748_v50 = vor.u32 %v15750_v41, %v11747_v39  ;;  %6469 = vmatpush.bf16.msrb.mxu3 %v12548_v43 }
 0x243   :  { %v15814_v44 = vld [vmem:[#allocation2 + $0xe64] sm:$0xf0] }
 0x244   :  { %v12259_v45 = vld [vmem:[#allocation2 + $0x1048] sm:$0xf]  ;;  %v12004_v53 = vor.u32 %v15814_v44, %v12003_v42  ;;  %6431 = vmatpush.bf16.msrb.mxu0 %v11748_v50 }
 0x245   :  { %v15878_v46 = vld [vmem:[#allocation2 + $0x1064] sm:$0xf0] }
 0x246   :  { %v12515_v48 = vld [vmem:[#allocation2 + $0x1248] sm:$0xf]  ;;  %v12260_v61 = vor.u32 %v15878_v46, %v12259_v45  ;;  %6444 = vmatpush.bf16.msrb.mxu1 %v12004_v53 }
 0x247   :  { %v15942_v49 = vld [vmem:[#allocation2 + $0x1264] sm:$0xf0] }
 0x248   :  { %v11715_v51 = vld [vmem:[#allocation2 + $0xc08] sm:$0xf]  ;;  %v12516_v58 = vor.u32 %v15942_v49, %v12515_v48  ;;  %6457 = vmatpush.bf16.msrb.mxu2 %v12260_v61 }
 0x249   :  { %v15742_v52 = vld [vmem:[#allocation2 + $0xc24] sm:$0xf0] }
 0x24a   :  { %v11971_v54 = vld [vmem:[#allocation2 + $0xe08] sm:$0xf]  ;;  %v11716_v5 = vor.u32 %v15742_v52, %v11715_v51  ;;  %6470 = vmatpush.bf16.msrb.mxu3 %v12516_v58 }
 0x24b   :  { %v15806_v55 = vld [vmem:[#allocation2 + $0xe24] sm:$0xf0] }
 0x24c   :  { %v12227_v4 = vld [vmem:[#allocation2 + $0x1008] sm:$0xf]  ;;  %v11972_v11 = vor.u32 %v15806_v55, %v11971_v54  ;;  %6432 = vmatpush.bf16.msrb.mxu0 %v11716_v5 }
 0x24d   :  { %v15870_v59 = vld [vmem:[#allocation2 + $0x1024] sm:$0xf0] }
 0x24e   :  { %v12483_v60 = vld [vmem:[#allocation2 + $0x1208] sm:$0xf]  ;;  %v12228_v13 = vor.u32 %v15870_v59, %v12227_v4  ;;  %6445 = vmatpush.bf16.msrb.mxu1 %v11972_v11 }
 0x24f   :  { %v15934_v62 = vld [vmem:[#allocation2 + $0x1224] sm:$0xf0]  ;;  %6433 = vmatmul.bf16.vlgmr.msrb.gmra.mxu0 %v17000_v34 }
 0x250   :  { %v12963_v0 = vld [vmem:[#allocation2 + $0x15c8] sm:$0xf]  ;;  %v12484_v20 = vor.u32 %v15934_v62, %v12483_v60  ;;  %6458 = vmatpush.bf16.msrb.mxu2 %v12228_v13 }
 0x251   :  { %v16054_v2 = vld [vmem:[#allocation2 + $0x15e4] sm:$0xf0]  ;;  %6446 = vmatmul.bf16.vlgmr.msrb.gmra.mxu1 %v17004_v38 }
 0x252   :  { %v13219_v3 = vld [vmem:[#allocation2 + $0x17c8] sm:$0xf]  ;;  %v12964_v21 = vor.u32 %v16054_v2, %v12963_v0  ;;  %6471 = vmatpush.bf16.msrb.mxu3 %v12484_v20  ;;  %v6226_v0 = vpop.f32.mrf.mxu0 }
 0x253   :  { %v16118_v6 = vld [vmem:[#allocation2 + $0x17e4] sm:$0xf0]  ;;  %6459 = vmatmul.bf16.vlgmr.msrb.gmra.mxu2 %v17024_v18  ;;  %v6227_v5 = vadd.f32 %v6226_v0, %v17092_v33 }
 0x254   :  { %v13475_v7 = vld [vmem:[#allocation2 + $0x19c8] sm:$0xf]  ;;  %v13220_v24 = vor.u32 %v16118_v6, %v13219_v3  ;;  %6477 = vmatpush.bf16.msra.mxu0 %v12964_v21 }
 0x255   :  { %v16182_v10 = vld [vmem:[#allocation2 + $0x19e4] sm:$0xf0]  ;;  %6472 = vmatmul.bf16.vlgmr.msrb.gmra.mxu3 %v17028_v23 }
 0x256   :  { %v13731_v14 = vld [vmem:[#allocation2 + $0x1bc8] sm:$0xf]  ;;  %v13476_v28 = vor.u32 %v16182_v10, %v13475_v7  ;;  %6490 = vmatpush.bf16.msra.mxu1 %v13220_v24  ;;  %v6239_v7 = vpop.f32.mrf.mxu1 }
 0x257   :  { %v16246_v16 = vld [vmem:[#allocation2 + $0x1be4] sm:$0xf0]  ;;  %v6240_v21 = vadd.f32 %v6239_v7, %v6227_v5 }
 0x258   :  { %v12931_v29 = vld [vmem:[#allocation2 + $0x1588] sm:$0xf]  ;;  %v13732_v32 = vor.u32 %v16246_v16, %v13731_v14  ;;  %6503 = vmatpush.bf16.msra.mxu2 %v13476_v28 }
 0x259   :  { %v16046_v30 = vld [vmem:[#allocation2 + $0x15a4] sm:$0xf0] }
 0x25a   :  { %v13187_v31 = vld [vmem:[#allocation2 + $0x1788] sm:$0xf]  ;;  %v12932_v42 = vor.u32 %v16046_v30, %v12931_v29  ;;  %6516 = vmatpush.bf16.msra.mxu3 %v13732_v32 }
 0x25b   :  { %v16110_v35 = vld [vmem:[#allocation2 + $0x17a4] sm:$0xf0] }
 0x25c   :  { %v13443_v57 = vld [vmem:[#allocation2 + $0x1988] sm:$0xf]  ;;  %v13188_v47 = vor.u32 %v16110_v35, %v13187_v31  ;;  %6478 = vmatpush.bf16.msra.mxu0 %v12932_v42  ;;  %v6252_v42 = vpop.f32.mrf.mxu2 }
 0x25d   :  { %v16174_v36 = vld [vmem:[#allocation2 + $0x19a4] sm:$0xf0] }
 0x25e   :  { %v13699_v39 = vld [vmem:[#allocation2 + $0x1b88] sm:$0xf]  ;;  %v13444_v43 = vor.u32 %v16174_v36, %v13443_v57  ;;  %6491 = vmatpush.bf16.msra.mxu1 %v13188_v47 }
 0x25f   :  { %v16238_v41 = vld [vmem:[#allocation2 + $0x1ba4] sm:$0xf0] }
 0x260   :  { %v12899_v44 = vld [vmem:[#allocation2 + $0x1548] sm:$0xf]  ;;  %v13700_v48 = vor.u32 %v16238_v41, %v13699_v39  ;;  %6504 = vmatpush.bf16.msra.mxu2 %v13444_v43 }
 0x261   :  { %v16038_v45 = vld [vmem:[#allocation2 + $0x1564] sm:$0xf0] }
 0x262   :  { %v13155_v46 = vld [vmem:[#allocation2 + $0x1748] sm:$0xf]  ;;  %v12900_v61 = vor.u32 %v16038_v45, %v12899_v44  ;;  %6517 = vmatpush.bf16.msra.mxu3 %v13700_v48  ;;  %v6253_v45 = vadd.f32 %v6252_v42, %v6240_v21  ;;  %v10917_v42 = vld [vmem:[#allocation2 + $0x5e8] sm:$0xf0] }
 0x263   :  { %v16102_v49 = vld [vmem:[#allocation2 + $0x1764] sm:$0xf0] }
 0x264   :  { %v13411_v50 = vld [vmem:[#allocation2 + $0x1948] sm:$0xf]  ;;  %v13156_v54 = vor.u32 %v16102_v49, %v13155_v46  ;;  %6479 = vmatpush.bf16.msra.mxu0 %v12900_v61  ;;  %v6265_v46 = vpop.f32.mrf.mxu3 }
 0x265   :  { %v16166_v51 = vld [vmem:[#allocation2 + $0x1964] sm:$0xf0] }
 0x266   :  { %v13667_v52 = vld [vmem:[#allocation2 + $0x1b48] sm:$0xf]  ;;  %v13412_v55 = vor.u32 %v16166_v51, %v13411_v50  ;;  %6492 = vmatpush.bf16.msra.mxu1 %v13156_v54  ;;  %v6228_v50 = vpop.f32.mrf.mxu0 }
 0x267   :  { %v16230_v53 = vld [vmem:[#allocation2 + $0x1b64] sm:$0xf0] }
 0x268   :  { %v12867_v4 = vld [vmem:[#allocation2 + $0x1508] sm:$0xf]  ;;  %v13668_v59 = vor.u32 %v16230_v53, %v13667_v52  ;;  %6505 = vmatpush.bf16.msra.mxu2 %v13412_v55  ;;  %v6241_v52 = vpop.f32.mrf.mxu1  ;;  %v17099_v53 = vadd.f32 %v6265_v46, %v6253_v45 }
 0x269   :  { %v16030_v56 = vld [vmem:[#allocation2 + $0x1524] sm:$0xf0]  ;;  %v15466_v52 = vld [vmem:[#allocation2 + $0x38c] sm:$0xf] }
 0x26a   :  { %v13123_v58 = vld [vmem:[#allocation2 + $0x1708] sm:$0xf]  ;;  %v12868_v6 = vor.u32 %v16030_v56, %v12867_v4  ;;  %6518 = vmatpush.bf16.msra.mxu3 %v13668_v59 }
 0x26b   :  { %v16094_v60 = vld [vmem:[#allocation2 + $0x1724] sm:$0xf0] }
 0x26c   :  { %v13379_v62 = vld [vmem:[#allocation2 + $0x1908] sm:$0xf]  ;;  %v13124_v10 = vor.u32 %v16094_v60, %v13123_v58  ;;  %6480 = vmatpush.bf16.msra.mxu0 %v12868_v6 }
 0x26d   :  { %v16158_v63 = vld [vmem:[#allocation2 + $0x1924] sm:$0xf0] }
 0x26e   :  { %v13635_v2 = vld [vmem:[#allocation2 + $0x1b08] sm:$0xf]  ;;  %v13380_v11 = vor.u32 %v16158_v63, %v13379_v62  ;;  %6493 = vmatpush.bf16.msra.mxu1 %v13124_v10 }
 0x26f   :  { %v16222_v3 = vld [vmem:[#allocation2 + $0x1b24] sm:$0xf0] }
 0x270   :  { %v12835_v13 = vld [vmem:[#allocation2 + $0x14c8] sm:$0xf]  ;;  %v13636_v20 = vor.u32 %v16222_v3, %v13635_v2  ;;  %6506 = vmatpush.bf16.msra.mxu2 %v13380_v11 }
 0x271   :  { %v16022_v14 = vld [vmem:[#allocation2 + $0x14e4] sm:$0xf0] }
 0x272   :  { %v13091_v16 = vld [vmem:[#allocation2 + $0x16c8] sm:$0xf]  ;;  %v12836_v32 = vor.u32 %v16022_v14, %v12835_v13  ;;  %6519 = vmatpush.bf16.msra.mxu3 %v13636_v20 }
 0x273   :  { %v16086_v24 = vld [vmem:[#allocation2 + $0x16e4] sm:$0xf0] }
 0x274   :  { %v13347_v28 = vld [vmem:[#allocation2 + $0x18c8] sm:$0xf]  ;;  %v13092_v33 = vor.u32 %v16086_v24, %v13091_v16  ;;  %6481 = vmatpush.bf16.msra.mxu0 %v12836_v32  ;;  %v6254_v24 = vpop.f32.mrf.mxu2 }
 0x275   :  { %v16150_v29 = vld [vmem:[#allocation2 + $0x18e4] sm:$0xf0]  ;;  %v15450_v24 = vld [vmem:[#allocation2 + $0x30c] sm:$0xf] }
 0x276   :  { %v13603_v30 = vld [vmem:[#allocation2 + $0x1ac8] sm:$0xf]  ;;  %v13348_v35 = vor.u32 %v16150_v29, %v13347_v28  ;;  %6494 = vmatpush.bf16.msra.mxu1 %v13092_v33  ;;  %v10405_v33 = vld [vmem:[#allocation2 + $0x1e8] sm:$0xf0] }
 0x277   :  { %v16214_v31 = vld [vmem:[#allocation2 + $0x1ae4] sm:$0xf0] }
 0x278   :  { %v12803_v57 = vld [vmem:[#allocation2 + $0x1488] sm:$0xf]  ;;  %v13604_v41 = vor.u32 %v16214_v31, %v13603_v30  ;;  %6507 = vmatpush.bf16.msra.mxu2 %v13348_v35  ;;  %v15410_v30 = vld [vmem:[#allocation2 + $0x1cc] sm:$0xf]  ;;  %v6267_v31 = vpop.f32.mrf.mxu3 }
 0x279   :  { %v16014_v36 = vld [vmem:[#allocation2 + $0x14a4] sm:$0xf0]  ;;  %v15474_v35 = vld [vmem:[#allocation2 + $0x3cc] sm:$0xf] }
 0x27a   :  { %v13059_v39 = vld [vmem:[#allocation2 + $0x1688] sm:$0xf]  ;;  %v12804_v51 = vor.u32 %v16014_v36, %v12803_v57  ;;  %6520 = vmatpush.bf16.msra.mxu3 %v13604_v41  ;;  %v10661_v57 = vld [vmem:[#allocation2 + $0x3e8] sm:$0xf0] }
 0x27b   :  { %v16078_v47 = vld [vmem:[#allocation2 + $0x16a4] sm:$0xf0]  ;;  %v15538_v41 = vld [vmem:[#allocation2 + $0x5cc] sm:$0xf]  ;;  %v10664_v45 = vor.u32 %v15474_v35, %v10661_v57  ;;  %v6291_v35 = vpop.f32.mrf.mxu1 }
 0x27c   :  { %v13315_v43 = vld [vmem:[#allocation2 + $0x1888] sm:$0xf]  ;;  %v13060_v61 = vor.u32 %v16078_v47, %v13059_v39  ;;  %6482 = vmatpush.bf16.msra.mxu0 %v12804_v51  ;;  %v10920_v50 = vor.u32 %v15538_v41, %v10917_v42  ;;  %v10373_v51 = vld [vmem:[#allocation2 + $0x1a8] sm:$0xf0] }
 0x27d   :  { %v16142_v44 = vld [vmem:[#allocation2 + $0x18a4] sm:$0xf0]  ;;  %v10821_v31 = vld [vmem:[#allocation2 + $0x528] sm:$0xf0] }
 0x27e   :  { %v13571_v48 = vld [vmem:[#allocation2 + $0x1a88] sm:$0xf]  ;;  %v13316_v54 = vor.u32 %v16142_v44, %v13315_v43  ;;  %6495 = vmatpush.bf16.msra.mxu1 %v13060_v61  ;;  %v10408_v44 = vor.u32 %v15410_v30, %v10405_v33  ;;  %v10629_v61 = vld [vmem:[#allocation2 + $0x3a8] sm:$0xf0] }
 0x27f   :  { %v16206_v49 = vld [vmem:[#allocation2 + $0x1aa4] sm:$0xf0]  ;;  %v15514_v30 = vld [vmem:[#allocation2 + $0x50c] sm:$0xf] }
 0x280   :  { %v12771_v55 = vld [vmem:[#allocation2 + $0x1448] sm:$0xf]  ;;  %v13572_v58 = vor.u32 %v16206_v49, %v13571_v48  ;;  %6508 = vmatpush.bf16.msra.mxu2 %v13316_v54  ;;  %v15402_v49 = vld [vmem:[#allocation2 + $0x18c] sm:$0xf] }
 0x281   :  { %v16006_v4 = vld [vmem:[#allocation2 + $0x1464] sm:$0xf0]  ;;  %v15530_v54 = vld [vmem:[#allocation2 + $0x58c] sm:$0xf] }
 0x282   :  { %v13027_v56 = vld [vmem:[#allocation2 + $0x1648] sm:$0xf]  ;;  %v12772_v2 = vor.u32 %v16006_v4, %v12771_v55  ;;  %6521 = vmatpush.bf16.msra.mxu3 %v13572_v58  ;;  %v10885_v55 = vld [vmem:[#allocation2 + $0x5a8] sm:$0xf0]  ;;  %v10632_v58 = vor.u32 %v15466_v52, %v10629_v61 }
 0x283   :  { %v16070_v59 = vld [vmem:[#allocation2 + $0x1664] sm:$0xf0]  ;;  %v15378_v42 = vld [vmem:[#allocation2 + $0xcc] sm:$0xf] }
 0x284   :  { %v13283_v60 = vld [vmem:[#allocation2 + $0x1848] sm:$0xf]  ;;  %v13028_v6 = vor.u32 %v16070_v59, %v13027_v56  ;;  %6483 = vmatpush.bf16.msra.mxu0 %v12772_v2  ;;  %v10376_v56 = vor.u32 %v15402_v49, %v10373_v51  ;;  %v15458_v2 = vld [vmem:[#allocation2 + $0x34c] sm:$0xf] }
 0x285   :  { %v16134_v62 = vld [vmem:[#allocation2 + $0x1864] sm:$0xf0]  ;;  %v10789_v49 = vld [vmem:[#allocation2 + $0x4e8] sm:$0xf0] }
 0x286   :  { %v13539_v63 = vld [vmem:[#allocation2 + $0x1a48] sm:$0xf]  ;;  %v13284_v7 = vor.u32 %v16134_v62, %v13283_v60  ;;  %6496 = vmatpush.bf16.msra.mxu1 %v13028_v6  ;;  %v15394_v62 = vld [vmem:[#allocation2 + $0x14c] sm:$0xf] }
 0x287   :  { %v16198_v0 = vld [vmem:[#allocation2 + $0x1a64] sm:$0xf0]  ;;  %v10853_v6 = vld [vmem:[#allocation2 + $0x568] sm:$0xf0] }
 0x288   :  { %v12739_v3 = vld [vmem:[#allocation2 + $0x1408] sm:$0xf]  ;;  %v13540_v14 = vor.u32 %v16198_v0, %v13539_v63  ;;  %6509 = vmatpush.bf16.msra.mxu2 %v13284_v7  ;;  %v10888_v63 = vor.u32 %v15530_v54, %v10885_v55  ;;  %v10341_v0 = vld [vmem:[#allocation2 + $0x168] sm:$0xf0] }
 0x289   :  { %v15998_v5 = vld [vmem:[#allocation2 + $0x1424] sm:$0xf0]  ;;  %v15370_v54 = vld [vmem:[#allocation2 + $0x8c] sm:$0xf] }
 0x28a   :  { %v12995_v10 = vld [vmem:[#allocation2 + $0x1608] sm:$0xf]  ;;  %v12740_v32 = vor.u32 %v15998_v5, %v12739_v3  ;;  %6522 = vmatpush.bf16.msra.mxu3 %v13540_v14  ;;  %v10597_v3 = vld [vmem:[#allocation2 + $0x368] sm:$0xf0] }
 0x28b   :  { %v16062_v11 = vld [vmem:[#allocation2 + $0x1624] sm:$0xf0]  ;;  %v15522_v5 = vld [vmem:[#allocation2 + $0x54c] sm:$0xf] }
 0x28c   :  { %v13251_v13 = vld [vmem:[#allocation2 + $0x1808] sm:$0xf]  ;;  %v12996_v36 = vor.u32 %v16062_v11, %v12995_v10  ;;  %6484 = vmatpush.bf16.msra.mxu0 %v12740_v32  ;;  %v10344_v10 = vor.u32 %v15394_v62, %v10341_v0  ;;  %v10600_v11 = vor.u32 %v15458_v2, %v10597_v3  ;;  %v6317_v62 = vpop.f32.mrf.mxu3  ;;  %v10757_v0 = vld [vmem:[#allocation2 + $0x4a8] sm:$0xf0] }
 0x28d   :  { %v16126_v16 = vld [vmem:[#allocation2 + $0x1824] sm:$0xf0] }
 0x28e   :  { %v13507_v20 = vld [vmem:[#allocation2 + $0x1a08] sm:$0xf]  ;;  %v13252_v39 = vor.u32 %v16126_v16, %v13251_v13  ;;  %6497 = vmatpush.bf16.msra.mxu1 %v12996_v36  ;;  %v15386_v16 = vld [vmem:[#allocation2 + $0x10c] sm:$0xf] }
 0x28f   :  { %v16190_v21 = vld [vmem:[#allocation2 + $0x1a24] sm:$0xf0]  ;;  %6485 = vmatmul.bf16.vlgmr.msra.gmra.mxu0 %v17026_v22 }
 0x290   :  { %v13987_v28 = vld [vmem:[#allocation2 + $0x1dc8] sm:$0xf]  ;;  %v13508_v47 = vor.u32 %v16190_v21, %v13507_v20  ;;  %6510 = vmatpush.bf16.msra.mxu2 %v13252_v39  ;;  %v10856_v20 = vor.u32 %v15522_v5, %v10853_v6  ;;  %v10309_v21 = vld [vmem:[#allocation2 + $0x128] sm:$0xf0]  ;;  %v6293_v5 = vpop.f32.mrf.mxu1 }
 0x291   :  { %v16310_v29 = vld [vmem:[#allocation2 + $0x1de4] sm:$0xf0]  ;;  %6498 = vmatmul.bf16.vlgmr.msra.gmra.mxu1 %v17030_v27  ;;  %v10312_v57 = vor.u32 %v15386_v16, %v10309_v21  ;;  %v15426_v21 = vld [vmem:[#allocation2 + $0x24c] sm:$0xf] }
 0x292   :  { %v13988_v43 = vor.u32 %v16310_v29, %v13987_v28  ;;  %v13955_v46 = vld [vmem:[#allocation2 + $0x1d88] sm:$0xf]  ;;  %6523 = vmatpush.bf16.msra.mxu3 %v13508_v47  ;;  %6542 = vmatpush.bf16.msrb.mxu1 %v10408_v44  ;;  %v10565_v28 = vld [vmem:[#allocation2 + $0x328] sm:$0xf0]  ;;  %v6278_v29 = vpop.f32.mrf.mxu0  ;;  %v10824_v47 = vor.u32 %v15514_v30, %v10821_v31 }
 0x293   :  { %v16302_v48 = vld [vmem:[#allocation2 + $0x1da4] sm:$0xf0]  ;;  %6511 = vmatmul.bf16.vlgmr.msra.gmra.mxu2 %v17045_v12  ;;  %v6279_v32 = vadd.f32 %v6278_v29, %v17099_v53  ;;  %v10568_v36 = vor.u32 %v15450_v24, %v10565_v28  ;;  %v10277_v44 = vld [vmem:[#allocation2 + $0xe8] sm:$0xf0] }
 0x294   :  { %6529 = vmatpush.bf16.msrb.mxu0 %v13988_v43  ;;  %v13956_v4 = vor.u32 %v16302_v48, %v13955_v46  ;;  %6555 = vmatpush.bf16.msrb.mxu2 %v10664_v45  ;;  %v13923_v59 = vld [vmem:[#allocation2 + $0x1d48] sm:$0xf]  ;;  %v15442_v45 = vld [vmem:[#allocation2 + $0x2cc] sm:$0xf]  ;;  %v10280_v53 = vor.u32 %v15378_v42, %v10277_v44 }
 0x295   :  { %v16294_v60 = vld [vmem:[#allocation2 + $0x1d64] sm:$0xf0]  ;;  %6524 = vmatmul.bf16.vlgmr.msra.gmra.mxu3 %v17049_v19  ;;  %v6292_v43 = vadd.f32 %v6291_v35, %v6279_v32  ;;  %v10533_v46 = vld [vmem:[#allocation2 + $0x2e8] sm:$0xf0] }
 0x296   :  { %6568 = vmatpush.bf16.msrb.mxu3 %v10920_v50  ;;  %v13924_v7 = vor.u32 %v16294_v60, %v13923_v59  ;;  %6543 = vmatpush.bf16.msrb.mxu1 %v10376_v56  ;;  %v13891_v13 = vld [vmem:[#allocation2 + $0x1d08] sm:$0xf]  ;;  %v15506_v48 = vld [vmem:[#allocation2 + $0x4cc] sm:$0xf]  ;;  %v10536_v51 = vor.u32 %v15442_v45, %v10533_v46 }
 0x297   :  { %v16286_v14 = vld [vmem:[#allocation2 + $0x1d24] sm:$0xf0]  ;;  %v10792_v55 = vor.u32 %v15506_v48, %v10789_v49  ;;  %v10245_v56 = vld [vmem:[#allocation2 + $0xa8] sm:$0xf0]  ;;  %v6319_v49 = vpop.f32.mrf.mxu3 }
 0x298   :  { %6530 = vmatpush.bf16.msrb.mxu0 %v13956_v4  ;;  %6556 = vmatpush.bf16.msrb.mxu2 %v10632_v58  ;;  %v13892_v33 = vor.u32 %v16286_v14, %v13891_v13  ;;  %v13859_v39 = vld [vmem:[#allocation2 + $0x1cc8] sm:$0xf]  ;;  %v6304_v4 = vpop.f32.mrf.mxu2  ;;  %v15434_v58 = vld [vmem:[#allocation2 + $0x28c] sm:$0xf] }
 0x299   :  { %v16278_v41 = vld [vmem:[#allocation2 + $0x1ce4] sm:$0xf0]  ;;  %v10501_v59 = vld [vmem:[#allocation2 + $0x2a8] sm:$0xf0]  ;;  %v6305_v60 = vadd.f32 %v6304_v4, %v6292_v43 }
 0x29a   :  { %6569 = vmatpush.bf16.msrb.mxu3 %v10888_v63  ;;  %6544 = vmatpush.bf16.msrb.mxu1 %v10344_v10  ;;  %v13860_v50 = vor.u32 %v16278_v41, %v13859_v39  ;;  %v13827_v52 = vld [vmem:[#allocation2 + $0x1c88] sm:$0xf]  ;;  %v15498_v63 = vld [vmem:[#allocation2 + $0x48c] sm:$0xf]  ;;  %v6280_v2 = vpop.f32.mrf.mxu0  ;;  %v10504_v10 = vor.u32 %v15434_v58, %v10501_v59 }
 0x29b   :  { %v16270_v61 = vld [vmem:[#allocation2 + $0x1ca4] sm:$0xf0]  ;;  %v17106_v6 = vadd.f32 %v6317_v62, %v6305_v60  ;;  %v15362_v14 = vld [vmem:[#allocation2 + $0x4c] sm:$0xf]  ;;  %v10760_v16 = vor.u32 %v15498_v63, %v10757_v0 }
 0x29c   :  { %6531 = vmatpush.bf16.msrb.mxu0 %v13924_v7  ;;  %6557 = vmatpush.bf16.msrb.mxu2 %v10600_v11  ;;  %v13828_v3 = vor.u32 %v16270_v61, %v13827_v52  ;;  %v10248_v7 = vor.u32 %v15370_v54, %v10245_v56  ;;  %v13795_v11 = vld [vmem:[#allocation2 + $0x1c48] sm:$0xf]  ;;  %v10469_v24 = vld [vmem:[#allocation2 + $0x268] sm:$0xf0] }
 0x29d   :  { %v16262_v13 = vld [vmem:[#allocation2 + $0x1c64] sm:$0xf0]  ;;  %v15490_v28 = vld [vmem:[#allocation2 + $0x44c] sm:$0xf]  ;;  %v10472_v35 = vor.u32 %v15426_v21, %v10469_v24 }
 0x29e   :  { %6570 = vmatpush.bf16.msrb.mxu3 %v10856_v20  ;;  %6545 = vmatpush.bf16.msrb.mxu1 %v10312_v57  ;;  %v10213_v20 = vld [vmem:[#allocation2 + $0x68] sm:$0xf0]  ;;  %v13796_v30 = vor.u32 %v16262_v13, %v13795_v11  ;;  %v13763_v31 = vld [vmem:[#allocation2 + $0x1c08] sm:$0xf] }
 0x29f   :  { %v10725_v29 = vld [vmem:[#allocation2 + $0x468] sm:$0xf0]  ;;  %v16254_v32 = vld [vmem:[#allocation2 + $0x1c24] sm:$0xf0] }
 0x2a0   :  { %6532 = vmatpush.bf16.msrb.mxu0 %v13892_v33  ;;  %6558 = vmatpush.bf16.msrb.mxu2 %v10568_v36  ;;  %v10216_v33 = vor.u32 %v15362_v14, %v10213_v20  ;;  %v15354_v57 = vld [vmem:[#allocation2 + $0xc] sm:$0xf]  ;;  %v10728_v41 = vor.u32 %v15490_v28, %v10725_v29  ;;  %v6306_v44 = vpop.f32.mrf.mxu2 }
 0x2a1   :  { %v10181_v36 = vld [vmem:[#allocation2 + $0x28] sm:$0xf0] }
 0x2a2   :  { %6571 = vmatpush.bf16.msrb.mxu3 %v10824_v47  ;;  %6546 = vmatpush.bf16.msrb.mxu1 %v10280_v53  ;;  %v15418_v39 = vld [vmem:[#allocation2 + $0x20c] sm:$0xf]  ;;  %v10184_v61 = vor.u32 %v15354_v57, %v10181_v36 }
 0x2a3   :  { %v10437_v42 = vld [vmem:[#allocation2 + $0x228] sm:$0xf0] }
 0x2a4   :  { %6533 = vmatpush.bf16.msrb.mxu0 %v13860_v50  ;;  %6559 = vmatpush.bf16.msrb.mxu2 %v10536_v51  ;;  %v15482_v47 = vld [vmem:[#allocation2 + $0x40c] sm:$0xf]  ;;  %v13764_v50 = vor.u32 %v16254_v32, %v13763_v31  ;;  %v10440_v54 = vor.u32 %v15418_v39, %v10437_v42 }
 0x2a5   :  { %v10693_v43 = vld [vmem:[#allocation2 + $0x428] sm:$0xf0] }
 0x2a6   :  { %6572 = vmatpush.bf16.msrb.mxu3 %v10792_v55  ;;  %6547 = vmatpush.bf16.msrb.mxu1 %v10248_v7  ;;  %v15602_v45 = vld [vmem:[#allocation2 + $0x7cc] sm:$0xf]  ;;  %v10696_v56 = vor.u32 %v15482_v47, %v10693_v43 }
 0x2a7   :  { %v11173_v46 = vld [vmem:[#allocation2 + $0x7e8] sm:$0xf0] }
 0x2a8   :  { %6534 = vmatpush.bf16.msrb.mxu0 %v13828_v3  ;;  %6560 = vmatpush.bf16.msrb.mxu2 %v10504_v10  ;;  %v15666_v48 = vld [vmem:[#allocation2 + $0x9cc] sm:$0xf]  ;;  %v11176_v58 = vor.u32 %v15602_v45, %v11173_v46  ;;  %v6330_v46 = vpop.f32.mrf.mxu0 }
 0x2a9   :  { %v11429_v53 = vld [vmem:[#allocation2 + $0x9e8] sm:$0xf0] }
 0x2aa   :  { %6573 = vmatpush.bf16.msrb.mxu3 %v10760_v16  ;;  %v15730_v51 = vld [vmem:[#allocation2 + $0xbcc] sm:$0xf]  ;;  %6548 = vmatpush.bf16.msrb.mxu1 %v10216_v33  ;;  %v11432_v59 = vor.u32 %v15666_v48, %v11429_v53 }
 0x2ab   :  { %v11685_v52 = vld [vmem:[#allocation2 + $0xbe8] sm:$0xf0] }
 0x2ac   :  { %6535 = vmatpush.bf16.msrb.mxu0 %v13796_v30  ;;  %6561 = vmatpush.bf16.msrb.mxu2 %v10472_v35  ;;  %v15794_v55 = vld [vmem:[#allocation2 + $0xdcc] sm:$0xf]  ;;  %v11688_v60 = vor.u32 %v15730_v51, %v11685_v52  ;;  %v6343_v51 = vpop.f32.mrf.mxu1 }
 0x2ad   :  { %v11941_v4 = vld [vmem:[#allocation2 + $0xde8] sm:$0xf0] }
 0x2ae   :  { %6574 = vmatpush.bf16.msrb.mxu3 %v10728_v41  ;;  %v15594_v62 = vld [vmem:[#allocation2 + $0x78c] sm:$0xf]  ;;  %v11944_v2 = vor.u32 %v15794_v55, %v11941_v4  ;;  %6549 = vmatpush.bf16.msrb.mxu1 %v10184_v61 }
 0x2af   :  { %v11141_v63 = vld [vmem:[#allocation2 + $0x7a8] sm:$0xf0] }
 0x2b0   :  { %v15658_v0 = vld [vmem:[#allocation2 + $0x98c] sm:$0xf]  ;;  %6536 = vmatpush.bf16.msrb.mxu0 %v13764_v50  ;;  %6562 = vmatpush.bf16.msrb.mxu2 %v10440_v54  ;;  %v11144_v13 = vor.u32 %v15594_v62, %v11141_v63  ;;  %v6331_v50 = vadd.f32 %v6330_v46, %v17106_v6  ;;  %v1143_v6 = vperm.slane %v17084_v26, 2  ;;  %v6332_v26 = vpop.f32.mrf.mxu0 }
 0x2b1   :  { %v11397_v3 = vld [vmem:[#allocation2 + $0x9a8] sm:$0xf0]  ;;  %6550 = vmatmul.bf16.vlgmr.msrb.gmra.mxu1 %v16972_v9 }
 0x2b2   :  { %v15722_v5 = vld [vmem:[#allocation2 + $0xb8c] sm:$0xf]  ;;  %6575 = vmatpush.bf16.msrb.mxu3 %v10696_v56  ;;  %6594 = vmatpush.bf16.msra.mxu1 %v11432_v59  ;;  %v11400_v14 = vor.u32 %v15658_v0, %v11397_v3 }
 0x2b3   :  { %v11653_v7 = vld [vmem:[#allocation2 + $0xba8] sm:$0xf0]  ;;  %6537 = vmatmul.bf16.vlgmr.msrb.gmra.mxu0 %v17047_v17  ;;  %6563 = vmatmul.bf16.vlgmr.msrb.gmra.mxu2 %v16985_v25 }
 0x2b4   :  { %v15786_v10 = vld [vmem:[#allocation2 + $0xd8c] sm:$0xf]  ;;  %6581 = vmatpush.bf16.msra.mxu0 %v11176_v58  ;;  %6607 = vmatpush.bf16.msra.mxu2 %v11688_v60  ;;  %v11656_v16 = vor.u32 %v15722_v5, %v11653_v7  ;;  %v17113_v58 = vadd.f32 %v6343_v51, %v6331_v50 }
 0x2b5   :  { %v11909_v11 = vld [vmem:[#allocation2 + $0xda8] sm:$0xf0]  ;;  %6576 = vmatmul.bf16.vlgmr.msrb.gmra.mxu3 %v16970_v8 }
 0x2b6   :  { %v15586_v20 = vld [vmem:[#allocation2 + $0x74c] sm:$0xf]  ;;  %6620 = vmatpush.bf16.msra.mxu3 %v11944_v2  ;;  %v11912_v28 = vor.u32 %v15786_v10, %v11909_v11  ;;  %6595 = vmatpush.bf16.msra.mxu1 %v11400_v14 }
 0x2b7   :  { %v11109_v21 = vld [vmem:[#allocation2 + $0x768] sm:$0xf0] }
 0x2b8   :  { %v15650_v24 = vld [vmem:[#allocation2 + $0x94c] sm:$0xf]  ;;  %6582 = vmatpush.bf16.msra.mxu0 %v11144_v13  ;;  %v11112_v35 = vor.u32 %v15586_v20, %v11109_v21  ;;  %6608 = vmatpush.bf16.msra.mxu2 %v11656_v16  ;;  %v6356_v21 = vpop.f32.mrf.mxu2 }
 0x2b9   :  { %v11365_v29 = vld [vmem:[#allocation2 + $0x968] sm:$0xf0] }
 0x2ba   :  { %v15714_v30 = vld [vmem:[#allocation2 + $0xb4c] sm:$0xf]  ;;  %v11368_v57 = vor.u32 %v15650_v24, %v11365_v29  ;;  %6621 = vmatpush.bf16.msra.mxu3 %v11912_v28  ;;  %v6357_v29 = vadd.f32 %v6356_v21, %v1143_v6 }
 0x2bb   :  { %v11621_v31 = vld [vmem:[#allocation2 + $0xb68] sm:$0xf0] }
 0x2bc   :  { %v15778_v32 = vld [vmem:[#allocation2 + $0xd4c] sm:$0xf]  ;;  %v11624_v36 = vor.u32 %v15714_v30, %v11621_v31  ;;  %6583 = vmatpush.bf16.msra.mxu0 %v11112_v35  ;;  %6596 = vmatpush.bf16.msra.mxu1 %v11368_v57  ;;  %v6369_v30 = vpop.f32.mrf.mxu3 }
 0x2bd   :  { %v11877_v33 = vld [vmem:[#allocation2 + $0xd68] sm:$0xf0] }
 0x2be   :  { %v15578_v39 = vld [vmem:[#allocation2 + $0x70c] sm:$0xf]  ;;  %v11880_v47 = vor.u32 %v15778_v32, %v11877_v33  ;;  %6609 = vmatpush.bf16.msra.mxu2 %v11624_v36  ;;  %v6345_v32 = vpop.f32.mrf.mxu1 }
 0x2bf   :  { %v11077_v41 = vld [vmem:[#allocation2 + $0x728] sm:$0xf0] }
 0x2c0   :  { %v15642_v42 = vld [vmem:[#allocation2 + $0x90c] sm:$0xf]  ;;  %v11080_v53 = vor.u32 %v15578_v39, %v11077_v41  ;;  %6622 = vmatpush.bf16.msra.mxu3 %v11880_v47  ;;  %v17116_v41 = vadd.f32 %v6369_v30, %v6357_v29 }
 0x2c1   :  { %v11333_v43 = vld [vmem:[#allocation2 + $0x928] sm:$0xf0] }
 0x2c2   :  { %v15706_v44 = vld [vmem:[#allocation2 + $0xb0c] sm:$0xf]  ;;  %v11336_v52 = vor.u32 %v15642_v42, %v11333_v43  ;;  %6584 = vmatpush.bf16.msra.mxu0 %v11080_v53 }
 0x2c3   :  { %v11589_v45 = vld [vmem:[#allocation2 + $0xb28] sm:$0xf0] }
 0x2c4   :  { %v15770_v48 = vld [vmem:[#allocation2 + $0xd0c] sm:$0xf]  ;;  %v11592_v61 = vor.u32 %v15706_v44, %v11589_v45  ;;  %6597 = vmatpush.bf16.msra.mxu1 %v11336_v52  ;;  %v6371_v6 = vpop.f32.mrf.mxu3 }
 0x2c5   :  { %v11845_v49 = vld [vmem:[#allocation2 + $0xd28] sm:$0xf0] }
 0x2c6   :  { %v15570_v54 = vld [vmem:[#allocation2 + $0x6cc] sm:$0xf]  ;;  %v11848_v56 = vor.u32 %v15770_v48, %v11845_v49  ;;  %6610 = vmatpush.bf16.msra.mxu2 %v11592_v61 }
 0x2c7   :  { %v11045_v55 = vld [vmem:[#allocation2 + $0x6e8] sm:$0xf0] }
 0x2c8   :  { %v15634_v4 = vld [vmem:[#allocation2 + $0x8cc] sm:$0xf]  ;;  %v11048_v2 = vor.u32 %v15570_v54, %v11045_v55  ;;  %6623 = vmatpush.bf16.msra.mxu3 %v11848_v56 }
 0x2c9   :  { %v11301_v59 = vld [vmem:[#allocation2 + $0x8e8] sm:$0xf0] }
 0x2ca   :  { %v15698_v60 = vld [vmem:[#allocation2 + $0xacc] sm:$0xf]  ;;  %v11304_v3 = vor.u32 %v15634_v4, %v11301_v59  ;;  %6585 = vmatpush.bf16.msra.mxu0 %v11048_v2 }
 0x2cb   :  { %v11557_v62 = vld [vmem:[#allocation2 + $0xae8] sm:$0xf0] }
 0x2cc   :  { %v15762_v63 = vld [vmem:[#allocation2 + $0xccc] sm:$0xf]  ;;  %v11560_v5 = vor.u32 %v15698_v60, %v11557_v62  ;;  %6598 = vmatpush.bf16.msra.mxu1 %v11304_v3  ;;  %v6358_v60 = vpop.f32.mrf.mxu2 }
 0x2cd   :  { %v11813_v0 = vld [vmem:[#allocation2 + $0xce8] sm:$0xf0] }
 0x2ce   :  { %v15562_v7 = vld [vmem:[#allocation2 + $0x68c] sm:$0xf]  ;;  %v11816_v13 = vor.u32 %v15762_v63, %v11813_v0  ;;  %6611 = vmatpush.bf16.msra.mxu2 %v11560_v5 }
 0x2cf   :  { %v11013_v10 = vld [vmem:[#allocation2 + $0x6a8] sm:$0xf0] }
 0x2d0   :  { %v15626_v11 = vld [vmem:[#allocation2 + $0x88c] sm:$0xf]  ;;  %v11016_v31 = vor.u32 %v15562_v7, %v11013_v10  ;;  %6624 = vmatpush.bf16.msra.mxu3 %v11816_v13 }
 0x2d1   :  { %v11269_v14 = vld [vmem:[#allocation2 + $0x8a8] sm:$0xf0] }
 0x2d2   :  { %v15690_v16 = vld [vmem:[#allocation2 + $0xa8c] sm:$0xf]  ;;  %v11272_v33 = vor.u32 %v15626_v11, %v11269_v14  ;;  %6586 = vmatpush.bf16.msra.mxu0 %v11016_v31 }
 0x2d3   :  { %v11525_v20 = vld [vmem:[#allocation2 + $0xaa8] sm:$0xf0] }
 0x2d4   :  { %v15754_v24 = vld [vmem:[#allocation2 + $0xc8c] sm:$0xf]  ;;  %v11528_v35 = vor.u32 %v15690_v16, %v11525_v20  ;;  %6599 = vmatpush.bf16.msra.mxu1 %v11272_v33 }
 0x2d5   :  { %v11781_v28 = vld [vmem:[#allocation2 + $0xca8] sm:$0xf0] }
 0x2d6   :  { %v15554_v57 = vld [vmem:[#allocation2 + $0x64c] sm:$0xf]  ;;  %v11784_v42 = vor.u32 %v15754_v24, %v11781_v28  ;;  %6612 = vmatpush.bf16.msra.mxu2 %v11528_v35 }
 0x2d7   :  { %v10981_v36 = vld [vmem:[#allocation2 + $0x668] sm:$0xf0] }
 0x2d8   :  { %v15618_v39 = vld [vmem:[#allocation2 + $0x84c] sm:$0xf]  ;;  %v10984_v48 = vor.u32 %v15554_v57, %v10981_v36  ;;  %6625 = vmatpush.bf16.msra.mxu3 %v11784_v42 }
 0x2d9   :  { %v11237_v47 = vld [vmem:[#allocation2 + $0x868] sm:$0xf0] }
 0x2da   :  { %v15682_v43 = vld [vmem:[#allocation2 + $0xa4c] sm:$0xf]  ;;  %v11240_v53 = vor.u32 %v15618_v39, %v11237_v47  ;;  %6587 = vmatpush.bf16.msra.mxu0 %v10984_v48 }
 0x2db   :  { %v11493_v44 = vld [vmem:[#allocation2 + $0xa68] sm:$0xf0] }
 0x2dc   :  { %v15746_v45 = vld [vmem:[#allocation2 + $0xc4c] sm:$0xf]  ;;  %v11496_v51 = vor.u32 %v15682_v43, %v11493_v44  ;;  %6600 = vmatpush.bf16.msra.mxu1 %v11240_v53 }
 0x2dd   :  { %v11749_v46 = vld [vmem:[#allocation2 + $0xc68] sm:$0xf0] }
 0x2de   :  { %v15546_v49 = vld [vmem:[#allocation2 + $0x60c] sm:$0xf]  ;;  %v11752_v55 = vor.u32 %v15746_v45, %v11749_v46  ;;  %6613 = vmatpush.bf16.msra.mxu2 %v11496_v51 }
 0x2df   :  { %v10949_v50 = vld [vmem:[#allocation2 + $0x628] sm:$0xf0] }
 0x2e0   :  { %v15610_v52 = vld [vmem:[#allocation2 + $0x80c] sm:$0xf]  ;;  %v10952_v2 = vor.u32 %v15546_v49, %v10949_v50  ;;  %6626 = vmatpush.bf16.msra.mxu3 %v11752_v55 }
 0x2e1   :  { %v11205_v61 = vld [vmem:[#allocation2 + $0x828] sm:$0xf0] }
 0x2e2   :  { %v15674_v54 = vld [vmem:[#allocation2 + $0xa0c] sm:$0xf]  ;;  %v11208_v10 = vor.u32 %v15610_v52, %v11205_v61  ;;  %6588 = vmatpush.bf16.msra.mxu0 %v10952_v2  ;;  %v6382_v2 = vpop.f32.mrf.mxu0 }
 0x2e3   :  { %v11461_v4 = vld [vmem:[#allocation2 + $0xa28] sm:$0xf0] }
 0x2e4   :  { %v15738_v56 = vld [vmem:[#allocation2 + $0xc0c] sm:$0xf]  ;;  %v11464_v11 = vor.u32 %v15674_v54, %v11461_v4  ;;  %6601 = vmatpush.bf16.msra.mxu1 %v11208_v10 }
 0x2e5   :  { %v11717_v59 = vld [vmem:[#allocation2 + $0xc28] sm:$0xf0]  ;;  %6589 = vmatmul.bf16.vlgmr.msra.gmra.mxu0 %v16977_v15 }
 0x2e6   :  { %v15858_v62 = vld [vmem:[#allocation2 + $0xfcc] sm:$0xf]  ;;  %v11720_v16 = vor.u32 %v15738_v56, %v11717_v59  ;;  %6614 = vmatpush.bf16.msra.mxu2 %v11464_v11 }
 0x2e7   :  { %v12197_v63 = vld [vmem:[#allocation2 + $0xfe8] sm:$0xf0]  ;;  %6602 = vmatmul.bf16.vlgmr.msra.gmra.mxu1 %v17002_v37 }
 0x2e8   :  { %v15922_v0 = vld [vmem:[#allocation2 + $0x11cc] sm:$0xf]  ;;  %v12200_v20 = vor.u32 %v15858_v62, %v12197_v63  ;;  %6627 = vmatpush.bf16.msra.mxu3 %v11720_v16 }
 0x2e9   :  { %v12453_v3 = vld [vmem:[#allocation2 + $0x11e8] sm:$0xf0]  ;;  %6615 = vmatmul.bf16.vlgmr.msra.gmra.mxu2 %v17006_v40 }
 0x2ea   :  { %v15986_v5 = vld [vmem:[#allocation2 + $0x13cc] sm:$0xf]  ;;  %v12456_v21 = vor.u32 %v15922_v0, %v12453_v3  ;;  %6633 = vmatpush.bf16.msrb.mxu0 %v12200_v20 }
 0x2eb   :  { %v12709_v7 = vld [vmem:[#allocation2 + $0x13e8] sm:$0xf0]  ;;  %6628 = vmatmul.bf16.vlgmr.msra.gmra.mxu3 %v17000_v34 }
 0x2ec   :  { %v16050_v13 = vld [vmem:[#allocation2 + $0x15cc] sm:$0xf]  ;;  %v12712_v24 = vor.u32 %v15986_v5, %v12709_v7  ;;  %6646 = vmatpush.bf16.msrb.mxu1 %v12456_v21 }
 0x2ed   :  { %v12965_v14 = vld [vmem:[#allocation2 + $0x15e8] sm:$0xf0] }
 0x2ee   :  { %v15850_v28 = vld [vmem:[#allocation2 + $0xf8c] sm:$0xf]  ;;  %v12968_v26 = vor.u32 %v16050_v13, %v12965_v14  ;;  %6659 = vmatpush.bf16.msrb.mxu2 %v12712_v24  ;;  %v6383_v13 = vadd.f32 %v6382_v2, %v17116_v41  ;;  %v6395_v14 = vpop.f32.mrf.mxu1 }
 0x2ef   :  { %v12165_v29 = vld [vmem:[#allocation2 + $0xfa8] sm:$0xf0] }
 0x2f0   :  { %v15914_v30 = vld [vmem:[#allocation2 + $0x118c] sm:$0xf]  ;;  %v12168_v36 = vor.u32 %v15850_v28, %v12165_v29  ;;  %6672 = vmatpush.bf16.msrb.mxu3 %v12968_v26 }
 0x2f1   :  { %v12421_v31 = vld [vmem:[#allocation2 + $0x11a8] sm:$0xf0] }
 0x2f2   :  { %v15978_v32 = vld [vmem:[#allocation2 + $0x138c] sm:$0xf]  ;;  %v12424_v39 = vor.u32 %v15914_v30, %v12421_v31  ;;  %6634 = vmatpush.bf16.msrb.mxu0 %v12168_v36  ;;  %v6396_v30 = vadd.f32 %v6395_v14, %v6383_v13  ;;  %v6408_v36 = vpop.f32.mrf.mxu2 }
 0x2f3   :  { %v12677_v33 = vld [vmem:[#allocation2 + $0x13a8] sm:$0xf0] }
 0x2f4   :  { %v16042_v35 = vld [vmem:[#allocation2 + $0x158c] sm:$0xf]  ;;  %v12680_v42 = vor.u32 %v15978_v32, %v12677_v33  ;;  %6647 = vmatpush.bf16.msrb.mxu1 %v12424_v39 }
 0x2f5   :  { %v12933_v57 = vld [vmem:[#allocation2 + $0x15a8] sm:$0xf0] }
 0x2f6   :  { %v15842_v47 = vld [vmem:[#allocation2 + $0xf4c] sm:$0xf]  ;;  %v12936_v45 = vor.u32 %v16042_v35, %v12933_v57  ;;  %6660 = vmatpush.bf16.msrb.mxu2 %v12680_v42 }
 0x2f7   :  { %v12133_v43 = vld [vmem:[#allocation2 + $0xf68] sm:$0xf0] }
 0x2f8   :  { %v15906_v44 = vld [vmem:[#allocation2 + $0x114c] sm:$0xf]  ;;  %v12136_v51 = vor.u32 %v15842_v47, %v12133_v43  ;;  %6673 = vmatpush.bf16.msrb.mxu3 %v12936_v45  ;;  %v6409_v43 = vadd.f32 %v6408_v36, %v6396_v30 }
 0x2f9   :  { %v12389_v46 = vld [vmem:[#allocation2 + $0x1168] sm:$0xf0] }
 0x2fa   :  { %v15970_v48 = vld [vmem:[#allocation2 + $0x134c] sm:$0xf]  ;;  %v12392_v52 = vor.u32 %v15906_v44, %v12389_v46  ;;  %6635 = vmatpush.bf16.msrb.mxu0 %v12136_v51  ;;  %v6421_v44 = vpop.f32.mrf.mxu3  ;;  %v6410_v13 = vpop.f32.mrf.mxu2 }
 0x2fb   :  { %v12645_v49 = vld [vmem:[#allocation2 + $0x1368] sm:$0xf0] }
 0x2fc   :  { %v16034_v50 = vld [vmem:[#allocation2 + $0x154c] sm:$0xf]  ;;  %v12648_v61 = vor.u32 %v15970_v48, %v12645_v49  ;;  %6648 = vmatpush.bf16.msrb.mxu1 %v12392_v52  ;;  %v17123_v49 = vadd.f32 %v6421_v44, %v6409_v43 }
 0x2fd   :  { %v12901_v53 = vld [vmem:[#allocation2 + $0x1568] sm:$0xf0] }
 0x2fe   :  { %v15834_v54 = vld [vmem:[#allocation2 + $0xf0c] sm:$0xf]  ;;  %v12904_v56 = vor.u32 %v16034_v50, %v12901_v53  ;;  %6661 = vmatpush.bf16.msrb.mxu2 %v12648_v61  ;;  %v6384_v50 = vpop.f32.mrf.mxu0 }
 0x2ff   :  { %v12101_v55 = vld [vmem:[#allocation2 + $0xf28] sm:$0xf0] }
 0x300   :  { %v15898_v4 = vld [vmem:[#allocation2 + $0x110c] sm:$0xf]  ;;  %v12104_v6 = vor.u32 %v15834_v54, %v12101_v55  ;;  %6674 = vmatpush.bf16.msrb.mxu3 %v12904_v56  ;;  %v6397_v55 = vpop.f32.mrf.mxu1 }
 0x301   :  { %v12357_v59 = vld [vmem:[#allocation2 + $0x1128] sm:$0xf0] }
 0x302   :  { %v15962_v60 = vld [vmem:[#allocation2 + $0x130c] sm:$0xf]  ;;  %v12360_v3 = vor.u32 %v15898_v4, %v12357_v59  ;;  %6636 = vmatpush.bf16.msrb.mxu0 %v12104_v6 }
 0x303   :  { %v12613_v62 = vld [vmem:[#allocation2 + $0x1328] sm:$0xf0] }
 0x304   :  { %v16026_v63 = vld [vmem:[#allocation2 + $0x150c] sm:$0xf]  ;;  %v12616_v5 = vor.u32 %v15962_v60, %v12613_v62  ;;  %6649 = vmatpush.bf16.msrb.mxu1 %v12360_v3 }
 0x305   :  { %v12869_v0 = vld [vmem:[#allocation2 + $0x1528] sm:$0xf0] }
 0x306   :  { %v15826_v7 = vld [vmem:[#allocation2 + $0xecc] sm:$0xf]  ;;  %v12872_v16 = vor.u32 %v16026_v63, %v12869_v0  ;;  %6662 = vmatpush.bf16.msrb.mxu2 %v12616_v5 }
 0x307   :  { %v12069_v10 = vld [vmem:[#allocation2 + $0xee8] sm:$0xf0] }
 0x308   :  { %v15890_v11 = vld [vmem:[#allocation2 + $0x10cc] sm:$0xf]  ;;  %v12072_v26 = vor.u32 %v15826_v7, %v12069_v10  ;;  %6675 = vmatpush.bf16.msrb.mxu3 %v12872_v16 }
 0x309   :  { %v12325_v20 = vld [vmem:[#allocation2 + $0x10e8] sm:$0xf0] }
 0x30a   :  { %v15954_v21 = vld [vmem:[#allocation2 + $0x12cc] sm:$0xf]  ;;  %v12328_v31 = vor.u32 %v15890_v11, %v12325_v20  ;;  %6637 = vmatpush.bf16.msrb.mxu0 %v12072_v26 }
 0x30b   :  { %v12581_v24 = vld [vmem:[#allocation2 + $0x12e8] sm:$0xf0] }
 0x30c   :  { %v16018_v28 = vld [vmem:[#allocation2 + $0x14cc] sm:$0xf]  ;;  %v12584_v32 = vor.u32 %v15954_v21, %v12581_v24  ;;  %6650 = vmatpush.bf16.msrb.mxu1 %v12328_v31  ;;  %v6423_v24 = vpop.f32.mrf.mxu3 }
 0x30d   :  { %v12837_v29 = vld [vmem:[#allocation2 + $0x14e8] sm:$0xf0] }
 0x30e   :  { %v15818_v33 = vld [vmem:[#allocation2 + $0xe8c] sm:$0xf]  ;;  %v12840_v41 = vor.u32 %v16018_v28, %v12837_v29  ;;  %6663 = vmatpush.bf16.msrb.mxu2 %v12584_v32 }
 0x30f   :  { %v12037_v35 = vld [vmem:[#allocation2 + $0xea8] sm:$0xf0] }
 0x310   :  { %v15882_v57 = vld [vmem:[#allocation2 + $0x108c] sm:$0xf]  ;;  %v12040_v48 = vor.u32 %v15818_v33, %v12037_v35  ;;  %6676 = vmatpush.bf16.msrb.mxu3 %v12840_v41 }
 0x311   :  { %v12293_v39 = vld [vmem:[#allocation2 + $0x10a8] sm:$0xf0] }
 0x312   :  { %v15946_v42 = vld [vmem:[#allocation2 + $0x128c] sm:$0xf]  ;;  %v12296_v53 = vor.u32 %v15882_v57, %v12293_v39  ;;  %6638 = vmatpush.bf16.msrb.mxu0 %v12040_v48 }
 0x313   :  { %v12549_v47 = vld [vmem:[#allocation2 + $0x12a8] sm:$0xf0] }
 0x314   :  { %v16010_v45 = vld [vmem:[#allocation2 + $0x148c] sm:$0xf]  ;;  %v12552_v51 = vor.u32 %v15946_v42, %v12549_v47  ;;  %6651 = vmatpush.bf16.msrb.mxu1 %v12296_v53 }
 0x315   :  { %v12805_v46 = vld [vmem:[#allocation2 + $0x14a8] sm:$0xf0] }
 0x316   :  { %v15810_v52 = vld [vmem:[#allocation2 + $0xe4c] sm:$0xf]  ;;  %v12808_v4 = vor.u32 %v16010_v45, %v12805_v46  ;;  %6664 = vmatpush.bf16.msrb.mxu2 %v12552_v51 }
 0x317   :  { %v12005_v61 = vld [vmem:[#allocation2 + $0xe68] sm:$0xf0] }
 0x318   :  { %v15874_v54 = vld [vmem:[#allocation2 + $0x104c] sm:$0xf]  ;;  %v12008_v0 = vor.u32 %v15810_v52, %v12005_v61  ;;  %6677 = vmatpush.bf16.msrb.mxu3 %v12808_v4 }
 0x319   :  { %v12261_v56 = vld [vmem:[#allocation2 + $0x1068] sm:$0xf0] }
 0x31a   :  { %v15938_v59 = vld [vmem:[#allocation2 + $0x124c] sm:$0xf]  ;;  %v12264_v3 = vor.u32 %v15874_v54, %v12261_v56  ;;  %6639 = vmatpush.bf16.msrb.mxu0 %v12008_v0 }
 0x31b   :  { %v12517_v60 = vld [vmem:[#allocation2 + $0x1268] sm:$0xf0] }
 0x31c   :  { %v16002_v62 = vld [vmem:[#allocation2 + $0x144c] sm:$0xf]  ;;  %v12520_v5 = vor.u32 %v15938_v59, %v12517_v60  ;;  %6652 = vmatpush.bf16.msrb.mxu1 %v12264_v3 }
 0x31d   :  { %v12773_v63 = vld [vmem:[#allocation2 + $0x1468] sm:$0xf0] }
 0x31e   :  { %v15802_v6 = vld [vmem:[#allocation2 + $0xe0c] sm:$0xf]  ;;  %v12776_v14 = vor.u32 %v16002_v62, %v12773_v63  ;;  %6665 = vmatpush.bf16.msrb.mxu2 %v12520_v5 }
 0x31f   :  { %v11973_v2 = vld [vmem:[#allocation2 + $0xe28] sm:$0xf0] }
 0x320   :  { %v15866_v7 = vld [vmem:[#allocation2 + $0x100c] sm:$0xf]  ;;  %v11976_v26 = vor.u32 %v15802_v6, %v11973_v2  ;;  %6678 = vmatpush.bf16.msrb.mxu3 %v12776_v14 }
 0x321   :  { %v12229_v10 = vld [vmem:[#allocation2 + $0x1028] sm:$0xf0] }
 0x322   :  { %v15930_v11 = vld [vmem:[#allocation2 + $0x120c] sm:$0xf]  ;;  %v12232_v35 = vor.u32 %v15866_v7, %v12229_v10  ;;  %6640 = vmatpush.bf16.msrb.mxu0 %v11976_v26 }
 0x323   :  { %v12485_v16 = vld [vmem:[#allocation2 + $0x1228] sm:$0xf0] }
 0x324   :  { %v15994_v20 = vld [vmem:[#allocation2 + $0x140c] sm:$0xf]  ;;  %v12488_v57 = vor.u32 %v15930_v11, %v12485_v16  ;;  %6653 = vmatpush.bf16.msrb.mxu1 %v12232_v35 }
 0x325   :  { %v12741_v21 = vld [vmem:[#allocation2 + $0x1428] sm:$0xf0]  ;;  %6641 = vmatmul.bf16.vlgmr.msrb.gmra.mxu0 %v17004_v38 }
 0x326   :  { %v16114_v28 = vld [vmem:[#allocation2 + $0x17cc] sm:$0xf]  ;;  %v12744_v39 = vor.u32 %v15994_v20, %v12741_v21  ;;  %6666 = vmatpush.bf16.msrb.mxu2 %v12488_v57 }
 0x327   :  { %v13221_v29 = vld [vmem:[#allocation2 + $0x17e8] sm:$0xf0]  ;;  %6654 = vmatmul.bf16.vlgmr.msrb.gmra.mxu1 %v17024_v18 }
 0x328   :  { %v16178_v30 = vld [vmem:[#allocation2 + $0x19cc] sm:$0xf]  ;;  %v13224_v42 = vor.u32 %v16114_v28, %v13221_v29  ;;  %6679 = vmatpush.bf16.msrb.mxu3 %v12744_v39  ;;  %v6434_v28 = vpop.f32.mrf.mxu0 }
 0x329   :  { %v13477_v31 = vld [vmem:[#allocation2 + $0x19e8] sm:$0xf0]  ;;  %6667 = vmatmul.bf16.vlgmr.msrb.gmra.mxu2 %v17028_v23  ;;  %v6435_v26 = vadd.f32 %v6434_v28, %v17123_v49 }
 0x32a   :  { %v16242_v32 = vld [vmem:[#allocation2 + $0x1bcc] sm:$0xf]  ;;  %v13480_v47 = vor.u32 %v16178_v30, %v13477_v31  ;;  %6685 = vmatpush.bf16.msra.mxu0 %v13224_v42 }
 0x32b   :  { %v13733_v33 = vld [vmem:[#allocation2 + $0x1be8] sm:$0xf0]  ;;  %6680 = vmatmul.bf16.vlgmr.msrb.gmra.mxu3 %v17026_v22 }
 0x32c   :  { %v16306_v36 = vld [vmem:[#allocation2 + $0x1dcc] sm:$0xf]  ;;  %v13736_v43 = vor.u32 %v16242_v32, %v13733_v33  ;;  %6698 = vmatpush.bf16.msra.mxu1 %v13480_v47  ;;  %v6447_v32 = vpop.f32.mrf.mxu1 }
 0x32d   :  { %v13989_v41 = vld [vmem:[#allocation2 + $0x1de8] sm:$0xf0]  ;;  %v6448_v42 = vadd.f32 %v6447_v32, %v6435_v26 }
 0x32e   :  { %v16106_v44 = vld [vmem:[#allocation2 + $0x178c] sm:$0xf]  ;;  %v13992_v48 = vor.u32 %v16306_v36, %v13989_v41  ;;  %6711 = vmatpush.bf16.msra.mxu2 %v13736_v43 }
 0x32f   :  { %v13189_v45 = vld [vmem:[#allocation2 + $0x17a8] sm:$0xf0] }
 0x330   :  { %v16170_v46 = vld [vmem:[#allocation2 + $0x198c] sm:$0xf]  ;;  %v13192_v54 = vor.u32 %v16106_v44, %v13189_v45  ;;  %6724 = vmatpush.bf16.msra.mxu3 %v13992_v48 }
 0x331   :  { %v13445_v50 = vld [vmem:[#allocation2 + $0x19a8] sm:$0xf0] }
 0x332   :  { %v16234_v53 = vld [vmem:[#allocation2 + $0x1b8c] sm:$0xf]  ;;  %v13448_v55 = vor.u32 %v16170_v46, %v13445_v50  ;;  %6686 = vmatpush.bf16.msra.mxu0 %v13192_v54  ;;  %v6460_v54 = vpop.f32.mrf.mxu2 }
 0x333   :  { %v13701_v51 = vld [vmem:[#allocation2 + $0x1ba8] sm:$0xf0] }
 0x334   :  { %v16298_v52 = vld [vmem:[#allocation2 + $0x1d8c] sm:$0xf]  ;;  %v13704_v4 = vor.u32 %v16234_v53, %v13701_v51  ;;  %6699 = vmatpush.bf16.msra.mxu1 %v13448_v55 }
 0x335   :  { %v13957_v61 = vld [vmem:[#allocation2 + $0x1da8] sm:$0xf0] }
 0x336   :  { %v16098_v56 = vld [vmem:[#allocation2 + $0x174c] sm:$0xf]  ;;  %v13960_v62 = vor.u32 %v16298_v52, %v13957_v61  ;;  %6712 = vmatpush.bf16.msra.mxu2 %v13704_v4 }
 0x337   :  { %v13157_v59 = vld [vmem:[#allocation2 + $0x1768] sm:$0xf0] }
 0x338   :  { %v16162_v60 = vld [vmem:[#allocation2 + $0x194c] sm:$0xf]  ;;  %v13160_v5 = vor.u32 %v16098_v56, %v13157_v59  ;;  %6725 = vmatpush.bf16.msra.mxu3 %v13960_v62  ;;  %v6461_v59 = vadd.f32 %v6460_v54, %v6448_v42  ;;  %v15607_v54 = vld [vmem:[#allocation2 + $0x7ec] sm:$0xf0] }
 0x339   :  { %v13413_v63 = vld [vmem:[#allocation2 + $0x1968] sm:$0xf0] }
 0x33a   :  { %v16226_v0 = vld [vmem:[#allocation2 + $0x1b4c] sm:$0xf]  ;;  %v13416_v7 = vor.u32 %v16162_v60, %v13413_v63  ;;  %6687 = vmatpush.bf16.msra.mxu0 %v13160_v5  ;;  %v6473_v60 = vpop.f32.mrf.mxu3 }
 0x33b   :  { %v13669_v6 = vld [vmem:[#allocation2 + $0x1b68] sm:$0xf0] }
 0x33c   :  { %v16290_v2 = vld [vmem:[#allocation2 + $0x1d4c] sm:$0xf]  ;;  %v13672_v10 = vor.u32 %v16226_v0, %v13669_v6  ;;  %6700 = vmatpush.bf16.msra.mxu1 %v13416_v7  ;;  %v6436_v0 = vpop.f32.mrf.mxu0 }
 0x33d   :  { %v13925_v3 = vld [vmem:[#allocation2 + $0x1d68] sm:$0xf0] }
 0x33e   :  { %v16090_v11 = vld [vmem:[#allocation2 + $0x170c] sm:$0xf]  ;;  %v13928_v16 = vor.u32 %v16290_v2, %v13925_v3  ;;  %6713 = vmatpush.bf16.msra.mxu2 %v13672_v10  ;;  %v6449_v2 = vpop.f32.mrf.mxu1  ;;  %v17130_v3 = vadd.f32 %v6473_v60, %v6461_v59  ;;  %v10379_v60 = vld [vmem:[#allocation2 + $0x190] sm:$0xf] }
 0x33f   :  { %v13125_v13 = vld [vmem:[#allocation2 + $0x1728] sm:$0xf0]  ;;  %v10891_v2 = vld [vmem:[#allocation2 + $0x590] sm:$0xf] }
 0x340   :  { %v16154_v14 = vld [vmem:[#allocation2 + $0x190c] sm:$0xf]  ;;  %v13128_v31 = vor.u32 %v16090_v11, %v13125_v13  ;;  %6726 = vmatpush.bf16.msra.mxu3 %v13928_v16 }
 0x341   :  { %v13381_v20 = vld [vmem:[#allocation2 + $0x1928] sm:$0xf0] }
 0x342   :  { %v16218_v21 = vld [vmem:[#allocation2 + $0x1b0c] sm:$0xf]  ;;  %v13384_v33 = vor.u32 %v16154_v14, %v13381_v20  ;;  %6688 = vmatpush.bf16.msra.mxu0 %v13128_v31 }
 0x343   :  { %v13637_v24 = vld [vmem:[#allocation2 + $0x1b28] sm:$0xf0] }
 0x344   :  { %v16282_v29 = vld [vmem:[#allocation2 + $0x1d0c] sm:$0xf]  ;;  %v13640_v35 = vor.u32 %v16218_v21, %v13637_v24  ;;  %6701 = vmatpush.bf16.msra.mxu1 %v13384_v33 }
 0x345   :  { %v13893_v30 = vld [vmem:[#allocation2 + $0x1d28] sm:$0xf0] }
 0x346   :  { %v16082_v57 = vld [vmem:[#allocation2 + $0x16cc] sm:$0xf]  ;;  %v13896_v39 = vor.u32 %v16282_v29, %v13893_v30  ;;  %6714 = vmatpush.bf16.msra.mxu2 %v13640_v35 }
 0x347   :  { %v13093_v36 = vld [vmem:[#allocation2 + $0x16e8] sm:$0xf0] }
 0x348   :  { %v16146_v41 = vld [vmem:[#allocation2 + $0x18cc] sm:$0xf]  ;;  %v13096_v48 = vor.u32 %v16082_v57, %v13093_v36  ;;  %6727 = vmatpush.bf16.msra.mxu3 %v13896_v39 }
 0x349   :  { %v13349_v47 = vld [vmem:[#allocation2 + $0x18e8] sm:$0xf0] }
 0x34a   :  { %v16210_v43 = vld [vmem:[#allocation2 + $0x1acc] sm:$0xf]  ;;  %v13352_v49 = vor.u32 %v16146_v41, %v13349_v47  ;;  %6689 = vmatpush.bf16.msra.mxu0 %v13096_v48  ;;  %v6462_v47 = vpop.f32.mrf.mxu2 }
 0x34b   :  { %v13605_v44 = vld [vmem:[#allocation2 + $0x1ae8] sm:$0xf0]  ;;  %v10827_v47 = vld [vmem:[#allocation2 + $0x510] sm:$0xf] }
 0x34c   :  { %v16274_v45 = vld [vmem:[#allocation2 + $0x1ccc] sm:$0xf]  ;;  %v13608_v50 = vor.u32 %v16210_v43, %v13605_v44  ;;  %6702 = vmatpush.bf16.msra.mxu1 %v13352_v49  ;;  %v10411_v43 = vld [vmem:[#allocation2 + $0x1d0] sm:$0xf] }
 0x34d   :  { %v13861_v46 = vld [vmem:[#allocation2 + $0x1ce8] sm:$0xf0]  ;;  %v15415_v44 = vld [vmem:[#allocation2 + $0x1ec] sm:$0xf0] }
 0x34e   :  { %v16074_v53 = vld [vmem:[#allocation2 + $0x168c] sm:$0xf]  ;;  %v13864_v61 = vor.u32 %v16274_v45, %v13861_v46  ;;  %6715 = vmatpush.bf16.msra.mxu2 %v13608_v50  ;;  %v10667_v45 = vld [vmem:[#allocation2 + $0x3d0] sm:$0xf]  ;;  %v6475_v46 = vpop.f32.mrf.mxu3 }
 0x34f   :  { %v13061_v51 = vld [vmem:[#allocation2 + $0x16a8] sm:$0xf0]  ;;  %v15479_v49 = vld [vmem:[#allocation2 + $0x3ec] sm:$0xf0] }
 0x350   :  { %v16138_v52 = vld [vmem:[#allocation2 + $0x188c] sm:$0xf]  ;;  %v13064_v6 = vor.u32 %v16074_v53, %v13061_v51  ;;  %6728 = vmatpush.bf16.msra.mxu3 %v13864_v61  ;;  %v10923_v50 = vld [vmem:[#allocation2 + $0x5d0] sm:$0xf] }
 0x351   :  { %v13317_v55 = vld [vmem:[#allocation2 + $0x18a8] sm:$0xf0]  ;;  %v15543_v53 = vld [vmem:[#allocation2 + $0x5ec] sm:$0xf0] }
 0x352   :  { %v16202_v4 = vld [vmem:[#allocation2 + $0x1a8c] sm:$0xf]  ;;  %v13320_v5 = vor.u32 %v16138_v52, %v13317_v55  ;;  %6690 = vmatpush.bf16.msra.mxu0 %v13064_v6  ;;  %v11179_v61 = vld [vmem:[#allocation2 + $0x7d0] sm:$0xf]  ;;  %v10924_v59 = vor.u32 %v15543_v53, %v10923_v50  ;;  %v6499_v50 = vpop.f32.mrf.mxu1 }
 0x353   :  { %v13573_v56 = vld [vmem:[#allocation2 + $0x1aa8] sm:$0xf0]  ;;  %v11180_v0 = vor.u32 %v15607_v54, %v11179_v61  ;;  %v15471_v6 = vld [vmem:[#allocation2 + $0x3ac] sm:$0xf0] }
 0x354   :  { %v16266_v62 = vld [vmem:[#allocation2 + $0x1c8c] sm:$0xf]  ;;  %v13576_v7 = vor.u32 %v16202_v4, %v13573_v56  ;;  %6703 = vmatpush.bf16.msra.mxu1 %v13320_v5  ;;  %v10412_v4 = vor.u32 %v15415_v44, %v10411_v43  ;;  %v10668_v56 = vor.u32 %v15479_v49, %v10667_v45  ;;  %v15535_v5 = vld [vmem:[#allocation2 + $0x5ac] sm:$0xf0]  ;;  %v6486_v44 = vpop.f32.mrf.mxu0 }
 0x355   :  { %v13829_v63 = vld [vmem:[#allocation2 + $0x1ca8] sm:$0xf0]  ;;  %v15519_v43 = vld [vmem:[#allocation2 + $0x52c] sm:$0xf0] }
 0x356   :  { %v16066_v10 = vld [vmem:[#allocation2 + $0x164c] sm:$0xf]  ;;  %v13832_v14 = vor.u32 %v16266_v62, %v13829_v63  ;;  %6716 = vmatpush.bf16.msra.mxu2 %v13576_v7  ;;  %v15407_v62 = vld [vmem:[#allocation2 + $0x1ac] sm:$0xf0] }
 0x357   :  { %v13029_v11 = vld [vmem:[#allocation2 + $0x1668] sm:$0xf0]  ;;  %v10635_v63 = vld [vmem:[#allocation2 + $0x390] sm:$0xf] }
 0x358   :  { %v16130_v13 = vld [vmem:[#allocation2 + $0x184c] sm:$0xf]  ;;  %v13032_v29 = vor.u32 %v16066_v10, %v13029_v11  ;;  %6729 = vmatpush.bf16.msra.mxu3 %v13832_v14  ;;  %v11147_v7 = vld [vmem:[#allocation2 + $0x790] sm:$0xf]  ;;  %v10380_v11 = vor.u32 %v15407_v62, %v10379_v60  ;;  %v10892_v14 = vor.u32 %v15535_v5, %v10891_v2 }
 0x359   :  { %v13285_v16 = vld [vmem:[#allocation2 + $0x1868] sm:$0xf0]  ;;  %v15599_v10 = vld [vmem:[#allocation2 + $0x7ac] sm:$0xf0] }
 0x35a   :  { %v16194_v20 = vld [vmem:[#allocation2 + $0x1a4c] sm:$0xf]  ;;  %v13288_v31 = vor.u32 %v16130_v13, %v13285_v16  ;;  %6691 = vmatpush.bf16.msra.mxu0 %v13032_v29  ;;  %v10636_v13 = vor.u32 %v15471_v6, %v10635_v63  ;;  %v10347_v16 = vld [vmem:[#allocation2 + $0x150] sm:$0xf] }
 0x35b   :  { %v13541_v21 = vld [vmem:[#allocation2 + $0x1a68] sm:$0xf0]  ;;  %v10859_v29 = vld [vmem:[#allocation2 + $0x550] sm:$0xf] }
 0x35c   :  { %v16258_v24 = vld [vmem:[#allocation2 + $0x1c4c] sm:$0xf]  ;;  %v13544_v32 = vor.u32 %v16194_v20, %v13541_v21  ;;  %6704 = vmatpush.bf16.msra.mxu1 %v13288_v31  ;;  %v15399_v20 = vld [vmem:[#allocation2 + $0x16c] sm:$0xf0] }
 0x35d   :  { %v13797_v28 = vld [vmem:[#allocation2 + $0x1c68] sm:$0xf0]  ;;  %v10603_v21 = vld [vmem:[#allocation2 + $0x350] sm:$0xf] }
 0x35e   :  { %v16058_v30 = vld [vmem:[#allocation2 + $0x160c] sm:$0xf]  ;;  %v13800_v36 = vor.u32 %v16258_v24, %v13797_v28  ;;  %6717 = vmatpush.bf16.msra.mxu2 %v13544_v32  ;;  %v11148_v24 = vor.u32 %v15599_v10, %v11147_v7  ;;  %v15463_v28 = vld [vmem:[#allocation2 + $0x36c] sm:$0xf0]  ;;  %v10348_v32 = vor.u32 %v15399_v20, %v10347_v16 }
 0x35f   :  { %v12997_v26 = vld [vmem:[#allocation2 + $0x1628] sm:$0xf0]  ;;  %v15591_v31 = vld [vmem:[#allocation2 + $0x76c] sm:$0xf0] }
 0x360   :  { %v16122_v33 = vld [vmem:[#allocation2 + $0x180c] sm:$0xf]  ;;  %v13000_v48 = vor.u32 %v16058_v30, %v12997_v26  ;;  %6730 = vmatpush.bf16.msra.mxu3 %v13800_v36  ;;  %v15527_v30 = vld [vmem:[#allocation2 + $0x56c] sm:$0xf0] }
 0x361   :  { %v13253_v35 = vld [vmem:[#allocation2 + $0x1828] sm:$0xf0]  ;;  %v11115_v26 = vld [vmem:[#allocation2 + $0x750] sm:$0xf] }
 0x362   :  { %v16186_v57 = vld [vmem:[#allocation2 + $0x1a0c] sm:$0xf]  ;;  %v13256_v51 = vor.u32 %v16122_v33, %v13253_v35  ;;  %6692 = vmatpush.bf16.msra.mxu0 %v13000_v48  ;;  %v10604_v33 = vor.u32 %v15463_v28, %v10603_v21  ;;  %v10860_v35 = vor.u32 %v15527_v30, %v10859_v29  ;;  %v15391_v36 = vld [vmem:[#allocation2 + $0x12c] sm:$0xf0]  ;;  %v6487_v48 = vadd.f32 %v6486_v44, %v17130_v3  ;;  %v6525_v21 = vpop.f32.mrf.mxu3  ;;  %v6488_v29 = vpop.f32.mrf.mxu0 }
 0x363   :  { %v13509_v41 = vld [vmem:[#allocation2 + $0x1a28] sm:$0xf0]  ;;  %v11083_v45 = vld [vmem:[#allocation2 + $0x710] sm:$0xf] }
 0x364   :  { %v16250_v39 = vld [vmem:[#allocation2 + $0x1c0c] sm:$0xf]  ;;  %v13512_v52 = vor.u32 %v16186_v57, %v13509_v41  ;;  %6705 = vmatpush.bf16.msra.mxu1 %v13256_v51  ;;  %v10315_v57 = vld [vmem:[#allocation2 + $0x110] sm:$0xf]  ;;  %v10828_v51 = vor.u32 %v15519_v43, %v10827_v47 }
 0x365   :  { %v13765_v42 = vld [vmem:[#allocation2 + $0x1c28] sm:$0xf0]  ;;  %6693 = vmatmul.bf16.vlgmr.msra.gmra.mxu0 %v17030_v27  ;;  %v10571_v41 = vld [vmem:[#allocation2 + $0x310] sm:$0xf]  ;;  %v10316_v49 = vor.u32 %v15391_v36, %v10315_v57 }
 0x366   :  { %v13768_v55 = vor.u32 %v16250_v39, %v13765_v42  ;;  %6718 = vmatpush.bf16.msra.mxu2 %v13512_v52  ;;  %6737 = vmatpush.bf16.msrb.mxu0 %v10412_v4  ;;  %v11116_v39 = vor.u32 %v15591_v31, %v11115_v26  ;;  %v15455_v42 = vld [vmem:[#allocation2 + $0x32c] sm:$0xf0]  ;;  %v6500_v4 = vadd.f32 %v6499_v50, %v6487_v48  ;;  %v6501_v26 = vpop.f32.mrf.mxu1 }
 0x367   :  { %6706 = vmatmul.bf16.vlgmr.msra.gmra.mxu1 %v17045_v12  ;;  %v15583_v46 = vld [vmem:[#allocation2 + $0x72c] sm:$0xf0]  ;;  %v10572_v53 = vor.u32 %v15455_v42, %v10571_v41 }
 0x368   :  { %6731 = vmatpush.bf16.msra.mxu3 %v13768_v55  ;;  %6750 = vmatpush.bf16.msrb.mxu1 %v10668_v56  ;;  %v10283_v52 = vld [vmem:[#allocation2 + $0xd0] sm:$0xf]  ;;  %v11084_v55 = vor.u32 %v15583_v46, %v11083_v45 }
 0x369   :  { %6719 = vmatmul.bf16.vlgmr.msra.gmra.mxu2 %v17049_v19  ;;  %v15383_v61 = vld [vmem:[#allocation2 + $0xec] sm:$0xf0] }
 0x36a   :  { %6763 = vmatpush.bf16.msrb.mxu2 %v10924_v59  ;;  %6738 = vmatpush.bf16.msrb.mxu0 %v10380_v11  ;;  %v10539_v54 = vld [vmem:[#allocation2 + $0x2d0] sm:$0xf]  ;;  %v6512_v11 = vpop.f32.mrf.mxu2 }
 0x36b   :  { %6732 = vmatmul.bf16.vlgmr.msra.gmra.mxu3 %v17047_v17  ;;  %v15447_v56 = vld [vmem:[#allocation2 + $0x2ec] sm:$0xf0]  ;;  %v6513_v20 = vadd.f32 %v6512_v11, %v6500_v4 }
 0x36c   :  { %6776 = vmatpush.bf16.msrb.mxu3 %v11180_v0  ;;  %6751 = vmatpush.bf16.msrb.mxu1 %v10636_v13  ;;  %v10795_v59 = vld [vmem:[#allocation2 + $0x4d0] sm:$0xf]  ;;  %v10284_v0 = vor.u32 %v15383_v61, %v10283_v52  ;;  %v10540_v3 = vor.u32 %v15447_v56, %v10539_v54 }
 0x36d   :  { %v15511_v60 = vld [vmem:[#allocation2 + $0x4ec] sm:$0xf0]  ;;  %v17137_v31 = vadd.f32 %v6525_v21, %v6513_v20 }
 0x36e   :  { %6764 = vmatpush.bf16.msrb.mxu2 %v10892_v14  ;;  %6739 = vmatpush.bf16.msrb.mxu0 %v10348_v32  ;;  %v11051_v62 = vld [vmem:[#allocation2 + $0x6d0] sm:$0xf]  ;;  %v10796_v6 = vor.u32 %v15511_v60, %v10795_v59 }
 0x36f   :  { %v15575_v63 = vld [vmem:[#allocation2 + $0x6ec] sm:$0xf0] }
 0x370   :  { %6777 = vmatpush.bf16.msrb.mxu3 %v11148_v24  ;;  %6752 = vmatpush.bf16.msrb.mxu1 %v10604_v33  ;;  %v10251_v2 = vld [vmem:[#allocation2 + $0x90] sm:$0xf]  ;;  %v11052_v10 = vor.u32 %v15575_v63, %v11051_v62  ;;  %v6527_v63 = vpop.f32.mrf.mxu3 }
 0x371   :  { %v15375_v5 = vld [vmem:[#allocation2 + $0xac] sm:$0xf0] }
 0x372   :  { %6765 = vmatpush.bf16.msrb.mxu2 %v10860_v35  ;;  %6740 = vmatpush.bf16.msrb.mxu0 %v10316_v49  ;;  %v10507_v7 = vld [vmem:[#allocation2 + $0x290] sm:$0xf]  ;;  %v10252_v30 = vor.u32 %v15375_v5, %v10251_v2  ;;  %v6514_v56 = vpop.f32.mrf.mxu2 }
 0x373   :  { %v15439_v13 = vld [vmem:[#allocation2 + $0x2ac] sm:$0xf0] }
 0x374   :  { %6778 = vmatpush.bf16.msrb.mxu3 %v11116_v39  ;;  %6753 = vmatpush.bf16.msrb.mxu1 %v10572_v53  ;;  %v10763_v14 = vld [vmem:[#allocation2 + $0x490] sm:$0xf]  ;;  %v10508_v32 = vor.u32 %v15439_v13, %v10507_v7 }
 0x375   :  { %v15503_v16 = vld [vmem:[#allocation2 + $0x4ac] sm:$0xf0] }
 0x376   :  { %6766 = vmatpush.bf16.msrb.mxu2 %v10828_v51  ;;  %v11019_v24 = vld [vmem:[#allocation2 + $0x690] sm:$0xf]  ;;  %6741 = vmatpush.bf16.msrb.mxu0 %v10284_v0  ;;  %v10764_v33 = vor.u32 %v15503_v16, %v10763_v14 }
 0x377   :  { %v15567_v28 = vld [vmem:[#allocation2 + $0x6ac] sm:$0xf0] }
 0x378   :  { %6779 = vmatpush.bf16.msrb.mxu3 %v11084_v55  ;;  %6754 = vmatpush.bf16.msrb.mxu1 %v10540_v3  ;;  %v10219_v35 = vld [vmem:[#allocation2 + $0x50] sm:$0xf]  ;;  %v11020_v41 = vor.u32 %v15567_v28, %v11019_v24 }
 0x379   :  { %v15367_v57 = vld [vmem:[#allocation2 + $0x6c] sm:$0xf0] }
 0x37a   :  { %6767 = vmatpush.bf16.msrb.mxu2 %v10796_v6  ;;  %v10475_v36 = vld [vmem:[#allocation2 + $0x250] sm:$0xf]  ;;  %6742 = vmatpush.bf16.msrb.mxu0 %v10252_v30  ;;  %v10220_v45 = vor.u32 %v15367_v57, %v10219_v35 }
 0x37b   :  { %v15431_v39 = vld [vmem:[#allocation2 + $0x26c] sm:$0xf0] }
 0x37c   :  { %6780 = vmatpush.bf16.msrb.mxu3 %v11052_v10  ;;  %v10731_v42 = vld [vmem:[#allocation2 + $0x450] sm:$0xf]  ;;  %6755 = vmatpush.bf16.msrb.mxu1 %v10508_v32  ;;  %v10476_v49 = vor.u32 %v15431_v39, %v10475_v36 }
 0x37d   :  { %v15495_v47 = vld [vmem:[#allocation2 + $0x46c] sm:$0xf0] }
 0x37e   :  { %v10987_v43 = vld [vmem:[#allocation2 + $0x650] sm:$0xf]  ;;  %6768 = vmatpush.bf16.msrb.mxu2 %v10764_v33  ;;  %v10732_v50 = vor.u32 %v15495_v47, %v10731_v42  ;;  %6743 = vmatpush.bf16.msrb.mxu0 %v10220_v45 }
 0x37f   :  { %v15559_v44 = vld [vmem:[#allocation2 + $0x66c] sm:$0xf0] }
 0x380   :  { %v10187_v46 = vld [vmem:[#allocation2 + $0x10] sm:$0xf]  ;;  %6781 = vmatpush.bf16.msrb.mxu3 %v11020_v41  ;;  %v10988_v61 = vor.u32 %v15559_v44, %v10987_v43  ;;  %6756 = vmatpush.bf16.msrb.mxu1 %v10476_v49 }
 0x381   :  { %v15359_v48 = vld [vmem:[#allocation2 + $0x2c] sm:$0xf0] }
 0x382   :  { %v10443_v53 = vld [vmem:[#allocation2 + $0x210] sm:$0xf]  ;;  %v10188_v0 = vor.u32 %v15359_v48, %v10187_v46  ;;  %6769 = vmatpush.bf16.msrb.mxu2 %v10732_v50 }
 0x383   :  { %v15423_v51 = vld [vmem:[#allocation2 + $0x22c] sm:$0xf0] }
 0x384   :  { %v10699_v52 = vld [vmem:[#allocation2 + $0x410] sm:$0xf]  ;;  %v10444_v5 = vor.u32 %v15423_v51, %v10443_v53  ;;  %6782 = vmatpush.bf16.msrb.mxu3 %v10988_v61  ;;  %6744 = vmatpush.bf16.msrb.mxu0 %v10188_v0  ;;  %v16667_v0 = vld [vmem:[#allocation4] sm:$0xff] }
 0x385   :  { %v15487_v54 = vld [vmem:[#allocation2 + $0x42c] sm:$0xf0] }
 0x386   :  { %v10955_v55 = vld [vmem:[#allocation2 + $0x610] sm:$0xf]  ;;  %v10700_v7 = vor.u32 %v15487_v54, %v10699_v52  ;;  %6757 = vmatpush.bf16.msrb.mxu1 %v10444_v5 }
 0x387   :  { %v15551_v4 = vld [vmem:[#allocation2 + $0x62c] sm:$0xf0]  ;;  %6745 = vmatmul.bf16.vlgmr.msrb.gmra.mxu0 %v16972_v9 }
 0x388   :  { %v11435_v59 = vld [vmem:[#allocation2 + $0x9d0] sm:$0xf]  ;;  %v10956_v13 = vor.u32 %v15551_v4, %v10955_v55  ;;  %6770 = vmatpush.bf16.msrb.mxu2 %v10700_v7 }
 0x389   :  { %v15671_v60 = vld [vmem:[#allocation2 + $0x9ec] sm:$0xf0]  ;;  %6758 = vmatmul.bf16.vlgmr.msrb.gmra.mxu1 %v16985_v25 }
 0x38a   :  { %v11691_v62 = vld [vmem:[#allocation2 + $0xbd0] sm:$0xf]  ;;  %v11436_v14 = vor.u32 %v15671_v60, %v11435_v59  ;;  %6783 = vmatpush.bf16.msrb.mxu3 %v10956_v13  ;;  %v6538_v60 = vpop.f32.mrf.mxu0 }
 0x38b   :  { %v15735_v3 = vld [vmem:[#allocation2 + $0xbec] sm:$0xf0]  ;;  %6771 = vmatmul.bf16.vlgmr.msrb.gmra.mxu2 %v16970_v8 }
 0x38c   :  { %v11947_v6 = vld [vmem:[#allocation2 + $0xdd0] sm:$0xf]  ;;  %v11692_v16 = vor.u32 %v15735_v3, %v11691_v62  ;;  %6789 = vmatpush.bf16.msra.mxu0 %v11436_v14  ;;  %v1144_v3 = vperm.slane %v16667_v0, 3  ;;  %v6551_v14 = vpop.f32.mrf.mxu1 }
 0x38d   :  { %v15799_v2 = vld [vmem:[#allocation2 + $0xdec] sm:$0xf0]  ;;  %6784 = vmatmul.bf16.vlgmr.msrb.gmra.mxu3 %v16977_v15 }
 0x38e   :  { %v12203_v10 = vld [vmem:[#allocation2 + $0xfd0] sm:$0xf]  ;;  %v11948_v20 = vor.u32 %v15799_v2, %v11947_v6  ;;  %6802 = vmatpush.bf16.msra.mxu1 %v11692_v16  ;;  %v17144_v6 = vadd.f32 %v6538_v60, %v17137_v31 }
 0x38f   :  { %v15863_v11 = vld [vmem:[#allocation2 + $0xfec] sm:$0xf0] }
 0x390   :  { %v11403_v21 = vld [vmem:[#allocation2 + $0x990] sm:$0xf]  ;;  %v12204_v29 = vor.u32 %v15863_v11, %v12203_v10  ;;  %6815 = vmatpush.bf16.msra.mxu2 %v11948_v20 }
 0x391   :  { %v15663_v24 = vld [vmem:[#allocation2 + $0x9ac] sm:$0xf0] }
 0x392   :  { %v11659_v28 = vld [vmem:[#allocation2 + $0xb90] sm:$0xf]  ;;  %v11404_v57 = vor.u32 %v15663_v24, %v11403_v21  ;;  %6828 = vmatpush.bf16.msra.mxu3 %v12204_v29 }
 0x393   :  { %v15727_v30 = vld [vmem:[#allocation2 + $0xbac] sm:$0xf0] }
 0x394   :  { %v11915_v26 = vld [vmem:[#allocation2 + $0xd90] sm:$0xf]  ;;  %v11660_v36 = vor.u32 %v15727_v30, %v11659_v28  ;;  %6790 = vmatpush.bf16.msra.mxu0 %v11404_v57  ;;  %v6552_v30 = vadd.f32 %v6551_v14, %v1144_v3 }
 0x395   :  { %v15791_v32 = vld [vmem:[#allocation2 + $0xdac] sm:$0xf0] }
 0x396   :  { %v12171_v33 = vld [vmem:[#allocation2 + $0xf90] sm:$0xf]  ;;  %v11916_v41 = vor.u32 %v15791_v32, %v11915_v26  ;;  %6803 = vmatpush.bf16.msra.mxu1 %v11660_v36 }
 0x397   :  { %v15855_v35 = vld [vmem:[#allocation2 + $0xfac] sm:$0xf0] }
 0x398   :  { %v11371_v39 = vld [vmem:[#allocation2 + $0x950] sm:$0xf]  ;;  %v12172_v43 = vor.u32 %v15855_v35, %v12171_v33  ;;  %6816 = vmatpush.bf16.msra.mxu2 %v11916_v41 }
 0x399   :  { %v15655_v42 = vld [vmem:[#allocation2 + $0x96c] sm:$0xf0] }
 0x39a   :  { %v11627_v47 = vld [vmem:[#allocation2 + $0xb50] sm:$0xf]  ;;  %v11372_v50 = vor.u32 %v15655_v42, %v11371_v39  ;;  %6829 = vmatpush.bf16.msra.mxu3 %v12172_v43  ;;  %v6577_v43 = vpop.f32.mrf.mxu3 }
 0x39b   :  { %v15719_v44 = vld [vmem:[#allocation2 + $0xb6c] sm:$0xf0] }
 0x39c   :  { %v11883_v45 = vld [vmem:[#allocation2 + $0xd50] sm:$0xf]  ;;  %v11628_v53 = vor.u32 %v15719_v44, %v11627_v47  ;;  %6791 = vmatpush.bf16.msra.mxu0 %v11372_v50  ;;  %v6564_v47 = vpop.f32.mrf.mxu2 }
 0x39d   :  { %v15783_v46 = vld [vmem:[#allocation2 + $0xd6c] sm:$0xf0] }
 0x39e   :  { %v12139_v48 = vld [vmem:[#allocation2 + $0xf50] sm:$0xf]  ;;  %v11884_v51 = vor.u32 %v15783_v46, %v11883_v45  ;;  %6804 = vmatpush.bf16.msra.mxu1 %v11628_v53  ;;  %v6565_v46 = vadd.f32 %v6564_v47, %v6552_v30 }
 0x39f   :  { %v15847_v49 = vld [vmem:[#allocation2 + $0xf6c] sm:$0xf0] }
 0x3a0   :  { %v11339_v52 = vld [vmem:[#allocation2 + $0x910] sm:$0xf]  ;;  %v12140_v55 = vor.u32 %v15847_v49, %v12139_v48  ;;  %6817 = vmatpush.bf16.msra.mxu2 %v11884_v51  ;;  %v6540_v48 = vpop.f32.mrf.mxu0 }
 0x3a1   :  { %v15647_v61 = vld [vmem:[#allocation2 + $0x92c] sm:$0xf0] }
 0x3a2   :  { %v11595_v54 = vld [vmem:[#allocation2 + $0xb10] sm:$0xf]  ;;  %v11340_v2 = vor.u32 %v15647_v61, %v11339_v52  ;;  %6830 = vmatpush.bf16.msra.mxu3 %v12140_v55  ;;  %v6553_v55 = vpop.f32.mrf.mxu1 }
 0x3a3   :  { %v15711_v4 = vld [vmem:[#allocation2 + $0xb2c] sm:$0xf0] }
 0x3a4   :  { %v11851_v56 = vld [vmem:[#allocation2 + $0xd10] sm:$0xf]  ;;  %v11596_v5 = vor.u32 %v15711_v4, %v11595_v54  ;;  %6792 = vmatpush.bf16.msra.mxu0 %v11340_v2  ;;  %v17146_v54 = vadd.f32 %v6577_v43, %v6565_v46 }
 0x3a5   :  { %v15775_v59 = vld [vmem:[#allocation2 + $0xd2c] sm:$0xf0] }
 0x3a6   :  { %v12107_v62 = vld [vmem:[#allocation2 + $0xf10] sm:$0xf]  ;;  %v11852_v7 = vor.u32 %v15775_v59, %v11851_v56  ;;  %6805 = vmatpush.bf16.msra.mxu1 %v11596_v5 }
 0x3a7   :  { %v15839_v63 = vld [vmem:[#allocation2 + $0xf2c] sm:$0xf0] }
 0x3a8   :  { %v11307_v10 = vld [vmem:[#allocation2 + $0x8d0] sm:$0xf]  ;;  %v12108_v16 = vor.u32 %v15839_v63, %v12107_v62  ;;  %6818 = vmatpush.bf16.msra.mxu2 %v11852_v7 }
 0x3a9   :  { %v15639_v11 = vld [vmem:[#allocation2 + $0x8ec] sm:$0xf0] }
 0x3aa   :  { %v11563_v13 = vld [vmem:[#allocation2 + $0xad0] sm:$0xf]  ;;  %v11308_v31 = vor.u32 %v15639_v11, %v11307_v10  ;;  %6831 = vmatpush.bf16.msra.mxu3 %v12108_v16 }
 0x3ab   :  { %v15703_v20 = vld [vmem:[#allocation2 + $0xaec] sm:$0xf0] }
 0x3ac   :  { %v11819_v21 = vld [vmem:[#allocation2 + $0xcd0] sm:$0xf]  ;;  %v11564_v26 = vor.u32 %v15703_v20, %v11563_v13  ;;  %6793 = vmatpush.bf16.msra.mxu0 %v11308_v31 }
 0x3ad   :  { %v15767_v24 = vld [vmem:[#allocation2 + $0xcec] sm:$0xf0] }
 0x3ae   :  { %v12075_v28 = vld [vmem:[#allocation2 + $0xed0] sm:$0xf]  ;;  %v11820_v32 = vor.u32 %v15767_v24, %v11819_v21  ;;  %6806 = vmatpush.bf16.msra.mxu1 %v11564_v26  ;;  %v6566_v24 = vpop.f32.mrf.mxu2 }
 0x3af   :  { %v15831_v29 = vld [vmem:[#allocation2 + $0xeec] sm:$0xf0] }
 0x3b0   :  { %v11275_v33 = vld [vmem:[#allocation2 + $0x890] sm:$0xf]  ;;  %v12076_v36 = vor.u32 %v15831_v29, %v12075_v28  ;;  %6819 = vmatpush.bf16.msra.mxu2 %v11820_v32  ;;  %v6579_v28 = vpop.f32.mrf.mxu3 }
 0x3b1   :  { %v15631_v35 = vld [vmem:[#allocation2 + $0x8ac] sm:$0xf0] }
 0x3b2   :  { %v11531_v57 = vld [vmem:[#allocation2 + $0xa90] sm:$0xf]  ;;  %v11276_v49 = vor.u32 %v15631_v35, %v11275_v33  ;;  %6832 = vmatpush.bf16.msra.mxu3 %v12076_v36 }
 0x3b3   :  { %v15695_v41 = vld [vmem:[#allocation2 + $0xaac] sm:$0xf0] }
 0x3b4   :  { %v11787_v39 = vld [vmem:[#allocation2 + $0xc90] sm:$0xf]  ;;  %v11532_v50 = vor.u32 %v15695_v41, %v11531_v57  ;;  %6794 = vmatpush.bf16.msra.mxu0 %v11276_v49 }
 0x3b5   :  { %v15759_v42 = vld [vmem:[#allocation2 + $0xcac] sm:$0xf0] }
 0x3b6   :  { %v12043_v44 = vld [vmem:[#allocation2 + $0xe90] sm:$0xf]  ;;  %v11788_v53 = vor.u32 %v15759_v42, %v11787_v39  ;;  %6807 = vmatpush.bf16.msra.mxu1 %v11532_v50 }
 0x3b7   :  { %v15823_v45 = vld [vmem:[#allocation2 + $0xeac] sm:$0xf0] }
 0x3b8   :  { %v11243_v51 = vld [vmem:[#allocation2 + $0x850] sm:$0xf]  ;;  %v12044_v4 = vor.u32 %v15823_v45, %v12043_v44  ;;  %6820 = vmatpush.bf16.msra.mxu2 %v11788_v53 }
 0x3b9   :  { %v15623_v52 = vld [vmem:[#allocation2 + $0x86c] sm:$0xf0] }
 0x3ba   :  { %v11499_v61 = vld [vmem:[#allocation2 + $0xa50] sm:$0xf]  ;;  %v11244_v0 = vor.u32 %v15623_v52, %v11243_v51  ;;  %6833 = vmatpush.bf16.msra.mxu3 %v12044_v4 }
 0x3bb   :  { %v15687_v56 = vld [vmem:[#allocation2 + $0xa6c] sm:$0xf0] }
 0x3bc   :  { %v11755_v59 = vld [vmem:[#allocation2 + $0xc50] sm:$0xf]  ;;  %v11500_v5 = vor.u32 %v15687_v56, %v11499_v61  ;;  %6795 = vmatpush.bf16.msra.mxu0 %v11244_v0 }
 0x3bd   :  { %v15751_v60 = vld [vmem:[#allocation2 + $0xc6c] sm:$0xf0] }
 0x3be   :  { %v12011_v62 = vld [vmem:[#allocation2 + $0xe50] sm:$0xf]  ;;  %v11756_v7 = vor.u32 %v15751_v60, %v11755_v59  ;;  %6808 = vmatpush.bf16.msra.mxu1 %v11500_v5 }
 0x3bf   :  { %v15815_v63 = vld [vmem:[#allocation2 + $0xe6c] sm:$0xf0] }
 0x3c0   :  { %v11211_v3 = vld [vmem:[#allocation2 + $0x810] sm:$0xf]  ;;  %v12012_v14 = vor.u32 %v15815_v63, %v12011_v62  ;;  %6821 = vmatpush.bf16.msra.mxu2 %v11756_v7 }
 0x3c1   :  { %v15615_v2 = vld [vmem:[#allocation2 + $0x82c] sm:$0xf0] }
 0x3c2   :  { %v11467_v10 = vld [vmem:[#allocation2 + $0xa10] sm:$0xf]  ;;  %v11212_v26 = vor.u32 %v15615_v2, %v11211_v3  ;;  %6834 = vmatpush.bf16.msra.mxu3 %v12012_v14 }
 0x3c3   :  { %v15679_v11 = vld [vmem:[#allocation2 + $0xa2c] sm:$0xf0] }
 0x3c4   :  { %v11723_v13 = vld [vmem:[#allocation2 + $0xc10] sm:$0xf]  ;;  %v11468_v57 = vor.u32 %v15679_v11, %v11467_v10  ;;  %6796 = vmatpush.bf16.msra.mxu0 %v11212_v26 }
 0x3c5   :  { %v15743_v16 = vld [vmem:[#allocation2 + $0xc2c] sm:$0xf0] }
 0x3c6   :  { %v11979_v20 = vld [vmem:[#allocation2 + $0xe10] sm:$0xf]  ;;  %v11724_v36 = vor.u32 %v15743_v16, %v11723_v13  ;;  %6809 = vmatpush.bf16.msra.mxu1 %v11468_v57 }
 0x3c7   :  { %v15807_v21 = vld [vmem:[#allocation2 + $0xe2c] sm:$0xf0]  ;;  %6797 = vmatmul.bf16.vlgmr.msra.gmra.mxu0 %v17002_v37 }
 0x3c8   :  { %v12459_v29 = vld [vmem:[#allocation2 + $0x11d0] sm:$0xf]  ;;  %v11980_v42 = vor.u32 %v15807_v21, %v11979_v20  ;;  %6822 = vmatpush.bf16.msra.mxu2 %v11724_v36 }
 0x3c9   :  { %v15927_v30 = vld [vmem:[#allocation2 + $0x11ec] sm:$0xf0]  ;;  %6810 = vmatmul.bf16.vlgmr.msra.gmra.mxu1 %v17006_v40 }
 0x3ca   :  { %v12715_v31 = vld [vmem:[#allocation2 + $0x13d0] sm:$0xf]  ;;  %v12460_v47 = vor.u32 %v15927_v30, %v12459_v29  ;;  %6835 = vmatpush.bf16.msra.mxu3 %v11980_v42  ;;  %v6603_v42 = vpop.f32.mrf.mxu1 }
 0x3cb   :  { %v15991_v32 = vld [vmem:[#allocation2 + $0x13ec] sm:$0xf0]  ;;  %6823 = vmatmul.bf16.vlgmr.msra.gmra.mxu2 %v17000_v34 }
 0x3cc   :  { %v12971_v33 = vld [vmem:[#allocation2 + $0x15d0] sm:$0xf]  ;;  %v12716_v43 = vor.u32 %v15991_v32, %v12715_v31  ;;  %6841 = vmatpush.bf16.msrb.mxu0 %v12460_v47  ;;  %v6590_v32 = vpop.f32.mrf.mxu0 }
 0x3cd   :  { %v16055_v35 = vld [vmem:[#allocation2 + $0x15ec] sm:$0xf0]  ;;  %6836 = vmatmul.bf16.vlgmr.msra.gmra.mxu3 %v17004_v38 }
 0x3ce   :  { %v13227_v41 = vld [vmem:[#allocation2 + $0x17d0] sm:$0xf]  ;;  %v12972_v44 = vor.u32 %v16055_v35, %v12971_v33  ;;  %6854 = vmatpush.bf16.msrb.mxu1 %v12716_v43 }
 0x3cf   :  { %v16119_v39 = vld [vmem:[#allocation2 + $0x17ec] sm:$0xf0] }
 0x3d0   :  { %v12427_v45 = vld [vmem:[#allocation2 + $0x1190] sm:$0xf]  ;;  %v13228_v49 = vor.u32 %v16119_v39, %v13227_v41  ;;  %6867 = vmatpush.bf16.msrb.mxu2 %v12972_v44  ;;  %v6591_v39 = vadd.f32 %v6590_v32, %v17146_v54 }
 0x3d1   :  { %v15919_v46 = vld [vmem:[#allocation2 + $0x11ac] sm:$0xf0] }
 0x3d2   :  { %v12683_v48 = vld [vmem:[#allocation2 + $0x1390] sm:$0xf]  ;;  %v12428_v55 = vor.u32 %v15919_v46, %v12427_v45  ;;  %6880 = vmatpush.bf16.msrb.mxu3 %v13228_v49  ;;  %v6604_v49 = vadd.f32 %v6603_v42, %v6591_v39 }
 0x3d3   :  { %v15983_v50 = vld [vmem:[#allocation2 + $0x13ac] sm:$0xf0] }
 0x3d4   :  { %v12939_v53 = vld [vmem:[#allocation2 + $0x1590] sm:$0xf]  ;;  %v12684_v4 = vor.u32 %v15983_v50, %v12683_v48  ;;  %6842 = vmatpush.bf16.msrb.mxu0 %v12428_v55 }
 0x3d5   :  { %v16047_v51 = vld [vmem:[#allocation2 + $0x15ac] sm:$0xf0] }
 0x3d6   :  { %v13195_v52 = vld [vmem:[#allocation2 + $0x1790] sm:$0xf]  ;;  %v12940_v56 = vor.u32 %v16047_v51, %v12939_v53  ;;  %6855 = vmatpush.bf16.msrb.mxu1 %v12684_v4  ;;  %v6616_v4 = vpop.f32.mrf.mxu2 }
 0x3d7   :  { %v16111_v61 = vld [vmem:[#allocation2 + $0x17ac] sm:$0xf0] }
 0x3d8   :  { %v12395_v59 = vld [vmem:[#allocation2 + $0x1150] sm:$0xf]  ;;  %v13196_v63 = vor.u32 %v16111_v61, %v13195_v52  ;;  %6868 = vmatpush.bf16.msrb.mxu2 %v12940_v56 }
 0x3d9   :  { %v15911_v60 = vld [vmem:[#allocation2 + $0x116c] sm:$0xf0] }
 0x3da   :  { %v12651_v62 = vld [vmem:[#allocation2 + $0x1350] sm:$0xf]  ;;  %v12396_v10 = vor.u32 %v15911_v60, %v12395_v59  ;;  %6881 = vmatpush.bf16.msrb.mxu3 %v13196_v63  ;;  %v6629_v63 = vpop.f32.mrf.mxu3 }
 0x3db   :  { %v15975_v0 = vld [vmem:[#allocation2 + $0x136c] sm:$0xf0] }
 0x3dc   :  { %v12907_v3 = vld [vmem:[#allocation2 + $0x1550] sm:$0xf]  ;;  %v12652_v11 = vor.u32 %v15975_v0, %v12651_v62  ;;  %6843 = vmatpush.bf16.msrb.mxu0 %v12396_v10  ;;  %v6617_v62 = vadd.f32 %v6616_v4, %v6604_v49 }
 0x3dd   :  { %v16039_v2 = vld [vmem:[#allocation2 + $0x156c] sm:$0xf0] }
 0x3de   :  { %v13163_v5 = vld [vmem:[#allocation2 + $0x1750] sm:$0xf]  ;;  %v12908_v13 = vor.u32 %v16039_v2, %v12907_v3  ;;  %6856 = vmatpush.bf16.msrb.mxu1 %v12652_v11  ;;  %v6618_v42 = vpop.f32.mrf.mxu2 }
 0x3df   :  { %v16103_v7 = vld [vmem:[#allocation2 + $0x176c] sm:$0xf0] }
 0x3e0   :  { %v12363_v14 = vld [vmem:[#allocation2 + $0x1110] sm:$0xf]  ;;  %v13164_v21 = vor.u32 %v16103_v7, %v13163_v5  ;;  %6869 = vmatpush.bf16.msrb.mxu2 %v12908_v13  ;;  %v17153_v5 = vadd.f32 %v6629_v63, %v6617_v62  ;;  %v6592_v7 = vpop.f32.mrf.mxu0 }
 0x3e1   :  { %v15903_v16 = vld [vmem:[#allocation2 + $0x112c] sm:$0xf0] }
 0x3e2   :  { %v12619_v20 = vld [vmem:[#allocation2 + $0x1310] sm:$0xf]  ;;  %v12364_v26 = vor.u32 %v15903_v16, %v12363_v14  ;;  %6882 = vmatpush.bf16.msrb.mxu3 %v13164_v21 }
 0x3e3   :  { %v15967_v24 = vld [vmem:[#allocation2 + $0x132c] sm:$0xf0] }
 0x3e4   :  { %v12875_v28 = vld [vmem:[#allocation2 + $0x1510] sm:$0xf]  ;;  %v12620_v33 = vor.u32 %v15967_v24, %v12619_v20  ;;  %6844 = vmatpush.bf16.msrb.mxu0 %v12364_v26  ;;  %v6605_v20 = vpop.f32.mrf.mxu1 }
 0x3e5   :  { %v16031_v29 = vld [vmem:[#allocation2 + $0x152c] sm:$0xf0] }
 0x3e6   :  { %v13131_v30 = vld [vmem:[#allocation2 + $0x1710] sm:$0xf]  ;;  %v12876_v35 = vor.u32 %v16031_v29, %v12875_v28  ;;  %6857 = vmatpush.bf16.msrb.mxu1 %v12620_v33 }
 0x3e7   :  { %v16095_v31 = vld [vmem:[#allocation2 + $0x172c] sm:$0xf0] }
 0x3e8   :  { %v12331_v57 = vld [vmem:[#allocation2 + $0x10d0] sm:$0xf]  ;;  %v13132_v47 = vor.u32 %v16095_v31, %v13131_v30  ;;  %6870 = vmatpush.bf16.msrb.mxu2 %v12876_v35 }
 0x3e9   :  { %v15895_v36 = vld [vmem:[#allocation2 + $0x10ec] sm:$0xf0] }
 0x3ea   :  { %v12587_v41 = vld [vmem:[#allocation2 + $0x12d0] sm:$0xf]  ;;  %v12332_v50 = vor.u32 %v15895_v36, %v12331_v57  ;;  %6883 = vmatpush.bf16.msrb.mxu3 %v13132_v47 }
 0x3eb   :  { %v15959_v43 = vld [vmem:[#allocation2 + $0x12ec] sm:$0xf0] }
 0x3ec   :  { %v12843_v44 = vld [vmem:[#allocation2 + $0x14d0] sm:$0xf]  ;;  %v12588_v53 = vor.u32 %v15959_v43, %v12587_v41  ;;  %6845 = vmatpush.bf16.msrb.mxu0 %v12332_v50 }
 0x3ed   :  { %v16023_v45 = vld [vmem:[#allocation2 + $0x14ec] sm:$0xf0] }
 0x3ee   :  { %v13099_v46 = vld [vmem:[#allocation2 + $0x16d0] sm:$0xf]  ;;  %v12844_v51 = vor.u32 %v16023_v45, %v12843_v44  ;;  %6858 = vmatpush.bf16.msrb.mxu1 %v12588_v53 }
 0x3ef   :  { %v16087_v48 = vld [vmem:[#allocation2 + $0x16ec] sm:$0xf0] }
 0x3f0   :  { %v12299_v52 = vld [vmem:[#allocation2 + $0x1090] sm:$0xf]  ;;  %v13100_v54 = vor.u32 %v16087_v48, %v13099_v46  ;;  %6871 = vmatpush.bf16.msrb.mxu2 %v12844_v51  ;;  %v6631_v46 = vpop.f32.mrf.mxu3 }
 0x3f1   :  { %v15887_v61 = vld [vmem:[#allocation2 + $0x10ac] sm:$0xf0] }
 0x3f2   :  { %v12555_v55 = vld [vmem:[#allocation2 + $0x1290] sm:$0xf]  ;;  %v12300_v2 = vor.u32 %v15887_v61, %v12299_v52  ;;  %6884 = vmatpush.bf16.msrb.mxu3 %v13100_v54  ;;  %v15411_v54 = vld [vmem:[#allocation2 + $0x1d4] sm:$0xf] }
 0x3f3   :  { %v15951_v56 = vld [vmem:[#allocation2 + $0x12ac] sm:$0xf0] }
 0x3f4   :  { %v12811_v59 = vld [vmem:[#allocation2 + $0x1490] sm:$0xf]  ;;  %v12556_v10 = vor.u32 %v15951_v56, %v12555_v55  ;;  %6846 = vmatpush.bf16.msrb.mxu0 %v12300_v2  ;;  %v10413_v56 = vld [vmem:[#allocation2 + $0x1f0] sm:$0xf0] }
 0x3f5   :  { %v16015_v60 = vld [vmem:[#allocation2 + $0x14ac] sm:$0xf0]  ;;  %v10416_v7 = vor.u32 %v15411_v54, %v10413_v56 }
 0x3f6   :  { %v13067_v0 = vld [vmem:[#allocation2 + $0x1690] sm:$0xf]  ;;  %v12812_v11 = vor.u32 %v16015_v60, %v12811_v59  ;;  %6859 = vmatpush.bf16.msrb.mxu1 %v12556_v10 }
 0x3f7   :  { %v16079_v3 = vld [vmem:[#allocation2 + $0x16ac] sm:$0xf0] }
 0x3f8   :  { %v12267_v13 = vld [vmem:[#allocation2 + $0x1050] sm:$0xf]  ;;  %v13068_v21 = vor.u32 %v16079_v3, %v13067_v0  ;;  %6872 = vmatpush.bf16.msrb.mxu2 %v12812_v11 }
 0x3f9   :  { %v15879_v14 = vld [vmem:[#allocation2 + $0x106c] sm:$0xf0] }
 0x3fa   :  { %v12523_v16 = vld [vmem:[#allocation2 + $0x1250] sm:$0xf]  ;;  %v12268_v26 = vor.u32 %v15879_v14, %v12267_v13  ;;  %6885 = vmatpush.bf16.msrb.mxu3 %v13068_v21  ;;  %v15403_v14 = vld [vmem:[#allocation2 + $0x194] sm:$0xf] }
 0x3fb   :  { %v15943_v24 = vld [vmem:[#allocation2 + $0x126c] sm:$0xf0] }
 0x3fc   :  { %v12779_v28 = vld [vmem:[#allocation2 + $0x1450] sm:$0xf]  ;;  %v12524_v35 = vor.u32 %v15943_v24, %v12523_v16  ;;  %6847 = vmatpush.bf16.msrb.mxu0 %v12268_v26  ;;  %v10381_v16 = vld [vmem:[#allocation2 + $0x1b0] sm:$0xf0] }
 0x3fd   :  { %v16007_v29 = vld [vmem:[#allocation2 + $0x146c] sm:$0xf0] }
 0x3fe   :  { %v13035_v30 = vld [vmem:[#allocation2 + $0x1650] sm:$0xf]  ;;  %v12780_v57 = vor.u32 %v16007_v29, %v12779_v28  ;;  %6860 = vmatpush.bf16.msrb.mxu1 %v12524_v35  ;;  %v15395_v35 = vld [vmem:[#allocation2 + $0x154] sm:$0xf] }
 0x3ff   :  { %v16071_v31 = vld [vmem:[#allocation2 + $0x166c] sm:$0xf0] }
 0x400   :  { %v12235_v32 = vld [vmem:[#allocation2 + $0x1010] sm:$0xf]  ;;  %v13036_v47 = vor.u32 %v16071_v31, %v13035_v30  ;;  %6873 = vmatpush.bf16.msrb.mxu2 %v12780_v57  ;;  %v10384_v31 = vor.u32 %v15403_v14, %v10381_v16  ;;  %v10349_v57 = vld [vmem:[#allocation2 + $0x170] sm:$0xf0] }
 0x401   :  { %v15871_v33 = vld [vmem:[#allocation2 + $0x102c] sm:$0xf0] }
 0x402   :  { %v12491_v36 = vld [vmem:[#allocation2 + $0x1210] sm:$0xf]  ;;  %v12236_v53 = vor.u32 %v15871_v33, %v12235_v32  ;;  %6886 = vmatpush.bf16.msrb.mxu3 %v13036_v47 }
 0x403   :  { %v15935_v41 = vld [vmem:[#allocation2 + $0x122c] sm:$0xf0] }
 0x404   :  { %v12747_v39 = vld [vmem:[#allocation2 + $0x1410] sm:$0xf]  ;;  %v12492_v55 = vor.u32 %v15935_v41, %v12491_v36  ;;  %6848 = vmatpush.bf16.msrb.mxu0 %v12236_v53  ;;  %v10317_v53 = vld [vmem:[#allocation2 + $0x130] sm:$0xf0] }
 0x405   :  { %v15999_v43 = vld [vmem:[#allocation2 + $0x142c] sm:$0xf0] }
 0x406   :  { %v13003_v44 = vld [vmem:[#allocation2 + $0x1610] sm:$0xf]  ;;  %v12748_v4 = vor.u32 %v15999_v43, %v12747_v39  ;;  %6861 = vmatpush.bf16.msrb.mxu1 %v12492_v55 }
 0x407   :  { %v16063_v45 = vld [vmem:[#allocation2 + $0x162c] sm:$0xf0]  ;;  %6849 = vmatmul.bf16.vlgmr.msrb.gmra.mxu0 %v17024_v18 }
 0x408   :  { %v13483_v48 = vld [vmem:[#allocation2 + $0x19d0] sm:$0xf]  ;;  %v13004_v59 = vor.u32 %v16063_v45, %v13003_v44  ;;  %6874 = vmatpush.bf16.msrb.mxu2 %v12748_v4  ;;  %v10352_v44 = vor.u32 %v15395_v35, %v10349_v57 }
 0x409   :  { %v16183_v49 = vld [vmem:[#allocation2 + $0x19ec] sm:$0xf0]  ;;  %6862 = vmatmul.bf16.vlgmr.msrb.gmra.mxu1 %v17028_v23 }
 0x40a   :  { %v13739_v50 = vld [vmem:[#allocation2 + $0x1bd0] sm:$0xf]  ;;  %v13484_v60 = vor.u32 %v16183_v49, %v13483_v48  ;;  %6887 = vmatpush.bf16.msrb.mxu3 %v13004_v59  ;;  %v6642_v49 = vpop.f32.mrf.mxu0 }
 0x40b   :  { %v16247_v51 = vld [vmem:[#allocation2 + $0x1bec] sm:$0xf0]  ;;  %6875 = vmatmul.bf16.vlgmr.msrb.gmra.mxu2 %v17026_v22 }
 0x40c   :  { %v13995_v52 = vld [vmem:[#allocation2 + $0x1dd0] sm:$0xf]  ;;  %v13740_v62 = vor.u32 %v16247_v51, %v13739_v50  ;;  %6893 = vmatpush.bf16.msra.mxu0 %v13484_v60  ;;  %v15387_v50 = vld [vmem:[#allocation2 + $0x114] sm:$0xf]  ;;  %v6643_v51 = vadd.f32 %v6642_v49, %v17153_v5 }
 0x40d   :  { %v16311_v61 = vld [vmem:[#allocation2 + $0x1dec] sm:$0xf0]  ;;  %6888 = vmatmul.bf16.vlgmr.msrb.gmra.mxu3 %v17030_v27  ;;  %v10320_v60 = vor.u32 %v15387_v50, %v10317_v53  ;;  %v15363_v49 = vld [vmem:[#allocation2 + $0x54] sm:$0xf] }
 0x40e   :  { %v13996_v63 = vor.u32 %v16311_v61, %v13995_v52  ;;  %v13451_v0 = vld [vmem:[#allocation2 + $0x1990] sm:$0xf]  ;;  %6906 = vmatpush.bf16.msra.mxu1 %v13740_v62  ;;  %6932 = vmatpush.bf16.msra.mxu3 %v10416_v7  ;;  %v6655_v61 = vpop.f32.mrf.mxu1  ;;  %v10285_v7 = vld [vmem:[#allocation2 + $0xf0] sm:$0xf0] }
 0x40f   :  { %v16175_v3 = vld [vmem:[#allocation2 + $0x19ac] sm:$0xf0]  ;;  %v6656_v62 = vadd.f32 %v6655_v61, %v6643_v51  ;;  %v10221_v50 = vld [vmem:[#allocation2 + $0x70] sm:$0xf0] }
 0x410   :  { %v13707_v2 = vld [vmem:[#allocation2 + $0x1b90] sm:$0xf]  ;;  %v13452_v20 = vor.u32 %v16175_v3, %v13451_v0  ;;  %6919 = vmatpush.bf16.msra.mxu2 %v13996_v63 }
 0x411   :  { %v16239_v10 = vld [vmem:[#allocation2 + $0x1bac] sm:$0xf0] }
 0x412   :  { %v13963_v11 = vld [vmem:[#allocation2 + $0x1d90] sm:$0xf]  ;;  %v13708_v21 = vor.u32 %v16239_v10, %v13707_v2  ;;  %6894 = vmatpush.bf16.msra.mxu0 %v13452_v20  ;;  %6933 = vmatpush.bf16.msra.mxu3 %v10384_v31  ;;  %v15379_v2 = vld [vmem:[#allocation2 + $0xd4] sm:$0xf]  ;;  %v6681_v31 = vpop.f32.mrf.mxu3 }
 0x413   :  { %v16303_v13 = vld [vmem:[#allocation2 + $0x1dac] sm:$0xf0]  ;;  %v10288_v20 = vor.u32 %v15379_v2, %v10285_v7  ;;  %v10669_v2 = vld [vmem:[#allocation2 + $0x3f0] sm:$0xf0] }
 0x414   :  { %v13964_v24 = vor.u32 %v16303_v13, %v13963_v11  ;;  %v13419_v28 = vld [vmem:[#allocation2 + $0x1950] sm:$0xf]  ;;  %6907 = vmatpush.bf16.msra.mxu1 %v13708_v21  ;;  %v6668_v21 = vpop.f32.mrf.mxu2  ;;  %v15539_v7 = vld [vmem:[#allocation2 + $0x5d4] sm:$0xf] }
 0x415   :  { %v16167_v29 = vld [vmem:[#allocation2 + $0x196c] sm:$0xf0] }
 0x416   :  { %v13675_v30 = vld [vmem:[#allocation2 + $0x1b50] sm:$0xf]  ;;  %v13420_v36 = vor.u32 %v16167_v29, %v13419_v28  ;;  %6920 = vmatpush.bf16.msra.mxu2 %v13964_v24  ;;  %6934 = vmatpush.bf16.msra.mxu3 %v10352_v44  ;;  %v6657_v57 = vpop.f32.mrf.mxu1 }
 0x417   :  { %v16231_v26 = vld [vmem:[#allocation2 + $0x1b6c] sm:$0xf0]  ;;  %v10893_v57 = vld [vmem:[#allocation2 + $0x5b0] sm:$0xf0] }
 0x418   :  { %v13931_v32 = vld [vmem:[#allocation2 + $0x1d50] sm:$0xf]  ;;  %v13676_v41 = vor.u32 %v16231_v26, %v13675_v30  ;;  %6895 = vmatpush.bf16.msra.mxu0 %v13420_v36  ;;  %v6669_v30 = vadd.f32 %v6668_v21, %v6656_v62  ;;  %v15371_v26 = vld [vmem:[#allocation2 + $0x94] sm:$0xf] }
 0x419   :  { %v16295_v33 = vld [vmem:[#allocation2 + $0x1d6c] sm:$0xf0]  ;;  %v15355_v62 = vld [vmem:[#allocation2 + $0x14] sm:$0xf] }
 0x41a   :  { %v13932_v39 = vor.u32 %v16295_v33, %v13931_v32  ;;  %v13387_v42 = vld [vmem:[#allocation2 + $0x1910] sm:$0xf]  ;;  %6908 = vmatpush.bf16.msra.mxu1 %v13676_v41  ;;  %6935 = vmatpush.bf16.msra.mxu3 %v10320_v60  ;;  %v10253_v32 = vld [vmem:[#allocation2 + $0xb0] sm:$0xf0]  ;;  %v6644_v33 = vpop.f32.mrf.mxu0  ;;  %v17160_v36 = vadd.f32 %v6681_v31, %v6669_v30 }
 0x41b   :  { %v16159_v47 = vld [vmem:[#allocation2 + $0x192c] sm:$0xf0]  ;;  %v10256_v44 = vor.u32 %v15371_v26, %v10253_v32  ;;  %v15667_v21 = vld [vmem:[#allocation2 + $0x9d4] sm:$0xf] }
 0x41c   :  { %v13643_v43 = vld [vmem:[#allocation2 + $0x1b10] sm:$0xf]  ;;  %v13388_v52 = vor.u32 %v16159_v47, %v13387_v42  ;;  %6921 = vmatpush.bf16.msra.mxu2 %v13932_v39  ;;  %v15467_v26 = vld [vmem:[#allocation2 + $0x394] sm:$0xf] }
 0x41d   :  { %v16223_v45 = vld [vmem:[#allocation2 + $0x1b2c] sm:$0xf0]  ;;  %v10637_v32 = vld [vmem:[#allocation2 + $0x3b0] sm:$0xf0] }
 0x41e   :  { %v13899_v46 = vld [vmem:[#allocation2 + $0x1d10] sm:$0xf]  ;;  %v13644_v55 = vor.u32 %v16223_v45, %v13643_v43  ;;  %6896 = vmatpush.bf16.msra.mxu0 %v13388_v52  ;;  %6936 = vmatpush.bf16.msra.mxu3 %v10288_v20  ;;  %v15531_v33 = vld [vmem:[#allocation2 + $0x594] sm:$0xf] }
 0x41f   :  { %v16287_v48 = vld [vmem:[#allocation2 + $0x1d2c] sm:$0xf0] }
 0x420   :  { %v13900_v4 = vor.u32 %v16287_v48, %v13899_v46  ;;  %v13355_v54 = vld [vmem:[#allocation2 + $0x18d0] sm:$0xf]  ;;  %6909 = vmatpush.bf16.msra.mxu1 %v13644_v55 }
 0x421   :  { %v16151_v56 = vld [vmem:[#allocation2 + $0x18ec] sm:$0xf0] }
 0x422   :  { %v13611_v59 = vld [vmem:[#allocation2 + $0x1ad0] sm:$0xf]  ;;  %v13356_v10 = vor.u32 %v16151_v56, %v13355_v54  ;;  %6922 = vmatpush.bf16.msra.mxu2 %v13900_v4  ;;  %6937 = vmatpush.bf16.msra.mxu3 %v10256_v44  ;;  %v10896_v44 = vor.u32 %v15531_v33, %v10893_v57  ;;  %v15635_v33 = vld [vmem:[#allocation2 + $0x8d4] sm:$0xf] }
 0x423   :  { %v16215_v63 = vld [vmem:[#allocation2 + $0x1aec] sm:$0xf0] }
 0x424   :  { %v13867_v0 = vld [vmem:[#allocation2 + $0x1cd0] sm:$0xf]  ;;  %v13612_v5 = vor.u32 %v16215_v63, %v13611_v59  ;;  %6897 = vmatpush.bf16.msra.mxu0 %v13356_v10  ;;  %v10224_v59 = vor.u32 %v15363_v49, %v10221_v50  ;;  %v10189_v63 = vld [vmem:[#allocation2 + $0x30] sm:$0xf0]  ;;  %v6683_v10 = vpop.f32.mrf.mxu3 }
 0x425   :  { %v16279_v3 = vld [vmem:[#allocation2 + $0x1cec] sm:$0xf0]  ;;  %v15523_v49 = vld [vmem:[#allocation2 + $0x554] sm:$0xf] }
 0x426   :  { %v13868_v11 = vor.u32 %v16279_v3, %v13867_v0  ;;  %v13323_v13 = vld [vmem:[#allocation2 + $0x1890] sm:$0xf]  ;;  %6910 = vmatpush.bf16.msra.mxu1 %v13612_v5  ;;  %v6670_v0 = vpop.f32.mrf.mxu2  ;;  %v15475_v3 = vld [vmem:[#allocation2 + $0x3d4] sm:$0xf]  ;;  %6938 = vmatpush.bf16.msra.mxu3 %v10224_v59 }
 0x427   :  { %v16143_v14 = vld [vmem:[#allocation2 + $0x18ac] sm:$0xf0]  ;;  %v15451_v59 = vld [vmem:[#allocation2 + $0x314] sm:$0xf] }
 0x428   :  { %v13579_v16 = vld [vmem:[#allocation2 + $0x1a90] sm:$0xf]  ;;  %v13324_v35 = vor.u32 %v16143_v14, %v13323_v13  ;;  %6923 = vmatpush.bf16.msra.mxu2 %v13868_v11  ;;  %v10925_v11 = vld [vmem:[#allocation2 + $0x5f0] sm:$0xf0] }
 0x429   :  { %v16207_v24 = vld [vmem:[#allocation2 + $0x1aac] sm:$0xf0]  ;;  %v15603_v13 = vld [vmem:[#allocation2 + $0x7d4] sm:$0xf]  ;;  %v10928_v30 = vor.u32 %v15539_v7, %v10925_v11  ;;  %v6694_v7 = vpop.f32.mrf.mxu0 }
 0x42a   :  { %v13835_v28 = vld [vmem:[#allocation2 + $0x1c90] sm:$0xf]  ;;  %v13580_v41 = vor.u32 %v16207_v24, %v13579_v16  ;;  %6898 = vmatpush.bf16.msra.mxu0 %v13324_v35  ;;  %v11181_v14 = vld [vmem:[#allocation2 + $0x7f0] sm:$0xf0]  ;;  %v6695_v11 = vadd.f32 %v6694_v7, %v17160_v36 }
 0x42b   :  { %v16271_v29 = vld [vmem:[#allocation2 + $0x1cac] sm:$0xf0]  ;;  %v11437_v24 = vld [vmem:[#allocation2 + $0x9f0] sm:$0xf0]  ;;  %v11184_v31 = vor.u32 %v15603_v13, %v11181_v14  ;;  %v6707_v14 = vpop.f32.mrf.mxu1 }
 0x42c   :  { %v13836_v39 = vor.u32 %v16271_v29, %v13835_v28  ;;  %v13291_v42 = vld [vmem:[#allocation2 + $0x1850] sm:$0xf]  ;;  %6911 = vmatpush.bf16.msra.mxu1 %v13580_v41  ;;  %v10192_v28 = vor.u32 %v15355_v62, %v10189_v63  ;;  %v10672_v29 = vor.u32 %v15475_v3, %v10669_v2  ;;  %v11440_v35 = vor.u32 %v15667_v21, %v11437_v24  ;;  %v15595_v41 = vld [vmem:[#allocation2 + $0x794] sm:$0xf] }
 0x42d   :  { %v16135_v47 = vld [vmem:[#allocation2 + $0x186c] sm:$0xf0]  ;;  %v15515_v62 = vld [vmem:[#allocation2 + $0x514] sm:$0xf] }
 0x42e   :  { %v13547_v43 = vld [vmem:[#allocation2 + $0x1a50] sm:$0xf]  ;;  %v13292_v53 = vor.u32 %v16135_v47, %v13291_v42  ;;  %6924 = vmatpush.bf16.msra.mxu2 %v13836_v39  ;;  %v11149_v39 = vld [vmem:[#allocation2 + $0x7b0] sm:$0xf0]  ;;  %6939 = vmatpush.bf16.msra.mxu3 %v10192_v28 }
 0x42f   :  { %v16199_v45 = vld [vmem:[#allocation2 + $0x1a6c] sm:$0xf0]  ;;  %v15659_v42 = vld [vmem:[#allocation2 + $0x994] sm:$0xf] }
 0x430   :  { %v13803_v46 = vld [vmem:[#allocation2 + $0x1c50] sm:$0xf]  ;;  %v13548_v61 = vor.u32 %v16199_v45, %v13547_v43  ;;  %6899 = vmatpush.bf16.msra.mxu0 %v13292_v53  ;;  %v11405_v47 = vld [vmem:[#allocation2 + $0x9b0] sm:$0xf0]  ;;  %v10640_v43 = vor.u32 %v15467_v26, %v10637_v32  ;;  %v11152_v45 = vor.u32 %v15595_v41, %v11149_v39 }
 0x431   :  { %v16263_v48 = vld [vmem:[#allocation2 + $0x1c6c] sm:$0xf0]  ;;  %v11408_v50 = vor.u32 %v15659_v42, %v11405_v47  ;;  %v10861_v53 = vld [vmem:[#allocation2 + $0x570] sm:$0xf0]  ;;  %6940 = vmatmul.bf16.vlgmr.msra.gmra.mxu3 %v16972_v9 }
 0x432   :  { %v13259_v51 = vld [vmem:[#allocation2 + $0x1810] sm:$0xf]  ;;  %v13804_v55 = vor.u32 %v16263_v48, %v13803_v46  ;;  %6912 = vmatpush.bf16.msra.mxu1 %v13548_v61  ;;  %v15459_v46 = vld [vmem:[#allocation2 + $0x354] sm:$0xf]  ;;  %6984 = vmatpush.bf16.msrb.mxu3 %v11440_v35 }
 0x433   :  { %v16127_v52 = vld [vmem:[#allocation2 + $0x182c] sm:$0xf0]  ;;  %v10605_v48 = vld [vmem:[#allocation2 + $0x370] sm:$0xf0] }
 0x434   :  { %v13515_v4 = vld [vmem:[#allocation2 + $0x1a10] sm:$0xf]  ;;  %v13260_v5 = vor.u32 %v16127_v52, %v13259_v51  ;;  %6925 = vmatpush.bf16.msra.mxu2 %v13804_v55  ;;  %v15587_v51 = vld [vmem:[#allocation2 + $0x754] sm:$0xf] }
 0x435   :  { %v16191_v54 = vld [vmem:[#allocation2 + $0x1a2c] sm:$0xf0]  ;;  %v11117_v52 = vld [vmem:[#allocation2 + $0x770] sm:$0xf0] }
 0x436   :  { %v13771_v56 = vld [vmem:[#allocation2 + $0x1c10] sm:$0xf]  ;;  %v13516_v16 = vor.u32 %v16191_v54, %v13515_v4  ;;  %6900 = vmatpush.bf16.msra.mxu0 %v13260_v5  ;;  %v15651_v61 = vld [vmem:[#allocation2 + $0x954] sm:$0xf]  ;;  %v10608_v4 = vor.u32 %v15459_v46, %v10605_v48  ;;  %v10864_v54 = vor.u32 %v15523_v49, %v10861_v53  ;;  %6985 = vmatpush.bf16.msrb.mxu3 %v11408_v50  ;;  %v6733_v50 = vpop.f32.mrf.mxu3 }
 0x437   :  { %v16255_v60 = vld [vmem:[#allocation2 + $0x1c2c] sm:$0xf0]  ;;  %v11373_v55 = vld [vmem:[#allocation2 + $0x970] sm:$0xf0] }
 0x438   :  { %v13772_v20 = vor.u32 %v16255_v60, %v13771_v56  ;;  %6913 = vmatpush.bf16.msra.mxu1 %v13516_v16  ;;  %v11120_v56 = vor.u32 %v15587_v51, %v11117_v52  ;;  %v10573_v60 = vld [vmem:[#allocation2 + $0x330] sm:$0xf0]  ;;  %v11376_v63 = vor.u32 %v15651_v61, %v11373_v55  ;;  %v6696_v52 = vpop.f32.mrf.mxu0  ;;  %v6709_v55 = vpop.f32.mrf.mxu1 }
 0x439   :  { %6901 = vmatmul.bf16.vlgmr.msra.gmra.mxu0 %v17045_v12  ;;  %v10829_v0 = vld [vmem:[#allocation2 + $0x530] sm:$0xf0]  ;;  %v10576_v13 = vor.u32 %v15451_v59, %v10573_v60 }
 0x43a   :  { %6926 = vmatpush.bf16.msra.mxu2 %v13772_v20  ;;  %6945 = vmatpush.bf16.msrb.mxu0 %v10672_v29  ;;  %v15579_v3 = vld [vmem:[#allocation2 + $0x714] sm:$0xf]  ;;  %v10832_v16 = vor.u32 %v15515_v62, %v10829_v0 }
 0x43b   :  { %6914 = vmatmul.bf16.vlgmr.msra.gmra.mxu1 %v17049_v19  ;;  %v11085_v2 = vld [vmem:[#allocation2 + $0x730] sm:$0xf0]  ;;  %6986 = vmatpush.bf16.msrb.mxu3 %v11376_v63 }
 0x43c   :  { %6958 = vmatpush.bf16.msrb.mxu1 %v10928_v30  ;;  %v15643_v10 = vld [vmem:[#allocation2 + $0x914] sm:$0xf]  ;;  %v11088_v20 = vor.u32 %v15579_v3, %v11085_v2  ;;  %v6708_v30 = vadd.f32 %v6707_v14, %v6695_v11 }
 0x43d   :  { %6927 = vmatmul.bf16.vlgmr.msra.gmra.mxu2 %v17047_v17  ;;  %v11341_v5 = vld [vmem:[#allocation2 + $0x930] sm:$0xf0] }
 0x43e   :  { %6971 = vmatpush.bf16.msrb.mxu2 %v11184_v31  ;;  %6946 = vmatpush.bf16.msrb.mxu0 %v10640_v43  ;;  %v15443_v21 = vld [vmem:[#allocation2 + $0x2d4] sm:$0xf]  ;;  %v11344_v29 = vor.u32 %v15643_v10, %v11341_v5 }
 0x43f   :  { %v10541_v24 = vld [vmem:[#allocation2 + $0x2f0] sm:$0xf0] }
 0x440   :  { %6959 = vmatpush.bf16.msrb.mxu1 %v10896_v44  ;;  %v15507_v28 = vld [vmem:[#allocation2 + $0x4d4] sm:$0xf]  ;;  %v10544_v57 = vor.u32 %v15443_v21, %v10541_v24  ;;  %6987 = vmatpush.bf16.msrb.mxu3 %v11344_v29  ;;  %v6720_v44 = vpop.f32.mrf.mxu2 }
 0x441   :  { %v10797_v31 = vld [vmem:[#allocation2 + $0x4f0] sm:$0xf0]  ;;  %v6721_v49 = vadd.f32 %v6720_v44, %v6708_v30 }
 0x442   :  { %6972 = vmatpush.bf16.msrb.mxu2 %v11152_v45  ;;  %6947 = vmatpush.bf16.msrb.mxu0 %v10608_v4  ;;  %v15571_v26 = vld [vmem:[#allocation2 + $0x6d4] sm:$0xf]  ;;  %v10800_v36 = vor.u32 %v15507_v28, %v10797_v31 }
 0x443   :  { %v11053_v32 = vld [vmem:[#allocation2 + $0x6f0] sm:$0xf0]  ;;  %v17167_v4 = vadd.f32 %v6733_v50, %v6721_v49 }
 0x444   :  { %6960 = vmatpush.bf16.msrb.mxu1 %v10864_v54  ;;  %v11309_v35 = vld [vmem:[#allocation2 + $0x8f0] sm:$0xf0]  ;;  %v11056_v41 = vor.u32 %v15571_v26, %v11053_v32 }
 0x445   :  { %v15435_v39 = vld [vmem:[#allocation2 + $0x294] sm:$0xf]  ;;  %v11312_v43 = vor.u32 %v15635_v33, %v11309_v35 }
 0x446   :  { %6973 = vmatpush.bf16.msrb.mxu2 %v11120_v56  ;;  %6948 = vmatpush.bf16.msrb.mxu0 %v10576_v13  ;;  %v10509_v42 = vld [vmem:[#allocation2 + $0x2b0] sm:$0xf0] }
 0x447   :  { %v15499_v47 = vld [vmem:[#allocation2 + $0x494] sm:$0xf]  ;;  %v10512_v61 = vor.u32 %v15435_v39, %v10509_v42  ;;  %6988 = vmatpush.bf16.msrb.mxu3 %v11312_v43 }
 0x448   :  { %6961 = vmatpush.bf16.msrb.mxu1 %v10832_v16  ;;  %v10765_v45 = vld [vmem:[#allocation2 + $0x4b0] sm:$0xf0]  ;;  %v6722_v26 = vpop.f32.mrf.mxu2 }
 0x449   :  { %v15563_v46 = vld [vmem:[#allocation2 + $0x694] sm:$0xf]  ;;  %v10768_v54 = vor.u32 %v15499_v47, %v10765_v45 }
 0x44a   :  { %6974 = vmatpush.bf16.msrb.mxu2 %v11088_v20  ;;  %v11021_v48 = vld [vmem:[#allocation2 + $0x6b0] sm:$0xf0]  ;;  %6949 = vmatpush.bf16.msrb.mxu0 %v10544_v57  ;;  %v6735_v57 = vpop.f32.mrf.mxu3 }
 0x44b   :  { %v15627_v53 = vld [vmem:[#allocation2 + $0x894] sm:$0xf]  ;;  %v11024_v56 = vor.u32 %v15563_v46, %v11021_v48 }
 0x44c   :  { %v11277_v51 = vld [vmem:[#allocation2 + $0x8b0] sm:$0xf0]  ;;  %6962 = vmatpush.bf16.msrb.mxu1 %v10800_v36 }
 0x44d   :  { %v15427_v59 = vld [vmem:[#allocation2 + $0x254] sm:$0xf]  ;;  %v11280_v63 = vor.u32 %v15627_v53, %v11277_v51 }
 0x44e   :  { %6975 = vmatpush.bf16.msrb.mxu2 %v11056_v41  ;;  %v10477_v60 = vld [vmem:[#allocation2 + $0x270] sm:$0xf0]  ;;  %6950 = vmatpush.bf16.msrb.mxu0 %v10512_v61 }
 0x44f   :  { %v15491_v62 = vld [vmem:[#allocation2 + $0x454] sm:$0xf]  ;;  %v10480_v5 = vor.u32 %v15427_v59, %v10477_v60  ;;  %6989 = vmatpush.bf16.msrb.mxu3 %v11280_v63 }
 0x450   :  { %v10733_v0 = vld [vmem:[#allocation2 + $0x470] sm:$0xf0]  ;;  %6963 = vmatpush.bf16.msrb.mxu1 %v10768_v54 }
 0x451   :  { %v15555_v3 = vld [vmem:[#allocation2 + $0x654] sm:$0xf]  ;;  %v10736_v14 = vor.u32 %v15491_v62, %v10733_v0 }
 0x452   :  { %v10989_v2 = vld [vmem:[#allocation2 + $0x670] sm:$0xf0]  ;;  %6976 = vmatpush.bf16.msrb.mxu2 %v11024_v56  ;;  %6951 = vmatpush.bf16.msrb.mxu0 %v10480_v5 }
 0x453   :  { %v15619_v7 = vld [vmem:[#allocation2 + $0x854] sm:$0xf]  ;;  %v10992_v16 = vor.u32 %v15555_v3, %v10989_v2 }
 0x454   :  { %v11245_v10 = vld [vmem:[#allocation2 + $0x870] sm:$0xf0]  ;;  %6964 = vmatpush.bf16.msrb.mxu1 %v10736_v14 }
 0x455   :  { %v15419_v11 = vld [vmem:[#allocation2 + $0x214] sm:$0xf]  ;;  %v11248_v28 = vor.u32 %v15619_v7, %v11245_v10 }
 0x456   :  { %v10445_v13 = vld [vmem:[#allocation2 + $0x230] sm:$0xf0]  ;;  %6977 = vmatpush.bf16.msrb.mxu2 %v10992_v16 }
 0x457   :  { %v15483_v20 = vld [vmem:[#allocation2 + $0x414] sm:$0xf]  ;;  %v10448_v36 = vor.u32 %v15419_v11, %v10445_v13  ;;  %6990 = vmatpush.bf16.msrb.mxu3 %v11248_v28 }
 0x458   :  { %v10701_v21 = vld [vmem:[#allocation2 + $0x430] sm:$0xf0] }
 0x459   :  { %v15547_v24 = vld [vmem:[#allocation2 + $0x614] sm:$0xf]  ;;  %v10704_v47 = vor.u32 %v15483_v20, %v10701_v21  ;;  %6952 = vmatpush.bf16.msrb.mxu0 %v10448_v36 }
 0x45a   :  { %v10957_v29 = vld [vmem:[#allocation2 + $0x630] sm:$0xf0] }
 0x45b   :  { %v15611_v30 = vld [vmem:[#allocation2 + $0x814] sm:$0xf]  ;;  %v10960_v43 = vor.u32 %v15547_v24, %v10957_v29  ;;  %6965 = vmatpush.bf16.msrb.mxu1 %v10704_v47 }
 0x45c   :  { %v11213_v31 = vld [vmem:[#allocation2 + $0x830] sm:$0xf0]  ;;  %6953 = vmatmul.bf16.vlgmr.msrb.gmra.mxu0 %v16985_v25 }
 0x45d   :  { %v15731_v32 = vld [vmem:[#allocation2 + $0xbd4] sm:$0xf]  ;;  %v11216_v46 = vor.u32 %v15611_v30, %v11213_v31  ;;  %6978 = vmatpush.bf16.msrb.mxu2 %v10960_v43  ;;  %v16668_v31 = vld [vmem:[#allocation4] sm:$0xff] }
 0x45e   :  { %v11693_v33 = vld [vmem:[#allocation2 + $0xbf0] sm:$0xf0]  ;;  %6966 = vmatmul.bf16.vlgmr.msrb.gmra.mxu1 %v16970_v8  ;;  %v1145_v26 = vperm.slane %v16668_v31, 4 }
 0x45f   :  { %v15795_v35 = vld [vmem:[#allocation2 + $0xdd4] sm:$0xf]  ;;  %v11696_v48 = vor.u32 %v15731_v32, %v11693_v33  ;;  %6991 = vmatpush.bf16.msrb.mxu3 %v11216_v46 }
 0x460   :  { %v11949_v41 = vld [vmem:[#allocation2 + $0xdf0] sm:$0xf0]  ;;  %6979 = vmatmul.bf16.vlgmr.msrb.gmra.mxu2 %v16977_v15 }
 0x461   :  { %v15859_v39 = vld [vmem:[#allocation2 + $0xfd4] sm:$0xf]  ;;  %v11952_v49 = vor.u32 %v15795_v35, %v11949_v41  ;;  %6997 = vmatpush.bf16.msra.mxu0 %v11696_v48 }
 0x462   :  { %v12205_v42 = vld [vmem:[#allocation2 + $0xff0] sm:$0xf0]  ;;  %6992 = vmatmul.bf16.vlgmr.msrb.gmra.mxu3 %v17002_v37 }
 0x463   :  { %v15923_v44 = vld [vmem:[#allocation2 + $0x11d4] sm:$0xf]  ;;  %v12208_v50 = vor.u32 %v15859_v39, %v12205_v42  ;;  %7010 = vmatpush.bf16.msra.mxu1 %v11952_v49  ;;  %v6746_v42 = vpop.f32.mrf.mxu0  ;;  %v6759_v49 = vpop.f32.mrf.mxu1 }
 0x464   :  { %v12461_v45 = vld [vmem:[#allocation2 + $0x11f0] sm:$0xf0]  ;;  %v6747_v48 = vadd.f32 %v6746_v42, %v1145_v26 }
 0x465   :  { %v15723_v53 = vld [vmem:[#allocation2 + $0xb94] sm:$0xf]  ;;  %v12464_v61 = vor.u32 %v15923_v44, %v12461_v45  ;;  %7023 = vmatpush.bf16.msra.mxu2 %v12208_v50 }
 0x466   :  { %v11661_v51 = vld [vmem:[#allocation2 + $0xbb0] sm:$0xf0] }
 0x467   :  { %v15787_v52 = vld [vmem:[#allocation2 + $0xd94] sm:$0xf]  ;;  %v11664_v62 = vor.u32 %v15723_v53, %v11661_v51  ;;  %7036 = vmatpush.bf16.msra.mxu3 %v12464_v61 }
 0x468   :  { %v11917_v55 = vld [vmem:[#allocation2 + $0xdb0] sm:$0xf0] }
 0x469   :  { %v15851_v54 = vld [vmem:[#allocation2 + $0xf94] sm:$0xf]  ;;  %v11920_v63 = vor.u32 %v15787_v52, %v11917_v55  ;;  %6998 = vmatpush.bf16.msra.mxu0 %v11664_v62 }
 0x46a   :  { %v12173_v56 = vld [vmem:[#allocation2 + $0xfb0] sm:$0xf0] }
 0x46b   :  { %v15915_v59 = vld [vmem:[#allocation2 + $0x1194] sm:$0xf]  ;;  %v12176_v0 = vor.u32 %v15851_v54, %v12173_v56  ;;  %7011 = vmatpush.bf16.msra.mxu1 %v11920_v63  ;;  %v6760_v54 = vadd.f32 %v6759_v49, %v6747_v48 }
 0x46c   :  { %v12429_v60 = vld [vmem:[#allocation2 + $0x11b0] sm:$0xf0] }
 0x46d   :  { %v15715_v3 = vld [vmem:[#allocation2 + $0xb54] sm:$0xf]  ;;  %v12432_v10 = vor.u32 %v15915_v59, %v12429_v60  ;;  %7024 = vmatpush.bf16.msra.mxu2 %v12176_v0 }
 0x46e   :  { %v11629_v2 = vld [vmem:[#allocation2 + $0xb70] sm:$0xf0] }
 0x46f   :  { %v15779_v7 = vld [vmem:[#allocation2 + $0xd54] sm:$0xf]  ;;  %v11632_v20 = vor.u32 %v15715_v3, %v11629_v2  ;;  %7037 = vmatpush.bf16.msra.mxu3 %v12432_v10  ;;  %v6772_v3 = vpop.f32.mrf.mxu2 }
 0x470   :  { %v11885_v5 = vld [vmem:[#allocation2 + $0xd70] sm:$0xf0] }
 0x471   :  { %v15843_v11 = vld [vmem:[#allocation2 + $0xf54] sm:$0xf]  ;;  %v11888_v24 = vor.u32 %v15779_v7, %v11885_v5  ;;  %6999 = vmatpush.bf16.msra.mxu0 %v11632_v20 }
 0x472   :  { %v12141_v13 = vld [vmem:[#allocation2 + $0xf70] sm:$0xf0] }
 0x473   :  { %v15907_v14 = vld [vmem:[#allocation2 + $0x1154] sm:$0xf]  ;;  %v12144_v28 = vor.u32 %v15843_v11, %v12141_v13  ;;  %7012 = vmatpush.bf16.msra.mxu1 %v11888_v24  ;;  %v6773_v11 = vadd.f32 %v6772_v3, %v6760_v54  ;;  %v6785_v13 = vpop.f32.mrf.mxu3  ;;  %v6748_v24 = vpop.f32.mrf.mxu0 }
 0x474   :  { %v12397_v16 = vld [vmem:[#allocation2 + $0x1170] sm:$0xf0] }
 0x475   :  { %v15707_v21 = vld [vmem:[#allocation2 + $0xb14] sm:$0xf]  ;;  %v12400_v32 = vor.u32 %v15907_v14, %v12397_v16  ;;  %7025 = vmatpush.bf16.msra.mxu2 %v12144_v28 }
 0x476   :  { %v11597_v29 = vld [vmem:[#allocation2 + $0xb30] sm:$0xf0] }
 0x477   :  { %v15771_v30 = vld [vmem:[#allocation2 + $0xd14] sm:$0xf]  ;;  %v11600_v39 = vor.u32 %v15707_v21, %v11597_v29  ;;  %7038 = vmatpush.bf16.msra.mxu3 %v12400_v32  ;;  %v17173_v21 = vadd.f32 %v6785_v13, %v6773_v11  ;;  %v6761_v32 = vpop.f32.mrf.mxu1 }
 0x478   :  { %v11853_v33 = vld [vmem:[#allocation2 + $0xd30] sm:$0xf0] }
 0x479   :  { %v15835_v35 = vld [vmem:[#allocation2 + $0xf14] sm:$0xf]  ;;  %v11856_v47 = vor.u32 %v15771_v30, %v11853_v33  ;;  %7000 = vmatpush.bf16.msra.mxu0 %v11600_v39 }
 0x47a   :  { %v12109_v57 = vld [vmem:[#allocation2 + $0xf30] sm:$0xf0] }
 0x47b   :  { %v15899_v36 = vld [vmem:[#allocation2 + $0x1114] sm:$0xf]  ;;  %v12112_v43 = vor.u32 %v15835_v35, %v12109_v57  ;;  %7013 = vmatpush.bf16.msra.mxu1 %v11856_v47 }
 0x47c   :  { %v12365_v41 = vld [vmem:[#allocation2 + $0x1130] sm:$0xf0] }
 0x47d   :  { %v15699_v44 = vld [vmem:[#allocation2 + $0xad4] sm:$0xf]  ;;  %v12368_v50 = vor.u32 %v15899_v36, %v12365_v41  ;;  %7026 = vmatpush.bf16.msra.mxu2 %v12112_v43 }
 0x47e   :  { %v11565_v45 = vld [vmem:[#allocation2 + $0xaf0] sm:$0xf0] }
 0x47f   :  { %v15763_v46 = vld [vmem:[#allocation2 + $0xcd4] sm:$0xf]  ;;  %v11568_v56 = vor.u32 %v15699_v44, %v11565_v45  ;;  %7039 = vmatpush.bf16.msra.mxu3 %v12368_v50  ;;  %v6774_v50 = vpop.f32.mrf.mxu2 }
 0x480   :  { %v11821_v53 = vld [vmem:[#allocation2 + $0xcf0] sm:$0xf0] }
 0x481   :  { %v15827_v51 = vld [vmem:[#allocation2 + $0xed4] sm:$0xf]  ;;  %v11824_v59 = vor.u32 %v15763_v46, %v11821_v53  ;;  %7001 = vmatpush.bf16.msra.mxu0 %v11568_v56 }
 0x482   :  { %v12077_v52 = vld [vmem:[#allocation2 + $0xef0] sm:$0xf0] }
 0x483   :  { %v15891_v61 = vld [vmem:[#allocation2 + $0x10d4] sm:$0xf]  ;;  %v12080_v60 = vor.u32 %v15827_v51, %v12077_v52  ;;  %7014 = vmatpush.bf16.msra.mxu1 %v11824_v59 }
 0x484   :  { %v12333_v55 = vld [vmem:[#allocation2 + $0x10f0] sm:$0xf0] }
 0x485   :  { %v15691_v62 = vld [vmem:[#allocation2 + $0xa94] sm:$0xf]  ;;  %v12336_v2 = vor.u32 %v15891_v61, %v12333_v55  ;;  %7027 = vmatpush.bf16.msra.mxu2 %v12080_v60  ;;  %v6787_v55 = vpop.f32.mrf.mxu3 }
 0x486   :  { %v11533_v63 = vld [vmem:[#allocation2 + $0xab0] sm:$0xf0] }
 0x487   :  { %v15755_v0 = vld [vmem:[#allocation2 + $0xc94] sm:$0xf]  ;;  %v11536_v20 = vor.u32 %v15691_v62, %v11533_v63  ;;  %7040 = vmatpush.bf16.msra.mxu3 %v12336_v2 }
 0x488   :  { %v11789_v7 = vld [vmem:[#allocation2 + $0xcb0] sm:$0xf0] }
 0x489   :  { %v15819_v10 = vld [vmem:[#allocation2 + $0xe94] sm:$0xf]  ;;  %v11792_v28 = vor.u32 %v15755_v0, %v11789_v7  ;;  %7002 = vmatpush.bf16.msra.mxu0 %v11536_v20 }
 0x48a   :  { %v12045_v5 = vld [vmem:[#allocation2 + $0xeb0] sm:$0xf0] }
 0x48b   :  { %v15883_v14 = vld [vmem:[#allocation2 + $0x1094] sm:$0xf]  ;;  %v12048_v29 = vor.u32 %v15819_v10, %v12045_v5  ;;  %7015 = vmatpush.bf16.msra.mxu1 %v11792_v28 }
 0x48c   :  { %v12301_v16 = vld [vmem:[#allocation2 + $0x10b0] sm:$0xf0] }
 0x48d   :  { %v15683_v30 = vld [vmem:[#allocation2 + $0xa54] sm:$0xf]  ;;  %v12304_v33 = vor.u32 %v15883_v14, %v12301_v16  ;;  %7028 = vmatpush.bf16.msra.mxu2 %v12048_v29 }
 0x48e   :  { %v11501_v31 = vld [vmem:[#allocation2 + $0xa70] sm:$0xf0] }
 0x48f   :  { %v15747_v26 = vld [vmem:[#allocation2 + $0xc54] sm:$0xf]  ;;  %v11504_v42 = vor.u32 %v15683_v30, %v11501_v31  ;;  %7041 = vmatpush.bf16.msra.mxu3 %v12304_v33 }
 0x490   :  { %v11757_v35 = vld [vmem:[#allocation2 + $0xc70] sm:$0xf0] }
 0x491   :  { %v15811_v57 = vld [vmem:[#allocation2 + $0xe54] sm:$0xf]  ;;  %v11760_v44 = vor.u32 %v15747_v26, %v11757_v35  ;;  %7003 = vmatpush.bf16.msra.mxu0 %v11504_v42 }
 0x492   :  { %v12013_v36 = vld [vmem:[#allocation2 + $0xe70] sm:$0xf0] }
 0x493   :  { %v15875_v41 = vld [vmem:[#allocation2 + $0x1054] sm:$0xf]  ;;  %v12016_v45 = vor.u32 %v15811_v57, %v12013_v36  ;;  %7016 = vmatpush.bf16.msra.mxu1 %v11760_v44 }
 0x494   :  { %v12269_v39 = vld [vmem:[#allocation2 + $0x1070] sm:$0xf0] }
 0x495   :  { %v15675_v47 = vld [vmem:[#allocation2 + $0xa14] sm:$0xf]  ;;  %v12272_v53 = vor.u32 %v15875_v41, %v12269_v39  ;;  %7029 = vmatpush.bf16.msra.mxu2 %v12016_v45 }
 0x496   :  { %v11469_v43 = vld [vmem:[#allocation2 + $0xa30] sm:$0xf0] }
 0x497   :  { %v15739_v46 = vld [vmem:[#allocation2 + $0xc14] sm:$0xf]  ;;  %v11472_v60 = vor.u32 %v15675_v47, %v11469_v43  ;;  %7042 = vmatpush.bf16.msra.mxu3 %v12272_v53 }
 0x498   :  { %v11725_v48 = vld [vmem:[#allocation2 + $0xc30] sm:$0xf0] }
 0x499   :  { %v15803_v49 = vld [vmem:[#allocation2 + $0xe14] sm:$0xf]  ;;  %v11728_v3 = vor.u32 %v15739_v46, %v11725_v48  ;;  %7004 = vmatpush.bf16.msra.mxu0 %v11472_v60 }
 0x49a   :  { %v11981_v51 = vld [vmem:[#allocation2 + $0xe30] sm:$0xf0] }
 0x49b   :  { %v15867_v52 = vld [vmem:[#allocation2 + $0x1014] sm:$0xf]  ;;  %v11984_v2 = vor.u32 %v15803_v49, %v11981_v51  ;;  %7017 = vmatpush.bf16.msra.mxu1 %v11728_v3 }
 0x49c   :  { %v12237_v61 = vld [vmem:[#allocation2 + $0x1030] sm:$0xf0]  ;;  %7005 = vmatmul.bf16.vlgmr.msra.gmra.mxu0 %v17006_v40 }
 0x49d   :  { %v15987_v54 = vld [vmem:[#allocation2 + $0x13d4] sm:$0xf]  ;;  %v12240_v5 = vor.u32 %v15867_v52, %v12237_v61  ;;  %7030 = vmatpush.bf16.msra.mxu2 %v11984_v2 }
 0x49e   :  { %v12717_v56 = vld [vmem:[#allocation2 + $0x13f0] sm:$0xf0]  ;;  %7018 = vmatmul.bf16.vlgmr.msra.gmra.mxu1 %v17000_v34 }
 0x49f   :  { %v16051_v59 = vld [vmem:[#allocation2 + $0x15d4] sm:$0xf]  ;;  %v12720_v11 = vor.u32 %v15987_v54, %v12717_v56  ;;  %7043 = vmatpush.bf16.msra.mxu3 %v12240_v5 }
 0x4a0   :  { %v12973_v62 = vld [vmem:[#allocation2 + $0x15f0] sm:$0xf0]  ;;  %7031 = vmatmul.bf16.vlgmr.msra.gmra.mxu2 %v17004_v38 }
 0x4a1   :  { %v16115_v63 = vld [vmem:[#allocation2 + $0x17d4] sm:$0xf]  ;;  %v12976_v13 = vor.u32 %v16051_v59, %v12973_v62  ;;  %7049 = vmatpush.bf16.msrb.mxu0 %v12720_v11  ;;  %v6811_v11 = vpop.f32.mrf.mxu1 }
 0x4a2   :  { %v13229_v0 = vld [vmem:[#allocation2 + $0x17f0] sm:$0xf0]  ;;  %7044 = vmatmul.bf16.vlgmr.msra.gmra.mxu3 %v17024_v18 }
 0x4a3   :  { %v16179_v7 = vld [vmem:[#allocation2 + $0x19d4] sm:$0xf]  ;;  %v13232_v14 = vor.u32 %v16115_v63, %v13229_v0  ;;  %7062 = vmatpush.bf16.msrb.mxu1 %v12976_v13  ;;  %v6798_v63 = vpop.f32.mrf.mxu0 }
 0x4a4   :  { %v13485_v10 = vld [vmem:[#allocation2 + $0x19f0] sm:$0xf0]  ;;  %v6799_v5 = vadd.f32 %v6798_v63, %v17173_v21 }
 0x4a5   :  { %v15979_v16 = vld [vmem:[#allocation2 + $0x1394] sm:$0xf]  ;;  %v13488_v28 = vor.u32 %v16179_v7, %v13485_v10  ;;  %7075 = vmatpush.bf16.msrb.mxu2 %v13232_v14 }
 0x4a6   :  { %v12685_v20 = vld [vmem:[#allocation2 + $0x13b0] sm:$0xf0] }
 0x4a7   :  { %v16043_v24 = vld [vmem:[#allocation2 + $0x1594] sm:$0xf]  ;;  %v12688_v33 = vor.u32 %v15979_v16, %v12685_v20  ;;  %7088 = vmatpush.bf16.msrb.mxu3 %v13488_v28 }
 0x4a8   :  { %v12941_v29 = vld [vmem:[#allocation2 + $0x15b0] sm:$0xf0] }
 0x4a9   :  { %v16107_v30 = vld [vmem:[#allocation2 + $0x1794] sm:$0xf]  ;;  %v12944_v35 = vor.u32 %v16043_v24, %v12941_v29  ;;  %7050 = vmatpush.bf16.msrb.mxu0 %v12688_v33  ;;  %v6812_v29 = vadd.f32 %v6811_v11, %v6799_v5 }
 0x4aa   :  { %v13197_v31 = vld [vmem:[#allocation2 + $0x17b0] sm:$0xf0] }
 0x4ab   :  { %v16171_v26 = vld [vmem:[#allocation2 + $0x1994] sm:$0xf]  ;;  %v13200_v57 = vor.u32 %v16107_v30, %v13197_v31  ;;  %7063 = vmatpush.bf16.msrb.mxu1 %v12944_v35 }
 0x4ac   :  { %v13453_v32 = vld [vmem:[#allocation2 + $0x19b0] sm:$0xf0] }
 0x4ad   :  { %v15971_v36 = vld [vmem:[#allocation2 + $0x1354] sm:$0xf]  ;;  %v13456_v42 = vor.u32 %v16171_v26, %v13453_v32  ;;  %7076 = vmatpush.bf16.msrb.mxu2 %v13200_v57  ;;  %v6824_v57 = vpop.f32.mrf.mxu2 }
 0x4ae   :  { %v12653_v41 = vld [vmem:[#allocation2 + $0x1370] sm:$0xf0] }
 0x4af   :  { %v16035_v39 = vld [vmem:[#allocation2 + $0x1554] sm:$0xf]  ;;  %v12656_v48 = vor.u32 %v15971_v36, %v12653_v41  ;;  %7089 = vmatpush.bf16.msrb.mxu3 %v13456_v42  ;;  %v6825_v42 = vadd.f32 %v6824_v57, %v6812_v29 }
 0x4b0   :  { %v12909_v47 = vld [vmem:[#allocation2 + $0x1570] sm:$0xf0] }
 0x4b1   :  { %v16099_v43 = vld [vmem:[#allocation2 + $0x1754] sm:$0xf]  ;;  %v12912_v49 = vor.u32 %v16035_v39, %v12909_v47  ;;  %7051 = vmatpush.bf16.msrb.mxu0 %v12656_v48  ;;  %v6837_v47 = vpop.f32.mrf.mxu3  ;;  %v6800_v48 = vpop.f32.mrf.mxu0 }
 0x4b2   :  { %v13165_v44 = vld [vmem:[#allocation2 + $0x1770] sm:$0xf0] }
 0x4b3   :  { %v16163_v45 = vld [vmem:[#allocation2 + $0x1954] sm:$0xf]  ;;  %v13168_v50 = vor.u32 %v16099_v43, %v13165_v44  ;;  %7064 = vmatpush.bf16.msrb.mxu1 %v12912_v49 }
 0x4b4   :  { %v13421_v46 = vld [vmem:[#allocation2 + $0x1970] sm:$0xf0] }
 0x4b5   :  { %v15963_v53 = vld [vmem:[#allocation2 + $0x1314] sm:$0xf]  ;;  %v13424_v61 = vor.u32 %v16163_v45, %v13421_v46  ;;  %7077 = vmatpush.bf16.msrb.mxu2 %v13168_v50  ;;  %v17180_v46 = vadd.f32 %v6837_v47, %v6825_v42 }
 0x4b6   :  { %v12621_v51 = vld [vmem:[#allocation2 + $0x1330] sm:$0xf0] }
 0x4b7   :  { %v16027_v52 = vld [vmem:[#allocation2 + $0x1514] sm:$0xf]  ;;  %v12624_v62 = vor.u32 %v15963_v53, %v12621_v51  ;;  %7090 = vmatpush.bf16.msrb.mxu3 %v13424_v61  ;;  %v6813_v61 = vpop.f32.mrf.mxu1 }
 0x4b8   :  { %v12877_v55 = vld [vmem:[#allocation2 + $0x1530] sm:$0xf0]  ;;  %v15472_v61 = vld [vmem:[#allocation2 + $0x3b4] sm:$0xf0] }
 0x4b9   :  { %v16091_v54 = vld [vmem:[#allocation2 + $0x1714] sm:$0xf]  ;;  %v12880_v0 = vor.u32 %v16027_v52, %v12877_v55  ;;  %7052 = vmatpush.bf16.msrb.mxu0 %v12624_v62 }
 0x4ba   :  { %v13133_v56 = vld [vmem:[#allocation2 + $0x1730] sm:$0xf0] }
 0x4bb   :  { %v16155_v59 = vld [vmem:[#allocation2 + $0x1914] sm:$0xf]  ;;  %v13136_v3 = vor.u32 %v16091_v54, %v13133_v56  ;;  %7065 = vmatpush.bf16.msrb.mxu1 %v12880_v0 }
 0x4bc   :  { %v13389_v60 = vld [vmem:[#allocation2 + $0x1930] sm:$0xf0] }
 0x4bd   :  { %v15955_v2 = vld [vmem:[#allocation2 + $0x12d4] sm:$0xf]  ;;  %v13392_v13 = vor.u32 %v16155_v59, %v13389_v60  ;;  %7078 = vmatpush.bf16.msrb.mxu2 %v13136_v3 }
 0x4be   :  { %v12589_v7 = vld [vmem:[#allocation2 + $0x12f0] sm:$0xf0] }
 0x4bf   :  { %v16019_v10 = vld [vmem:[#allocation2 + $0x14d4] sm:$0xf]  ;;  %v12592_v30 = vor.u32 %v15955_v2, %v12589_v7  ;;  %7091 = vmatpush.bf16.msrb.mxu3 %v13392_v13  ;;  %v6826_v13 = vpop.f32.mrf.mxu2 }
 0x4c0   :  { %v12845_v14 = vld [vmem:[#allocation2 + $0x14f0] sm:$0xf0] }
 0x4c1   :  { %v16083_v16 = vld [vmem:[#allocation2 + $0x16d4] sm:$0xf]  ;;  %v12848_v31 = vor.u32 %v16019_v10, %v12845_v14  ;;  %7053 = vmatpush.bf16.msrb.mxu0 %v12592_v30 }
 0x4c2   :  { %v13101_v20 = vld [vmem:[#allocation2 + $0x16f0] sm:$0xf0] }
 0x4c3   :  { %v16147_v24 = vld [vmem:[#allocation2 + $0x18d4] sm:$0xf]  ;;  %v13104_v26 = vor.u32 %v16083_v16, %v13101_v20  ;;  %7066 = vmatpush.bf16.msrb.mxu1 %v12848_v31 }
 0x4c4   :  { %v13357_v28 = vld [vmem:[#allocation2 + $0x18f0] sm:$0xf0] }
 0x4c5   :  { %v15947_v32 = vld [vmem:[#allocation2 + $0x1294] sm:$0xf]  ;;  %v13360_v21 = vor.u32 %v16147_v24, %v13357_v28  ;;  %7079 = vmatpush.bf16.msrb.mxu2 %v13104_v26  ;;  %v6839_v28 = vpop.f32.mrf.mxu3 }
 0x4c6   :  { %v12557_v33 = vld [vmem:[#allocation2 + $0x12b0] sm:$0xf0] }
 0x4c7   :  { %v16011_v35 = vld [vmem:[#allocation2 + $0x1494] sm:$0xf]  ;;  %v12560_v45 = vor.u32 %v15947_v32, %v12557_v33  ;;  %7092 = vmatpush.bf16.msrb.mxu3 %v13360_v21  ;;  %v10419_v33 = vld [vmem:[#allocation2 + $0x1d8] sm:$0xf] }
 0x4c8   :  { %v12813_v36 = vld [vmem:[#allocation2 + $0x14b0] sm:$0xf0] }
 0x4c9   :  { %v16075_v41 = vld [vmem:[#allocation2 + $0x1694] sm:$0xf]  ;;  %v12816_v49 = vor.u32 %v16011_v35, %v12813_v36  ;;  %7054 = vmatpush.bf16.msrb.mxu0 %v12560_v45  ;;  %v15416_v35 = vld [vmem:[#allocation2 + $0x1f4] sm:$0xf0] }
 0x4ca   :  { %v13069_v39 = vld [vmem:[#allocation2 + $0x16b0] sm:$0xf0]  ;;  %v10675_v36 = vld [vmem:[#allocation2 + $0x3d8] sm:$0xf] }
 0x4cb   :  { %v16139_v43 = vld [vmem:[#allocation2 + $0x1894] sm:$0xf]  ;;  %v13072_v50 = vor.u32 %v16075_v41, %v13069_v39  ;;  %7067 = vmatpush.bf16.msrb.mxu1 %v12816_v49  ;;  %v15480_v41 = vld [vmem:[#allocation2 + $0x3f4] sm:$0xf0] }
 0x4cc   :  { %v13325_v44 = vld [vmem:[#allocation2 + $0x18b0] sm:$0xf0]  ;;  %v10676_v49 = vor.u32 %v15480_v41, %v10675_v36 }
 0x4cd   :  { %v15939_v53 = vld [vmem:[#allocation2 + $0x1254] sm:$0xf]  ;;  %v13328_v55 = vor.u32 %v16139_v43, %v13325_v44  ;;  %7080 = vmatpush.bf16.msrb.mxu2 %v13072_v50  ;;  %v10420_v43 = vor.u32 %v15416_v35, %v10419_v33 }
 0x4ce   :  { %v12525_v51 = vld [vmem:[#allocation2 + $0x1270] sm:$0xf0] }
 0x4cf   :  { %v16003_v52 = vld [vmem:[#allocation2 + $0x1454] sm:$0xf]  ;;  %v12528_v63 = vor.u32 %v15939_v53, %v12525_v51  ;;  %7093 = vmatpush.bf16.msrb.mxu3 %v13328_v55  ;;  %v10387_v53 = vld [vmem:[#allocation2 + $0x198] sm:$0xf] }
 0x4d0   :  { %v12781_v54 = vld [vmem:[#allocation2 + $0x1470] sm:$0xf0]  ;;  %v15408_v51 = vld [vmem:[#allocation2 + $0x1b4] sm:$0xf0] }
 0x4d1   :  { %v16067_v56 = vld [vmem:[#allocation2 + $0x1654] sm:$0xf]  ;;  %v12784_v2 = vor.u32 %v16003_v52, %v12781_v54  ;;  %7055 = vmatpush.bf16.msrb.mxu0 %v12528_v63  ;;  %v10643_v52 = vld [vmem:[#allocation2 + $0x398] sm:$0xf] }
 0x4d2   :  { %v13037_v59 = vld [vmem:[#allocation2 + $0x1670] sm:$0xf0]  ;;  %v10644_v63 = vor.u32 %v15472_v61, %v10643_v52 }
 0x4d3   :  { %v16131_v60 = vld [vmem:[#allocation2 + $0x1854] sm:$0xf]  ;;  %v13040_v7 = vor.u32 %v16067_v56, %v13037_v59  ;;  %7068 = vmatpush.bf16.msrb.mxu1 %v12784_v2  ;;  %v10388_v56 = vor.u32 %v15408_v51, %v10387_v53  ;;  %v15400_v2 = vld [vmem:[#allocation2 + $0x174] sm:$0xf0] }
 0x4d4   :  { %v13293_v62 = vld [vmem:[#allocation2 + $0x1870] sm:$0xf0] }
 0x4d5   :  { %v15931_v0 = vld [vmem:[#allocation2 + $0x1214] sm:$0xf]  ;;  %v13296_v14 = vor.u32 %v16131_v60, %v13293_v62  ;;  %7081 = vmatpush.bf16.msrb.mxu2 %v13040_v7  ;;  %v10611_v7 = vld [vmem:[#allocation2 + $0x358] sm:$0xf] }
 0x4d6   :  { %v12493_v3 = vld [vmem:[#allocation2 + $0x1230] sm:$0xf0] }
 0x4d7   :  { %v15995_v10 = vld [vmem:[#allocation2 + $0x1414] sm:$0xf]  ;;  %v12496_v26 = vor.u32 %v15931_v0, %v12493_v3  ;;  %7094 = vmatpush.bf16.msrb.mxu3 %v13296_v14  ;;  %v10355_v3 = vld [vmem:[#allocation2 + $0x158] sm:$0xf] }
 0x4d8   :  { %v12749_v5 = vld [vmem:[#allocation2 + $0x1430] sm:$0xf0]  ;;  %v10356_v13 = vor.u32 %v15400_v2, %v10355_v3  ;;  %v10515_v3 = vld [vmem:[#allocation2 + $0x298] sm:$0xf] }
 0x4d9   :  { %v16059_v11 = vld [vmem:[#allocation2 + $0x1614] sm:$0xf]  ;;  %v12752_v57 = vor.u32 %v15995_v10, %v12749_v5  ;;  %7056 = vmatpush.bf16.msrb.mxu0 %v12496_v26  ;;  %v15464_v10 = vld [vmem:[#allocation2 + $0x374] sm:$0xf0] }
 0x4da   :  { %v13005_v16 = vld [vmem:[#allocation2 + $0x1630] sm:$0xf0]  ;;  %v10579_v26 = vld [vmem:[#allocation2 + $0x318] sm:$0xf] }
 0x4db   :  { %v16123_v20 = vld [vmem:[#allocation2 + $0x1814] sm:$0xf]  ;;  %v13008_v21 = vor.u32 %v16059_v11, %v13005_v16  ;;  %7069 = vmatpush.bf16.msrb.mxu1 %v12752_v57  ;;  %v6863_v57 = vpop.f32.mrf.mxu1  ;;  %v15440_v2 = vld [vmem:[#allocation2 + $0x2b4] sm:$0xf0] }
 0x4dc   :  { %v13261_v24 = vld [vmem:[#allocation2 + $0x1830] sm:$0xf0]  ;;  %7057 = vmatmul.bf16.vlgmr.msrb.gmra.mxu0 %v17028_v23 }
 0x4dd   :  { %v16243_v29 = vld [vmem:[#allocation2 + $0x1bd4] sm:$0xf]  ;;  %v13264_v39 = vor.u32 %v16123_v20, %v13261_v24  ;;  %7082 = vmatpush.bf16.msrb.mxu2 %v13008_v21  ;;  %v10612_v24 = vor.u32 %v15464_v10, %v10611_v7 }
 0x4de   :  { %v13741_v30 = vld [vmem:[#allocation2 + $0x1bf0] sm:$0xf0]  ;;  %7070 = vmatmul.bf16.vlgmr.msrb.gmra.mxu1 %v17026_v22 }
 0x4df   :  { %v16307_v31 = vld [vmem:[#allocation2 + $0x1dd4] sm:$0xf]  ;;  %v13744_v42 = vor.u32 %v16243_v29, %v13741_v30  ;;  %7095 = vmatpush.bf16.msrb.mxu3 %v13264_v39  ;;  %v10323_v29 = vld [vmem:[#allocation2 + $0x118] sm:$0xf] }
 0x4e0   :  { %v13997_v32 = vld [vmem:[#allocation2 + $0x1df0] sm:$0xf0]  ;;  %7083 = vmatmul.bf16.vlgmr.msrb.gmra.mxu2 %v17030_v27  ;;  %v15392_v30 = vld [vmem:[#allocation2 + $0x134] sm:$0xf0] }
 0x4e1   :  { %v14000_v47 = vor.u32 %v16307_v31, %v13997_v32  ;;  %v16235_v44 = vld [vmem:[#allocation2 + $0x1b94] sm:$0xf]  ;;  %7101 = vmatpush.bf16.msra.mxu0 %v13744_v42  ;;  %7127 = vmatpush.bf16.msra.mxu2 %v10420_v43  ;;  %v6850_v31 = vpop.f32.mrf.mxu0  ;;  %v15456_v32 = vld [vmem:[#allocation2 + $0x334] sm:$0xf0]  ;;  %v10324_v36 = vor.u32 %v15392_v30, %v10323_v29 }
 0x4e2   :  { %v13709_v45 = vld [vmem:[#allocation2 + $0x1bb0] sm:$0xf0]  ;;  %7096 = vmatmul.bf16.vlgmr.msrb.gmra.mxu3 %v17045_v12  ;;  %v6851_v33 = vadd.f32 %v6850_v31, %v17180_v46  ;;  %v10227_v30 = vld [vmem:[#allocation2 + $0x58] sm:$0xf] }
 0x4e3   :  { %v16299_v48 = vld [vmem:[#allocation2 + $0x1d94] sm:$0xf]  ;;  %v13712_v55 = vor.u32 %v16235_v44, %v13709_v45  ;;  %7114 = vmatpush.bf16.msra.mxu1 %v14000_v47  ;;  %7140 = vmatpush.bf16.msra.mxu3 %v10676_v49  ;;  %v10580_v47 = vor.u32 %v15456_v32, %v10579_v26  ;;  %v10291_v45 = vld [vmem:[#allocation2 + $0xd8] sm:$0xf] }
 0x4e4   :  { %v13965_v50 = vld [vmem:[#allocation2 + $0x1db0] sm:$0xf0]  ;;  %v6864_v43 = vadd.f32 %v6863_v57, %v6851_v33  ;;  %v10547_v49 = vld [vmem:[#allocation2 + $0x2d8] sm:$0xf] }
 0x4e5   :  { %v13968_v54 = vor.u32 %v16299_v48, %v13965_v50  ;;  %v16227_v59 = vld [vmem:[#allocation2 + $0x1b54] sm:$0xf]  ;;  %7102 = vmatpush.bf16.msra.mxu0 %v13712_v55  ;;  %7128 = vmatpush.bf16.msra.mxu2 %v10388_v56  ;;  %v15384_v48 = vld [vmem:[#allocation2 + $0xf4] sm:$0xf0]  ;;  %v6876_v56 = vpop.f32.mrf.mxu2 }
 0x4e6   :  { %v13677_v60 = vld [vmem:[#allocation2 + $0x1b70] sm:$0xf0]  ;;  %v15448_v50 = vld [vmem:[#allocation2 + $0x2f4] sm:$0xf0]  ;;  %v10292_v51 = vor.u32 %v15384_v48, %v10291_v45 }
 0x4e7   :  { %v16291_v62 = vld [vmem:[#allocation2 + $0x1d54] sm:$0xf]  ;;  %v13680_v5 = vor.u32 %v16227_v59, %v13677_v60  ;;  %7115 = vmatpush.bf16.msra.mxu1 %v13968_v54  ;;  %7141 = vmatpush.bf16.msra.mxu3 %v10644_v63  ;;  %v10548_v54 = vor.u32 %v15448_v50, %v10547_v49  ;;  %v10259_v60 = vld [vmem:[#allocation2 + $0x98] sm:$0xf]  ;;  %v6877_v63 = vadd.f32 %v6876_v56, %v6864_v43 }
 0x4e8   :  { %v13933_v0 = vld [vmem:[#allocation2 + $0x1d70] sm:$0xf0]  ;;  %v15368_v31 = vld [vmem:[#allocation2 + $0x74] sm:$0xf0] }
 0x4e9   :  { %v13936_v11 = vor.u32 %v16291_v62, %v13933_v0  ;;  %v16219_v14 = vld [vmem:[#allocation2 + $0x1b14] sm:$0xf]  ;;  %7103 = vmatpush.bf16.msra.mxu0 %v13680_v5  ;;  %7129 = vmatpush.bf16.msra.mxu2 %v10356_v13  ;;  %v15376_v62 = vld [vmem:[#allocation2 + $0xb4] sm:$0xf0]  ;;  %v6889_v0 = vpop.f32.mrf.mxu3  ;;  %v6852_v7 = vpop.f32.mrf.mxu0 }
 0x4ea   :  { %v13645_v16 = vld [vmem:[#allocation2 + $0x1b30] sm:$0xf0]  ;;  %v6865_v5 = vpop.f32.mrf.mxu1  ;;  %v10483_v26 = vld [vmem:[#allocation2 + $0x258] sm:$0xf] }
 0x4eb   :  { %v16283_v20 = vld [vmem:[#allocation2 + $0x1d14] sm:$0xf]  ;;  %v13648_v35 = vor.u32 %v16219_v14, %v13645_v16  ;;  %7116 = vmatpush.bf16.msra.mxu1 %v13936_v11  ;;  %7142 = vmatpush.bf16.msra.mxu3 %v10612_v24  ;;  %v17187_v11 = vadd.f32 %v6889_v0, %v6877_v63  ;;  %v10260_v14 = vor.u32 %v15376_v62, %v10259_v60  ;;  %v15432_v32 = vld [vmem:[#allocation2 + $0x274] sm:$0xf0] }
 0x4ec   :  { %v13901_v28 = vld [vmem:[#allocation2 + $0x1d30] sm:$0xf0]  ;;  %v15360_v43 = vld [vmem:[#allocation2 + $0x34] sm:$0xf0] }
 0x4ed   :  { %v13904_v21 = vor.u32 %v16283_v20, %v13901_v28  ;;  %v16211_v41 = vld [vmem:[#allocation2 + $0x1ad4] sm:$0xf]  ;;  %7104 = vmatpush.bf16.msra.mxu0 %v13648_v35  ;;  %7130 = vmatpush.bf16.msra.mxu2 %v10324_v36  ;;  %v10516_v28 = vor.u32 %v15440_v2, %v10515_v3  ;;  %v10228_v36 = vor.u32 %v15368_v31, %v10227_v30  ;;  %v15424_v45 = vld [vmem:[#allocation2 + $0x234] sm:$0xf0]  ;;  %v6878_v48 = vpop.f32.mrf.mxu2 }
 0x4ee   :  { %v13613_v39 = vld [vmem:[#allocation2 + $0x1af0] sm:$0xf0]  ;;  %v10931_v49 = vld [vmem:[#allocation2 + $0x5d8] sm:$0xf] }
 0x4ef   :  { %v16275_v42 = vld [vmem:[#allocation2 + $0x1cd4] sm:$0xf]  ;;  %v13616_v53 = vor.u32 %v16211_v41, %v13613_v39  ;;  %7117 = vmatpush.bf16.msra.mxu1 %v13904_v21  ;;  %7143 = vmatpush.bf16.msra.mxu3 %v10580_v47  ;;  %v10484_v47 = vor.u32 %v15432_v32, %v10483_v26  ;;  %v15544_v50 = vld [vmem:[#allocation2 + $0x5f4] sm:$0xf0] }
 0x4f0   :  { %v13869_v44 = vld [vmem:[#allocation2 + $0x1cf0] sm:$0xf0]  ;;  %v15736_v60 = vld [vmem:[#allocation2 + $0xbf4] sm:$0xf0]  ;;  %v10932_v63 = vor.u32 %v15544_v50, %v10931_v49 }
 0x4f1   :  { %v13872_v46 = vor.u32 %v16275_v42, %v13869_v44  ;;  %v16203_v52 = vld [vmem:[#allocation2 + $0x1a94] sm:$0xf]  ;;  %7105 = vmatpush.bf16.msra.mxu0 %v13616_v53  ;;  %7131 = vmatpush.bf16.msra.mxu2 %v10292_v51  ;;  %v10195_v42 = vld [vmem:[#allocation2 + $0x18] sm:$0xf] }
 0x4f2   :  { %v13581_v61 = vld [vmem:[#allocation2 + $0x1ab0] sm:$0xf0]  ;;  %v10451_v44 = vld [vmem:[#allocation2 + $0x218] sm:$0xf]  ;;  %v10196_v56 = vor.u32 %v15360_v43, %v10195_v42 }
 0x4f3   :  { %v16267_v55 = vld [vmem:[#allocation2 + $0x1c94] sm:$0xf]  ;;  %v13584_v10 = vor.u32 %v16203_v52, %v13581_v61  ;;  %7118 = vmatpush.bf16.msra.mxu1 %v13872_v46  ;;  %7144 = vmatpush.bf16.msra.mxu3 %v10548_v54  ;;  %v11187_v53 = vld [vmem:[#allocation2 + $0x7d8] sm:$0xf]  ;;  %v6891_v46 = vpop.f32.mrf.mxu3  ;;  %v10452_v62 = vor.u32 %v15424_v45, %v10451_v44 }
 0x4f4   :  { %v13837_v59 = vld [vmem:[#allocation2 + $0x1cb0] sm:$0xf0]  ;;  %v15608_v52 = vld [vmem:[#allocation2 + $0x7f4] sm:$0xf0]  ;;  %v6902_v46 = vpop.f32.mrf.mxu0 }
 0x4f5   :  { %v13840_v13 = vor.u32 %v16267_v55, %v13837_v59  ;;  %v16195_v16 = vld [vmem:[#allocation2 + $0x1a54] sm:$0xf]  ;;  %7106 = vmatpush.bf16.msra.mxu0 %v13584_v10  ;;  %7132 = vmatpush.bf16.msra.mxu2 %v10260_v14  ;;  %v11443_v61 = vld [vmem:[#allocation2 + $0x9d8] sm:$0xf]  ;;  %v11188_v0 = vor.u32 %v15608_v52, %v11187_v53 }
 0x4f6   :  { %v13549_v20 = vld [vmem:[#allocation2 + $0x1a70] sm:$0xf0]  ;;  %v15672_v55 = vld [vmem:[#allocation2 + $0x9f4] sm:$0xf0] }
 0x4f7   :  { %v16259_v24 = vld [vmem:[#allocation2 + $0x1c54] sm:$0xf]  ;;  %v13552_v33 = vor.u32 %v16195_v16, %v13549_v20  ;;  %7119 = vmatpush.bf16.msra.mxu1 %v13840_v13  ;;  %7145 = vmatpush.bf16.msra.mxu3 %v10516_v28  ;;  %v11699_v59 = vld [vmem:[#allocation2 + $0xbd8] sm:$0xf]  ;;  %v11444_v3 = vor.u32 %v15672_v55, %v11443_v61  ;;  %v6903_v61 = vadd.f32 %v6902_v46, %v17187_v11 }
 0x4f8   :  { %v13805_v29 = vld [vmem:[#allocation2 + $0x1c70] sm:$0xf0]  ;;  %v10899_v2 = vld [vmem:[#allocation2 + $0x598] sm:$0xf]  ;;  %v11700_v5 = vor.u32 %v15736_v60, %v11699_v59 }
 0x4f9   :  { %v16187_v35 = vld [vmem:[#allocation2 + $0x1a14] sm:$0xf]  ;;  %v13808_v21 = vor.u32 %v16259_v24, %v13805_v29  ;;  %7107 = vmatpush.bf16.msra.mxu0 %v13552_v33  ;;  %7133 = vmatpush.bf16.msra.mxu2 %v10228_v36  ;;  %v15536_v7 = vld [vmem:[#allocation2 + $0x5b4] sm:$0xf0] }
 0x4fa   :  { %v13517_v57 = vld [vmem:[#allocation2 + $0x1a30] sm:$0xf0]  ;;  %v11155_v10 = vld [vmem:[#allocation2 + $0x798] sm:$0xf]  ;;  %v10900_v28 = vor.u32 %v15536_v7, %v10899_v2 }
 0x4fb   :  { %v16251_v41 = vld [vmem:[#allocation2 + $0x1c14] sm:$0xf]  ;;  %v13520_v51 = vor.u32 %v16187_v35, %v13517_v57  ;;  %7120 = vmatpush.bf16.msra.mxu1 %v13808_v21  ;;  %7146 = vmatpush.bf16.msra.mxu3 %v10484_v47  ;;  %v15600_v13 = vld [vmem:[#allocation2 + $0x7b4] sm:$0xf0] }
 0x4fc   :  { %v13773_v39 = vld [vmem:[#allocation2 + $0x1c30] sm:$0xf0]  ;;  %v11411_v14 = vld [vmem:[#allocation2 + $0x998] sm:$0xf]  ;;  %v11156_v29 = vor.u32 %v15600_v13, %v11155_v10 }
 0x4fd   :  { %v13776_v54 = vor.u32 %v16251_v41, %v13773_v39  ;;  %7108 = vmatpush.bf16.msra.mxu0 %v13520_v51  ;;  %v15664_v16 = vld [vmem:[#allocation2 + $0x9b4] sm:$0xf0]  ;;  %7134 = vmatpush.bf16.msra.mxu2 %v10196_v56 }
 0x4fe   :  { %v11667_v20 = vld [vmem:[#allocation2 + $0xb98] sm:$0xf]  ;;  %v11412_v30 = vor.u32 %v15664_v16, %v11411_v14 }
 0x4ff   :  { %7121 = vmatpush.bf16.msra.mxu1 %v13776_v54  ;;  %v15728_v24 = vld [vmem:[#allocation2 + $0xbb4] sm:$0xf0]  ;;  %7147 = vmatpush.bf16.msra.mxu3 %v10452_v62  ;;  %v6915_v54 = vpop.f32.mrf.mxu1 }
 0x500   :  { %v10867_v31 = vld [vmem:[#allocation2 + $0x558] sm:$0xf]  ;;  %7109 = vmatmul.bf16.vlgmr.msra.gmra.mxu0 %v17049_v19  ;;  %v11668_v33 = vor.u32 %v15728_v24, %v11667_v20  ;;  %7135 = vmatmul.bf16.vlgmr.msra.gmra.mxu2 %v16972_v9 }
 0x501   :  { %7153 = vmatpush.bf16.msrb.mxu0 %v10932_v63  ;;  %7179 = vmatpush.bf16.msrb.mxu2 %v11444_v3  ;;  %v15528_v26 = vld [vmem:[#allocation2 + $0x574] sm:$0xf0]  ;;  %v6916_v3 = vadd.f32 %v6915_v54, %v6903_v61 }
 0x502   :  { %v11123_v32 = vld [vmem:[#allocation2 + $0x758] sm:$0xf]  ;;  %7122 = vmatmul.bf16.vlgmr.msra.gmra.mxu1 %v17047_v17  ;;  %v10868_v39 = vor.u32 %v15528_v26, %v10867_v31  ;;  %7148 = vmatmul.bf16.vlgmr.msra.gmra.mxu3 %v16985_v25 }
 0x503   :  { %7166 = vmatpush.bf16.msrb.mxu1 %v11188_v0  ;;  %7192 = vmatpush.bf16.msrb.mxu3 %v11700_v5  ;;  %v15592_v35 = vld [vmem:[#allocation2 + $0x774] sm:$0xf0] }
 0x504   :  { %v11379_v57 = vld [vmem:[#allocation2 + $0x958] sm:$0xf]  ;;  %v11124_v42 = vor.u32 %v15592_v35, %v11123_v32 }
 0x505   :  { %v15656_v21 = vld [vmem:[#allocation2 + $0x974] sm:$0xf0]  ;;  %7154 = vmatpush.bf16.msrb.mxu0 %v10900_v28  ;;  %7180 = vmatpush.bf16.msrb.mxu2 %v11412_v30  ;;  %v6928_v30 = vpop.f32.mrf.mxu2 }
 0x506   :  { %v11635_v36 = vld [vmem:[#allocation2 + $0xb58] sm:$0xf]  ;;  %v11380_v47 = vor.u32 %v15656_v21, %v11379_v57  ;;  %v17196_v21 = vpop.f32.mrf.mxu3 }
 0x507   :  { %v15720_v41 = vld [vmem:[#allocation2 + $0xb74] sm:$0xf0]  ;;  %7167 = vmatpush.bf16.msrb.mxu1 %v11156_v29  ;;  %7193 = vmatpush.bf16.msrb.mxu3 %v11668_v33  ;;  %v17194_v33 = vadd.f32 %v6928_v30, %v6916_v3 }
 0x508   :  { %v10835_v43 = vld [vmem:[#allocation2 + $0x518] sm:$0xf]  ;;  %v11636_v48 = vor.u32 %v15720_v41, %v11635_v36  ;;  %v6904_v36 = vpop.f32.mrf.mxu0 }
 0x509   :  { %v15520_v44 = vld [vmem:[#allocation2 + $0x534] sm:$0xf0]  ;;  %7155 = vmatpush.bf16.msrb.mxu0 %v10868_v39  ;;  %7181 = vmatpush.bf16.msrb.mxu2 %v11380_v47  ;;  %v6917_v39 = vpop.f32.mrf.mxu1 }
 0x50a   :  { %v11091_v45 = vld [vmem:[#allocation2 + $0x718] sm:$0xf]  ;;  %v10836_v55 = vor.u32 %v15520_v44, %v10835_v43 }
 0x50b   :  { %v15584_v49 = vld [vmem:[#allocation2 + $0x734] sm:$0xf0]  ;;  %7168 = vmatpush.bf16.msrb.mxu1 %v11124_v42  ;;  %7194 = vmatpush.bf16.msrb.mxu3 %v11636_v48 }
 0x50c   :  { %v11347_v50 = vld [vmem:[#allocation2 + $0x918] sm:$0xf]  ;;  %v11092_v56 = vor.u32 %v15584_v49, %v11091_v45 }
 0x50d   :  { %v15648_v53 = vld [vmem:[#allocation2 + $0x934] sm:$0xf0]  ;;  %7156 = vmatpush.bf16.msrb.mxu0 %v10836_v55 }
 0x50e   :  { %v11603_v51 = vld [vmem:[#allocation2 + $0xb18] sm:$0xf]  ;;  %v11348_v59 = vor.u32 %v15648_v53, %v11347_v50 }
 0x50f   :  { %v15712_v52 = vld [vmem:[#allocation2 + $0xb34] sm:$0xf0]  ;;  %7169 = vmatpush.bf16.msrb.mxu1 %v11092_v56 }
 0x510   :  { %v10803_v60 = vld [vmem:[#allocation2 + $0x4d8] sm:$0xf]  ;;  %v11604_v0 = vor.u32 %v15712_v52, %v11603_v51  ;;  %7182 = vmatpush.bf16.msrb.mxu2 %v11348_v59 }
 0x511   :  { %v15512_v62 = vld [vmem:[#allocation2 + $0x4f4] sm:$0xf0] }
 0x512   :  { %v11059_v63 = vld [vmem:[#allocation2 + $0x6d8] sm:$0xf]  ;;  %v10804_v14 = vor.u32 %v15512_v62, %v10803_v60  ;;  %7195 = vmatpush.bf16.msrb.mxu3 %v11604_v0 }
 0x513   :  { %v15576_v2 = vld [vmem:[#allocation2 + $0x6f4] sm:$0xf0] }
 0x514   :  { %v11315_v7 = vld [vmem:[#allocation2 + $0x8d8] sm:$0xf]  ;;  %v11060_v11 = vor.u32 %v15576_v2, %v11059_v63  ;;  %7157 = vmatpush.bf16.msrb.mxu0 %v10804_v14  ;;  %v6943_v14 = vpop.f32.mrf.mxu3 }
 0x515   :  { %v15640_v10 = vld [vmem:[#allocation2 + $0x8f4] sm:$0xf0] }
 0x516   :  { %v11571_v5 = vld [vmem:[#allocation2 + $0xad8] sm:$0xf]  ;;  %v11316_v16 = vor.u32 %v15640_v10, %v11315_v7  ;;  %7170 = vmatpush.bf16.msrb.mxu1 %v11060_v11  ;;  %v6930_v7 = vpop.f32.mrf.mxu2 }
 0x517   :  { %v15704_v13 = vld [vmem:[#allocation2 + $0xaf4] sm:$0xf0] }
 0x518   :  { %v10771_v20 = vld [vmem:[#allocation2 + $0x498] sm:$0xf]  ;;  %v11572_v29 = vor.u32 %v15704_v13, %v11571_v5  ;;  %7183 = vmatpush.bf16.msrb.mxu2 %v11316_v16 }
 0x519   :  { %v15504_v24 = vld [vmem:[#allocation2 + $0x4b4] sm:$0xf0] }
 0x51a   :  { %v11027_v28 = vld [vmem:[#allocation2 + $0x698] sm:$0xf]  ;;  %v10772_v41 = vor.u32 %v15504_v24, %v10771_v20  ;;  %7196 = vmatpush.bf16.msrb.mxu3 %v11572_v29 }
 0x51b   :  { %v15568_v31 = vld [vmem:[#allocation2 + $0x6b4] sm:$0xf0] }
 0x51c   :  { %v11283_v26 = vld [vmem:[#allocation2 + $0x898] sm:$0xf]  ;;  %v11028_v42 = vor.u32 %v15568_v31, %v11027_v28  ;;  %7158 = vmatpush.bf16.msrb.mxu0 %v10772_v41 }
 0x51d   :  { %v15632_v32 = vld [vmem:[#allocation2 + $0x8b4] sm:$0xf0] }
 0x51e   :  { %v11539_v35 = vld [vmem:[#allocation2 + $0xa98] sm:$0xf]  ;;  %v11284_v47 = vor.u32 %v15632_v32, %v11283_v26  ;;  %7171 = vmatpush.bf16.msrb.mxu1 %v11028_v42 }
 0x51f   :  { %v15696_v57 = vld [vmem:[#allocation2 + $0xab4] sm:$0xf0] }
 0x520   :  { %v10739_v43 = vld [vmem:[#allocation2 + $0x458] sm:$0xf]  ;;  %v11540_v48 = vor.u32 %v15696_v57, %v11539_v35  ;;  %7184 = vmatpush.bf16.msrb.mxu2 %v11284_v47 }
 0x521   :  { %v15496_v44 = vld [vmem:[#allocation2 + $0x474] sm:$0xf0] }
 0x522   :  { %v10995_v45 = vld [vmem:[#allocation2 + $0x658] sm:$0xf]  ;;  %v10740_v52 = vor.u32 %v15496_v44, %v10739_v43  ;;  %7197 = vmatpush.bf16.msrb.mxu3 %v11540_v48 }
 0x523   :  { %v15560_v49 = vld [vmem:[#allocation2 + $0x674] sm:$0xf0] }
 0x524   :  { %v11251_v50 = vld [vmem:[#allocation2 + $0x858] sm:$0xf]  ;;  %v10996_v54 = vor.u32 %v15560_v49, %v10995_v45  ;;  %7159 = vmatpush.bf16.msrb.mxu0 %v10740_v52 }
 0x525   :  { %v15624_v53 = vld [vmem:[#allocation2 + $0x874] sm:$0xf0] }
 0x526   :  { %v11507_v46 = vld [vmem:[#allocation2 + $0xa58] sm:$0xf]  ;;  %v11252_v56 = vor.u32 %v15624_v53, %v11251_v50  ;;  %7172 = vmatpush.bf16.msrb.mxu1 %v10996_v54 }
 0x527   :  { %v15688_v51 = vld [vmem:[#allocation2 + $0xa74] sm:$0xf0] }
 0x528   :  { %v10707_v61 = vld [vmem:[#allocation2 + $0x418] sm:$0xf]  ;;  %v11508_v63 = vor.u32 %v15688_v51, %v11507_v46  ;;  %7185 = vmatpush.bf16.msrb.mxu2 %v11252_v56 }
 0x529   :  { %v15488_v55 = vld [vmem:[#allocation2 + $0x434] sm:$0xf0] }
 0x52a   :  { %v10963_v59 = vld [vmem:[#allocation2 + $0x618] sm:$0xf]  ;;  %v10708_v11 = vor.u32 %v15488_v55, %v10707_v61  ;;  %7198 = vmatpush.bf16.msrb.mxu3 %v11508_v63  ;;  %v17198_v61 = vld [vmem:[#allocation4] sm:$0xff] }
 0x52b   :  { %v15552_v60 = vld [vmem:[#allocation2 + $0x634] sm:$0xf0]  ;;  %v1146_v55 = vperm.slane %v17198_v61, 5 }
 0x52c   :  { %v11219_v62 = vld [vmem:[#allocation2 + $0x818] sm:$0xf]  ;;  %v10964_v28 = vor.u32 %v15552_v60, %v10963_v59  ;;  %7160 = vmatpush.bf16.msrb.mxu0 %v10708_v11 }
 0x52d   :  { %v15616_v0 = vld [vmem:[#allocation2 + $0x834] sm:$0xf0]  ;;  %v6942_v7 = vadd.f32 %v17196_v21, %v1146_v55 }
 0x52e   :  { %v11475_v3 = vld [vmem:[#allocation2 + $0xa18] sm:$0xf]  ;;  %v11220_v29 = vor.u32 %v15616_v0, %v11219_v62  ;;  %7173 = vmatpush.bf16.msrb.mxu1 %v10964_v28 }
 0x52f   :  { %v15680_v2 = vld [vmem:[#allocation2 + $0xa34] sm:$0xf0]  ;;  %7161 = vmatmul.bf16.vlgmr.msrb.gmra.mxu0 %v16970_v8 }
 0x530   :  { %v11955_v10 = vld [vmem:[#allocation2 + $0xdd8] sm:$0xf]  ;;  %v11476_v26 = vor.u32 %v15680_v2, %v11475_v3  ;;  %7186 = vmatpush.bf16.msrb.mxu2 %v11220_v29 }
 0x531   :  { %v15800_v5 = vld [vmem:[#allocation2 + $0xdf4] sm:$0xf0]  ;;  %7174 = vmatmul.bf16.vlgmr.msrb.gmra.mxu1 %v16977_v15 }
 0x532   :  { %v12211_v13 = vld [vmem:[#allocation2 + $0xfd8] sm:$0xf]  ;;  %v11956_v32 = vor.u32 %v15800_v5, %v11955_v10  ;;  %7199 = vmatpush.bf16.msrb.mxu3 %v11476_v26 }
 0x533   :  { %v15864_v16 = vld [vmem:[#allocation2 + $0xff4] sm:$0xf0]  ;;  %7187 = vmatmul.bf16.vlgmr.msrb.gmra.mxu2 %v17002_v37 }
 0x534   :  { %v12467_v20 = vld [vmem:[#allocation2 + $0x11d8] sm:$0xf]  ;;  %v12212_v35 = vor.u32 %v15864_v16, %v12211_v13  ;;  %7205 = vmatpush.bf16.msra.mxu0 %v11956_v32 }
 0x535   :  { %v15928_v24 = vld [vmem:[#allocation2 + $0x11f4] sm:$0xf0]  ;;  %7200 = vmatmul.bf16.vlgmr.msrb.gmra.mxu3 %v17006_v40 }
 0x536   :  { %v12723_v30 = vld [vmem:[#allocation2 + $0x13d8] sm:$0xf]  ;;  %v12468_v57 = vor.u32 %v15928_v24, %v12467_v20  ;;  %7218 = vmatpush.bf16.msra.mxu1 %v12212_v35 }
 0x537   :  { %v15992_v31 = vld [vmem:[#allocation2 + $0x13f4] sm:$0xf0] }
 0x538   :  { %v11923_v36 = vld [vmem:[#allocation2 + $0xd98] sm:$0xf]  ;;  %v12724_v42 = vor.u32 %v15992_v31, %v12723_v30  ;;  %7231 = vmatpush.bf16.msra.mxu2 %v12468_v57  ;;  %v6954_v30 = vpop.f32.mrf.mxu0 }
 0x539   :  { %v15792_v41 = vld [vmem:[#allocation2 + $0xdb4] sm:$0xf0]  ;;  %v6955_v57 = vadd.f32 %v6954_v30, %v6942_v7 }
 0x53a   :  { %v12179_v39 = vld [vmem:[#allocation2 + $0xf98] sm:$0xf]  ;;  %v11924_v49 = vor.u32 %v15792_v41, %v11923_v36  ;;  %7244 = vmatpush.bf16.msra.mxu3 %v12724_v42  ;;  %v6967_v36 = vpop.f32.mrf.mxu1 }
 0x53b   :  { %v15856_v47 = vld [vmem:[#allocation2 + $0xfb4] sm:$0xf0] }
 0x53c   :  { %v12435_v43 = vld [vmem:[#allocation2 + $0x1198] sm:$0xf]  ;;  %v12180_v53 = vor.u32 %v15856_v47, %v12179_v39  ;;  %7206 = vmatpush.bf16.msra.mxu0 %v11924_v49 }
 0x53d   :  { %v15920_v44 = vld [vmem:[#allocation2 + $0x11b4] sm:$0xf0] }
 0x53e   :  { %v12691_v45 = vld [vmem:[#allocation2 + $0x1398] sm:$0xf]  ;;  %v12436_v46 = vor.u32 %v15920_v44, %v12435_v43  ;;  %7219 = vmatpush.bf16.msra.mxu1 %v12180_v53 }
 0x53f   :  { %v15984_v48 = vld [vmem:[#allocation2 + $0x13b4] sm:$0xf0] }
 0x540   :  { %v11891_v50 = vld [vmem:[#allocation2 + $0xd58] sm:$0xf]  ;;  %v12692_v54 = vor.u32 %v15984_v48, %v12691_v45  ;;  %7232 = vmatpush.bf16.msra.mxu2 %v12436_v46  ;;  %v6968_v45 = vadd.f32 %v6967_v36, %v6955_v57  ;;  %v6956_v7 = vpop.f32.mrf.mxu0 }
 0x541   :  { %v15784_v51 = vld [vmem:[#allocation2 + $0xd74] sm:$0xf0] }
 0x542   :  { %v12147_v52 = vld [vmem:[#allocation2 + $0xf58] sm:$0xf]  ;;  %v11892_v0 = vor.u32 %v15784_v51, %v11891_v50  ;;  %7245 = vmatpush.bf16.msra.mxu3 %v12692_v54 }
 0x543   :  { %v15848_v56 = vld [vmem:[#allocation2 + $0xf74] sm:$0xf0] }
 0x544   :  { %v12403_v59 = vld [vmem:[#allocation2 + $0x1158] sm:$0xf]  ;;  %v12148_v3 = vor.u32 %v15848_v56, %v12147_v52  ;;  %7207 = vmatpush.bf16.msra.mxu0 %v11892_v0  ;;  %v6980_v52 = vpop.f32.mrf.mxu2 }
 0x545   :  { %v15912_v60 = vld [vmem:[#allocation2 + $0x1174] sm:$0xf0] }
 0x546   :  { %v12659_v62 = vld [vmem:[#allocation2 + $0x1358] sm:$0xf]  ;;  %v12404_v2 = vor.u32 %v15912_v60, %v12403_v59  ;;  %7220 = vmatpush.bf16.msra.mxu1 %v12148_v3  ;;  %v6981_v60 = vadd.f32 %v6980_v52, %v6968_v45 }
 0x547   :  { %v15976_v63 = vld [vmem:[#allocation2 + $0x1374] sm:$0xf0] }
 0x548   :  { %v11859_v10 = vld [vmem:[#allocation2 + $0xd18] sm:$0xf]  ;;  %v12660_v14 = vor.u32 %v15976_v63, %v12659_v62  ;;  %7233 = vmatpush.bf16.msra.mxu2 %v12404_v2  ;;  %v6993_v62 = vpop.f32.mrf.mxu3 }
 0x549   :  { %v15776_v5 = vld [vmem:[#allocation2 + $0xd34] sm:$0xf0]  ;;  %v17206_v2 = vadd.f32 %v6993_v62, %v6981_v60 }
 0x54a   :  { %v12115_v13 = vld [vmem:[#allocation2 + $0xf18] sm:$0xf]  ;;  %v11860_v29 = vor.u32 %v15776_v5, %v11859_v10  ;;  %7246 = vmatpush.bf16.msra.mxu3 %v12660_v14 }
 0x54b   :  { %v15840_v11 = vld [vmem:[#allocation2 + $0xf34] sm:$0xf0] }
 0x54c   :  { %v12371_v16 = vld [vmem:[#allocation2 + $0x1118] sm:$0xf]  ;;  %v12116_v31 = vor.u32 %v15840_v11, %v12115_v13  ;;  %7208 = vmatpush.bf16.msra.mxu0 %v11860_v29 }
 0x54d   :  { %v15904_v20 = vld [vmem:[#allocation2 + $0x1134] sm:$0xf0] }
 0x54e   :  { %v12627_v24 = vld [vmem:[#allocation2 + $0x1318] sm:$0xf]  ;;  %v12372_v26 = vor.u32 %v15904_v20, %v12371_v16  ;;  %7221 = vmatpush.bf16.msra.mxu1 %v12116_v31  ;;  %v6969_v16 = vpop.f32.mrf.mxu1 }
 0x54f   :  { %v15968_v28 = vld [vmem:[#allocation2 + $0x1334] sm:$0xf0] }
 0x550   :  { %v11827_v32 = vld [vmem:[#allocation2 + $0xcd8] sm:$0xf]  ;;  %v12628_v41 = vor.u32 %v15968_v28, %v12627_v24  ;;  %7234 = vmatpush.bf16.msra.mxu2 %v12372_v26 }
 0x551   :  { %v15768_v35 = vld [vmem:[#allocation2 + $0xcf4] sm:$0xf0] }
 0x552   :  { %v12083_v21 = vld [vmem:[#allocation2 + $0xed8] sm:$0xf]  ;;  %v11828_v48 = vor.u32 %v15768_v35, %v11827_v32  ;;  %7247 = vmatpush.bf16.msra.mxu3 %v12628_v41 }
 0x553   :  { %v15832_v39 = vld [vmem:[#allocation2 + $0xef4] sm:$0xf0] }
 0x554   :  { %v12339_v42 = vld [vmem:[#allocation2 + $0x10d8] sm:$0xf]  ;;  %v12084_v49 = vor.u32 %v15832_v39, %v12083_v21  ;;  %7209 = vmatpush.bf16.msra.mxu0 %v11828_v48  ;;  %v6995_v48 = vpop.f32.mrf.mxu3 }
 0x555   :  { %v15896_v47 = vld [vmem:[#allocation2 + $0x10f4] sm:$0xf0] }
 0x556   :  { %v12595_v43 = vld [vmem:[#allocation2 + $0x12d8] sm:$0xf]  ;;  %v12340_v50 = vor.u32 %v15896_v47, %v12339_v42  ;;  %7222 = vmatpush.bf16.msra.mxu1 %v12084_v49  ;;  %v6982_v42 = vpop.f32.mrf.mxu2 }
 0x557   :  { %v15960_v44 = vld [vmem:[#allocation2 + $0x12f4] sm:$0xf0] }
 0x558   :  { %v11795_v53 = vld [vmem:[#allocation2 + $0xc98] sm:$0xf]  ;;  %v12596_v55 = vor.u32 %v15960_v44, %v12595_v43  ;;  %7235 = vmatpush.bf16.msra.mxu2 %v12340_v50 }
 0x559   :  { %v15760_v46 = vld [vmem:[#allocation2 + $0xcb4] sm:$0xf0] }
 0x55a   :  { %v12051_v51 = vld [vmem:[#allocation2 + $0xe98] sm:$0xf]  ;;  %v11796_v3 = vor.u32 %v15760_v46, %v11795_v53  ;;  %7248 = vmatpush.bf16.msra.mxu3 %v12596_v55 }
 0x55b   :  { %v15824_v54 = vld [vmem:[#allocation2 + $0xeb4] sm:$0xf0] }
 0x55c   :  { %v12307_v56 = vld [vmem:[#allocation2 + $0x1098] sm:$0xf]  ;;  %v12052_v10 = vor.u32 %v15824_v54, %v12051_v51  ;;  %7210 = vmatpush.bf16.msra.mxu0 %v11796_v3 }
 0x55d   :  { %v15888_v59 = vld [vmem:[#allocation2 + $0x10b4] sm:$0xf0] }
 0x55e   :  { %v12563_v63 = vld [vmem:[#allocation2 + $0x1298] sm:$0xf]  ;;  %v12308_v5 = vor.u32 %v15888_v59, %v12307_v56  ;;  %7223 = vmatpush.bf16.msra.mxu1 %v12052_v10 }
 0x55f   :  { %v15952_v0 = vld [vmem:[#allocation2 + $0x12b4] sm:$0xf0] }
 0x560   :  { %v11763_v13 = vld [vmem:[#allocation2 + $0xc58] sm:$0xf]  ;;  %v12564_v20 = vor.u32 %v15952_v0, %v12563_v63  ;;  %7236 = vmatpush.bf16.msra.mxu2 %v12308_v5 }
 0x561   :  { %v15752_v14 = vld [vmem:[#allocation2 + $0xc74] sm:$0xf0] }
 0x562   :  { %v12019_v11 = vld [vmem:[#allocation2 + $0xe58] sm:$0xf]  ;;  %v11764_v26 = vor.u32 %v15752_v14, %v11763_v13  ;;  %7249 = vmatpush.bf16.msra.mxu3 %v12564_v20 }
 0x563   :  { %v15816_v24 = vld [vmem:[#allocation2 + $0xe74] sm:$0xf0] }
 0x564   :  { %v12275_v28 = vld [vmem:[#allocation2 + $0x1058] sm:$0xf]  ;;  %v12020_v21 = vor.u32 %v15816_v24, %v12019_v11  ;;  %7211 = vmatpush.bf16.msra.mxu0 %v11764_v26 }
 0x565   :  { %v15880_v29 = vld [vmem:[#allocation2 + $0x1074] sm:$0xf0] }
 0x566   :  { %v12531_v30 = vld [vmem:[#allocation2 + $0x1258] sm:$0xf]  ;;  %v12276_v57 = vor.u32 %v15880_v29, %v12275_v28  ;;  %7224 = vmatpush.bf16.msra.mxu1 %v12020_v21 }
 0x567   :  { %v15944_v31 = vld [vmem:[#allocation2 + $0x1274] sm:$0xf0] }
 0x568   :  { %v11731_v32 = vld [vmem:[#allocation2 + $0xc18] sm:$0xf]  ;;  %v12532_v47 = vor.u32 %v15944_v31, %v12531_v30  ;;  %7237 = vmatpush.bf16.msra.mxu2 %v12276_v57 }
 0x569   :  { %v15744_v35 = vld [vmem:[#allocation2 + $0xc34] sm:$0xf0] }
 0x56a   :  { %v11987_v36 = vld [vmem:[#allocation2 + $0xe18] sm:$0xf]  ;;  %v11732_v46 = vor.u32 %v15744_v35, %v11731_v32  ;;  %7250 = vmatpush.bf16.msra.mxu3 %v12532_v47 }
 0x56b   :  { %v15808_v41 = vld [vmem:[#allocation2 + $0xe34] sm:$0xf0] }
 0x56c   :  { %v12243_v39 = vld [vmem:[#allocation2 + $0x1018] sm:$0xf]  ;;  %v11988_v54 = vor.u32 %v15808_v41, %v11987_v36  ;;  %7212 = vmatpush.bf16.msra.mxu0 %v11732_v46 }
 0x56d   :  { %v15872_v43 = vld [vmem:[#allocation2 + $0x1034] sm:$0xf0] }
 0x56e   :  { %v12499_v44 = vld [vmem:[#allocation2 + $0x1218] sm:$0xf]  ;;  %v12244_v56 = vor.u32 %v15872_v43, %v12243_v39  ;;  %7225 = vmatpush.bf16.msra.mxu1 %v11988_v54 }
 0x56f   :  { %v15936_v45 = vld [vmem:[#allocation2 + $0x1234] sm:$0xf0]  ;;  %7213 = vmatmul.bf16.vlgmr.msra.gmra.mxu0 %v17000_v34 }
 0x570   :  { %v12979_v49 = vld [vmem:[#allocation2 + $0x15d8] sm:$0xf]  ;;  %v12500_v62 = vor.u32 %v15936_v45, %v12499_v44  ;;  %7238 = vmatpush.bf16.msra.mxu2 %v12244_v56 }
 0x571   :  { %v16056_v50 = vld [vmem:[#allocation2 + $0x15f4] sm:$0xf0]  ;;  %7226 = vmatmul.bf16.vlgmr.msra.gmra.mxu1 %v17004_v38 }
 0x572   :  { %v13235_v53 = vld [vmem:[#allocation2 + $0x17d8] sm:$0xf]  ;;  %v12980_v63 = vor.u32 %v16056_v50, %v12979_v49  ;;  %7251 = vmatpush.bf16.msra.mxu3 %v12500_v62 }
 0x573   :  { %v16120_v51 = vld [vmem:[#allocation2 + $0x17f4] sm:$0xf0]  ;;  %7239 = vmatmul.bf16.vlgmr.msra.gmra.mxu2 %v17024_v18 }
 0x574   :  { %v13491_v52 = vld [vmem:[#allocation2 + $0x19d8] sm:$0xf]  ;;  %v13236_v0 = vor.u32 %v16120_v51, %v13235_v53  ;;  %7257 = vmatpush.bf16.msrb.mxu0 %v12980_v63  ;;  %v7006_v51 = vpop.f32.mrf.mxu0 }
 0x575   :  { %v16184_v55 = vld [vmem:[#allocation2 + $0x19f4] sm:$0xf0]  ;;  %7252 = vmatmul.bf16.vlgmr.msra.gmra.mxu3 %v17028_v23  ;;  %v7007_v54 = vadd.f32 %v7006_v51, %v17206_v2 }
 0x576   :  { %v13747_v59 = vld [vmem:[#allocation2 + $0x1bd8] sm:$0xf]  ;;  %v13492_v3 = vor.u32 %v16184_v55, %v13491_v52  ;;  %7270 = vmatpush.bf16.msrb.mxu1 %v13236_v0 }
 0x577   :  { %v16248_v60 = vld [vmem:[#allocation2 + $0x1bf4] sm:$0xf0] }
 0x578   :  { %v12947_v7 = vld [vmem:[#allocation2 + $0x1598] sm:$0xf]  ;;  %v13748_v13 = vor.u32 %v16248_v60, %v13747_v59  ;;  %7283 = vmatpush.bf16.msrb.mxu2 %v13492_v3  ;;  %v7019_v59 = vpop.f32.mrf.mxu1 }
 0x579   :  { %v16048_v10 = vld [vmem:[#allocation2 + $0x15b4] sm:$0xf0] }
 0x57a   :  { %v13203_v5 = vld [vmem:[#allocation2 + $0x1798] sm:$0xf]  ;;  %v12948_v28 = vor.u32 %v16048_v10, %v12947_v7  ;;  %7296 = vmatpush.bf16.msrb.mxu3 %v13748_v13  ;;  %v7020_v10 = vadd.f32 %v7019_v59, %v7007_v54 }
 0x57b   :  { %v16112_v14 = vld [vmem:[#allocation2 + $0x17b4] sm:$0xf0] }
 0x57c   :  { %v13459_v11 = vld [vmem:[#allocation2 + $0x1998] sm:$0xf]  ;;  %v13204_v29 = vor.u32 %v16112_v14, %v13203_v5  ;;  %7258 = vmatpush.bf16.msrb.mxu0 %v12948_v28 }
 0x57d   :  { %v16176_v16 = vld [vmem:[#allocation2 + $0x19b4] sm:$0xf0] }
 0x57e   :  { %v13715_v20 = vld [vmem:[#allocation2 + $0x1b98] sm:$0xf]  ;;  %v13460_v30 = vor.u32 %v16176_v16, %v13459_v11  ;;  %7271 = vmatpush.bf16.msrb.mxu1 %v13204_v29 }
 0x57f   :  { %v16240_v24 = vld [vmem:[#allocation2 + $0x1bb4] sm:$0xf0] }
 0x580   :  { %v12915_v31 = vld [vmem:[#allocation2 + $0x1558] sm:$0xf]  ;;  %v13716_v35 = vor.u32 %v16240_v24, %v13715_v20  ;;  %7284 = vmatpush.bf16.msrb.mxu2 %v13460_v30 }
 0x581   :  { %v16040_v26 = vld [vmem:[#allocation2 + $0x1574] sm:$0xf0] }
 0x582   :  { %v13171_v32 = vld [vmem:[#allocation2 + $0x1758] sm:$0xf]  ;;  %v12916_v42 = vor.u32 %v16040_v26, %v12915_v31  ;;  %7297 = vmatpush.bf16.msrb.mxu3 %v13716_v35  ;;  %v7032_v26 = vpop.f32.mrf.mxu2 }
 0x583   :  { %v16104_v21 = vld [vmem:[#allocation2 + $0x1774] sm:$0xf0] }
 0x584   :  { %v13427_v57 = vld [vmem:[#allocation2 + $0x1958] sm:$0xf]  ;;  %v13172_v47 = vor.u32 %v16104_v21, %v13171_v32  ;;  %7259 = vmatpush.bf16.msrb.mxu0 %v12916_v42  ;;  %v7008_v42 = vpop.f32.mrf.mxu0 }
 0x585   :  { %v16168_v36 = vld [vmem:[#allocation2 + $0x1974] sm:$0xf0] }
 0x586   :  { %v13683_v41 = vld [vmem:[#allocation2 + $0x1b58] sm:$0xf]  ;;  %v13428_v43 = vor.u32 %v16168_v36, %v13427_v57  ;;  %7272 = vmatpush.bf16.msrb.mxu1 %v13172_v47  ;;  %v7033_v57 = vadd.f32 %v7032_v26, %v7020_v10  ;;  %v7045_v36 = vpop.f32.mrf.mxu3  ;;  %v10677_v26 = vld [vmem:[#allocation2 + $0x3f8] sm:$0xf0] }
 0x587   :  { %v16232_v39 = vld [vmem:[#allocation2 + $0x1b74] sm:$0xf0] }
 0x588   :  { %v12883_v44 = vld [vmem:[#allocation2 + $0x1518] sm:$0xf]  ;;  %v13684_v49 = vor.u32 %v16232_v39, %v13683_v41  ;;  %7285 = vmatpush.bf16.msrb.mxu2 %v13428_v43  ;;  %v7021_v43 = vpop.f32.mrf.mxu1 }
 0x589   :  { %v16032_v45 = vld [vmem:[#allocation2 + $0x1534] sm:$0xf0] }
 0x58a   :  { %v13139_v48 = vld [vmem:[#allocation2 + $0x1718] sm:$0xf]  ;;  %v12884_v56 = vor.u32 %v16032_v45, %v12883_v44  ;;  %7298 = vmatpush.bf16.msrb.mxu3 %v13684_v49  ;;  %v17213_v44 = vadd.f32 %v7045_v36, %v7033_v57  ;;  %v10933_v57 = vld [vmem:[#allocation2 + $0x5f8] sm:$0xf0] }
 0x58b   :  { %v16096_v50 = vld [vmem:[#allocation2 + $0x1734] sm:$0xf0] }
 0x58c   :  { %v13395_v53 = vld [vmem:[#allocation2 + $0x1918] sm:$0xf]  ;;  %v13140_v60 = vor.u32 %v16096_v50, %v13139_v48  ;;  %7260 = vmatpush.bf16.msrb.mxu0 %v12884_v56 }
 0x58d   :  { %v16160_v46 = vld [vmem:[#allocation2 + $0x1934] sm:$0xf0] }
 0x58e   :  { %v13651_v52 = vld [vmem:[#allocation2 + $0x1b18] sm:$0xf]  ;;  %v13396_v62 = vor.u32 %v16160_v46, %v13395_v53  ;;  %7273 = vmatpush.bf16.msrb.mxu1 %v13140_v60 }
 0x58f   :  { %v16224_v55 = vld [vmem:[#allocation2 + $0x1b34] sm:$0xf0] }
 0x590   :  { %v12851_v63 = vld [vmem:[#allocation2 + $0x14d8] sm:$0xf]  ;;  %v13652_v7 = vor.u32 %v16224_v55, %v13651_v52  ;;  %7286 = vmatpush.bf16.msrb.mxu2 %v13396_v62 }
 0x591   :  { %v16024_v0 = vld [vmem:[#allocation2 + $0x14f4] sm:$0xf0] }
 0x592   :  { %v13107_v3 = vld [vmem:[#allocation2 + $0x16d8] sm:$0xf]  ;;  %v12852_v20 = vor.u32 %v16024_v0, %v12851_v63  ;;  %7299 = vmatpush.bf16.msrb.mxu3 %v13652_v7 }
 0x593   :  { %v16088_v5 = vld [vmem:[#allocation2 + $0x16f4] sm:$0xf0] }
 0x594   :  { %v13363_v13 = vld [vmem:[#allocation2 + $0x18d8] sm:$0xf]  ;;  %v13108_v2 = vor.u32 %v16088_v5, %v13107_v3  ;;  %7261 = vmatpush.bf16.msrb.mxu0 %v12852_v20 }
 0x595   :  { %v16152_v14 = vld [vmem:[#allocation2 + $0x18f4] sm:$0xf0] }
 0x596   :  { %v13619_v11 = vld [vmem:[#allocation2 + $0x1ad8] sm:$0xf]  ;;  %v13364_v24 = vor.u32 %v16152_v14, %v13363_v13  ;;  %7274 = vmatpush.bf16.msrb.mxu1 %v13108_v2 }
 0x597   :  { %v16216_v16 = vld [vmem:[#allocation2 + $0x1af4] sm:$0xf0] }
 0x598   :  { %v12819_v28 = vld [vmem:[#allocation2 + $0x1498] sm:$0xf]  ;;  %v13620_v31 = vor.u32 %v16216_v16, %v13619_v11  ;;  %7287 = vmatpush.bf16.msrb.mxu2 %v13364_v24  ;;  %v7034_v16 = vpop.f32.mrf.mxu2  ;;  %v15412_v24 = vld [vmem:[#allocation2 + $0x1dc] sm:$0xf] }
 0x599   :  { %v16016_v29 = vld [vmem:[#allocation2 + $0x14b4] sm:$0xf0] }
 0x59a   :  { %v13075_v30 = vld [vmem:[#allocation2 + $0x1698] sm:$0xf]  ;;  %v12820_v47 = vor.u32 %v16016_v29, %v12819_v28  ;;  %7300 = vmatpush.bf16.msrb.mxu3 %v13620_v31  ;;  %v7047_v28 = vpop.f32.mrf.mxu3  ;;  %v15476_v31 = vld [vmem:[#allocation2 + $0x3dc] sm:$0xf] }
 0x59b   :  { %v16080_v32 = vld [vmem:[#allocation2 + $0x16b4] sm:$0xf0]  ;;  %v10680_v42 = vor.u32 %v15476_v31, %v10677_v26  ;;  %v15452_v28 = vld [vmem:[#allocation2 + $0x31c] sm:$0xf] }
 0x59c   :  { %v13331_v35 = vld [vmem:[#allocation2 + $0x1898] sm:$0xf]  ;;  %v13076_v45 = vor.u32 %v16080_v32, %v13075_v30  ;;  %7262 = vmatpush.bf16.msrb.mxu0 %v12820_v47  ;;  %v10421_v30 = vld [vmem:[#allocation2 + $0x1f8] sm:$0xf0] }
 0x59d   :  { %v16144_v21 = vld [vmem:[#allocation2 + $0x18b4] sm:$0xf0]  ;;  %v15516_v31 = vld [vmem:[#allocation2 + $0x51c] sm:$0xf] }
 0x59e   :  { %v13587_v41 = vld [vmem:[#allocation2 + $0x1a98] sm:$0xf]  ;;  %v13332_v48 = vor.u32 %v16144_v21, %v13331_v35  ;;  %7275 = vmatpush.bf16.msrb.mxu1 %v13076_v45  ;;  %v15540_v21 = vld [vmem:[#allocation2 + $0x5dc] sm:$0xf] }
 0x59f   :  { %v16208_v39 = vld [vmem:[#allocation2 + $0x1ab4] sm:$0xf0]  ;;  %v15404_v45 = vld [vmem:[#allocation2 + $0x19c] sm:$0xf] }
 0x5a0   :  { %v12787_v49 = vld [vmem:[#allocation2 + $0x1458] sm:$0xf]  ;;  %v13588_v46 = vor.u32 %v16208_v39, %v13587_v41  ;;  %7288 = vmatpush.bf16.msrb.mxu2 %v13332_v48  ;;  %v10424_v39 = vor.u32 %v15412_v24, %v10421_v30  ;;  %v10936_v48 = vor.u32 %v15540_v21, %v10933_v57  ;;  %v10325_v24 = vld [vmem:[#allocation2 + $0x138] sm:$0xf0]  ;;  %v7058_v30 = vpop.f32.mrf.mxu0  ;;  %v7071_v21 = vpop.f32.mrf.mxu1 }
 0x5a1   :  { %v16008_v50 = vld [vmem:[#allocation2 + $0x1474] sm:$0xf0]  ;;  %v10837_v26 = vld [vmem:[#allocation2 + $0x538] sm:$0xf0] }
 0x5a2   :  { %v13043_v53 = vld [vmem:[#allocation2 + $0x1658] sm:$0xf]  ;;  %v12788_v59 = vor.u32 %v16008_v50, %v12787_v49  ;;  %7301 = vmatpush.bf16.msrb.mxu3 %v13588_v46  ;;  %v10389_v49 = vld [vmem:[#allocation2 + $0x1b8] sm:$0xf0] }
 0x5a3   :  { %v16072_v51 = vld [vmem:[#allocation2 + $0x1674] sm:$0xf0]  ;;  %v15468_v50 = vld [vmem:[#allocation2 + $0x39c] sm:$0xf] }
 0x5a4   :  { %v13299_v52 = vld [vmem:[#allocation2 + $0x1858] sm:$0xf]  ;;  %v13044_v63 = vor.u32 %v16072_v51, %v13043_v53  ;;  %7263 = vmatpush.bf16.msrb.mxu0 %v12788_v59  ;;  %v10645_v53 = vld [vmem:[#allocation2 + $0x3b8] sm:$0xf0] }
 0x5a5   :  { %v16136_v55 = vld [vmem:[#allocation2 + $0x1874] sm:$0xf0]  ;;  %v15532_v46 = vld [vmem:[#allocation2 + $0x59c] sm:$0xf] }
 0x5a6   :  { %v13555_v54 = vld [vmem:[#allocation2 + $0x1a58] sm:$0xf]  ;;  %v13300_v0 = vor.u32 %v16136_v55, %v13299_v52  ;;  %7276 = vmatpush.bf16.msrb.mxu1 %v13044_v63  ;;  %v10901_v51 = vld [vmem:[#allocation2 + $0x5b8] sm:$0xf0]  ;;  %v10392_v55 = vor.u32 %v15404_v45, %v10389_v49 }
 0x5a7   :  { %v16200_v56 = vld [vmem:[#allocation2 + $0x1a74] sm:$0xf0]  ;;  %v10357_v63 = vld [vmem:[#allocation2 + $0x178] sm:$0xf0] }
 0x5a8   :  { %v12755_v60 = vld [vmem:[#allocation2 + $0x1418] sm:$0xf]  ;;  %v13556_v5 = vor.u32 %v16200_v56, %v13555_v54  ;;  %7289 = vmatpush.bf16.msrb.mxu2 %v13300_v0  ;;  %v10648_v54 = vor.u32 %v15468_v50, %v10645_v53  ;;  %v15460_v0 = vld [vmem:[#allocation2 + $0x35c] sm:$0xf] }
 0x5a9   :  { %v16000_v62 = vld [vmem:[#allocation2 + $0x1434] sm:$0xf0]  ;;  %v10293_v45 = vld [vmem:[#allocation2 + $0xf8] sm:$0xf0] }
 0x5aa   :  { %v13011_v3 = vld [vmem:[#allocation2 + $0x1618] sm:$0xf]  ;;  %v12756_v29 = vor.u32 %v16000_v62, %v12755_v60  ;;  %7302 = vmatpush.bf16.msrb.mxu3 %v13556_v5  ;;  %v15396_v60 = vld [vmem:[#allocation2 + $0x15c] sm:$0xf]  ;;  %v10904_v62 = vor.u32 %v15532_v46, %v10901_v51 }
 0x5ab   :  { %v16064_v7 = vld [vmem:[#allocation2 + $0x1634] sm:$0xf0]  ;;  %v10549_v49 = vld [vmem:[#allocation2 + $0x2f8] sm:$0xf0] }
 0x5ac   :  { %v13267_v10 = vld [vmem:[#allocation2 + $0x1818] sm:$0xf]  ;;  %v13012_v32 = vor.u32 %v16064_v7, %v13011_v3  ;;  %7264 = vmatpush.bf16.msrb.mxu0 %v12756_v29  ;;  %v10613_v3 = vld [vmem:[#allocation2 + $0x378] sm:$0xf0] }
 0x5ad   :  { %v16128_v13 = vld [vmem:[#allocation2 + $0x1834] sm:$0xf0]  ;;  %v15524_v7 = vld [vmem:[#allocation2 + $0x55c] sm:$0xf] }
 0x5ae   :  { %v13523_v14 = vld [vmem:[#allocation2 + $0x1a18] sm:$0xf]  ;;  %v13268_v35 = vor.u32 %v16128_v13, %v13267_v10  ;;  %7277 = vmatpush.bf16.msrb.mxu1 %v13012_v32  ;;  %v10869_v10 = vld [vmem:[#allocation2 + $0x578] sm:$0xf0]  ;;  %v10360_v13 = vor.u32 %v15396_v60, %v10357_v63  ;;  %v7059_v32 = vadd.f32 %v7058_v30, %v17213_v44 }
 0x5af   :  { %v16192_v11 = vld [vmem:[#allocation2 + $0x1a34] sm:$0xf0]  ;;  %7265 = vmatmul.bf16.vlgmr.msrb.gmra.mxu0 %v17026_v22  ;;  %v10581_v29 = vld [vmem:[#allocation2 + $0x338] sm:$0xf0] }
 0x5b0   :  { %v14003_v20 = vld [vmem:[#allocation2 + $0x1dd8] sm:$0xf]  ;;  %v13524_v36 = vor.u32 %v16192_v11, %v13523_v14  ;;  %7290 = vmatpush.bf16.msrb.mxu2 %v13268_v35  ;;  %v10616_v14 = vor.u32 %v15460_v0, %v10613_v3  ;;  %v15508_v50 = vld [vmem:[#allocation2 + $0x4dc] sm:$0xf]  ;;  %v7097_v3 = vpop.f32.mrf.mxu3 }
 0x5b1   :  { %v16312_v2 = vld [vmem:[#allocation2 + $0x1df4] sm:$0xf0]  ;;  %7278 = vmatmul.bf16.vlgmr.msrb.gmra.mxu1 %v17030_v27  ;;  %v10805_v53 = vld [vmem:[#allocation2 + $0x4f8] sm:$0xf0] }
 0x5b2   :  { %v14004_v41 = vor.u32 %v16312_v2, %v14003_v20  ;;  %v13971_v47 = vld [vmem:[#allocation2 + $0x1d98] sm:$0xf]  ;;  %7303 = vmatpush.bf16.msrb.mxu3 %v13524_v36  ;;  %7322 = vmatpush.bf16.msra.mxu1 %v10424_v39  ;;  %v15388_v20 = vld [vmem:[#allocation2 + $0x11c] sm:$0xf]  ;;  %v10872_v2 = vor.u32 %v15524_v7, %v10869_v10  ;;  %v10584_v36 = vor.u32 %v15452_v28, %v10581_v29 }
 0x5b3   :  { %v16304_v43 = vld [vmem:[#allocation2 + $0x1db4] sm:$0xf0]  ;;  %7291 = vmatmul.bf16.vlgmr.msrb.gmra.mxu2 %v17045_v12  ;;  %v10328_v57 = vor.u32 %v15388_v20, %v10325_v24  ;;  %v10261_v60 = vld [vmem:[#allocation2 + $0xb8] sm:$0xf0] }
 0x5b4   :  { %7309 = vmatpush.bf16.msra.mxu0 %v14004_v41  ;;  %v13972_v52 = vor.u32 %v16304_v43, %v13971_v47  ;;  %7335 = vmatpush.bf16.msra.mxu2 %v10680_v42  ;;  %v13939_v56 = vld [vmem:[#allocation2 + $0x1d58] sm:$0xf]  ;;  %v15380_v42 = vld [vmem:[#allocation2 + $0xdc] sm:$0xf]  ;;  %v10840_v47 = vor.u32 %v15516_v31, %v10837_v26  ;;  %v7072_v43 = vadd.f32 %v7071_v21, %v7059_v32 }
 0x5b5   :  { %v16296_v59 = vld [vmem:[#allocation2 + $0x1d74] sm:$0xf0]  ;;  %7304 = vmatmul.bf16.vlgmr.msrb.gmra.mxu3 %v17049_v19  ;;  %v10296_v44 = vor.u32 %v15380_v42, %v10293_v45  ;;  %v10517_v63 = vld [vmem:[#allocation2 + $0x2b8] sm:$0xf0] }
 0x5b6   :  { %7348 = vmatpush.bf16.msra.mxu3 %v10936_v48  ;;  %v13940_v5 = vor.u32 %v16296_v59, %v13939_v56  ;;  %7323 = vmatpush.bf16.msra.mxu1 %v10392_v55  ;;  %v13907_v11 = vld [vmem:[#allocation2 + $0x1d18] sm:$0xf]  ;;  %v15444_v48 = vld [vmem:[#allocation2 + $0x2dc] sm:$0xf]  ;;  %v10808_v56 = vor.u32 %v15508_v50, %v10805_v53  ;;  %v7084_v59 = vpop.f32.mrf.mxu2 }
 0x5b7   :  { %v16288_v16 = vld [vmem:[#allocation2 + $0x1d34] sm:$0xf0]  ;;  %v10552_v51 = vor.u32 %v15444_v48, %v10549_v49  ;;  %v7085_v0 = vadd.f32 %v7084_v59, %v7072_v43  ;;  %v15500_v7 = vld [vmem:[#allocation2 + $0x49c] sm:$0xf] }
 0x5b8   :  { %7310 = vmatpush.bf16.msra.mxu0 %v13972_v52  ;;  %7336 = vmatpush.bf16.msra.mxu2 %v10648_v54  ;;  %v13908_v35 = vor.u32 %v16288_v16, %v13907_v11  ;;  %v13875_v41 = vld [vmem:[#allocation2 + $0x1cd8] sm:$0xf]  ;;  %v15372_v54 = vld [vmem:[#allocation2 + $0x9c] sm:$0xf] }
 0x5b9   :  { %v16280_v39 = vld [vmem:[#allocation2 + $0x1cf4] sm:$0xf0]  ;;  %v10773_v10 = vld [vmem:[#allocation2 + $0x4b8] sm:$0xf0]  ;;  %v17220_v11 = vadd.f32 %v7097_v3, %v7085_v0  ;;  %v10264_v16 = vor.u32 %v15372_v54, %v10261_v60 }
 0x5ba   :  { %7349 = vmatpush.bf16.msra.mxu3 %v10904_v62  ;;  %7324 = vmatpush.bf16.msra.mxu1 %v10360_v13  ;;  %v13876_v46 = vor.u32 %v16280_v39, %v13875_v41  ;;  %v13843_v52 = vld [vmem:[#allocation2 + $0x1c98] sm:$0xf]  ;;  %v15436_v62 = vld [vmem:[#allocation2 + $0x29c] sm:$0xf]  ;;  %v10776_v29 = vor.u32 %v15500_v7, %v10773_v10 }
 0x5bb   :  { %v16272_v55 = vld [vmem:[#allocation2 + $0x1cb4] sm:$0xf0]  ;;  %v10520_v20 = vor.u32 %v15436_v62, %v10517_v63  ;;  %v15364_v28 = vld [vmem:[#allocation2 + $0x5c] sm:$0xf] }
 0x5bc   :  { %7311 = vmatpush.bf16.msra.mxu0 %v13940_v5  ;;  %7337 = vmatpush.bf16.msra.mxu2 %v10616_v14  ;;  %v7060_v5 = vpop.f32.mrf.mxu0  ;;  %v13844_v13 = vor.u32 %v16272_v55, %v13843_v52  ;;  %v7073_v14 = vpop.f32.mrf.mxu1  ;;  %v16264_v24 = vld [vmem:[#allocation2 + $0x1c74] sm:$0xf0]  ;;  %v10229_v30 = vld [vmem:[#allocation2 + $0x78] sm:$0xf0] }
 0x5bd   :  { %v15428_v31 = vld [vmem:[#allocation2 + $0x25c] sm:$0xf]  ;;  %v10232_v41 = vor.u32 %v15364_v28, %v10229_v30  ;;  %v7099_v52 = vpop.f32.mrf.mxu3 }
 0x5be   :  { %7350 = vmatpush.bf16.msra.mxu3 %v10872_v2  ;;  %7325 = vmatpush.bf16.msra.mxu1 %v10328_v57  ;;  %v13811_v2 = vld [vmem:[#allocation2 + $0x1c58] sm:$0xf]  ;;  %v10485_v26 = vld [vmem:[#allocation2 + $0x278] sm:$0xf0]  ;;  %v7086_v53 = vpop.f32.mrf.mxu2 }
 0x5bf   :  { %v15492_v32 = vld [vmem:[#allocation2 + $0x45c] sm:$0xf]  ;;  %v13812_v21 = vor.u32 %v16264_v24, %v13811_v2  ;;  %v13779_v57 = vld [vmem:[#allocation2 + $0x1c18] sm:$0xf]  ;;  %v10488_v39 = vor.u32 %v15428_v31, %v10485_v26 }
 0x5c0   :  { %7312 = vmatpush.bf16.msra.mxu0 %v13908_v35  ;;  %7338 = vmatpush.bf16.msra.mxu2 %v10584_v36  ;;  %v10741_v35 = vld [vmem:[#allocation2 + $0x478] sm:$0xf0]  ;;  %v16256_v36 = vld [vmem:[#allocation2 + $0x1c34] sm:$0xf0] }
 0x5c1   :  { %v15356_v42 = vld [vmem:[#allocation2 + $0x1c] sm:$0xf]  ;;  %v10744_v45 = vor.u32 %v15492_v32, %v10741_v35  ;;  %v13780_v55 = vor.u32 %v16256_v36, %v13779_v57 }
 0x5c2   :  { %7351 = vmatpush.bf16.msra.mxu3 %v10840_v47  ;;  %7326 = vmatpush.bf16.msra.mxu1 %v10296_v44  ;;  %v10197_v47 = vld [vmem:[#allocation2 + $0x38] sm:$0xf0] }
 0x5c3   :  { %v15420_v43 = vld [vmem:[#allocation2 + $0x21c] sm:$0xf]  ;;  %v10200_v60 = vor.u32 %v15356_v42, %v10197_v47 }
 0x5c4   :  { %7313 = vmatpush.bf16.msra.mxu0 %v13876_v46  ;;  %7339 = vmatpush.bf16.msra.mxu2 %v10552_v51  ;;  %v10453_v48 = vld [vmem:[#allocation2 + $0x238] sm:$0xf0] }
 0x5c5   :  { %v15484_v49 = vld [vmem:[#allocation2 + $0x41c] sm:$0xf]  ;;  %v10456_v62 = vor.u32 %v15420_v43, %v10453_v48 }
 0x5c6   :  { %7352 = vmatpush.bf16.msra.mxu3 %v10808_v56  ;;  %7327 = vmatpush.bf16.msra.mxu1 %v10264_v16  ;;  %v10709_v50 = vld [vmem:[#allocation2 + $0x438] sm:$0xf0] }
 0x5c7   :  { %v15604_v46 = vld [vmem:[#allocation2 + $0x7dc] sm:$0xf]  ;;  %v10712_v3 = vor.u32 %v15484_v49, %v10709_v50 }
 0x5c8   :  { %7314 = vmatpush.bf16.msra.mxu0 %v13844_v13  ;;  %7340 = vmatpush.bf16.msra.mxu2 %v10520_v20  ;;  %v11189_v44 = vld [vmem:[#allocation2 + $0x7f8] sm:$0xf0] }
 0x5c9   :  { %v15668_v51 = vld [vmem:[#allocation2 + $0x9dc] sm:$0xf]  ;;  %v11192_v7 = vor.u32 %v15604_v46, %v11189_v44 }
 0x5ca   :  { %7353 = vmatpush.bf16.msra.mxu3 %v10776_v29  ;;  %v11445_v54 = vld [vmem:[#allocation2 + $0x9f8] sm:$0xf0]  ;;  %7328 = vmatpush.bf16.msra.mxu1 %v10232_v41 }
 0x5cb   :  { %v15732_v56 = vld [vmem:[#allocation2 + $0xbdc] sm:$0xf]  ;;  %v11448_v10 = vor.u32 %v15668_v51, %v11445_v54  ;;  %v7110_v54 = vpop.f32.mrf.mxu0 }
 0x5cc   :  { %7315 = vmatpush.bf16.msra.mxu0 %v13812_v21  ;;  %v11701_v59 = vld [vmem:[#allocation2 + $0xbf8] sm:$0xf0]  ;;  %7341 = vmatpush.bf16.msra.mxu2 %v10488_v39 }
 0x5cd   :  { %v15796_v63 = vld [vmem:[#allocation2 + $0xddc] sm:$0xf]  ;;  %v11704_v5 = vor.u32 %v15732_v56, %v11701_v59 }
 0x5ce   :  { %v11957_v0 = vld [vmem:[#allocation2 + $0xdf8] sm:$0xf0]  ;;  %7354 = vmatpush.bf16.msra.mxu3 %v10744_v45  ;;  %7329 = vmatpush.bf16.msra.mxu1 %v10200_v60 }
 0x5cf   :  { %v15596_v13 = vld [vmem:[#allocation2 + $0x79c] sm:$0xf]  ;;  %v11960_v20 = vor.u32 %v15796_v63, %v11957_v0 }
 0x5d0   :  { %v11157_v14 = vld [vmem:[#allocation2 + $0x7b8] sm:$0xf0]  ;;  %7316 = vmatpush.bf16.msra.mxu0 %v13780_v55  ;;  %7342 = vmatpush.bf16.msra.mxu2 %v10456_v62 }
 0x5d1   :  { %v15660_v16 = vld [vmem:[#allocation2 + $0x99c] sm:$0xf]  ;;  %v11160_v31 = vor.u32 %v15596_v13, %v11157_v14  ;;  %7330 = vmatmul.bf16.vlgmr.msra.gmra.mxu1 %v16972_v9  ;;  %v7123_v9 = vpop.f32.mrf.mxu1 }
 0x5d2   :  { %v11413_v2 = vld [vmem:[#allocation2 + $0x9b8] sm:$0xf0]  ;;  %7355 = vmatpush.bf16.msra.mxu3 %v10712_v3  ;;  %7374 = vmatpush.bf16.msrb.mxu1 %v11448_v10 }
 0x5d3   :  { %v15724_v24 = vld [vmem:[#allocation2 + $0xb9c] sm:$0xf]  ;;  %v11416_v26 = vor.u32 %v15660_v16, %v11413_v2  ;;  %7317 = vmatmul.bf16.vlgmr.msra.gmra.mxu0 %v17047_v17  ;;  %7343 = vmatmul.bf16.vlgmr.msra.gmra.mxu2 %v16985_v25 }
 0x5d4   :  { %v11669_v28 = vld [vmem:[#allocation2 + $0xbb8] sm:$0xf0]  ;;  %7361 = vmatpush.bf16.msrb.mxu0 %v11192_v7  ;;  %7387 = vmatpush.bf16.msrb.mxu2 %v11704_v5 }
 0x5d5   :  { %v15788_v29 = vld [vmem:[#allocation2 + $0xd9c] sm:$0xf]  ;;  %v11672_v32 = vor.u32 %v15724_v24, %v11669_v28  ;;  %7356 = vmatmul.bf16.vlgmr.msra.gmra.mxu3 %v16970_v8  ;;  %v7111_v8 = vadd.f32 %v7110_v54, %v17220_v11  ;;  %v1147_v11 = vperm.slane %v17198_v61, 6  ;;  %v7112_v61 = vpop.f32.mrf.mxu0 }
 0x5d6   :  { %v11925_v30 = vld [vmem:[#allocation2 + $0xdb8] sm:$0xf0]  ;;  %7400 = vmatpush.bf16.msrb.mxu3 %v11960_v20  ;;  %7375 = vmatpush.bf16.msrb.mxu1 %v11416_v26 }
 0x5d7   :  { %v15588_v35 = vld [vmem:[#allocation2 + $0x75c] sm:$0xf]  ;;  %v11928_v36 = vor.u32 %v15788_v29, %v11925_v30  ;;  %v17227_v10 = vadd.f32 %v7123_v9, %v7111_v8 }
 0x5d8   :  { %v11125_v21 = vld [vmem:[#allocation2 + $0x778] sm:$0xf0]  ;;  %7362 = vmatpush.bf16.msrb.mxu0 %v11160_v31  ;;  %7388 = vmatpush.bf16.msrb.mxu2 %v11672_v32 }
 0x5d9   :  { %v15652_v57 = vld [vmem:[#allocation2 + $0x95c] sm:$0xf]  ;;  %v11128_v45 = vor.u32 %v15588_v35, %v11125_v21 }
 0x5da   :  { %v11381_v41 = vld [vmem:[#allocation2 + $0x978] sm:$0xf0]  ;;  %7401 = vmatpush.bf16.msrb.mxu3 %v11928_v36 }
 0x5db   :  { %v15716_v39 = vld [vmem:[#allocation2 + $0xb5c] sm:$0xf]  ;;  %v11384_v48 = vor.u32 %v15652_v57, %v11381_v41  ;;  %v7136_v57 = vpop.f32.mrf.mxu2 }
 0x5dc   :  { %v11637_v42 = vld [vmem:[#allocation2 + $0xb78] sm:$0xf0]  ;;  %7363 = vmatpush.bf16.msrb.mxu0 %v11128_v45 }
 0x5dd   :  { %v15780_v47 = vld [vmem:[#allocation2 + $0xd5c] sm:$0xf]  ;;  %v11640_v49 = vor.u32 %v15716_v39, %v11637_v42  ;;  %7376 = vmatpush.bf16.msrb.mxu1 %v11384_v48  ;;  %v7137_v39 = vadd.f32 %v7136_v57, %v1147_v11  ;;  %v7149_v42 = vpop.f32.mrf.mxu3 }
 0x5de   :  { %v11893_v43 = vld [vmem:[#allocation2 + $0xd78] sm:$0xf0] }
 0x5df   :  { %v15580_v50 = vld [vmem:[#allocation2 + $0x71c] sm:$0xf]  ;;  %v11896_v44 = vor.u32 %v15780_v47, %v11893_v43  ;;  %7389 = vmatpush.bf16.msrb.mxu2 %v11640_v49  ;;  %v7125_v43 = vpop.f32.mrf.mxu1 }
 0x5e0   :  { %v11093_v53 = vld [vmem:[#allocation2 + $0x738] sm:$0xf0] }
 0x5e1   :  { %v15644_v46 = vld [vmem:[#allocation2 + $0x91c] sm:$0xf]  ;;  %v11096_v59 = vor.u32 %v15580_v50, %v11093_v53  ;;  %7402 = vmatpush.bf16.msrb.mxu3 %v11896_v44 }
 0x5e2   :  { %v11349_v51 = vld [vmem:[#allocation2 + $0x938] sm:$0xf0] }
 0x5e3   :  { %v15708_v52 = vld [vmem:[#allocation2 + $0xb1c] sm:$0xf]  ;;  %v11352_v60 = vor.u32 %v15644_v46, %v11349_v51  ;;  %7364 = vmatpush.bf16.msrb.mxu0 %v11096_v59  ;;  %v17230_v46 = vadd.f32 %v7149_v42, %v7137_v39 }
 0x5e4   :  { %v11605_v55 = vld [vmem:[#allocation2 + $0xb38] sm:$0xf0] }
 0x5e5   :  { %v15772_v25 = vld [vmem:[#allocation2 + $0xd1c] sm:$0xf]  ;;  %v11608_v62 = vor.u32 %v15708_v52, %v11605_v55  ;;  %7377 = vmatpush.bf16.msrb.mxu1 %v11352_v60 }
 0x5e6   :  { %v11861_v56 = vld [vmem:[#allocation2 + $0xd38] sm:$0xf0] }
 0x5e7   :  { %v15572_v63 = vld [vmem:[#allocation2 + $0x6dc] sm:$0xf]  ;;  %v11864_v7 = vor.u32 %v15772_v25, %v11861_v56  ;;  %7390 = vmatpush.bf16.msrb.mxu2 %v11608_v62 }
 0x5e8   :  { %v11061_v0 = vld [vmem:[#allocation2 + $0x6f8] sm:$0xf0] }
 0x5e9   :  { %v15636_v3 = vld [vmem:[#allocation2 + $0x8dc] sm:$0xf]  ;;  %v11064_v2 = vor.u32 %v15572_v63, %v11061_v0  ;;  %7403 = vmatpush.bf16.msrb.mxu3 %v11864_v7 }
 0x5ea   :  { %v11317_v5 = vld [vmem:[#allocation2 + $0x8f8] sm:$0xf0] }
 0x5eb   :  { %v15700_v13 = vld [vmem:[#allocation2 + $0xadc] sm:$0xf]  ;;  %v11320_v24 = vor.u32 %v15636_v3, %v11317_v5  ;;  %7365 = vmatpush.bf16.msrb.mxu0 %v11064_v2  ;;  %v7151_v2 = vpop.f32.mrf.mxu3 }
 0x5ec   :  { %v11573_v14 = vld [vmem:[#allocation2 + $0xaf8] sm:$0xf0] }
 0x5ed   :  { %v15764_v16 = vld [vmem:[#allocation2 + $0xcdc] sm:$0xf]  ;;  %v11576_v28 = vor.u32 %v15700_v13, %v11573_v14  ;;  %7378 = vmatpush.bf16.msrb.mxu1 %v11320_v24  ;;  %v7138_v14 = vpop.f32.mrf.mxu2 }
 0x5ee   :  { %v11829_v20 = vld [vmem:[#allocation2 + $0xcf8] sm:$0xf0] }
 0x5ef   :  { %v15564_v29 = vld [vmem:[#allocation2 + $0x69c] sm:$0xf]  ;;  %v11832_v26 = vor.u32 %v15764_v16, %v11829_v20  ;;  %7391 = vmatpush.bf16.msrb.mxu2 %v11576_v28 }
 0x5f0   :  { %v11029_v30 = vld [vmem:[#allocation2 + $0x6b8] sm:$0xf0] }
 0x5f1   :  { %v15628_v31 = vld [vmem:[#allocation2 + $0x89c] sm:$0xf]  ;;  %v11032_v47 = vor.u32 %v15564_v29, %v11029_v30  ;;  %7404 = vmatpush.bf16.msrb.mxu3 %v11832_v26 }
 0x5f2   :  { %v11285_v32 = vld [vmem:[#allocation2 + $0x8b8] sm:$0xf0] }
 0x5f3   :  { %v15692_v35 = vld [vmem:[#allocation2 + $0xa9c] sm:$0xf]  ;;  %v11288_v45 = vor.u32 %v15628_v31, %v11285_v32  ;;  %7366 = vmatpush.bf16.msrb.mxu0 %v11032_v47 }
 0x5f4   :  { %v11541_v21 = vld [vmem:[#allocation2 + $0xab8] sm:$0xf0] }
 0x5f5   :  { %v15756_v36 = vld [vmem:[#allocation2 + $0xc9c] sm:$0xf]  ;;  %v11544_v48 = vor.u32 %v15692_v35, %v11541_v21  ;;  %7379 = vmatpush.bf16.msrb.mxu1 %v11288_v45 }
 0x5f6   :  { %v11797_v41 = vld [vmem:[#allocation2 + $0xcb8] sm:$0xf0] }
 0x5f7   :  { %v15556_v49 = vld [vmem:[#allocation2 + $0x65c] sm:$0xf]  ;;  %v11800_v44 = vor.u32 %v15756_v36, %v11797_v41  ;;  %7392 = vmatpush.bf16.msrb.mxu2 %v11544_v48 }
 0x5f8   :  { %v10997_v50 = vld [vmem:[#allocation2 + $0x678] sm:$0xf0] }
 0x5f9   :  { %v15620_v53 = vld [vmem:[#allocation2 + $0x85c] sm:$0xf]  ;;  %v11000_v56 = vor.u32 %v15556_v49, %v10997_v50  ;;  %7405 = vmatpush.bf16.msrb.mxu3 %v11800_v44 }
 0x5fa   :  { %v11253_v51 = vld [vmem:[#allocation2 + $0x878] sm:$0xf0] }
 0x5fb   :  { %v15684_v52 = vld [vmem:[#allocation2 + $0xa5c] sm:$0xf]  ;;  %v11256_v9 = vor.u32 %v15620_v53, %v11253_v51  ;;  %7367 = vmatpush.bf16.msrb.mxu0 %v11000_v56 }
 0x5fc   :  { %v11509_v55 = vld [vmem:[#allocation2 + $0xa78] sm:$0xf0] }
 0x5fd   :  { %v15748_v54 = vld [vmem:[#allocation2 + $0xc5c] sm:$0xf]  ;;  %v11512_v60 = vor.u32 %v15684_v52, %v11509_v55  ;;  %7380 = vmatpush.bf16.msrb.mxu1 %v11256_v9 }
 0x5fe   :  { %v11765_v25 = vld [vmem:[#allocation2 + $0xc78] sm:$0xf0] }
 0x5ff   :  { %v15548_v8 = vld [vmem:[#allocation2 + $0x61c] sm:$0xf]  ;;  %v11768_v3 = vor.u32 %v15748_v54, %v11765_v25  ;;  %7393 = vmatpush.bf16.msrb.mxu2 %v11512_v60 }
 0x600   :  { %v10965_v59 = vld [vmem:[#allocation2 + $0x638] sm:$0xf0] }
 0x601   :  { %v15612_v62 = vld [vmem:[#allocation2 + $0x81c] sm:$0xf]  ;;  %v10968_v24 = vor.u32 %v15548_v8, %v10965_v59  ;;  %7406 = vmatpush.bf16.msrb.mxu3 %v11768_v3 }
 0x602   :  { %v11221_v63 = vld [vmem:[#allocation2 + $0x838] sm:$0xf0] }
 0x603   :  { %v15676_v0 = vld [vmem:[#allocation2 + $0xa1c] sm:$0xf]  ;;  %v11224_v31 = vor.u32 %v15612_v62, %v11221_v63  ;;  %7368 = vmatpush.bf16.msrb.mxu0 %v10968_v24 }
 0x604   :  { %v11477_v7 = vld [vmem:[#allocation2 + $0xa38] sm:$0xf0] }
 0x605   :  { %v15740_v5 = vld [vmem:[#allocation2 + $0xc1c] sm:$0xf]  ;;  %v11480_v26 = vor.u32 %v15676_v0, %v11477_v7  ;;  %7381 = vmatpush.bf16.msrb.mxu1 %v11224_v31  ;;  %v7175_v31 = vpop.f32.mrf.mxu1 }
 0x606   :  { %v11733_v13 = vld [vmem:[#allocation2 + $0xc38] sm:$0xf0]  ;;  %7369 = vmatmul.bf16.vlgmr.msrb.gmra.mxu0 %v16977_v15 }
 0x607   :  { %v15860_v16 = vld [vmem:[#allocation2 + $0xfdc] sm:$0xf]  ;;  %v11736_v21 = vor.u32 %v15740_v5, %v11733_v13  ;;  %7394 = vmatpush.bf16.msrb.mxu2 %v11480_v26 }
 0x608   :  { %v12213_v20 = vld [vmem:[#allocation2 + $0xff8] sm:$0xf0]  ;;  %7382 = vmatmul.bf16.vlgmr.msrb.gmra.mxu1 %v17002_v37 }
 0x609   :  { %v15924_v11 = vld [vmem:[#allocation2 + $0x11dc] sm:$0xf]  ;;  %v12216_v57 = vor.u32 %v15860_v16, %v12213_v20  ;;  %7407 = vmatpush.bf16.msrb.mxu3 %v11736_v21 }
 0x60a   :  { %v12469_v28 = vld [vmem:[#allocation2 + $0x11f8] sm:$0xf0]  ;;  %7395 = vmatmul.bf16.vlgmr.msrb.gmra.mxu2 %v17006_v40 }
 0x60b   :  { %v15988_v29 = vld [vmem:[#allocation2 + $0x13dc] sm:$0xf]  ;;  %v12472_v36 = vor.u32 %v15924_v11, %v12469_v28  ;;  %7413 = vmatpush.bf16.msra.mxu0 %v12216_v57  ;;  %v7162_v11 = vpop.f32.mrf.mxu0 }
 0x60c   :  { %v12725_v30 = vld [vmem:[#allocation2 + $0x13f8] sm:$0xf0]  ;;  %7408 = vmatmul.bf16.vlgmr.msrb.gmra.mxu3 %v17000_v34 }
 0x60d   :  { %v16052_v32 = vld [vmem:[#allocation2 + $0x15dc] sm:$0xf]  ;;  %v12728_v41 = vor.u32 %v15988_v29, %v12725_v30  ;;  %7426 = vmatpush.bf16.msra.mxu1 %v12472_v36  ;;  %v7163_v30 = vadd.f32 %v7162_v11, %v17230_v46 }
 0x60e   :  { %v12981_v35 = vld [vmem:[#allocation2 + $0x15f8] sm:$0xf0] }
 0x60f   :  { %v15852_v39 = vld [vmem:[#allocation2 + $0xf9c] sm:$0xf]  ;;  %v12984_v47 = vor.u32 %v16052_v32, %v12981_v35  ;;  %7439 = vmatpush.bf16.msra.mxu2 %v12728_v41  ;;  %v7176_v41 = vadd.f32 %v7175_v31, %v7163_v30 }
 0x610   :  { %v12181_v42 = vld [vmem:[#allocation2 + $0xfb8] sm:$0xf0] }
 0x611   :  { %v15916_v61 = vld [vmem:[#allocation2 + $0x119c] sm:$0xf]  ;;  %v12184_v53 = vor.u32 %v15852_v39, %v12181_v42  ;;  %7452 = vmatpush.bf16.msra.mxu3 %v12984_v47 }
 0x612   :  { %v12437_v43 = vld [vmem:[#allocation2 + $0x11b8] sm:$0xf0] }
 0x613   :  { %v15980_v45 = vld [vmem:[#allocation2 + $0x139c] sm:$0xf]  ;;  %v12440_v44 = vor.u32 %v15916_v61, %v12437_v43  ;;  %7414 = vmatpush.bf16.msra.mxu0 %v12184_v53 }
 0x614   :  { %v12693_v48 = vld [vmem:[#allocation2 + $0x13b8] sm:$0xf0] }
 0x615   :  { %v16044_v49 = vld [vmem:[#allocation2 + $0x159c] sm:$0xf]  ;;  %v12696_v51 = vor.u32 %v15980_v45, %v12693_v48  ;;  %7427 = vmatpush.bf16.msra.mxu1 %v12440_v44  ;;  %v7188_v48 = vpop.f32.mrf.mxu2 }
 0x616   :  { %v12949_v50 = vld [vmem:[#allocation2 + $0x15b8] sm:$0xf0]  ;;  %v7189_v44 = vadd.f32 %v7188_v48, %v7176_v41 }
 0x617   :  { %v15844_v52 = vld [vmem:[#allocation2 + $0xf5c] sm:$0xf]  ;;  %v12952_v25 = vor.u32 %v16044_v49, %v12949_v50  ;;  %7440 = vmatpush.bf16.msra.mxu2 %v12696_v51  ;;  %v7201_v51 = vpop.f32.mrf.mxu3 }
 0x618   :  { %v12149_v55 = vld [vmem:[#allocation2 + $0xf78] sm:$0xf0] }
 0x619   :  { %v15908_v54 = vld [vmem:[#allocation2 + $0x115c] sm:$0xf]  ;;  %v12152_v62 = vor.u32 %v15844_v52, %v12149_v55  ;;  %7453 = vmatpush.bf16.msra.mxu3 %v12952_v25  ;;  %v17237_v25 = vadd.f32 %v7201_v51, %v7189_v44 }
 0x61a   :  { %v12405_v56 = vld [vmem:[#allocation2 + $0x1178] sm:$0xf0] }
 0x61b   :  { %v15972_v8 = vld [vmem:[#allocation2 + $0x135c] sm:$0xf]  ;;  %v12408_v63 = vor.u32 %v15908_v54, %v12405_v56  ;;  %7415 = vmatpush.bf16.msra.mxu0 %v12152_v62  ;;  %v7164_v56 = vpop.f32.mrf.mxu0 }
 0x61c   :  { %v12661_v59 = vld [vmem:[#allocation2 + $0x1378] sm:$0xf0] }
 0x61d   :  { %v16036_v9 = vld [vmem:[#allocation2 + $0x155c] sm:$0xf]  ;;  %v12664_v0 = vor.u32 %v15972_v8, %v12661_v59  ;;  %7428 = vmatpush.bf16.msra.mxu1 %v12408_v63  ;;  %v7177_v63 = vpop.f32.mrf.mxu1 }
 0x61e   :  { %v12917_v60 = vld [vmem:[#allocation2 + $0x1578] sm:$0xf0] }
 0x61f   :  { %v15836_v3 = vld [vmem:[#allocation2 + $0xf1c] sm:$0xf]  ;;  %v12920_v5 = vor.u32 %v16036_v9, %v12917_v60  ;;  %7441 = vmatpush.bf16.msra.mxu2 %v12664_v0 }
 0x620   :  { %v12117_v7 = vld [vmem:[#allocation2 + $0xf38] sm:$0xf0] }
 0x621   :  { %v15900_v40 = vld [vmem:[#allocation2 + $0x111c] sm:$0xf]  ;;  %v12120_v34 = vor.u32 %v15836_v3, %v12117_v7  ;;  %7454 = vmatpush.bf16.msra.mxu3 %v12920_v5 }
 0x622   :  { %v12373_v13 = vld [vmem:[#allocation2 + $0x1138] sm:$0xf0] }
 0x623   :  { %v15964_v14 = vld [vmem:[#allocation2 + $0x131c] sm:$0xf]  ;;  %v12376_v37 = vor.u32 %v15900_v40, %v12373_v13  ;;  %7416 = vmatpush.bf16.msra.mxu0 %v12120_v34 }
 0x624   :  { %v12629_v16 = vld [vmem:[#allocation2 + $0x1338] sm:$0xf0] }
 0x625   :  { %v16028_v20 = vld [vmem:[#allocation2 + $0x151c] sm:$0xf]  ;;  %v12632_v2 = vor.u32 %v15964_v14, %v12629_v16  ;;  %7429 = vmatpush.bf16.msra.mxu1 %v12376_v37 }
 0x626   :  { %v12885_v15 = vld [vmem:[#allocation2 + $0x1538] sm:$0xf0] }
 0x627   :  { %v15828_v24 = vld [vmem:[#allocation2 + $0xedc] sm:$0xf]  ;;  %v12888_v26 = vor.u32 %v16028_v20, %v12885_v15  ;;  %7442 = vmatpush.bf16.msra.mxu2 %v12632_v2 }
 0x628   :  { %v12085_v28 = vld [vmem:[#allocation2 + $0xef8] sm:$0xf0] }
 0x629   :  { %v15892_v29 = vld [vmem:[#allocation2 + $0x10dc] sm:$0xf]  ;;  %v12088_v39 = vor.u32 %v15828_v24, %v12085_v28  ;;  %7455 = vmatpush.bf16.msra.mxu3 %v12888_v26  ;;  %v7190_v24 = vpop.f32.mrf.mxu2  ;;  %v7203_v26 = vpop.f32.mrf.mxu3 }
 0x62a   :  { %v12341_v32 = vld [vmem:[#allocation2 + $0x10f8] sm:$0xf0] }
 0x62b   :  { %v15956_v35 = vld [vmem:[#allocation2 + $0x12dc] sm:$0xf]  ;;  %v12344_v42 = vor.u32 %v15892_v29, %v12341_v32  ;;  %7417 = vmatpush.bf16.msra.mxu0 %v12088_v39 }
 0x62c   :  { %v12597_v21 = vld [vmem:[#allocation2 + $0x12f8] sm:$0xf0] }
 0x62d   :  { %v16020_v57 = vld [vmem:[#allocation2 + $0x14dc] sm:$0xf]  ;;  %v12600_v61 = vor.u32 %v15956_v35, %v12597_v21  ;;  %7430 = vmatpush.bf16.msra.mxu1 %v12344_v42 }
 0x62e   :  { %v12853_v36 = vld [vmem:[#allocation2 + $0x14f8] sm:$0xf0] }
 0x62f   :  { %v15820_v47 = vld [vmem:[#allocation2 + $0xe9c] sm:$0xf]  ;;  %v12856_v46 = vor.u32 %v16020_v57, %v12853_v36  ;;  %7443 = vmatpush.bf16.msra.mxu2 %v12600_v61 }
 0x630   :  { %v12053_v43 = vld [vmem:[#allocation2 + $0xeb8] sm:$0xf0] }
 0x631   :  { %v15884_v45 = vld [vmem:[#allocation2 + $0x109c] sm:$0xf]  ;;  %v12056_v54 = vor.u32 %v15820_v47, %v12053_v43  ;;  %7456 = vmatpush.bf16.msra.mxu3 %v12856_v46 }
 0x632   :  { %v12309_v49 = vld [vmem:[#allocation2 + $0x10b8] sm:$0xf0] }
 0x633   :  { %v15948_v50 = vld [vmem:[#allocation2 + $0x129c] sm:$0xf]  ;;  %v12312_v8 = vor.u32 %v15884_v45, %v12309_v49  ;;  %7418 = vmatpush.bf16.msra.mxu0 %v12056_v54 }
 0x634   :  { %v12565_v53 = vld [vmem:[#allocation2 + $0x12b8] sm:$0xf0] }
 0x635   :  { %v16012_v52 = vld [vmem:[#allocation2 + $0x149c] sm:$0xf]  ;;  %v12568_v59 = vor.u32 %v15948_v50, %v12565_v53  ;;  %7431 = vmatpush.bf16.msra.mxu1 %v12312_v8 }
 0x636   :  { %v12821_v55 = vld [vmem:[#allocation2 + $0x14b8] sm:$0xf0] }
 0x637   :  { %v15812_v9 = vld [vmem:[#allocation2 + $0xe5c] sm:$0xf]  ;;  %v12824_v0 = vor.u32 %v16012_v52, %v12821_v55  ;;  %7444 = vmatpush.bf16.msra.mxu2 %v12568_v59 }
 0x638   :  { %v12021_v60 = vld [vmem:[#allocation2 + $0xe78] sm:$0xf0] }
 0x639   :  { %v15876_v62 = vld [vmem:[#allocation2 + $0x105c] sm:$0xf]  ;;  %v12024_v14 = vor.u32 %v15812_v9, %v12021_v60  ;;  %7457 = vmatpush.bf16.msra.mxu3 %v12824_v0 }
 0x63a   :  { %v12277_v3 = vld [vmem:[#allocation2 + $0x1078] sm:$0xf0] }
 0x63b   :  { %v15940_v7 = vld [vmem:[#allocation2 + $0x125c] sm:$0xf]  ;;  %v12280_v15 = vor.u32 %v15876_v62, %v12277_v3  ;;  %7419 = vmatpush.bf16.msra.mxu0 %v12024_v14 }
 0x63c   :  { %v12533_v40 = vld [vmem:[#allocation2 + $0x1278] sm:$0xf0] }
 0x63d   :  { %v16004_v5 = vld [vmem:[#allocation2 + $0x145c] sm:$0xf]  ;;  %v12536_v34 = vor.u32 %v15940_v7, %v12533_v40  ;;  %7432 = vmatpush.bf16.msra.mxu1 %v12280_v15 }
 0x63e   :  { %v12789_v13 = vld [vmem:[#allocation2 + $0x1478] sm:$0xf0] }
 0x63f   :  { %v15804_v16 = vld [vmem:[#allocation2 + $0xe1c] sm:$0xf]  ;;  %v12792_v28 = vor.u32 %v16004_v5, %v12789_v13  ;;  %7445 = vmatpush.bf16.msra.mxu2 %v12536_v34 }
 0x640   :  { %v11989_v20 = vld [vmem:[#allocation2 + $0xe38] sm:$0xf0] }
 0x641   :  { %v15868_v11 = vld [vmem:[#allocation2 + $0x101c] sm:$0xf]  ;;  %v11992_v57 = vor.u32 %v15804_v16, %v11989_v20  ;;  %7458 = vmatpush.bf16.msra.mxu3 %v12792_v28  ;;  %v17243_v28 = vpop.f32.mrf.mxu0 }
 0x642   :  { %v12245_v37 = vld [vmem:[#allocation2 + $0x1038] sm:$0xf0] }
 0x643   :  { %v15932_v2 = vld [vmem:[#allocation2 + $0x121c] sm:$0xf]  ;;  %v12248_v42 = vor.u32 %v15868_v11, %v12245_v37  ;;  %7420 = vmatpush.bf16.msra.mxu0 %v11992_v57 }
 0x644   :  { %v12501_v29 = vld [vmem:[#allocation2 + $0x1238] sm:$0xf0] }
 0x645   :  { %v15996_v30 = vld [vmem:[#allocation2 + $0x141c] sm:$0xf]  ;;  %v12504_v61 = vor.u32 %v15932_v2, %v12501_v29  ;;  %7433 = vmatpush.bf16.msra.mxu1 %v12248_v42 }
 0x646   :  { %v12757_v31 = vld [vmem:[#allocation2 + $0x1438] sm:$0xf0]  ;;  %7421 = vmatmul.bf16.vlgmr.msra.gmra.mxu0 %v17004_v38 }
 0x647   :  { %v16116_v32 = vld [vmem:[#allocation2 + $0x17dc] sm:$0xf]  ;;  %v12760_v45 = vor.u32 %v15996_v30, %v12757_v31  ;;  %7446 = vmatpush.bf16.msra.mxu2 %v12504_v61  ;;  %v17245_v30 = vpop.f32.mrf.mxu1 }
 0x648   :  { %v13237_v35 = vld [vmem:[#allocation2 + $0x17f8] sm:$0xf0]  ;;  %7434 = vmatmul.bf16.vlgmr.msra.gmra.mxu1 %v17024_v18 }
 0x649   :  { %v16180_v21 = vld [vmem:[#allocation2 + $0x19dc] sm:$0xf]  ;;  %v13240_v48 = vor.u32 %v16116_v32, %v13237_v35  ;;  %7459 = vmatpush.bf16.msra.mxu3 %v12760_v45 }
 0x64a   :  { %v13493_v36 = vld [vmem:[#allocation2 + $0x19f8] sm:$0xf0]  ;;  %7447 = vmatmul.bf16.vlgmr.msra.gmra.mxu2 %v17028_v23 }
 0x64b   :  { %v16244_v41 = vld [vmem:[#allocation2 + $0x1bdc] sm:$0xf]  ;;  %v13496_v46 = vor.u32 %v16180_v21, %v13493_v36  ;;  %7465 = vmatpush.bf16.msrb.mxu0 %v13240_v48 }
 0x64c   :  { %v13749_v39 = vld [vmem:[#allocation2 + $0x1bf8] sm:$0xf0]  ;;  %7460 = vmatmul.bf16.vlgmr.msra.gmra.mxu3 %v17026_v22 }
 0x64d   :  { %v16308_v47 = vld [vmem:[#allocation2 + $0x1ddc] sm:$0xf]  ;;  %v13752_v49 = vor.u32 %v16244_v41, %v13749_v39  ;;  %7478 = vmatpush.bf16.msrb.mxu1 %v13496_v46 }
 0x64e   :  { %v14005_v43 = vld [vmem:[#allocation2 + $0x1df8] sm:$0xf0] }
 0x64f   :  { %v16108_v50 = vld [vmem:[#allocation2 + $0x179c] sm:$0xf]  ;;  %v14008_v51 = vor.u32 %v16308_v47, %v14005_v43  ;;  %7491 = vmatpush.bf16.msrb.mxu2 %v13752_v49 }
 0x650   :  { %v13205_v53 = vld [vmem:[#allocation2 + $0x17b8] sm:$0xf0] }
 0x651   :  { %v16172_v44 = vld [vmem:[#allocation2 + $0x199c] sm:$0xf]  ;;  %v13208_v59 = vor.u32 %v16108_v50, %v13205_v53  ;;  %7504 = vmatpush.bf16.msrb.mxu3 %v14008_v51  ;;  %v17247_v53 = vpop.f32.mrf.mxu2 }
 0x652   :  { %v13461_v52 = vld [vmem:[#allocation2 + $0x19b8] sm:$0xf0] }
 0x653   :  { %v16236_v55 = vld [vmem:[#allocation2 + $0x1b9c] sm:$0xf]  ;;  %v13464_v9 = vor.u32 %v16172_v44, %v13461_v52  ;;  %7466 = vmatpush.bf16.msrb.mxu0 %v13208_v59 }
 0x654   :  { %v13717_v54 = vld [vmem:[#allocation2 + $0x1bb8] sm:$0xf0] }
 0x655   :  { %v16300_v56 = vld [vmem:[#allocation2 + $0x1d9c] sm:$0xf]  ;;  %v13720_v60 = vor.u32 %v16236_v55, %v13717_v54  ;;  %7479 = vmatpush.bf16.msrb.mxu1 %v13464_v9  ;;  %v17249_v55 = vpop.f32.mrf.mxu3  ;;  %v7229_v9 = vpop.f32.mrf.mxu1 }
 0x656   :  { %v13973_v8 = vld [vmem:[#allocation2 + $0x1db8] sm:$0xf0]  ;;  %v16435_v9 = vld [vmem:[#allocation6 + $0x3cc] sm:$0xf0] }
 0x657   :  { %v16100_v62 = vld [vmem:[#allocation2 + $0x175c] sm:$0xf]  ;;  %v13976_v3 = vor.u32 %v16300_v56, %v13973_v8  ;;  %7492 = vmatpush.bf16.msrb.mxu2 %v13720_v60  ;;  %v7216_v8 = vpop.f32.mrf.mxu0 }
 0x658   :  { %v13173_v63 = vld [vmem:[#allocation2 + $0x1778] sm:$0xf0]  ;;  %v16403_v8 = vld [vmem:[#allocation6 + $0x2cc] sm:$0xf0] }
 0x659   :  { %v16164_v0 = vld [vmem:[#allocation2 + $0x195c] sm:$0xf]  ;;  %v13176_v16 = vor.u32 %v16100_v62, %v13173_v63  ;;  %7505 = vmatpush.bf16.msrb.mxu3 %v13976_v3 }
 0x65a   :  { %v13429_v7 = vld [vmem:[#allocation2 + $0x1978] sm:$0xf0] }
 0x65b   :  { %v16228_v40 = vld [vmem:[#allocation2 + $0x1b5c] sm:$0xf]  ;;  %v13432_v20 = vor.u32 %v16164_v0, %v13429_v7  ;;  %7467 = vmatpush.bf16.msrb.mxu0 %v13176_v16 }
 0x65c   :  { %v13685_v5 = vld [vmem:[#allocation2 + $0x1b78] sm:$0xf0] }
 0x65d   :  { %v16292_v13 = vld [vmem:[#allocation2 + $0x1d5c] sm:$0xf]  ;;  %v13688_v15 = vor.u32 %v16228_v40, %v13685_v5  ;;  %7480 = vmatpush.bf16.msrb.mxu1 %v13432_v20 }
 0x65e   :  { %v13941_v14 = vld [vmem:[#allocation2 + $0x1d78] sm:$0xf0] }
 0x65f   :  { %v16092_v34 = vld [vmem:[#allocation2 + $0x171c] sm:$0xf]  ;;  %v13944_v37 = vor.u32 %v16292_v13, %v13941_v14  ;;  %7493 = vmatpush.bf16.msrb.mxu2 %v13688_v15 }
 0x660   :  { %v13141_v38 = vld [vmem:[#allocation2 + $0x1738] sm:$0xf0] }
 0x661   :  { %v16156_v11 = vld [vmem:[#allocation2 + $0x191c] sm:$0xf]  ;;  %v13144_v22 = vor.u32 %v16092_v34, %v13141_v38  ;;  %7506 = vmatpush.bf16.msrb.mxu3 %v13944_v37 }
 0x662   :  { %v13397_v2 = vld [vmem:[#allocation2 + $0x1938] sm:$0xf0] }
 0x663   :  { %v16220_v24 = vld [vmem:[#allocation2 + $0x1b1c] sm:$0xf]  ;;  %v13400_v31 = vor.u32 %v16156_v11, %v13397_v2  ;;  %7468 = vmatpush.bf16.msrb.mxu0 %v13144_v22 }
 0x664   :  { %v13653_v23 = vld [vmem:[#allocation2 + $0x1b38] sm:$0xf0] }
 0x665   :  { %v16284_v18 = vld [vmem:[#allocation2 + $0x1d1c] sm:$0xf]  ;;  %v13656_v26 = vor.u32 %v16220_v24, %v13653_v23  ;;  %7481 = vmatpush.bf16.msrb.mxu1 %v13400_v31  ;;  %v7242_v31 = vpop.f32.mrf.mxu2 }
 0x666   :  { %v13909_v29 = vld [vmem:[#allocation2 + $0x1d38] sm:$0xf0] }
 0x667   :  { %v16084_v32 = vld [vmem:[#allocation2 + $0x16dc] sm:$0xf]  ;;  %v13912_v57 = vor.u32 %v16284_v18, %v13909_v29  ;;  %7494 = vmatpush.bf16.msrb.mxu2 %v13656_v26  ;;  %v14123_v26 = vld [vmem:[#allocation6 + $0xe0] sm:$0xf] }
 0x668   :  { %v13109_v35 = vld [vmem:[#allocation2 + $0x16f8] sm:$0xf0] }
 0x669   :  { %v16148_v21 = vld [vmem:[#allocation2 + $0x18dc] sm:$0xf]  ;;  %v13112_v47 = vor.u32 %v16084_v32, %v13109_v35  ;;  %7507 = vmatpush.bf16.msrb.mxu3 %v13912_v57  ;;  %v16343_v32 = vld [vmem:[#allocation6 + $0xec] sm:$0xf0]  ;;  %v14251_v35 = vld [vmem:[#allocation6 + $0x1e0] sm:$0xf] }
 0x66a   :  { %v13365_v36 = vld [vmem:[#allocation2 + $0x18f8] sm:$0xf0] }
 0x66b   :  { %v16212_v41 = vld [vmem:[#allocation2 + $0x1adc] sm:$0xf]  ;;  %v13368_v43 = vor.u32 %v16148_v21, %v13365_v36  ;;  %7469 = vmatpush.bf16.msrb.mxu0 %v13112_v47  ;;  %v7255_v21 = vpop.f32.mrf.mxu3  ;;  %v16375_v36 = vld [vmem:[#allocation6 + $0x1ec] sm:$0xf0]  ;;  %v14507_v47 = vld [vmem:[#allocation6 + $0x3e0] sm:$0xf] }
 0x66c   :  { %v13621_v39 = vld [vmem:[#allocation2 + $0x1af8] sm:$0xf0]  ;;  %v14187_v21 = vld [vmem:[#allocation6 + $0x160] sm:$0xf] }
 0x66d   :  { %v16276_v42 = vld [vmem:[#allocation2 + $0x1cdc] sm:$0xf]  ;;  %v13624_v45 = vor.u32 %v16212_v41, %v13621_v39  ;;  %7482 = vmatpush.bf16.msrb.mxu1 %v13368_v43  ;;  %v14379_v41 = vld [vmem:[#allocation6 + $0x2e0] sm:$0xf]  ;;  %v16407_v39 = vld [vmem:[#allocation6 + $0x2ec] sm:$0xf0] }
 0x66e   :  { %v13877_v61 = vld [vmem:[#allocation2 + $0x1cf8] sm:$0xf0]  ;;  %v16439_v43 = vld [vmem:[#allocation6 + $0x3ec] sm:$0xf0] }
 0x66f   :  { %v16076_v48 = vld [vmem:[#allocation2 + $0x169c] sm:$0xf]  ;;  %v13880_v50 = vor.u32 %v16276_v42, %v13877_v61  ;;  %7495 = vmatpush.bf16.msrb.mxu2 %v13624_v45 }
 0x670   :  { %v13077_v46 = vld [vmem:[#allocation2 + $0x16b8] sm:$0xf0] }
 0x671   :  { %v16140_v49 = vld [vmem:[#allocation2 + $0x189c] sm:$0xf]  ;;  %v13080_v59 = vor.u32 %v16076_v48, %v13077_v46  ;;  %7508 = vmatpush.bf16.msrb.mxu3 %v13880_v50  ;;  %v14124_v48 = vor.u32 %v16343_v32, %v14123_v26  ;;  %v14252_v46 = vor.u32 %v16375_v36, %v14251_v35  ;;  %v14107_v50 = vld [vmem:[#allocation6 + $0xc0] sm:$0xf]  ;;  %v16327_v35 = vld [vmem:[#allocation6 + $0x6c] sm:$0xf0] }
 0x672   :  { %v13333_v44 = vld [vmem:[#allocation2 + $0x18b8] sm:$0xf0]  ;;  %v14059_v32 = vld [vmem:[#allocation6 + $0x60] sm:$0xf]  ;;  %v16359_v36 = vld [vmem:[#allocation6 + $0x16c] sm:$0xf0] }
 0x673   :  { %v16204_v51 = vld [vmem:[#allocation2 + $0x1a9c] sm:$0xf]  ;;  %v13336_v60 = vor.u32 %v16140_v49, %v13333_v44  ;;  %7470 = vmatpush.bf16.msrb.mxu0 %v13080_v59  ;;  %v14380_v49 = vor.u32 %v16407_v39, %v14379_v41  ;;  %v16339_v44 = vld [vmem:[#allocation6 + $0xcc] sm:$0xf0]  ;;  %v14491_v59 = vld [vmem:[#allocation6 + $0x3c0] sm:$0xf] }
 0x674   :  { %v13589_v52 = vld [vmem:[#allocation2 + $0x1ab8] sm:$0xf0]  ;;  %v14315_v41 = vld [vmem:[#allocation6 + $0x260] sm:$0xf]  ;;  %v16391_v39 = vld [vmem:[#allocation6 + $0x26c] sm:$0xf0] }
 0x675   :  { %v16268_v54 = vld [vmem:[#allocation2 + $0x1c9c] sm:$0xf]  ;;  %v13592_v62 = vor.u32 %v16204_v51, %v13589_v52  ;;  %7483 = vmatpush.bf16.msrb.mxu1 %v13336_v60  ;;  %v14235_v51 = vld [vmem:[#allocation6 + $0x1c0] sm:$0xf]  ;;  %v14508_v52 = vor.u32 %v16439_v43, %v14507_v47  ;;  %v14108_v60 = vor.u32 %v16339_v44, %v14107_v50  ;;  %v14060_v47 = vor.u32 %v16327_v35, %v14059_v32  ;;  %v17259_v44 = vpop.f32.mrf.mxu2  ;;  %v16471_v32 = vld [vmem:[#allocation6 + $0x4ec] sm:$0xf0] }
 0x676   :  { %v13845_v56 = vld [vmem:[#allocation2 + $0x1cb8] sm:$0xf0]  ;;  %v14188_v43 = vor.u32 %v16359_v36, %v14187_v21  ;;  %v14763_v35 = vld [vmem:[#allocation6 + $0x5e0] sm:$0xf]  ;;  %v16503_v36 = vld [vmem:[#allocation6 + $0x5ec] sm:$0xf0] }
 0x677   :  { %v16068_v63 = vld [vmem:[#allocation2 + $0x165c] sm:$0xf]  ;;  %v13848_v7 = vor.u32 %v16268_v54, %v13845_v56  ;;  %7496 = vmatpush.bf16.msrb.mxu2 %v13592_v62  ;;  %v16371_v54 = vld [vmem:[#allocation6 + $0x1cc] sm:$0xf0]  ;;  %v14363_v56 = vld [vmem:[#allocation6 + $0x2c0] sm:$0xf] }
 0x678   :  { %v13045_v0 = vld [vmem:[#allocation2 + $0x1678] sm:$0xf0]  ;;  %v14236_v62 = vor.u32 %v16371_v54, %v14235_v51  ;;  %v16355_v51 = vld [vmem:[#allocation6 + $0x14c] sm:$0xf0] }
 0x679   :  { %v16132_v3 = vld [vmem:[#allocation2 + $0x185c] sm:$0xf]  ;;  %v13048_v20 = vor.u32 %v16068_v63, %v13045_v0  ;;  %7509 = vmatpush.bf16.msrb.mxu3 %v13848_v7  ;;  %v14364_v63 = vor.u32 %v16403_v8, %v14363_v56  ;;  %v14091_v0 = vld [vmem:[#allocation6 + $0xa0] sm:$0xf]  ;;  %v16387_v54 = vld [vmem:[#allocation6 + $0x24c] sm:$0xf0]  ;;  %v17261_v56 = vpop.f32.mrf.mxu3 }
 0x67a   :  { %v13301_v40 = vld [vmem:[#allocation2 + $0x1878] sm:$0xf0]  ;;  %v14219_v7 = vld [vmem:[#allocation6 + $0x1a0] sm:$0xf] }
 0x67b   :  { %v16196_v5 = vld [vmem:[#allocation2 + $0x1a5c] sm:$0xf]  ;;  %v13304_v38 = vor.u32 %v16132_v3, %v13301_v40  ;;  %7471 = vmatpush.bf16.msrb.mxu0 %v13048_v20  ;;  %v16335_v3 = vld [vmem:[#allocation6 + $0xac] sm:$0xf0]  ;;  %v14492_v40 = vor.u32 %v16435_v9, %v14491_v59  ;;  %v14427_v8 = vld [vmem:[#allocation6 + $0x340] sm:$0xf] }
 0x67c   :  { %v13557_v13 = vld [vmem:[#allocation2 + $0x1a78] sm:$0xf0]  ;;  %v16431_v20 = vld [vmem:[#allocation6 + $0x3ac] sm:$0xf0] }
 0x67d   :  { %v16260_v14 = vld [vmem:[#allocation2 + $0x1c5c] sm:$0xf]  ;;  %v13560_v11 = vor.u32 %v16196_v5, %v13557_v13  ;;  %7484 = vmatpush.bf16.msrb.mxu1 %v13304_v38  ;;  %v16367_v5 = vld [vmem:[#allocation6 + $0x1ac] sm:$0xf0]  ;;  %v14347_v13 = vld [vmem:[#allocation6 + $0x2a0] sm:$0xf] }
 0x67e   :  { %v13813_v16 = vld [vmem:[#allocation2 + $0x1c78] sm:$0xf0]  ;;  %v16419_v59 = vld [vmem:[#allocation6 + $0x34c] sm:$0xf0] }
 0x67f   :  { %v16060_v15 = vld [vmem:[#allocation2 + $0x161c] sm:$0xf]  ;;  %v13816_v23 = vor.u32 %v16260_v14, %v13813_v16  ;;  %7497 = vmatpush.bf16.msrb.mxu2 %v13560_v11  ;;  %v16399_v14 = vld [vmem:[#allocation6 + $0x2ac] sm:$0xf0]  ;;  %v14475_v16 = vld [vmem:[#allocation6 + $0x3a0] sm:$0xf] }
 0x680   :  { %v13013_v34 = vld [vmem:[#allocation2 + $0x1638] sm:$0xf0]  ;;  %v14348_v38 = vor.u32 %v16399_v14, %v14347_v13  ;;  %v14075_v11 = vld [vmem:[#allocation6 + $0x80] sm:$0xf]  ;;  %v16351_v13 = vld [vmem:[#allocation6 + $0x12c] sm:$0xf0] }
 0x681   :  { %v16124_v37 = vld [vmem:[#allocation2 + $0x181c] sm:$0xf]  ;;  %v13016_v57 = vor.u32 %v16060_v15, %v13013_v34  ;;  %7510 = vmatpush.bf16.msrb.mxu3 %v13816_v23  ;;  %v14092_v15 = vor.u32 %v16335_v3, %v14091_v0  ;;  %v14220_v34 = vor.u32 %v16367_v5, %v14219_v7  ;;  %v14331_v23 = vld [vmem:[#allocation6 + $0x280] sm:$0xf]  ;;  %v16319_v7 = vld [vmem:[#allocation6 + $0x2c] sm:$0xf0]  ;;  %v14428_v5 = vor.u32 %v16419_v59, %v14427_v8  ;;  %v7307_v21 = vpop.f32.mrf.mxu3 }
 0x682   :  { %v13269_v2 = vld [vmem:[#allocation2 + $0x1838] sm:$0xf0]  ;;  %v14027_v3 = vld [vmem:[#allocation6 + $0x20] sm:$0xf] }
 0x683   :  { %v16188_v24 = vld [vmem:[#allocation2 + $0x1a1c] sm:$0xf]  ;;  %v13272_v42 = vor.u32 %v16124_v37, %v13269_v2  ;;  %7472 = vmatpush.bf16.msrb.mxu0 %v13016_v57  ;;  %v14203_v37 = vld [vmem:[#allocation6 + $0x180] sm:$0xf]  ;;  %v14476_v2 = vor.u32 %v16431_v20, %v14475_v16  ;;  %v16383_v16 = vld [vmem:[#allocation6 + $0x22c] sm:$0xf0] }
 0x684   :  { %v13525_v18 = vld [vmem:[#allocation2 + $0x1a38] sm:$0xf0]  ;;  %v14283_v14 = vld [vmem:[#allocation6 + $0x220] sm:$0xf] }
 0x685   :  { %v16252_v29 = vld [vmem:[#allocation2 + $0x1c1c] sm:$0xf]  ;;  %v13528_v61 = vor.u32 %v16188_v24, %v13525_v18  ;;  %7485 = vmatpush.bf16.msrb.mxu1 %v13272_v42  ;;  %v16363_v24 = vld [vmem:[#allocation6 + $0x18c] sm:$0xf0]  ;;  %v17255_v18 = vpop.f32.mrf.mxu0  ;;  %v14443_v42 = vld [vmem:[#allocation6 + $0x360] sm:$0xf] }
 0x686   :  { %v13781_v22 = vld [vmem:[#allocation2 + $0x1c38] sm:$0xf0]  ;;  %7473 = vmatmul.bf16.vlgmr.msrb.gmra.mxu0 %v17030_v27  ;;  %v16331_v27 = vld [vmem:[#allocation6 + $0x8c] sm:$0xf0]  ;;  %v14204_v31 = vor.u32 %v16363_v24, %v14203_v37  ;;  %v14411_v20 = vld [vmem:[#allocation6 + $0x320] sm:$0xf]  ;;  %v14284_v37 = vor.u32 %v16383_v16, %v14283_v14 }
 0x687   :  { %v13784_v45 = vor.u32 %v16252_v29, %v13781_v22  ;;  %7498 = vmatpush.bf16.msrb.mxu2 %v13528_v61  ;;  %9079 = vmatpush.bf16.msra.mxu0 %v14124_v48  ;;  %v16427_v29 = vld [vmem:[#allocation6 + $0x38c] sm:$0xf0]  ;;  %v17257_v22 = vpop.f32.mrf.mxu1  ;;  %v14043_v48 = vld [vmem:[#allocation6 + $0x40] sm:$0xf] }
 0x688   :  { %7486 = vmatmul.bf16.vlgmr.msrb.gmra.mxu1 %v17045_v12  ;;  %v16395_v12 = vld [vmem:[#allocation6 + $0x28c] sm:$0xf0]  ;;  %v14747_v8 = vld [vmem:[#allocation6 + $0x5c0] sm:$0xf] }
 0x689   :  { %7511 = vmatpush.bf16.msrb.mxu3 %v13784_v45  ;;  %9092 = vmatpush.bf16.msra.mxu1 %v14252_v46  ;;  %v14332_v26 = vor.u32 %v16395_v12, %v14331_v23  ;;  %v16423_v61 = vld [vmem:[#allocation6 + $0x36c] sm:$0xf0]  ;;  %v14316_v45 = vor.u32 %v16391_v39, %v14315_v41  ;;  %v14267_v23 = vld [vmem:[#allocation6 + $0x200] sm:$0xf] }
 0x68a   :  { %7499 = vmatmul.bf16.vlgmr.msrb.gmra.mxu2 %v17049_v19  ;;  %v14459_v19 = vld [vmem:[#allocation6 + $0x380] sm:$0xf]  ;;  %v16323_v46 = vld [vmem:[#allocation6 + $0x4c] sm:$0xf0]  ;;  %v14444_v50 = vor.u32 %v16423_v61, %v14443_v42  ;;  %v7517_v42 = vmax.f32 %v17080_v1, 0.0  ;;  %v7518_v61 = vmax.f32 %v17113_v58, 0.0  ;;  %v7215_v1 = vadd.f32 %v17243_v28, %v17237_v25 }
 0x68b   :  { %9105 = vmatpush.bf16.msra.mxu2 %v14380_v49  ;;  %9080 = vmatpush.bf16.msra.mxu0 %v14108_v60  ;;  %v14460_v57 = vor.u32 %v16427_v29, %v14459_v19  ;;  %v14171_v49 = vld [vmem:[#allocation6 + $0x140] sm:$0xf]  ;;  %v14044_v60 = vor.u32 %v16323_v46, %v14043_v48  ;;  %v16347_v24 = vld [vmem:[#allocation6 + $0x10c] sm:$0xf0]  ;;  %v7520_v48 = vmax.f32 %v17167_v4, 0.0 }
 0x68c   :  { %7512 = vmatmul.bf16.vlgmr.msrb.gmra.mxu3 %v17047_v17  ;;  %v14076_v17 = vor.u32 %v16331_v27, %v14075_v11  ;;  %v16315_v11 = vld [vmem:[#allocation6 + $0xc] sm:$0xf0]  ;;  %v14395_v29 = vld [vmem:[#allocation6 + $0x300] sm:$0xf] }
 0x68d   :  { %9118 = vmatpush.bf16.msra.mxu3 %v14508_v52  ;;  %9093 = vmatpush.bf16.msra.mxu1 %v14236_v62  ;;  %v14299_v52 = vld [vmem:[#allocation6 + $0x240] sm:$0xf]  ;;  %v7268_v9 = vpop.f32.mrf.mxu0  ;;  %v16379_v19 = vld [vmem:[#allocation6 + $0x20c] sm:$0xf0] }
 0x68e   :  { %v14300_v0 = vor.u32 %v16387_v54, %v14299_v52  ;;  %v14891_v41 = vld [vmem:[#allocation6 + $0x6e0] sm:$0xf]  ;;  %v16535_v39 = vld [vmem:[#allocation6 + $0x6ec] sm:$0xf0] }
 0x68f   :  { %9106 = vmatpush.bf16.msra.mxu2 %v14364_v63  ;;  %9081 = vmatpush.bf16.msra.mxu0 %v14092_v15  ;;  %v7281_v62 = vpop.f32.mrf.mxu1  ;;  %v14172_v63 = vor.u32 %v16355_v51, %v14171_v49  ;;  %v16415_v15 = vld [vmem:[#allocation6 + $0x32c] sm:$0xf0]  ;;  %v14892_v51 = vor.u32 %v16535_v39, %v14891_v41  ;;  %v14619_v52 = vld [vmem:[#allocation6 + $0x4c0] sm:$0xf] }
 0x690   :  { %v14412_v12 = vor.u32 %v16415_v15, %v14411_v20  ;;  %v16467_v54 = vld [vmem:[#allocation6 + $0x4cc] sm:$0xf0]  ;;  %v14875_v59 = vld [vmem:[#allocation6 + $0x6c0] sm:$0xf] }
 0x691   :  { %9119 = vmatpush.bf16.msra.mxu3 %v14492_v40  ;;  %9094 = vmatpush.bf16.msra.mxu1 %v14220_v34  ;;  %v14155_v40 = vld [vmem:[#allocation6 + $0x120] sm:$0xf]  ;;  %v14028_v34 = vor.u32 %v16319_v7, %v14027_v3  ;;  %v16499_v58 = vld [vmem:[#allocation6 + $0x5cc] sm:$0xf0]  ;;  %v14620_v62 = vor.u32 %v16467_v54, %v14619_v52 }
 0x692   :  { %v14156_v27 = vor.u32 %v16351_v13, %v14155_v40  ;;  %v16531_v9 = vld [vmem:[#allocation6 + $0x6cc] sm:$0xf0]  ;;  %v14748_v25 = vor.u32 %v16499_v58, %v14747_v8  ;;  %v14731_v7 = vld [vmem:[#allocation6 + $0x5a0] sm:$0xf]  ;;  %v7228_v40 = vadd.f32 %v17245_v30, %v7215_v1 }
 0x693   :  { %9107 = vmatpush.bf16.msra.mxu2 %v14348_v38  ;;  %9082 = vmatpush.bf16.msra.mxu0 %v14076_v17  ;;  %v14011_v38 = vld [vmem:[#allocation6] sm:$0xf]  ;;  %v16411_v17 = vld [vmem:[#allocation6 + $0x30c] sm:$0xf0]  ;;  %v14876_v28 = vor.u32 %v16531_v9, %v14875_v59 }
 0x694   :  { %v14396_v46 = vor.u32 %v16411_v17, %v14395_v29  ;;  %v16463_v3 = vld [vmem:[#allocation6 + $0x4ac] sm:$0xf0]  ;;  %v14859_v13 = vld [vmem:[#allocation6 + $0x6a0] sm:$0xf]  ;;  %v7241_v16 = vadd.f32 %v17247_v53, %v7228_v40 }
 0x695   :  { %9120 = vmatpush.bf16.msra.mxu3 %v14476_v2  ;;  %9095 = vmatpush.bf16.msra.mxu1 %v14204_v31  ;;  %v14139_v2 = vld [vmem:[#allocation6 + $0x100] sm:$0xf]  ;;  %v7294_v31 = vpop.f32.mrf.mxu2  ;;  %v16527_v14 = vld [vmem:[#allocation6 + $0x6ac] sm:$0xf0] }
 0x696   :  { %v14587_v30 = vld [vmem:[#allocation6 + $0x480] sm:$0xf]  ;;  %v16519_v41 = vld [vmem:[#allocation6 + $0x66c] sm:$0xf0] }
 0x697   :  { %9108 = vmatpush.bf16.msra.mxu2 %v14332_v26  ;;  %9083 = vmatpush.bf16.msra.mxu0 %v14060_v47  ;;  %v14635_v26 = vld [vmem:[#allocation6 + $0x4e0] sm:$0xf]  ;;  %v14140_v47 = vor.u32 %v16347_v24, %v14139_v2  ;;  %v16523_v2 = vld [vmem:[#allocation6 + $0x68c] sm:$0xf0]  ;;  %v17283_v24 = vpop.f32.mrf.mxu0 }
 0x698   :  { %v14636_v49 = vor.u32 %v16471_v32, %v14635_v26  ;;  %v14571_v31 = vld [vmem:[#allocation6 + $0x460] sm:$0xf]  ;;  %v16455_v26 = vld [vmem:[#allocation6 + $0x46c] sm:$0xf0] }
 0x699   :  { %9121 = vmatpush.bf16.msra.mxu3 %v14460_v57  ;;  %9096 = vmatpush.bf16.msra.mxu1 %v14188_v43  ;;  %v14012_v57 = vor.u32 %v16315_v11, %v14011_v38  ;;  %v14268_v43 = vor.u32 %v16379_v19, %v14267_v23  ;;  %v16459_v38 = vld [vmem:[#allocation6 + $0x48c] sm:$0xf0]  ;;  %v14715_v11 = vld [vmem:[#allocation6 + $0x580] sm:$0xf]  ;;  %v16670_v23 = vld [vmem:[#allocation4] sm:$0xff]  ;;  %v7254_v19 = vadd.f32 %v17249_v55, %v7241_v16 }
 0x69a   :  { %v14588_v53 = vor.u32 %v16459_v38, %v14587_v30  ;;  %v14699_v32 = vld [vmem:[#allocation6 + $0x560] sm:$0xf]  ;;  %v16507_v30 = vld [vmem:[#allocation6 + $0x60c] sm:$0xf0] }
 0x69b   :  { %9109 = vmatpush.bf16.msra.mxu2 %v14316_v45  ;;  %9084 = vmatpush.bf16.msra.mxu0 %v14044_v60  ;;  %v7519_v45 = vmax.f32 %v17144_v6, 0.0  ;;  %v17269_v60 = vpack.c.bf16 %v7517_v42, %v7517_v42  ;;  %v17271_v6 = vpack.c.bf16 %v7518_v61, %v7518_v61  ;;  %v7267_v21 = vadd.f32 %v17255_v18, %v7254_v19  ;;  %v7357_v18 = vpop.f32.mrf.mxu3  ;;  %v14539_v9 = vld [vmem:[#allocation6 + $0x420] sm:$0xf]  ;;  %v14253_v19 = vld [vmem:[#allocation6 + $0x1f0] sm:$0xf0] }
 0x69c   :  { %v14572_v42 = vor.u32 %v16455_v26, %v14571_v31  ;;  %v14381_v31 = vld [vmem:[#allocation6 + $0x2f0] sm:$0xf0]  ;;  %v7521_v26 = vmax.f32 %v17194_v33, 0.0 }
 0x69d   :  { %9122 = vmatpush.bf16.msra.mxu3 %v14444_v50  ;;  %9097 = vmatpush.bf16.msra.mxu1 %v14172_v63  ;;  %v14764_v50 = vor.u32 %v16503_v36, %v14763_v35  ;;  %v17273_v4 = vpack.c.bf16 %v7519_v45, %v7519_v45  ;;  %v17275_v63 = vpack.c.bf16 %v7520_v48, %v7520_v48  ;;  %v7331_v35 = vpop.f32.mrf.mxu1  ;;  %v14827_v36 = vld [vmem:[#allocation6 + $0x660] sm:$0xf]  ;;  %v14365_v33 = vld [vmem:[#allocation6 + $0x2d0] sm:$0xf0] }
 0x69e   :  { %v14828_v61 = vor.u32 %v16519_v41, %v14827_v36  ;;  %v14683_v45 = vld [vmem:[#allocation6 + $0x540] sm:$0xf]  ;;  %v7280_v48 = vadd.f32 %v17257_v22, %v7267_v21  ;;  %v16337_v21 = vld [vmem:[#allocation6 + $0xc4] sm:$0xf] }
 0x69f   :  { %9110 = vmatpush.bf16.msra.mxu2 %v14300_v0  ;;  %9085 = vmatpush.bf16.msra.mxu0 %v14028_v34  ;;  %v14603_v0 = vld [vmem:[#allocation6 + $0x4a0] sm:$0xf]  ;;  %v14860_v34 = vor.u32 %v16527_v14, %v14859_v13  ;;  %v7320_v54 = vpop.f32.mrf.mxu0  ;;  %v16443_v13 = vld [vmem:[#allocation6 + $0x40c] sm:$0xf0] }
 0x6a0   :  { %v14604_v20 = vor.u32 %v16463_v3, %v14603_v0  ;;  %v7293_v8 = vadd.f32 %v17259_v44, %v7280_v48  ;;  %v16479_v0 = vld [vmem:[#allocation6 + $0x52c] sm:$0xf0]  ;;  %v14795_v3 = vld [vmem:[#allocation6 + $0x620] sm:$0xf]  ;;  %v17295_v48 = vpack.c.bf16 %v7521_v26, %v7521_v26  ;;  %v16365_v54 = vld [vmem:[#allocation6 + $0x1a4] sm:$0xf] }
 0x6a1   :  { %9123 = vmatpush.bf16.msra.mxu3 %v14428_v5  ;;  %9098 = vmatpush.bf16.msra.mxu1 %v14156_v27  ;;  %v16495_v5 = vld [vmem:[#allocation6 + $0x5ac] sm:$0xf0]  ;;  %v14523_v44 = vld [vmem:[#allocation6 + $0x400] sm:$0xf] }
 0x6a2   :  { %v14732_v15 = vor.u32 %v16495_v5, %v14731_v7  ;;  %v16491_v27 = vld [vmem:[#allocation6 + $0x58c] sm:$0xf0]  ;;  %v7306_v40 = vadd.f32 %v17261_v56, %v7293_v8  ;;  %v14651_v14 = vld [vmem:[#allocation6 + $0x500] sm:$0xf]  ;;  %v14125_v56 = vld [vmem:[#allocation6 + $0xf0] sm:$0xf0] }
 0x6a3   :  { %9111 = vmatpush.bf16.msra.mxu2 %v14284_v37  ;;  %9086 = vmatpush.bf16.msra.mxu0 %v14012_v57  ;;  %v14843_v37 = vld [vmem:[#allocation6 + $0x680] sm:$0xf]  ;;  %v14716_v29 = vor.u32 %v16491_v27, %v14715_v11  ;;  %v16487_v57 = vld [vmem:[#allocation6 + $0x56c] sm:$0xf0]  ;;  %v16341_v11 = vld [vmem:[#allocation6 + $0xe4] sm:$0xf] }
 0x6a4   :  { %v14844_v17 = vor.u32 %v16523_v2, %v14843_v37  ;;  %v14700_v55 = vor.u32 %v16487_v57, %v14699_v32  ;;  %v16511_v7 = vld [vmem:[#allocation6 + $0x62c] sm:$0xf0]  ;;  %v7319_v38 = vadd.f32 %v17283_v24, %v7306_v40  ;;  %v7359_v37 = vpop.f32.mrf.mxu3  ;;  %v15019_v2 = vld [vmem:[#allocation6 + $0x7e0] sm:$0xf]  ;;  %v7522_v32 = vmax.f32 %v17227_v10, 0.0 }
 0x6a5   :  { %9124 = vmatpush.bf16.msra.mxu3 %v14412_v12  ;;  %9099 = vmatpush.bf16.msra.mxu1 %v14140_v47  ;;  %v1148_v12 = vperm.slane %v16670_v23, 7  ;;  %v14555_v47 = vld [vmem:[#allocation6 + $0x440] sm:$0xf]  ;;  %v7333_v22 = vpop.f32.mrf.mxu1  ;;  %v16567_v23 = vld [vmem:[#allocation6 + $0x7ec] sm:$0xf0]  ;;  %v14128_v36 = vor.u32 %v16341_v11, %v14125_v56 }
 0x6a6   :  { %9087 = vmatmul.bf16.vlgmr.msra.gmra.mxu0 %v17269_v60  ;;  %v7523_v57 = vmax.f32 %v7319_v38, 0.0  ;;  %v17297_v10 = vpack.c.bf16 %v7522_v32, %v7522_v32  ;;  %v16555_v40 = vld [vmem:[#allocation6 + $0x78c] sm:$0xf0]  ;;  %v16325_v38 = vld [vmem:[#allocation6 + $0x64] sm:$0xf] }
 0x6a7   :  { %9112 = vmatpush.bf16.msra.mxu2 %v14268_v43  ;;  %9131 = vmatpush.bf16.msrb.mxu0 %v14636_v49  ;;  %v7332_v39 = vadd.f32 %v7331_v35, %v1148_v12  ;;  %v16451_v43 = vld [vmem:[#allocation6 + $0x44c] sm:$0xf0]  ;;  %v14811_v49 = vld [vmem:[#allocation6 + $0x640] sm:$0xf]  ;;  %v16373_v12 = vld [vmem:[#allocation6 + $0x1e4] sm:$0xf]  ;;  %v17304_v11 = vpop.f32.mrf.mxu0 }
 0x6a8   :  { %9100 = vmatmul.bf16.vlgmr.msra.gmra.mxu1 %v17271_v6  ;;  %v14556_v1 = vor.u32 %v16451_v43, %v14555_v47  ;;  %v14256_v41 = vor.u32 %v16373_v12, %v14253_v19  ;;  %v15003_v47 = vld [vmem:[#allocation6 + $0x7c0] sm:$0xf]  ;;  %v16563_v43 = vld [vmem:[#allocation6 + $0x7cc] sm:$0xf0]  ;;  %v16357_v56 = vld [vmem:[#allocation6 + $0x164] sm:$0xf] }
 0x6a9   :  { %9125 = vmatpush.bf16.msra.mxu3 %v14396_v46  ;;  %9144 = vmatpush.bf16.msrb.mxu1 %v14764_v50  ;;  %v16483_v46 = vld [vmem:[#allocation6 + $0x54c] sm:$0xf0]  ;;  %v14189_v12 = vld [vmem:[#allocation6 + $0x170] sm:$0xf0]  ;;  %v16321_v32 = vld [vmem:[#allocation6 + $0x44] sm:$0xf] }
 0x6aa   :  { %9113 = vmatmul.bf16.vlgmr.msra.gmra.mxu2 %v17273_v4  ;;  %v16515_v50 = vld [vmem:[#allocation6 + $0x64c] sm:$0xf0]  ;;  %v14684_v58 = vor.u32 %v16483_v46, %v14683_v45  ;;  %v16401_v45 = vld [vmem:[#allocation6 + $0x2c4] sm:$0xf]  ;;  %v15004_v46 = vor.u32 %v16563_v43, %v15003_v47  ;;  %v14192_v26 = vor.u32 %v16357_v56, %v14189_v12 }
 0x6ab   :  { %9157 = vmatpush.bf16.msrb.mxu2 %v14892_v51  ;;  %9132 = vmatpush.bf16.msrb.mxu0 %v14620_v62  ;;  %v7344_v51 = vpop.f32.mrf.mxu2  ;;  %v14812_v59 = vor.u32 %v16515_v50, %v14811_v49  ;;  %v16447_v62 = vld [vmem:[#allocation6 + $0x42c] sm:$0xf0]  ;;  %v17299_v49 = vpack.c.bf16 %v7523_v57, %v7523_v57  ;;  %v14368_v8 = vor.u32 %v16401_v45, %v14365_v33  ;;  %v14045_v57 = vld [vmem:[#allocation6 + $0x50] sm:$0xf0]  ;;  %v16317_v33 = vld [vmem:[#allocation6 + $0x24] sm:$0xf] }
 0x6ac   :  { %9126 = vmatmul.bf16.vlgmr.msra.gmra.mxu3 %v17275_v63  ;;  %v7345_v52 = vadd.f32 %v7344_v51, %v7332_v39  ;;  %v14540_v5 = vor.u32 %v16447_v62, %v14539_v9  ;;  %v14109_v39 = vld [vmem:[#allocation6 + $0xd0] sm:$0xf0]  ;;  %v16397_v9 = vld [vmem:[#allocation6 + $0x2a4] sm:$0xf]  ;;  %v16551_v37 = vld [vmem:[#allocation6 + $0x76c] sm:$0xf0]  ;;  %v14048_v43 = vor.u32 %v16321_v32, %v14045_v57 }
 0x6ad   :  { %9145 = vmatpush.bf16.msrb.mxu1 %v14748_v25  ;;  %v14667_v25 = vld [vmem:[#allocation6 + $0x520] sm:$0xf]  ;;  %v14112_v50 = vor.u32 %v16337_v21, %v14109_v39  ;;  %v14349_v62 = vld [vmem:[#allocation6 + $0x2b0] sm:$0xf0]  ;;  %v17306_v19 = vpop.f32.mrf.mxu1  ;;  %v16465_v32 = vld [vmem:[#allocation6 + $0x4c4] sm:$0xf] }
 0x6ae   :  { %v14668_v16 = vor.u32 %v16479_v0, %v14667_v25  ;;  %v16529_v57 = vld [vmem:[#allocation6 + $0x6c4] sm:$0xf] }
 0x6af   :  { %9158 = vmatpush.bf16.msrb.mxu2 %v14876_v28  ;;  %9133 = vmatpush.bf16.msrb.mxu0 %v14604_v20  ;;  %v17289_v28 = vadd.f32 %v7357_v18, %v7345_v52  ;;  %v14796_v20 = vor.u32 %v16511_v7, %v14795_v3  ;;  %v16333_v18 = vld [vmem:[#allocation6 + $0xa4] sm:$0xf]  ;;  %v14093_v52 = vld [vmem:[#allocation6 + $0xb0] sm:$0xf0]  ;;  %v14971_v7 = vld [vmem:[#allocation6 + $0x780] sm:$0xf] }
 0x6b0   :  { %v14096_v22 = vor.u32 %v16333_v18, %v14093_v52  ;;  %v16329_v3 = vld [vmem:[#allocation6 + $0x84] sm:$0xf]  ;;  %v14157_v52 = vld [vmem:[#allocation6 + $0x130] sm:$0xf0] }
 0x6b1   :  { %9146 = vmatpush.bf16.msrb.mxu1 %v14732_v15  ;;  %v16475_v15 = vld [vmem:[#allocation6 + $0x50c] sm:$0xf0] }
 0x6b2   :  { %v14652_v24 = vor.u32 %v16475_v15, %v14651_v14  ;;  %v14205_v14 = vld [vmem:[#allocation6 + $0x190] sm:$0xf0]  ;;  %v14972_v15 = vor.u32 %v16555_v40, %v14971_v7  ;;  %v14907_v7 = vld [vmem:[#allocation6 + $0x700] sm:$0xf]  ;;  %v16539_v40 = vld [vmem:[#allocation6 + $0x70c] sm:$0xf0] }
 0x6b3   :  { %9159 = vmatpush.bf16.msrb.mxu2 %v14860_v34  ;;  %9134 = vmatpush.bf16.msrb.mxu0 %v14588_v53  ;;  %v14779_v34 = vld [vmem:[#allocation6 + $0x600] sm:$0xf]  ;;  %v7346_v27 = vpop.f32.mrf.mxu2  ;;  %v15020_v53 = vor.u32 %v16567_v23, %v15019_v2  ;;  %v14061_v23 = vld [vmem:[#allocation6 + $0x70] sm:$0xf0] }
 0x6b4   :  { %v14780_v35 = vor.u32 %v16507_v30, %v14779_v34  ;;  %v14955_v27 = vld [vmem:[#allocation6 + $0x760] sm:$0xf] }
 0x6b5   :  { %9147 = vmatpush.bf16.msrb.mxu1 %v14716_v29  ;;  %v14524_v29 = vor.u32 %v16443_v13, %v14523_v44  ;;  %9170 = vmatpush.bf16.msrb.mxu3 %v15020_v53  ;;  %v14077_v44 = vld [vmem:[#allocation6 + $0x90] sm:$0xf0]  ;;  %v16361_v13 = vld [vmem:[#allocation6 + $0x184] sm:$0xf] }
 0x6b6   :  { %v14080_v34 = vor.u32 %v16329_v3, %v14077_v44  ;;  %v14208_v30 = vor.u32 %v16361_v13, %v14205_v14  ;;  %v16389_v53 = vld [vmem:[#allocation6 + $0x264] sm:$0xf]  ;;  %v14141_v44 = vld [vmem:[#allocation6 + $0x110] sm:$0xf0] }
 0x6b7   :  { %9160 = vmatpush.bf16.msrb.mxu2 %v14844_v17  ;;  %9135 = vmatpush.bf16.msrb.mxu0 %v14572_v42  ;;  %v16405_v17 = vld [vmem:[#allocation6 + $0x2e4] sm:$0xf]  ;;  %v14269_v14 = vld [vmem:[#allocation6 + $0x210] sm:$0xf0] }
 0x6b8   :  { %v16369_v42 = vld [vmem:[#allocation6 + $0x1c4] sm:$0xf] }
 0x6b9   :  { %9148 = vmatpush.bf16.msrb.mxu1 %v14700_v55  ;;  %v14384_v55 = vor.u32 %v16405_v17, %v14381_v31  ;;  %9171 = vmatpush.bf16.msrb.mxu3 %v15004_v46  ;;  %v14956_v17 = vor.u32 %v16551_v37, %v14955_v27  ;;  %v14064_v31 = vor.u32 %v16325_v38, %v14061_v23  ;;  %v14029_v46 = vld [vmem:[#allocation6 + $0x30] sm:$0xf0]  ;;  %v16345_v3 = vld [vmem:[#allocation6 + $0x104] sm:$0xf] }
 0x6ba   :  { %v16377_v13 = vld [vmem:[#allocation6 + $0x204] sm:$0xf]  ;;  %v14765_v38 = vld [vmem:[#allocation6 + $0x5f0] sm:$0xf0]  ;;  %v14144_v56 = vor.u32 %v16345_v3, %v14141_v44 }
 0x6bb   :  { %9161 = vmatpush.bf16.msrb.mxu2 %v14828_v61  ;;  %9136 = vmatpush.bf16.msrb.mxu0 %v14556_v1  ;;  %v14237_v61 = vld [vmem:[#allocation6 + $0x1d0] sm:$0xf0]  ;;  %v17308_v39 = vpop.f32.mrf.mxu2  ;;  %v16533_v27 = vld [vmem:[#allocation6 + $0x6e4] sm:$0xf]  ;;  %v14272_v12 = vor.u32 %v16377_v13, %v14269_v14 }
 0x6bc   :  { %v14240_v51 = vor.u32 %v16369_v42, %v14237_v61  ;;  %v14221_v1 = vld [vmem:[#allocation6 + $0x1b0] sm:$0xf0]  ;;  %v16385_v42 = vld [vmem:[#allocation6 + $0x244] sm:$0xf]  ;;  %v17310_v61 = vpop.f32.mrf.mxu3 }
 0x6bd   :  { %9149 = vmatpush.bf16.msrb.mxu1 %v14684_v58  ;;  %v14987_v58 = vld [vmem:[#allocation6 + $0x7a0] sm:$0xf]  ;;  %v14224_v0 = vor.u32 %v16365_v54, %v14221_v1  ;;  %v7385_v54 = vpop.f32.mrf.mxu1  ;;  %v16543_v1 = vld [vmem:[#allocation6 + $0x72c] sm:$0xf0]  ;;  %v14893_v37 = vld [vmem:[#allocation6 + $0x6f0] sm:$0xf0] }
 0x6be   :  { %v16521_v3 = vld [vmem:[#allocation6 + $0x684] sm:$0xf]  ;;  %v14461_v14 = vld [vmem:[#allocation6 + $0x390] sm:$0xf0] }
 0x6bf   :  { %9162 = vmatpush.bf16.msrb.mxu2 %v14812_v59  ;;  %9137 = vmatpush.bf16.msrb.mxu0 %v14540_v5  ;;  %v16559_v59 = vld [vmem:[#allocation6 + $0x7ac] sm:$0xf0]  ;;  %v14352_v5 = vor.u32 %v16397_v9, %v14349_v62  ;;  %v16313_v9 = vld [vmem:[#allocation6 + $0x4] sm:$0xf]  ;;  %v14013_v62 = vld [vmem:[#allocation6 + $0x10] sm:$0xf0] }
 0x6c0   :  { %v14988_v25 = vor.u32 %v16559_v59, %v14987_v58  ;;  %v16381_v58 = vld [vmem:[#allocation6 + $0x224] sm:$0xf]  ;;  %v14285_v59 = vld [vmem:[#allocation6 + $0x230] sm:$0xf0]  ;;  %v14016_v23 = vor.u32 %v16313_v9, %v14013_v62 }
 0x6c1   :  { %9150 = vmatpush.bf16.msrb.mxu1 %v14668_v16  ;;  %v16393_v16 = vld [vmem:[#allocation6 + $0x284] sm:$0xf] }
 0x6c2   :  { %9172 = vmatpush.bf16.msrb.mxu3 %v14988_v25  ;;  %v16457_v62 = vld [vmem:[#allocation6 + $0x484] sm:$0xf] }
 0x6c3   :  { %9163 = vmatpush.bf16.msrb.mxu2 %v14796_v20  ;;  %9138 = vmatpush.bf16.msrb.mxu0 %v14524_v29  ;;  %v14333_v20 = vld [vmem:[#allocation6 + $0x290] sm:$0xf0]  ;;  %v16425_v13 = vld [vmem:[#allocation6 + $0x384] sm:$0xf] }
 0x6c4   :  { %v14336_v2 = vor.u32 %v16393_v16, %v14333_v20  ;;  %v14317_v29 = vld [vmem:[#allocation6 + $0x270] sm:$0xf0]  ;;  %v7398_v16 = vpop.f32.mrf.mxu2  ;;  %v16469_v20 = vld [vmem:[#allocation6 + $0x4e4] sm:$0xf] }
 0x6c5   :  { %9151 = vmatpush.bf16.msrb.mxu1 %v14652_v24  ;;  %v14939_v24 = vld [vmem:[#allocation6 + $0x740] sm:$0xf]  ;;  %v14320_v21 = vor.u32 %v16389_v53, %v14317_v29  ;;  %v16437_v29 = vld [vmem:[#allocation6 + $0x3e4] sm:$0xf] }
 0x6c6   :  { %9139 = vmatmul.bf16.vlgmr.msrb.gmra.mxu0 %v17295_v48  ;;  %9173 = vmatpush.bf16.msrb.mxu3 %v14972_v15  ;;  %v14637_v15 = vld [vmem:[#allocation6 + $0x4f0] sm:$0xf0] }
 0x6c7   :  { %9164 = vmatpush.bf16.msrb.mxu2 %v14780_v35  ;;  %9183 = vmatpush.bf16.msra.mxu0 %v14128_v36  ;;  %v16547_v35 = vld [vmem:[#allocation6 + $0x74c] sm:$0xf0]  ;;  %v16353_v36 = vld [vmem:[#allocation6 + $0x144] sm:$0xf]  ;;  %v14640_v53 = vor.u32 %v16469_v20, %v14637_v15  ;;  %v17317_v15 = vpop.f32.mrf.mxu1 }
 0x6c8   :  { %9152 = vmatmul.bf16.vlgmr.msrb.gmra.mxu1 %v17297_v10  ;;  %v14940_v47 = vor.u32 %v16547_v35, %v14939_v24  ;;  %v14621_v24 = vld [vmem:[#allocation6 + $0x4d0] sm:$0xf0]  ;;  %v16497_v35 = vld [vmem:[#allocation6 + $0x5c4] sm:$0xf] }
 0x6c9   :  { %9196 = vmatpush.bf16.msra.mxu1 %v14256_v41  ;;  %v14173_v41 = vld [vmem:[#allocation6 + $0x150] sm:$0xf0] }
 0x6ca   :  { %9165 = vmatmul.bf16.vlgmr.msrb.gmra.mxu2 %v17299_v49  ;;  %9174 = vmatpush.bf16.msrb.mxu3 %v14956_v17  ;;  %v14176_v45 = vor.u32 %v16353_v36, %v14173_v41  ;;  %v14509_v17 = vld [vmem:[#allocation6 + $0x3f0] sm:$0xf0] }
 0x6cb   :  { %9209 = vmatpush.bf16.msra.mxu2 %v14384_v55  ;;  %9184 = vmatpush.bf16.msra.mxu0 %v14112_v50  ;;  %v14301_v55 = vld [vmem:[#allocation6 + $0x250] sm:$0xf0]  ;;  %v16349_v50 = vld [vmem:[#allocation6 + $0x124] sm:$0xf]  ;;  %v14512_v41 = vor.u32 %v16437_v29, %v14509_v17 }
 0x6cc   :  { %v14304_v18 = vor.u32 %v16385_v42, %v14301_v55  ;;  %v14877_v36 = vld [vmem:[#allocation6 + $0x6d0] sm:$0xf0]  ;;  %v14624_v42 = vor.u32 %v16465_v32, %v14621_v24  ;;  %v16433_v55 = vld [vmem:[#allocation6 + $0x3c4] sm:$0xf]  ;;  %v7371_v24 = vadd.f32 %v17304_v11, %v17289_v28 }
 0x6cd   :  { %9197 = vmatpush.bf16.msra.mxu1 %v14240_v51  ;;  %v7372_v51 = vpop.f32.mrf.mxu0  ;;  %v16481_v32 = vld [vmem:[#allocation6 + $0x544] sm:$0xf]  ;;  %v14541_v28 = vld [vmem:[#allocation6 + $0x430] sm:$0xf0] }
 0x6ce   :  { %9175 = vmatpush.bf16.msrb.mxu3 %v14940_v47  ;;  %v14493_v47 = vld [vmem:[#allocation6 + $0x3d0] sm:$0xf0]  ;;  %v16477_v11 = vld [vmem:[#allocation6 + $0x524] sm:$0xf] }
 0x6cf   :  { %9210 = vmatpush.bf16.msra.mxu2 %v14368_v8  ;;  %9185 = vmatpush.bf16.msra.mxu0 %v14096_v22  ;;  %v14923_v8 = vld [vmem:[#allocation6 + $0x720] sm:$0xf]  ;;  %v14032_v22 = vor.u32 %v16317_v33, %v14029_v46  ;;  %v16461_v33 = vld [vmem:[#allocation6 + $0x4a4] sm:$0xf]  ;;  %v14605_v46 = vld [vmem:[#allocation6 + $0x4b0] sm:$0xf0]  ;;  %v14496_v54 = vor.u32 %v16433_v55, %v14493_v47 }
 0x6d0   :  { %v14924_v25 = vor.u32 %v16543_v1, %v14923_v8  ;;  %v14733_v51 = vld [vmem:[#allocation6 + $0x5b0] sm:$0xf0]  ;;  %v14608_v8 = vor.u32 %v16461_v33, %v14605_v46  ;;  %v16429_v1 = vld [vmem:[#allocation6 + $0x3a4] sm:$0xf] }
 0x6d1   :  { %9198 = vmatpush.bf16.msra.mxu1 %v14224_v0  ;;  %v14160_v0 = vor.u32 %v16349_v50, %v14157_v52  ;;  %v16493_v50 = vld [vmem:[#allocation6 + $0x5a4] sm:$0xf]  ;;  %v14861_v52 = vld [vmem:[#allocation6 + $0x6b0] sm:$0xf0] }
 0x6d2   :  { %9176 = vmatpush.bf16.msrb.mxu3 %v14924_v25  ;;  %v14589_v25 = vld [vmem:[#allocation6 + $0x490] sm:$0xf0] }
 0x6d3   :  { %9211 = vmatpush.bf16.msra.mxu2 %v14352_v5  ;;  %9186 = vmatpush.bf16.msra.mxu0 %v14080_v34  ;;  %v14288_v5 = vor.u32 %v16381_v58, %v14285_v59  ;;  %v16501_v34 = vld [vmem:[#allocation6 + $0x5e4] sm:$0xf]  ;;  %v14477_v58 = vld [vmem:[#allocation6 + $0x3b0] sm:$0xf0]  ;;  %v14736_v59 = vor.u32 %v16493_v50, %v14733_v51  ;;  %v14592_v44 = vor.u32 %v16457_v62, %v14589_v25  ;;  %v7437_v51 = vpop.f32.mrf.mxu1 }
 0x6d4   :  { %v16445_v50 = vld [vmem:[#allocation6 + $0x424] sm:$0xf]  ;;  %v14413_v62 = vld [vmem:[#allocation6 + $0x330] sm:$0xf0] }
 0x6d5   :  { %9199 = vmatpush.bf16.msra.mxu1 %v14208_v30  ;;  %v7411_v30 = vpop.f32.mrf.mxu3 }
 0x6d6   :  { %v14573_v30 = vld [vmem:[#allocation6 + $0x470] sm:$0xf0] }
 0x6d7   :  { %9212 = vmatpush.bf16.msra.mxu2 %v14336_v2  ;;  %9187 = vmatpush.bf16.msra.mxu0 %v14064_v31  ;;  %v14908_v2 = vor.u32 %v16539_v40, %v14907_v7  ;;  %v14768_v31 = vor.u32 %v16501_v34, %v14765_v38  ;;  %v14845_v7 = vld [vmem:[#allocation6 + $0x690] sm:$0xf0]  ;;  %v14480_v40 = vor.u32 %v16429_v1, %v14477_v58  ;;  %v16453_v34 = vld [vmem:[#allocation6 + $0x464] sm:$0xf] }
 0x6d8   :  { %v14848_v20 = vor.u32 %v16521_v3, %v14845_v7  ;;  %v16485_v38 = vld [vmem:[#allocation6 + $0x564] sm:$0xf]  ;;  %v14544_v58 = vor.u32 %v16445_v50, %v14541_v28  ;;  %v14653_v7 = vld [vmem:[#allocation6 + $0x510] sm:$0xf0]  ;;  %v16368_v50 = vld [vmem:[#allocation6 + $0x1b4] sm:$0xf0] }
 0x6d9   :  { %9200 = vmatpush.bf16.msra.mxu1 %v14192_v26  ;;  %v14896_v26 = vor.u32 %v16533_v27, %v14893_v37  ;;  %9177 = vmatpush.bf16.msrb.mxu3 %v14908_v2  ;;  %v14701_v27 = vld [vmem:[#allocation6 + $0x570] sm:$0xf0]  ;;  %v16517_v37 = vld [vmem:[#allocation6 + $0x664] sm:$0xf]  ;;  %v14355_v28 = vld [vmem:[#allocation6 + $0x2a8] sm:$0xf] }
 0x6da   :  { %v14829_v2 = vld [vmem:[#allocation6 + $0x670] sm:$0xf0]  ;;  %v14704_v29 = vor.u32 %v16485_v38, %v14701_v27  ;;  %v16473_v3 = vld [vmem:[#allocation6 + $0x504] sm:$0xf]  ;;  %v14387_v27 = vld [vmem:[#allocation6 + $0x2e8] sm:$0xf] }
 0x6db   :  { %9213 = vmatpush.bf16.msra.mxu2 %v14320_v21  ;;  %9188 = vmatpush.bf16.msra.mxu0 %v14048_v43  ;;  %v14749_v21 = vld [vmem:[#allocation6 + $0x5d0] sm:$0xf0]  ;;  %v14832_v17 = vor.u32 %v16517_v37, %v14829_v2  ;;  %v16408_v37 = vld [vmem:[#allocation6 + $0x2f4] sm:$0xf0] }
 0x6dc   :  { %v14752_v43 = vor.u32 %v16497_v35, %v14749_v21  ;;  %v14685_v35 = vld [vmem:[#allocation6 + $0x550] sm:$0xf0]  ;;  %v16513_v21 = vld [vmem:[#allocation6 + $0x644] sm:$0xf] }
 0x6dd   :  { %9201 = vmatpush.bf16.msra.mxu1 %v14176_v45  ;;  %v14880_v45 = vor.u32 %v16529_v57, %v14877_v36  ;;  %9222 = vmatpush.bf16.msra.mxu3 %v14512_v41  ;;  %v14813_v57 = vld [vmem:[#allocation6 + $0x650] sm:$0xf0]  ;;  %v17321_v36 = vpop.f32.mrf.mxu2  ;;  %v14688_v33 = vor.u32 %v16481_v32, %v14685_v35  ;;  %v16340_v32 = vld [vmem:[#allocation6 + $0xd4] sm:$0xf0] }
 0x6de   :  { %v14816_v46 = vor.u32 %v16513_v21, %v14813_v57  ;;  %v16372_v35 = vld [vmem:[#allocation6 + $0x1d4] sm:$0xf0]  ;;  %v14371_v57 = vld [vmem:[#allocation6 + $0x2c8] sm:$0xf] }
 0x6df   :  { %9214 = vmatpush.bf16.msra.mxu2 %v14304_v18  ;;  %9189 = vmatpush.bf16.msra.mxu0 %v14032_v22  ;;  %v16525_v18 = vld [vmem:[#allocation6 + $0x6a4] sm:$0xf] }
 0x6e0   :  { %v14864_v9 = vor.u32 %v16525_v18, %v14861_v52  ;;  %v16489_v22 = vld [vmem:[#allocation6 + $0x584] sm:$0xf]  ;;  %v7384_v18 = vadd.f32 %v17306_v19, %v7371_v24  ;;  %v14669_v52 = vld [vmem:[#allocation6 + $0x530] sm:$0xf0]  ;;  %v14243_v24 = vld [vmem:[#allocation6 + $0x1c8] sm:$0xf] }
 0x6e1   :  { %9202 = vmatpush.bf16.msra.mxu1 %v14160_v0  ;;  %v14717_v0 = vld [vmem:[#allocation6 + $0x590] sm:$0xf0]  ;;  %9223 = vmatpush.bf16.msra.mxu3 %v14496_v54  ;;  %v16509_v54 = vld [vmem:[#allocation6 + $0x624] sm:$0xf]  ;;  %v14672_v25 = vor.u32 %v16477_v11, %v14669_v52  ;;  %v16400_v11 = vld [vmem:[#allocation6 + $0x2b4] sm:$0xf0] }
 0x6e2   :  { %v14720_v16 = vor.u32 %v16489_v22, %v14717_v0  ;;  %v14525_v0 = vld [vmem:[#allocation6 + $0x410] sm:$0xf0]  ;;  %v16505_v19 = vld [vmem:[#allocation6 + $0x604] sm:$0xf] }
 0x6e3   :  { %9215 = vmatpush.bf16.msra.mxu2 %v14288_v5  ;;  %9190 = vmatpush.bf16.msra.mxu0 %v14016_v23  ;;  %v17315_v5 = vpop.f32.mrf.mxu0  ;;  %v14464_v23 = vor.u32 %v16425_v13, %v14461_v14  ;;  %v14131_v13 = vld [vmem:[#allocation6 + $0xe8] sm:$0xf]  ;;  %v16344_v14 = vld [vmem:[#allocation6 + $0xf4] sm:$0xf0] }
 0x6e5   :  { %9203 = vmatpush.bf16.msra.mxu1 %v14144_v56  ;;  %9224 = vmatpush.bf16.msra.mxu3 %v14480_v40  ;;  %v14576_v56 = vor.u32 %v16453_v34, %v14573_v30  ;;  %v7397_v40 = vadd.f32 %v17308_v39, %v7384_v18  ;;  %v7450_v34 = vpop.f32.mrf.mxu2 }
 0x6e6   :  { %9191 = vmatmul.bf16.vlgmr.msra.gmra.mxu0 %v17269_v60 }
 0x6e7   :  { %9216 = vmatpush.bf16.msra.mxu2 %v14272_v12  ;;  %9235 = vmatpush.bf16.msrb.mxu0 %v14640_v53  ;;  %v16421_v12 = vld [vmem:[#allocation6 + $0x364] sm:$0xf]  ;;  %v14445_v53 = vld [vmem:[#allocation6 + $0x370] sm:$0xf0]  ;;  %v7410_v39 = vadd.f32 %v17310_v61, %v7397_v40  ;;  %v16328_v40 = vld [vmem:[#allocation6 + $0x74] sm:$0xf0] }
 0x6e8   :  { %9204 = vmatmul.bf16.vlgmr.msra.gmra.mxu1 %v17271_v6  ;;  %v14448_v41 = vor.u32 %v16421_v12, %v14445_v53  ;;  %v14132_v12 = vor.u32 %v16344_v14, %v14131_v13  ;;  %v14323_v14 = vld [vmem:[#allocation6 + $0x268] sm:$0xf] }
 0x6e9   :  { %9248 = vmatpush.bf16.msrb.mxu1 %v14768_v31  ;;  %v16449_v31 = vld [vmem:[#allocation6 + $0x444] sm:$0xf]  ;;  %9225 = vmatpush.bf16.msra.mxu3 %v14464_v23  ;;  %v14656_v23 = vor.u32 %v16473_v3, %v14653_v7  ;;  %v7423_v21 = vadd.f32 %v17315_v5, %v7410_v39 }
 0x6ea   :  { %9217 = vmatmul.bf16.vlgmr.msra.gmra.mxu2 %v17273_v4 }
 0x6eb   :  { %9261 = vmatpush.bf16.msrb.mxu2 %v14896_v26  ;;  %9236 = vmatpush.bf16.msrb.mxu0 %v14624_v42  ;;  %v14557_v26 = vld [vmem:[#allocation6 + $0x450] sm:$0xf0]  ;;  %v17323_v42 = vpop.f32.mrf.mxu3  ;;  %v7424_v47 = vpop.f32.mrf.mxu0  ;;  %v7436_v5 = vadd.f32 %v17317_v15, %v7423_v21  ;;  %v14339_v15 = vld [vmem:[#allocation6 + $0x288] sm:$0xf] }
 0x6ec   :  { %v14560_v55 = vor.u32 %v16449_v31, %v14557_v26  ;;  %v14397_v31 = vld [vmem:[#allocation6 + $0x310] sm:$0xf0]  ;;  %v14388_v26 = vor.u32 %v16408_v37, %v14387_v27  ;;  %v14244_v47 = vor.u32 %v16372_v35, %v14243_v24  ;;  %v14179_v27 = vld [vmem:[#allocation6 + $0x148] sm:$0xf]  ;;  %v16356_v37 = vld [vmem:[#allocation6 + $0x154] sm:$0xf0] }
 0x6ed   :  { %9249 = vmatpush.bf16.msrb.mxu1 %v14752_v43  ;;  %v16417_v43 = vld [vmem:[#allocation6 + $0x344] sm:$0xf]  ;;  %9226 = vmatpush.bf16.msra.mxu3 %v14448_v41  ;;  %v16404_v41 = vld [vmem:[#allocation6 + $0x2d4] sm:$0xf0]  ;;  %v7449_v51 = vadd.f32 %v17321_v36, %v7436_v5  ;;  %v14067_v36 = vld [vmem:[#allocation6 + $0x68] sm:$0xf] }
 0x6ee   :  { %v16320_v35 = vld [vmem:[#allocation6 + $0x34] sm:$0xf0]  ;;  %v14163_v21 = vld [vmem:[#allocation6 + $0x128] sm:$0xf] }
 0x6ef   :  { %9262 = vmatpush.bf16.msrb.mxu2 %v14880_v45  ;;  %9237 = vmatpush.bf16.msrb.mxu0 %v14608_v8  ;;  %v14429_v45 = vld [vmem:[#allocation6 + $0x350] sm:$0xf0]  ;;  %v16316_v5 = vld [vmem:[#allocation6 + $0x14] sm:$0xf0] }
 0x6f0   :  { %v14797_v8 = vld [vmem:[#allocation6 + $0x630] sm:$0xf0]  ;;  %v14432_v1 = vor.u32 %v16417_v43, %v14429_v45  ;;  %v14099_v43 = vld [vmem:[#allocation6 + $0xa8] sm:$0xf]  ;;  %v14372_v45 = vor.u32 %v16404_v41, %v14371_v57  ;;  %v16352_v57 = vld [vmem:[#allocation6 + $0x134] sm:$0xf0] }
 0x6f1   :  { %9250 = vmatpush.bf16.msrb.mxu1 %v14736_v59  ;;  %v16441_v59 = vld [vmem:[#allocation6 + $0x404] sm:$0xf]  ;;  %v14800_v22 = vor.u32 %v16509_v54, %v14797_v8  ;;  %v14083_v54 = vld [vmem:[#allocation6 + $0x88] sm:$0xf]  ;;  %v14356_v8 = vor.u32 %v16400_v11, %v14355_v28 }
 0x6f2   :  { %9227 = vmatpush.bf16.msra.mxu3 %v14432_v1  ;;  %v14528_v38 = vor.u32 %v16441_v59, %v14525_v0  ;;  %v16332_v1 = vld [vmem:[#allocation6 + $0x94] sm:$0xf0]  ;;  %v14147_v28 = vld [vmem:[#allocation6 + $0x108] sm:$0xf] }
 0x6f3   :  { %9263 = vmatpush.bf16.msrb.mxu2 %v14864_v9  ;;  %9238 = vmatpush.bf16.msrb.mxu0 %v14592_v44  ;;  %v16413_v9 = vld [vmem:[#allocation6 + $0x324] sm:$0xf]  ;;  %v14781_v44 = vld [vmem:[#allocation6 + $0x610] sm:$0xf0]  ;;  %v7463_v2 = vpop.f32.mrf.mxu3  ;;  %v16364_v59 = vld [vmem:[#allocation6 + $0x194] sm:$0xf0] }
 0x6f4   :  { %v14416_v30 = vor.u32 %v16413_v9, %v14413_v62  ;;  %v16396_v9 = vld [vmem:[#allocation6 + $0x294] sm:$0xf0]  ;;  %v7462_v62 = vadd.f32 %v17323_v42, %v7449_v51  ;;  %v14051_v42 = vld [vmem:[#allocation6 + $0x48] sm:$0xf] }
 0x6f5   :  { %9251 = vmatpush.bf16.msrb.mxu1 %v14720_v16  ;;  %v14259_v16 = vld [vmem:[#allocation6 + $0x1e8] sm:$0xf]  ;;  %v14340_v7 = vor.u32 %v16396_v9, %v14339_v15  ;;  %v16348_v51 = vld [vmem:[#allocation6 + $0x114] sm:$0xf0] }
 0x6f6   :  { %9228 = vmatpush.bf16.msra.mxu3 %v14416_v30  ;;  %v16504_v9 = vld [vmem:[#allocation6 + $0x5f4] sm:$0xf0] }
 0x6f7   :  { %9264 = vmatpush.bf16.msrb.mxu2 %v14848_v20  ;;  %9239 = vmatpush.bf16.msrb.mxu0 %v14576_v56  ;;  %v16376_v20 = vld [vmem:[#allocation6 + $0x1f4] sm:$0xf0]  ;;  %v14784_v56 = vor.u32 %v16505_v19, %v14781_v44  ;;  %v14195_v19 = vld [vmem:[#allocation6 + $0x168] sm:$0xf] }
 0x6f8   :  { %v14260_v53 = vor.u32 %v16376_v20, %v14259_v16  ;;  %v16360_v44 = vld [vmem:[#allocation6 + $0x174] sm:$0xf0]  ;;  %v14068_v20 = vor.u32 %v16328_v40, %v14067_v36  ;;  %v14148_v36 = vor.u32 %v16348_v51, %v14147_v28  ;;  %v14957_v28 = vld [vmem:[#allocation6 + $0x770] sm:$0xf0] }
 0x6f9   :  { %9252 = vmatpush.bf16.msrb.mxu1 %v14704_v29  ;;  %v14115_v29 = vld [vmem:[#allocation6 + $0xc8] sm:$0xf]  ;;  %v16392_v16 = vld [vmem:[#allocation6 + $0x274] sm:$0xf0]  ;;  %v14196_v34 = vor.u32 %v16360_v44, %v14195_v19 }
 0x6fa   :  { %v14116_v61 = vor.u32 %v16340_v32, %v14115_v29  ;;  %v14324_v30 = vor.u32 %v16392_v16, %v14323_v14  ;;  %v14627_v14 = vld [vmem:[#allocation6 + $0x4c8] sm:$0xf]  ;;  %v16468_v16 = vld [vmem:[#allocation6 + $0x4d4] sm:$0xf0] }
 0x6fb   :  { %9265 = vmatpush.bf16.msrb.mxu2 %v14832_v17  ;;  %9240 = vmatpush.bf16.msrb.mxu0 %v14560_v55  ;;  %v16409_v17 = vld [vmem:[#allocation6 + $0x304] sm:$0xf] }
 0x6fc   :  { %v14400_v55 = vor.u32 %v16409_v17, %v14397_v31  ;;  %v14180_v31 = vor.u32 %v16356_v37, %v14179_v27  ;;  %v16557_v27 = vld [vmem:[#allocation6 + $0x7a4] sm:$0xf]  ;;  %v14989_v37 = vld [vmem:[#allocation6 + $0x7b0] sm:$0xf0] }
 0x6fd   :  { %9253 = vmatpush.bf16.msrb.mxu1 %v14688_v33  ;;  %v16336_v33 = vld [vmem:[#allocation6 + $0xb4] sm:$0xf0] }
 0x6fe   :  { %9229 = vmatpush.bf16.msra.mxu3 %v14400_v55  ;;  %v14100_v18 = vor.u32 %v16336_v33, %v14099_v43  ;;  %v14291_v55 = vld [vmem:[#allocation6 + $0x228] sm:$0xf]  ;;  %v15021_v43 = vld [vmem:[#allocation6 + $0x7f0] sm:$0xf0] }
 0x6ff   :  { %9266 = vmatpush.bf16.msrb.mxu2 %v14816_v46  ;;  %9241 = vmatpush.bf16.msrb.mxu0 %v14544_v58  ;;  %v14227_v46 = vld [vmem:[#allocation6 + $0x1a8] sm:$0xf] }
 0x700   :  { %v14228_v52 = vor.u32 %v16368_v50, %v14227_v46  ;;  %v14211_v58 = vld [vmem:[#allocation6 + $0x188] sm:$0xf]  ;;  %v14164_v50 = vor.u32 %v16352_v57, %v14163_v21 }
 0x701   :  { %9254 = vmatpush.bf16.msrb.mxu1 %v14672_v25  ;;  %v14212_v0 = vor.u32 %v16364_v59, %v14211_v58  ;;  %v16472_v58 = vld [vmem:[#allocation6 + $0x4f4] sm:$0xf0]  ;;  %v14771_v59 = vld [vmem:[#allocation6 + $0x5e8] sm:$0xf] }
 0x702   :  { %v14772_v44 = vor.u32 %v16504_v9, %v14771_v59  ;;  %v14595_v57 = vld [vmem:[#allocation6 + $0x488] sm:$0xf] }
 0x703   :  { %9267 = vmatpush.bf16.msrb.mxu2 %v14800_v22  ;;  %9242 = vmatpush.bf16.msrb.mxu0 %v14528_v38  ;;  %v7474_v25 = vpop.f32.mrf.mxu0  ;;  %v14084_v22 = vor.u32 %v16332_v1, %v14083_v54  ;;  %v16324_v38 = vld [vmem:[#allocation6 + $0x54] sm:$0xf0]  ;;  %v14643_v1 = vld [vmem:[#allocation6 + $0x4e8] sm:$0xf] }
 0x704   :  { %v7475_v13 = vadd.f32 %v7474_v25, %v7462_v62  ;;  %v14052_v17 = vor.u32 %v16324_v38, %v14051_v42  ;;  %v14899_v62 = vld [vmem:[#allocation6 + $0x6e8] sm:$0xf]  ;;  %v16536_v25 = vld [vmem:[#allocation6 + $0x6f4] sm:$0xf0]  ;;  %v14644_v19 = vor.u32 %v16472_v58, %v14643_v1 }
 0x705   :  { %9255 = vmatpush.bf16.msrb.mxu1 %v14656_v23  ;;  %v7487_v3 = vpop.f32.mrf.mxu1  ;;  %v14307_v23 = vld [vmem:[#allocation6 + $0x248] sm:$0xf]  ;;  %v16500_v42 = vld [vmem:[#allocation6 + $0x5d4] sm:$0xf0] }
 0x706   :  { %9243 = vmatmul.bf16.vlgmr.msrb.gmra.mxu0 %v17295_v48  ;;  %v7488_v2 = vadd.f32 %v7487_v3, %v7475_v13  ;;  %v16561_v3 = vld [vmem:[#allocation6 + $0x7c4] sm:$0xf]  ;;  %v14900_v13 = vor.u32 %v16536_v25, %v14899_v62  ;;  %v16532_v38 = vld [vmem:[#allocation6 + $0x6d4] sm:$0xf0]  ;;  %v14579_v1 = vld [vmem:[#allocation6 + $0x468] sm:$0xf] }
 0x707   :  { %9268 = vmatpush.bf16.msrb.mxu2 %v14784_v56  ;;  %9287 = vmatpush.bf16.msra.mxu0 %v14132_v12  ;;  %v16388_v56 = vld [vmem:[#allocation6 + $0x254] sm:$0xf0]  ;;  %v14707_v59 = vld [vmem:[#allocation6 + $0x568] sm:$0xf] }
 0x708   :  { %9256 = vmatmul.bf16.vlgmr.msrb.gmra.mxu1 %v17297_v10  ;;  %v14308_v24 = vor.u32 %v16388_v56, %v14307_v23  ;;  %v14611_v23 = vld [vmem:[#allocation6 + $0x4a8] sm:$0xf]  ;;  %v16456_v58 = vld [vmem:[#allocation6 + $0x474] sm:$0xf0] }
 0x709   :  { %9300 = vmatpush.bf16.msra.mxu1 %v14260_v53  ;;  %v16488_v62 = vld [vmem:[#allocation6 + $0x574] sm:$0xf0]  ;;  %v14835_v25 = vld [vmem:[#allocation6 + $0x668] sm:$0xf] }
 0x70a   :  { %9269 = vmatmul.bf16.vlgmr.msrb.gmra.mxu2 %v17299_v49 }
 0x70b   :  { %9313 = vmatpush.bf16.msra.mxu2 %v14388_v26  ;;  %9288 = vmatpush.bf16.msra.mxu0 %v14116_v61  ;;  %v7476_v29 = vpop.f32.mrf.mxu0  ;;  %v14035_v26 = vld [vmem:[#allocation6 + $0x28] sm:$0xf]  ;;  %v16384_v61 = vld [vmem:[#allocation6 + $0x234] sm:$0xf0] }
 0x70c   :  { %v14036_v46 = vor.u32 %v16320_v35, %v14035_v26  ;;  %v14292_v11 = vor.u32 %v16384_v61, %v14291_v55  ;;  %v16496_v29 = vld [vmem:[#allocation6 + $0x5b4] sm:$0xf0]  ;;  %v14973_v35 = vld [vmem:[#allocation6 + $0x790] sm:$0xf0] }
 0x70d   :  { %9301 = vmatpush.bf16.msra.mxu1 %v14244_v47  ;;  %v7500_v39 = vpop.f32.mrf.mxu2  ;;  %v7489_v32 = vpop.f32.mrf.mxu1  ;;  %v16565_v47 = vld [vmem:[#allocation6 + $0x7e4] sm:$0xf]  ;;  %v16528_v26 = vld [vmem:[#allocation6 + $0x6b4] sm:$0xf0] }
 0x70e   :  { %v7501_v12 = vadd.f32 %v7500_v39, %v7488_v2  ;;  %v14628_v2 = vor.u32 %v16468_v16, %v14627_v14  ;;  %v17339_v32 = vld [vmem:[#allocation7] sm:$0xf]  ;;  %v14691_v14 = vld [vmem:[#allocation6 + $0x548] sm:$0xf] }
 0x70f   :  { %9314 = vmatpush.bf16.msra.mxu2 %v14372_v45  ;;  %9289 = vmatpush.bf16.msra.mxu0 %v14100_v18  ;;  %v7513_v53 = vpop.f32.mrf.mxu3  ;;  %v14019_v45 = vld [vmem:[#allocation6 + $0x8] sm:$0xf]  ;;  %v7791_v61 = vperm.slane %v17339_v32, 0 }
 0x710   :  { %v7514_v41 = vadd.f32 %v7513_v53, %v7501_v12  ;;  %v14275_v18 = vld [vmem:[#allocation6 + $0x208] sm:$0xf]  ;;  %v16464_v12 = vld [vmem:[#allocation6 + $0x4b4] sm:$0xf0] }
 0x711   :  { %9302 = vmatpush.bf16.msra.mxu1 %v14228_v52  ;;  %v16380_v52 = vld [vmem:[#allocation6 + $0x214] sm:$0xf0]  ;;  %v14739_v53 = vld [vmem:[#allocation6 + $0x5a8] sm:$0xf]  ;;  %v14612_v21 = vor.u32 %v16464_v12, %v14611_v23 }
 0x712   :  { %v7524_v33 = vmax.f32 %v7514_v41, 0.0  ;;  %v14276_v40 = vor.u32 %v16380_v52, %v14275_v18  ;;  %v14740_v41 = vor.u32 %v16496_v29, %v14739_v53  ;;  %v14547_v29 = vld [vmem:[#allocation6 + $0x428] sm:$0xf] }
 0x713   :  { %9315 = vmatpush.bf16.msra.mxu2 %v14356_v8  ;;  %9290 = vmatpush.bf16.msra.mxu0 %v14084_v22  ;;  %v15024_v8 = vor.u32 %v16565_v47, %v15021_v43  ;;  %v16460_v47 = vld [vmem:[#allocation6 + $0x494] sm:$0xf0]  ;;  %v14723_v43 = vld [vmem:[#allocation6 + $0x588] sm:$0xf] }
 0x714   :  { %v17335_v54 = vpack.c.bf16 %v7524_v33, %v7524_v33  ;;  %v16492_v33 = vld [vmem:[#allocation6 + $0x594] sm:$0xf0] }
 0x715   :  { %9303 = vmatpush.bf16.msra.mxu1 %v14212_v0  ;;  %v7502_v15 = vpop.f32.mrf.mxu2  ;;  %v14020_v0 = vor.u32 %v16316_v5, %v14019_v45  ;;  %v16549_v5 = vld [vmem:[#allocation6 + $0x764] sm:$0xf]  ;;  %v14724_v52 = vor.u32 %v16492_v33, %v14723_v43  ;;  %v16440_v43 = vld [vmem:[#allocation6 + $0x3f4] sm:$0xf0] }
 0x716   :  { %9178 = vmatmul.bf16.vlgmr.msrb.gmra.mxu3 %v17335_v54  ;;  %v14960_v9 = vor.u32 %v16549_v5, %v14957_v28  ;;  %v14659_v5 = vld [vmem:[#allocation6 + $0x508] sm:$0xf] }
 0x717   :  { %9316 = vmatpush.bf16.msra.mxu2 %v14340_v7  ;;  %9291 = vmatpush.bf16.msra.mxu0 %v14068_v20  ;;  %v7515_v22 = vpop.f32.mrf.mxu3  ;;  %v15005_v7 = vld [vmem:[#allocation6 + $0x7d0] sm:$0xf0]  ;;  %v14755_v20 = vld [vmem:[#allocation6 + $0x5c8] sm:$0xf] }
 0x718   :  { %9274 = vmatpush.bf16.msrb.mxu3 %v15024_v8  ;;  %v14756_v56 = vor.u32 %v16500_v42, %v14755_v20  ;;  %v16520_v22 = vld [vmem:[#allocation6 + $0x674] sm:$0xf0] }
 0x719   :  { %9304 = vmatpush.bf16.msra.mxu1 %v14196_v34  ;;  %v15008_v34 = vor.u32 %v16561_v3, %v15005_v7  ;;  %v14580_v7 = vor.u32 %v16456_v58, %v14579_v1  ;;  %v16484_v20 = vld [vmem:[#allocation6 + $0x554] sm:$0xf0]  ;;  %v14133_v1 = vld [vmem:[#allocation6 + $0xf8] sm:$0xf0]  ;;  %v16374_v58 = vld [vmem:[#allocation6 + $0x1ec] sm:$0xf] }
 0x71a   :  { %v16516_v42 = vld [vmem:[#allocation6 + $0x654] sm:$0xf0]  ;;  %v14692_v12 = vor.u32 %v16484_v20, %v14691_v14  ;;  %v14117_v14 = vld [vmem:[#allocation6 + $0xd8] sm:$0xf0] }
 0x71b   :  { %9317 = vmatpush.bf16.msra.mxu2 %v14324_v30  ;;  %9292 = vmatpush.bf16.msra.mxu0 %v14052_v17  ;;  %v14883_v30 = vld [vmem:[#allocation6 + $0x6c8] sm:$0xf]  ;;  %v14992_v17 = vor.u32 %v16557_v27, %v14989_v37 }
 0x71c   :  { %v14884_v39 = vor.u32 %v16532_v38, %v14883_v30  ;;  %9275 = vmatpush.bf16.msrb.mxu3 %v15008_v34  ;;  %v14819_v34 = vld [vmem:[#allocation6 + $0x648] sm:$0xf]  ;;  %v16541_v30 = vld [vmem:[#allocation6 + $0x724] sm:$0xf]  ;;  %v14925_v38 = vld [vmem:[#allocation6 + $0x730] sm:$0xf0] }
 0x71d   :  { %9305 = vmatpush.bf16.msra.mxu1 %v14180_v31  ;;  %v14867_v31 = vld [vmem:[#allocation6 + $0x6a8] sm:$0xf]  ;;  %v14820_v53 = vor.u32 %v16516_v42, %v14819_v34  ;;  %v14245_v34 = vld [vmem:[#allocation6 + $0x1d8] sm:$0xf0]  ;;  %v16402_v42 = vld [vmem:[#allocation6 + $0x2cc] sm:$0xf] }
 0x71e   :  { %v14868_v55 = vor.u32 %v16528_v26, %v14867_v31  ;;  %v14675_v31 = vld [vmem:[#allocation6 + $0x528] sm:$0xf]  ;;  %v14928_v26 = vor.u32 %v16541_v30, %v14925_v38  ;;  %v14373_v30 = vld [vmem:[#allocation6 + $0x2d8] sm:$0xf0] }
 0x71f   :  { %9318 = vmatpush.bf16.msra.mxu2 %v14308_v24  ;;  %9293 = vmatpush.bf16.msra.mxu0 %v14036_v46  ;;  %v16553_v24 = vld [vmem:[#allocation6 + $0x784] sm:$0xf]  ;;  %v14851_v46 = vld [vmem:[#allocation6 + $0x688] sm:$0xf] }
 0x720   :  { %9276 = vmatpush.bf16.msrb.mxu3 %v14992_v17  ;;  %v14976_v45 = vor.u32 %v16553_v24, %v14973_v35  ;;  %v16448_v17 = vld [vmem:[#allocation6 + $0x434] sm:$0xf0]  ;;  %v14803_v35 = vld [vmem:[#allocation6 + $0x628] sm:$0xf] }
 0x721   :  { %9306 = vmatpush.bf16.msra.mxu1 %v14164_v50  ;;  %v16524_v50 = vld [vmem:[#allocation6 + $0x694] sm:$0xf0]  ;;  %v14483_v38 = vld [vmem:[#allocation6 + $0x3a8] sm:$0xf] }
 0x722   :  { %v14852_v8 = vor.u32 %v16524_v50, %v14851_v46  ;;  %v16480_v24 = vld [vmem:[#allocation6 + $0x534] sm:$0xf0]  ;;  %v14531_v46 = vld [vmem:[#allocation6 + $0x408] sm:$0xf] }
 0x723   :  { %9319 = vmatpush.bf16.msra.mxu2 %v14292_v11  ;;  %9294 = vmatpush.bf16.msra.mxu0 %v14020_v0  ;;  %v14596_v11 = vor.u32 %v16460_v47, %v14595_v57  ;;  %v9088_v51 = vpop.f32.mrf.mxu0  ;;  %v16545_v0 = vld [vmem:[#allocation6 + $0x744] sm:$0xf]  ;;  %v14515_v47 = vld [vmem:[#allocation6 + $0x3e8] sm:$0xf]  ;;  %v16444_v50 = vld [vmem:[#allocation6 + $0x414] sm:$0xf0] }
 0x724   :  { %9277 = vmatpush.bf16.msrb.mxu3 %v14976_v45  ;;  %v9089_v15 = vadd.f32 %v9088_v51, %v7791_v61  ;;  %v14548_v61 = vor.u32 %v16448_v17, %v14547_v29  ;;  %v14676_v45 = vor.u32 %v16480_v24, %v14675_v31  ;;  %v14787_v51 = vld [vmem:[#allocation6 + $0x608] sm:$0xf]  ;;  %v14229_v29 = vld [vmem:[#allocation6 + $0x1b8] sm:$0xf0]  ;;  %v16398_v17 = vld [vmem:[#allocation6 + $0x2ac] sm:$0xf] }
 0x725   :  { %9307 = vmatpush.bf16.msra.mxu1 %v14148_v36  ;;  %v9101_v18 = vpop.f32.mrf.mxu1  ;;  %v14941_v36 = vld [vmem:[#allocation6 + $0x750] sm:$0xf0]  ;;  %v14357_v31 = vld [vmem:[#allocation6 + $0x2b8] sm:$0xf0]  ;;  %v16428_v24 = vld [vmem:[#allocation6 + $0x394] sm:$0xf0] }
 0x726   :  { %9295 = vmatmul.bf16.vlgmr.msra.gmra.mxu0 %v17269_v60  ;;  %v9102_v3 = vadd.f32 %v9101_v18, %v9089_v15  ;;  %9230 = vmatmul.bf16.vlgmr.msra.gmra.mxu3 %v17275_v63  ;;  %v14944_v16 = vor.u32 %v16545_v0, %v14941_v36  ;;  %v16508_v18 = vld [vmem:[#allocation6 + $0x614] sm:$0xf0] }
 0x727   :  { %9320 = vmatpush.bf16.msra.mxu2 %v14276_v40  ;;  %9339 = vmatpush.bf16.msrb.mxu0 %v14644_v19  ;;  %v14708_v40 = vor.u32 %v16488_v62, %v14707_v59  ;;  %v14836_v19 = vor.u32 %v16520_v22, %v14835_v25  ;;  %v14261_v62 = vld [vmem:[#allocation6 + $0x1f8] sm:$0xf0]  ;;  %v16406_v25 = vld [vmem:[#allocation6 + $0x2ec] sm:$0xf]  ;;  %v14788_v36 = vor.u32 %v16508_v18, %v14787_v51 }
 0x728   :  { %9308 = vmatmul.bf16.vlgmr.msra.gmra.mxu1 %v17271_v6  ;;  %9278 = vmatpush.bf16.msrb.mxu3 %v14960_v9  ;;  %v14532_v9 = vor.u32 %v16444_v50, %v14531_v46  ;;  %v14389_v22 = vld [vmem:[#allocation6 + $0x2f8] sm:$0xf0]  ;;  %v14451_v50 = vld [vmem:[#allocation6 + $0x368] sm:$0xf] }
 0x729   :  { %9352 = vmatpush.bf16.msrb.mxu1 %v14772_v44  ;;  %v14563_v44 = vld [vmem:[#allocation6 + $0x448] sm:$0xf]  ;;  %v14341_v46 = vld [vmem:[#allocation6 + $0x298] sm:$0xf0] }
 0x72a   :  { %9321 = vmatmul.bf16.vlgmr.msra.gmra.mxu2 %v17273_v4 }
 0x72b   :  { %9365 = vmatpush.bf16.msrb.mxu2 %v14900_v13  ;;  %9340 = vmatpush.bf16.msrb.mxu0 %v14628_v2  ;;  %v16452_v13 = vld [vmem:[#allocation6 + $0x454] sm:$0xf0] }
 0x72c   :  { %v14564_v2 = vor.u32 %v16452_v13, %v14563_v44  ;;  %9279 = vmatpush.bf16.msrb.mxu3 %v14944_v16  ;;  %v14392_v44 = vor.u32 %v16406_v25, %v14389_v22  ;;  %v16338_v13 = vld [vmem:[#allocation6 + $0xcc] sm:$0xf]  ;;  %v14325_v25 = vld [vmem:[#allocation6 + $0x278] sm:$0xf0] }
 0x72d   :  { %9353 = vmatpush.bf16.msrb.mxu1 %v14756_v56  ;;  %v9114_v27 = vpop.f32.mrf.mxu2  ;;  %v9090_v56 = vpop.f32.mrf.mxu0  ;;  %v16370_v16 = vld [vmem:[#allocation6 + $0x1cc] sm:$0xf] }
 0x72e   :  { %v9115_v23 = vadd.f32 %v9114_v27, %v9102_v3  ;;  %v14499_v3 = vld [vmem:[#allocation6 + $0x3c8] sm:$0xf]  ;;  %v16432_v27 = vld [vmem:[#allocation6 + $0x3b4] sm:$0xf0]  ;;  %v16334_v56 = vld [vmem:[#allocation6 + $0xac] sm:$0xf] }
 0x72f   :  { %9366 = vmatpush.bf16.msrb.mxu2 %v14884_v39  ;;  %9341 = vmatpush.bf16.msrb.mxu0 %v14612_v21  ;;  %v9127_v37 = vpop.f32.mrf.mxu3  ;;  %v9103_v39 = vpop.f32.mrf.mxu1  ;;  %v16512_v21 = vld [vmem:[#allocation6 + $0x634] sm:$0xf0] }
 0x730   :  { %v17345_v57 = vadd.f32 %v9127_v37, %v9115_v23  ;;  %v14804_v33 = vor.u32 %v16512_v21, %v14803_v35  ;;  %9280 = vmatpush.bf16.msrb.mxu3 %v14928_v26  ;;  %v14120_v37 = vor.u32 %v16338_v13, %v14117_v14  ;;  %v14376_v23 = vor.u32 %v16402_v42, %v14373_v30  ;;  %v14101_v39 = vld [vmem:[#allocation6 + $0xb8] sm:$0xf0]  ;;  %v14467_v26 = vld [vmem:[#allocation6 + $0x388] sm:$0xf]  ;;  %v16416_v30 = vld [vmem:[#allocation6 + $0x334] sm:$0xf0] }
 0x731   :  { %9354 = vmatpush.bf16.msrb.mxu1 %v14740_v41  ;;  %v16537_v41 = vld [vmem:[#allocation6 + $0x704] sm:$0xf]  ;;  %v14104_v35 = vor.u32 %v16334_v56, %v14101_v39  ;;  %v14181_v14 = vld [vmem:[#allocation6 + $0x158] sm:$0xf0]  ;;  %v14419_v42 = vld [vmem:[#allocation6 + $0x328] sm:$0xf] }
 0x732   :  { %v16318_v39 = vld [vmem:[#allocation6 + $0x2c] sm:$0xf] }
 0x733   :  { %9367 = vmatpush.bf16.msrb.mxu2 %v14868_v55  ;;  %9342 = vmatpush.bf16.msrb.mxu0 %v14596_v11  ;;  %v14909_v55 = vld [vmem:[#allocation6 + $0x710] sm:$0xf0]  ;;  %v16476_v11 = vld [vmem:[#allocation6 + $0x514] sm:$0xf0] }
 0x734   :  { %v14912_v28 = vor.u32 %v16537_v41, %v14909_v55  ;;  %v14660_v0 = vor.u32 %v16476_v11, %v14659_v5  ;;  %v14360_v41 = vor.u32 %v16398_v17, %v14357_v31  ;;  %v16330_v55 = vld [vmem:[#allocation6 + $0x8c] sm:$0xf]  ;;  %v16424_v5 = vld [vmem:[#allocation6 + $0x374] sm:$0xf0]  ;;  %v14165_v17 = vld [vmem:[#allocation6 + $0x138] sm:$0xf0] }
 0x735   :  { %9355 = vmatpush.bf16.msrb.mxu1 %v14724_v52  ;;  %v14516_v52 = vor.u32 %v16440_v43, %v14515_v47  ;;  %v9116_v59 = vpop.f32.mrf.mxu2  ;;  %v16362_v47 = vld [vmem:[#allocation6 + $0x18c] sm:$0xf]  ;;  %v14468_v43 = vor.u32 %v16428_v24, %v14467_v26  ;;  %v14293_v26 = vld [vmem:[#allocation6 + $0x238] sm:$0xf0]  ;;  %v14403_v24 = vld [vmem:[#allocation6 + $0x308] sm:$0xf] }
 0x736   :  { %9281 = vmatpush.bf16.msrb.mxu3 %v14912_v28  ;;  %v16358_v59 = vld [vmem:[#allocation6 + $0x16c] sm:$0xf] }
 0x737   :  { %9368 = vmatpush.bf16.msrb.mxu2 %v14852_v8  ;;  %9343 = vmatpush.bf16.msrb.mxu0 %v14580_v7  ;;  %v16342_v8 = vld [vmem:[#allocation6 + $0xec] sm:$0xf]  ;;  %v9129_v15 = vpop.f32.mrf.mxu3  ;;  %v16436_v7 = vld [vmem:[#allocation6 + $0x3d4] sm:$0xf0] }
 0x738   :  { %v14500_v20 = vor.u32 %v16436_v7, %v14499_v3  ;;  %v14452_v15 = vor.u32 %v16424_v5, %v14451_v50  ;;  %v16382_v31 = vld [vmem:[#allocation6 + $0x22c] sm:$0xf]  ;;  %v14149_v50 = vld [vmem:[#allocation6 + $0x118] sm:$0xf0] }
 0x739   :  { %9356 = vmatpush.bf16.msrb.mxu1 %v14708_v40  ;;  %v14136_v40 = vor.u32 %v16342_v8, %v14133_v1  ;;  %9282 = vmatmul.bf16.vlgmr.msrb.gmra.mxu3 %v17335_v54  ;;  %v16326_v1 = vld [vmem:[#allocation6 + $0x6c] sm:$0xf] }
 0x73a   :  { %9326 = vmatpush.bf16.msra.mxu3 %v14516_v52  ;;  %v16378_v5 = vld [vmem:[#allocation6 + $0x20c] sm:$0xf] }
 0x73b   :  { %9369 = vmatpush.bf16.msrb.mxu2 %v14836_v19  ;;  %9344 = vmatpush.bf16.msrb.mxu0 %v14564_v2  ;;  %v14264_v19 = vor.u32 %v16374_v58, %v14261_v62  ;;  %v14248_v2 = vor.u32 %v16370_v16, %v14245_v34  ;;  %v14069_v58 = vld [vmem:[#allocation6 + $0x78] sm:$0xf0]  ;;  %v16390_v62 = vld [vmem:[#allocation6 + $0x26c] sm:$0xf] }
 0x73c   :  { %v14072_v3 = vor.u32 %v16326_v1, %v14069_v58  ;;  %v16386_v16 = vld [vmem:[#allocation6 + $0x24c] sm:$0xf]  ;;  %v14773_v58 = vld [vmem:[#allocation6 + $0x5f8] sm:$0xf0] }
 0x73d   :  { %9357 = vmatpush.bf16.msrb.mxu1 %v14692_v12  ;;  %v16366_v12 = vld [vmem:[#allocation6 + $0x1ac] sm:$0xf] }
 0x73e   :  { %9327 = vmatpush.bf16.msra.mxu3 %v14500_v20  ;;  %v14232_v21 = vor.u32 %v16366_v12, %v14229_v29  ;;  %v14309_v20 = vld [vmem:[#allocation6 + $0x258] sm:$0xf0]  ;;  %v14420_v29 = vor.u32 %v16416_v30, %v14419_v42 }
 0x73f   :  { %9370 = vmatpush.bf16.msrb.mxu2 %v14820_v53  ;;  %9345 = vmatpush.bf16.msrb.mxu0 %v14548_v61  ;;  %v14484_v53 = vor.u32 %v16432_v27, %v14483_v38  ;;  %v14085_v61 = vld [vmem:[#allocation6 + $0x98] sm:$0xf0]  ;;  %v14312_v56 = vor.u32 %v16386_v16, %v14309_v20  ;;  %v14995_v16 = vld [vmem:[#allocation6 + $0x7a8] sm:$0xf]  ;;  %v16560_v20 = vld [vmem:[#allocation6 + $0x7b4] sm:$0xf0] }
 0x740   :  { %v14088_v11 = vor.u32 %v16330_v55, %v14085_v61  ;;  %v14037_v12 = vld [vmem:[#allocation6 + $0x38] sm:$0xf0]  ;;  %v16568_v55 = vld [vmem:[#allocation6 + $0x7f4] sm:$0xf0] }
 0x741   :  { %9358 = vmatpush.bf16.msrb.mxu1 %v14676_v45  ;;  %v14213_v45 = vld [vmem:[#allocation6 + $0x198] sm:$0xf0] }
 0x742   :  { %9328 = vmatpush.bf16.msra.mxu3 %v14484_v53  ;;  %v14216_v52 = vor.u32 %v16362_v47, %v14213_v45  ;;  %v16350_v53 = vld [vmem:[#allocation6 + $0x12c] sm:$0xf]  ;;  %v14296_v47 = vor.u32 %v16382_v31, %v14293_v26  ;;  %v14021_v45 = vld [vmem:[#allocation6 + $0x18] sm:$0xf0]  ;;  %v7792_v31 = vperm.slane %v17339_v32, 1 }
 0x743   :  { %9371 = vmatpush.bf16.msrb.mxu2 %v14804_v33  ;;  %9346 = vmatpush.bf16.msrb.mxu0 %v14532_v9  ;;  %v16394_v33 = vld [vmem:[#allocation6 + $0x28c] sm:$0xf]  ;;  %v9140_v28 = vpop.f32.mrf.mxu0  ;;  %v14197_v9 = vld [vmem:[#allocation6 + $0x178] sm:$0xf0]  ;;  %v14168_v61 = vor.u32 %v16350_v53, %v14165_v17  ;;  %v14979_v53 = vld [vmem:[#allocation6 + $0x788] sm:$0xf] }
 0x744   :  { %v9141_v51 = vadd.f32 %v9140_v28, %v17345_v57  ;;  %v14344_v8 = vor.u32 %v16394_v33, %v14341_v46  ;;  %v14200_v7 = vor.u32 %v16358_v59, %v14197_v9  ;;  %v14328_v57 = vor.u32 %v16390_v62, %v14325_v25  ;;  %v16346_v33 = vld [vmem:[#allocation6 + $0x10c] sm:$0xf]  ;;  %v14277_v28 = vld [vmem:[#allocation6 + $0x218] sm:$0xf0]  ;;  %v15011_v62 = vld [vmem:[#allocation6 + $0x7c8] sm:$0xf] }
 0x745   :  { %9359 = vmatpush.bf16.msrb.mxu1 %v14660_v0  ;;  %v9153_v18 = vpop.f32.mrf.mxu1  ;;  %v14435_v0 = vld [vmem:[#allocation6 + $0x348] sm:$0xf]  ;;  %v16534_v59 = vld [vmem:[#allocation6 + $0x6ec] sm:$0xf]  ;;  %v14152_v9 = vor.u32 %v16346_v33, %v14149_v50  ;;  %v16564_v25 = vld [vmem:[#allocation6 + $0x7d4] sm:$0xf0] }
 0x746   :  { %9347 = vmatmul.bf16.vlgmr.msrb.gmra.mxu0 %v17295_v48  ;;  %9329 = vmatpush.bf16.msra.mxu3 %v14468_v43  ;;  %v9154_v22 = vadd.f32 %v9153_v18, %v9141_v51  ;;  %v16314_v43 = vld [vmem:[#allocation6 + $0xc] sm:$0xf] }
 0x747   :  { %9372 = vmatpush.bf16.msrb.mxu2 %v14788_v36  ;;  %9391 = vmatpush.bf16.msra.mxu0 %v14136_v40  ;;  %v16420_v36 = vld [vmem:[#allocation6 + $0x354] sm:$0xf0]  ;;  %v16322_v40 = vld [vmem:[#allocation6 + $0x4c] sm:$0xf]  ;;  %v14024_v1 = vor.u32 %v16314_v43, %v14021_v45 }
 0x748   :  { %9360 = vmatmul.bf16.vlgmr.msrb.gmra.mxu1 %v17297_v10  ;;  %v14436_v13 = vor.u32 %v16420_v36, %v14435_v0  ;;  %v16470_v18 = vld [vmem:[#allocation6 + $0x4ec] sm:$0xf] }
 0x749   :  { %9404 = vmatpush.bf16.msra.mxu1 %v14264_v19  ;;  %v14053_v19 = vld [vmem:[#allocation6 + $0x58] sm:$0xf0] }
 0x74a   :  { %9373 = vmatmul.bf16.vlgmr.msrb.gmra.mxu2 %v17299_v49  ;;  %9330 = vmatpush.bf16.msra.mxu3 %v14452_v15  ;;  %v14901_v15 = vld [vmem:[#allocation6 + $0x6f8] sm:$0xf0] }
 0x74b   :  { %9417 = vmatpush.bf16.msra.mxu2 %v14392_v44  ;;  %9392 = vmatpush.bf16.msra.mxu0 %v14120_v37  ;;  %v16354_v44 = vld [vmem:[#allocation6 + $0x14c] sm:$0xf]  ;;  %v9142_v27 = vpop.f32.mrf.mxu0  ;;  %v14056_v37 = vor.u32 %v16322_v40, %v14053_v19  ;;  %v15012_v19 = vor.u32 %v16564_v25, %v15011_v62 }
 0x74c   :  { %v16498_v40 = vld [vmem:[#allocation6 + $0x5cc] sm:$0xf] }
 0x74d   :  { %9405 = vmatpush.bf16.msra.mxu1 %v14248_v2  ;;  %v9166_v34 = vpop.f32.mrf.mxu2  ;;  %v9155_v2 = vpop.f32.mrf.mxu1  ;;  %v16462_v27 = vld [vmem:[#allocation6 + $0x4ac] sm:$0xf] }
 0x74e   :  { %v17352_v38 = vadd.f32 %v9166_v34, %v9154_v22  ;;  %9331 = vmatpush.bf16.msra.mxu3 %v14436_v13  ;;  %v14280_v22 = vor.u32 %v16378_v5, %v14277_v28  ;;  %v16530_v13 = vld [vmem:[#allocation6 + $0x6cc] sm:$0xf]  ;;  %v14581_v28 = vld [vmem:[#allocation6 + $0x478] sm:$0xf0] }
 0x74f   :  { %9418 = vmatpush.bf16.msra.mxu2 %v14376_v23  ;;  %9393 = vmatpush.bf16.msra.mxu0 %v14104_v35  ;;  %v14184_v23 = vor.u32 %v16354_v44, %v14181_v14  ;;  %v16412_v35 = vld [vmem:[#allocation6 + $0x314] sm:$0xf0]  ;;  %v14757_v44 = vld [vmem:[#allocation6 + $0x5d8] sm:$0xf0]  ;;  %v16494_v2 = vld [vmem:[#allocation6 + $0x5ac] sm:$0xf] }
 0x750   :  { %v14404_v46 = vor.u32 %v16412_v35, %v14403_v24  ;;  %v14885_v14 = vld [vmem:[#allocation6 + $0x6d8] sm:$0xf0]  ;;  %v14760_v42 = vor.u32 %v16498_v40, %v14757_v44  ;;  %v16458_v35 = vld [vmem:[#allocation6 + $0x48c] sm:$0xf]  ;;  %v16544_v44 = vld [vmem:[#allocation6 + $0x734] sm:$0xf0] }
 0x751   :  { %9406 = vmatpush.bf16.msra.mxu1 %v14232_v21  ;;  %v14040_v21 = vor.u32 %v16318_v39, %v14037_v12  ;;  %v14888_v30 = vor.u32 %v16530_v13, %v14885_v14  ;;  %v16526_v39 = vld [vmem:[#allocation6 + $0x6ac] sm:$0xf]  ;;  %v14869_v12 = vld [vmem:[#allocation6 + $0x6b8] sm:$0xf0] }
 0x752   :  { %9332 = vmatpush.bf16.msra.mxu3 %v14420_v29  ;;  %v16556_v29 = vld [vmem:[#allocation6 + $0x794] sm:$0xf0]  ;;  %v14872_v24 = vor.u32 %v16526_v39, %v14869_v12  ;;  %v16454_v5 = vld [vmem:[#allocation6 + $0x46c] sm:$0xf]  ;;  %v14805_v39 = vld [vmem:[#allocation6 + $0x638] sm:$0xf0] }
 0x753   :  { %9419 = vmatpush.bf16.msra.mxu2 %v14360_v41  ;;  %9394 = vmatpush.bf16.msra.mxu0 %v14088_v11  ;;  %v15027_v41 = vld [vmem:[#allocation6 + $0x7e8] sm:$0xf]  ;;  %v16450_v25 = vld [vmem:[#allocation6 + $0x44c] sm:$0xf] }
 0x754   :  { %v15028_v51 = vor.u32 %v16568_v55, %v15027_v41  ;;  %v14980_v41 = vor.u32 %v16556_v29, %v14979_v53  ;;  %v14725_v55 = vld [vmem:[#allocation6 + $0x598] sm:$0xf0]  ;;  %v14915_v12 = vld [vmem:[#allocation6 + $0x708] sm:$0xf]  ;;  %v16540_v53 = vld [vmem:[#allocation6 + $0x714] sm:$0xf0] }
 0x755   :  { %9407 = vmatpush.bf16.msra.mxu1 %v14216_v52  ;;  %v9168_v11 = vpop.f32.mrf.mxu2  ;;  %v14645_v52 = vld [vmem:[#allocation6 + $0x4f8] sm:$0xf0] }
 0x756   :  { %9333 = vmatpush.bf16.msra.mxu3 %v14404_v46  ;;  %v14648_v0 = vor.u32 %v16470_v18, %v14645_v52  ;;  %v16486_v11 = vld [vmem:[#allocation6 + $0x56c] sm:$0xf]  ;;  %v14709_v18 = vld [vmem:[#allocation6 + $0x578] sm:$0xf0] }
 0x757   :  { %9420 = vmatpush.bf16.msra.mxu2 %v14344_v8  ;;  %9395 = vmatpush.bf16.msra.mxu0 %v14072_v3  ;;  %v16502_v8 = vld [vmem:[#allocation6 + $0x5ec] sm:$0xf]  ;;  %v14904_v3 = vor.u32 %v16534_v59, %v14901_v15  ;;  %v16548_v59 = vld [vmem:[#allocation6 + $0x754] sm:$0xf0]  ;;  %v14584_v15 = vor.u32 %v16454_v5, %v14581_v28 }
 0x758   :  { %v14776_v36 = vor.u32 %v16502_v8, %v14773_v58  ;;  %v16518_v52 = vld [vmem:[#allocation6 + $0x66c] sm:$0xf]  ;;  %v14837_v8 = vld [vmem:[#allocation6 + $0x678] sm:$0xf0]  ;;  %v14947_v58 = vld [vmem:[#allocation6 + $0x748] sm:$0xf] }
 0x759   :  { %9408 = vmatpush.bf16.msra.mxu1 %v14200_v7  ;;  %v16466_v7 = vld [vmem:[#allocation6 + $0x4cc] sm:$0xf]  ;;  %9334 = vmatmul.bf16.vlgmr.msra.gmra.mxu3 %v17275_v63  ;;  %v14840_v62 = vor.u32 %v16518_v52, %v14837_v8  ;;  %v14485_v8 = vld [vmem:[#allocation6 + $0x3b8] sm:$0xf0] }
 0x75a   :  { %9378 = vmatpush.bf16.msrb.mxu3 %v15028_v51  ;;  %v16430_v52 = vld [vmem:[#allocation6 + $0x3ac] sm:$0xf] }
 0x75b   :  { %9421 = vmatpush.bf16.msra.mxu2 %v14328_v57  ;;  %9396 = vmatpush.bf16.msra.mxu0 %v14056_v37  ;;  %v14629_v57 = vld [vmem:[#allocation6 + $0x4d8] sm:$0xf0] }
 0x75c   :  { %v14632_v34 = vor.u32 %v16466_v7, %v14629_v57  ;;  %v14613_v37 = vld [vmem:[#allocation6 + $0x4b8] sm:$0xf0]  ;;  %v16514_v7 = vld [vmem:[#allocation6 + $0x64c] sm:$0xf] }
 0x75d   :  { %9409 = vmatpush.bf16.msra.mxu1 %v14184_v23  ;;  %v14996_v23 = vor.u32 %v16560_v20, %v14995_v16  ;;  %v14616_v17 = vor.u32 %v16462_v27, %v14613_v37  ;;  %v14821_v57 = vld [vmem:[#allocation6 + $0x658] sm:$0xf0]  ;;  %v16478_v37 = vld [vmem:[#allocation6 + $0x52c] sm:$0xf] }
 0x75e   :  { %9379 = vmatpush.bf16.msrb.mxu3 %v15012_v19  ;;  %v14931_v19 = vld [vmem:[#allocation6 + $0x728] sm:$0xf]  ;;  %v14549_v27 = vld [vmem:[#allocation6 + $0x438] sm:$0xf0] }
 0x75f   :  { %9422 = vmatpush.bf16.msra.mxu2 %v14312_v56  ;;  %9397 = vmatpush.bf16.msra.mxu0 %v14040_v21  ;;  %v14741_v56 = vld [vmem:[#allocation6 + $0x5b8] sm:$0xf0]  ;;  %v16490_v21 = vld [vmem:[#allocation6 + $0x58c] sm:$0xf] }
 0x760   :  { %v14744_v26 = vor.u32 %v16494_v2, %v14741_v56  ;;  %v14728_v46 = vor.u32 %v16490_v21, %v14725_v55  ;;  %v14932_v2 = vor.u32 %v16544_v44, %v14931_v19  ;;  %v16510_v56 = vld [vmem:[#allocation6 + $0x62c] sm:$0xf]  ;;  %v14916_v21 = vor.u32 %v16540_v53, %v14915_v12  ;;  %v14661_v55 = vld [vmem:[#allocation6 + $0x518] sm:$0xf0]  ;;  %v15147_v19 = vld [vmem:[#allocation9 + $0xe0] sm:$0xf] }
 0x761   :  { %9410 = vmatpush.bf16.msra.mxu1 %v14168_v61  ;;  %v16522_v61 = vld [vmem:[#allocation6 + $0x68c] sm:$0xf]  ;;  %v15051_v53 = vld [vmem:[#allocation9 + $0x20] sm:$0xf] }
 0x762   :  { %9380 = vmatpush.bf16.msrb.mxu3 %v14996_v23  ;;  %v14677_v23 = vld [vmem:[#allocation6 + $0x538] sm:$0xf0]  ;;  %v16598_v44 = vld [vmem:[#allocation9 + $0xe4] sm:$0xf0] }
 0x763   :  { %9423 = vmatpush.bf16.msra.mxu2 %v14296_v47  ;;  %9398 = vmatpush.bf16.msra.mxu0 %v14024_v1  ;;  %v14963_v47 = vld [vmem:[#allocation6 + $0x768] sm:$0xf]  ;;  %v9192_v43 = vpop.f32.mrf.mxu0  ;;  %v16414_v12 = vld [vmem:[#allocation6 + $0x32c] sm:$0xf] }
 0x764   :  { %v9193_v32 = vadd.f32 %v9192_v43, %v7792_v31  ;;  %v14517_v31 = vld [vmem:[#allocation6 + $0x3f8] sm:$0xf0]  ;;  %v15091_v43 = vld [vmem:[#allocation9 + $0x70] sm:$0xf] }
 0x765   :  { %9411 = vmatpush.bf16.msra.mxu1 %v14152_v9  ;;  %v9205_v45 = vpop.f32.mrf.mxu1  ;;  %v14712_v9 = vor.u32 %v16486_v11, %v14709_v18  ;;  %v16582_v18 = vld [vmem:[#allocation9 + $0x64] sm:$0xf0] }
 0x766   :  { %9399 = vmatmul.bf16.vlgmr.msra.gmra.mxu0 %v17269_v60  ;;  %v14597_v60 = vld [vmem:[#allocation6 + $0x498] sm:$0xf0]  ;;  %9381 = vmatpush.bf16.msrb.mxu3 %v14980_v41  ;;  %v9206_v1 = vadd.f32 %v9205_v45, %v9193_v32  ;;  %v16474_v41 = vld [vmem:[#allocation6 + $0x50c] sm:$0xf] }
 0x767   :  { %9424 = vmatpush.bf16.msra.mxu2 %v14280_v22  ;;  %9443 = vmatpush.bf16.msrb.mxu0 %v14648_v0  ;;  %v14600_v33 = vor.u32 %v16458_v35, %v14597_v60  ;;  %v14565_v22 = vld [vmem:[#allocation6 + $0x458] sm:$0xf0]  ;;  %v16482_v0 = vld [vmem:[#allocation6 + $0x54c] sm:$0xf] }
 0x768   :  { %9412 = vmatmul.bf16.vlgmr.msra.gmra.mxu1 %v17271_v6  ;;  %v14853_v6 = vld [vmem:[#allocation6 + $0x698] sm:$0xf0]  ;;  %v14568_v20 = vor.u32 %v16450_v25, %v14565_v22  ;;  %v16442_v35 = vld [vmem:[#allocation6 + $0x40c] sm:$0xf]  ;;  %v15155_v25 = vld [vmem:[#allocation9 + $0xf0] sm:$0xf] }
 0x769   :  { %9456 = vmatpush.bf16.msrb.mxu1 %v14776_v36  ;;  %v14856_v50 = vor.u32 %v16522_v61, %v14853_v6  ;;  %v14948_v36 = vor.u32 %v16548_v59, %v14947_v58  ;;  %v14533_v60 = vld [vmem:[#allocation6 + $0x418] sm:$0xf0]  ;;  %v16506_v61 = vld [vmem:[#allocation6 + $0x60c] sm:$0xf]  ;;  %v14488_v58 = vor.u32 %v16430_v52, %v14485_v8  ;;  %v15093_v8 = vld [vmem:[#allocation9 + $0x78] sm:$0xf0] }
 0x76a   :  { %9425 = vmatmul.bf16.vlgmr.msra.gmra.mxu2 %v17273_v4  ;;  %v16552_v4 = vld [vmem:[#allocation6 + $0x774] sm:$0xf0]  ;;  %v16584_v45 = vld [vmem:[#allocation9 + $0x74] sm:$0xf0]  ;;  %v16434_v32 = vld [vmem:[#allocation6 + $0x3cc] sm:$0xf] }
 0x76b   :  { %9469 = vmatpush.bf16.msrb.mxu2 %v14904_v3  ;;  %9444 = vmatpush.bf16.msrb.mxu0 %v14632_v34  ;;  %v14964_v51 = vor.u32 %v16552_v4, %v14963_v47  ;;  %v14693_v3 = vld [vmem:[#allocation6 + $0x558] sm:$0xf0]  ;;  %v9194_v14 = vpop.f32.mrf.mxu0  ;;  %v15092_v28 = vor.u32 %v16584_v45, %v15091_v43  ;;  %v16426_v59 = vld [vmem:[#allocation6 + $0x38c] sm:$0xf]  ;;  %v15123_v43 = vld [vmem:[#allocation9 + $0xb0] sm:$0xf] }
 0x76c   :  { %v14696_v34 = vor.u32 %v16482_v0, %v14693_v3  ;;  %v14789_v4 = vld [vmem:[#allocation6 + $0x618] sm:$0xf0] }
 0x76d   :  { %9457 = vmatpush.bf16.msrb.mxu1 %v14760_v42  ;;  %9382 = vmatpush.bf16.msrb.mxu3 %v14964_v51  ;;  %v9218_v40 = vpop.f32.mrf.mxu2  ;;  %v9207_v16 = vpop.f32.mrf.mxu1  ;;  %v14824_v42 = vor.u32 %v16514_v7, %v14821_v57  ;;  %v14792_v5 = vor.u32 %v16506_v61, %v14789_v4  ;;  %v15083_v51 = vld [vmem:[#allocation9 + $0x60] sm:$0xf]  ;;  %v16600_v22 = vld [vmem:[#allocation9 + $0xf4] sm:$0xf0]  ;;  %v16422_v7 = vld [vmem:[#allocation6 + $0x36c] sm:$0xf] }
 0x76e   :  { %v17359_v13 = vadd.f32 %v9218_v40, %v9206_v1  ;;  %v15084_v1 = vor.u32 %v16582_v18, %v15083_v51  ;;  %v15156_v0 = vor.u32 %v16600_v22, %v15155_v25  ;;  %v15067_v57 = vld [vmem:[#allocation9 + $0x40] sm:$0xf]  ;;  %v16578_v40 = vld [vmem:[#allocation9 + $0x44] sm:$0xf0]  ;;  %v14405_v4 = vld [vmem:[#allocation6 + $0x318] sm:$0xf0] }
 0x76f   :  { %9470 = vmatpush.bf16.msrb.mxu2 %v14888_v30  ;;  %9445 = vmatpush.bf16.msrb.mxu0 %v14616_v17  ;;  %v16446_v30 = vld [vmem:[#allocation6 + $0x42c] sm:$0xf]  ;;  %v16592_v45 = vld [vmem:[#allocation9 + $0xb4] sm:$0xf0]  ;;  %v16583_v51 = vld [vmem:[#allocation9 + $0x74] sm:$0xf] }
 0x770   :  { %v14552_v29 = vor.u32 %v16446_v30, %v14549_v27  ;;  %v16438_v17 = vld [vmem:[#allocation6 + $0x3ec] sm:$0xf]  ;;  %v16576_v30 = vld [vmem:[#allocation9 + $0x34] sm:$0xf0]  ;;  %v15096_v25 = vor.u32 %v16583_v51, %v15093_v8  ;;  %v16581_v22 = vld [vmem:[#allocation9 + $0x64] sm:$0xf] }
 0x771   :  { %9458 = vmatpush.bf16.msrb.mxu1 %v14744_v26  ;;  %9383 = vmatpush.bf16.msrb.mxu3 %v14948_v36  ;;  %v14680_v26 = vor.u32 %v16478_v37, %v14677_v23  ;;  %v14520_v47 = vor.u32 %v16438_v17, %v14517_v31  ;;  %v14437_v27 = vld [vmem:[#allocation6 + $0x358] sm:$0xf0]  ;;  %v15139_v37 = vld [vmem:[#allocation9 + $0xd0] sm:$0xf]  ;;  %v16410_v61 = vld [vmem:[#allocation6 + $0x30c] sm:$0xf] }
 0x772   :  { %v14421_v31 = vld [vmem:[#allocation6 + $0x338] sm:$0xf0]  ;;  %v16542_v8 = vld [vmem:[#allocation6 + $0x72c] sm:$0xf] }
 0x773   :  { %9471 = vmatpush.bf16.msrb.mxu2 %v14872_v24  ;;  %9446 = vmatpush.bf16.msrb.mxu0 %v14600_v33  ;;  %v14808_v24 = vor.u32 %v16510_v56, %v14805_v39  ;;  %v14536_v33 = vor.u32 %v16442_v35, %v14533_v60 }
 0x775   :  { %9459 = vmatpush.bf16.msrb.mxu1 %v14728_v46  ;;  %9384 = vmatpush.bf16.msrb.mxu3 %v14932_v2  ;;  %v9220_v6 = vpop.f32.mrf.mxu2  ;;  %v14501_v46 = vld [vmem:[#allocation6 + $0x3d8] sm:$0xf0] }
 0x776   :  { %v14504_v11 = vor.u32 %v16434_v32, %v14501_v46  ;;  %v16596_v2 = vld [vmem:[#allocation9 + $0xd4] sm:$0xf0]  ;;  %v15043_v6 = vld [vmem:[#allocation9 + $0x10] sm:$0xf]  ;;  %v15124_v46 = vor.u32 %v16592_v45, %v15123_v43  ;;  %v16546_v43 = vld [vmem:[#allocation6 + $0x74c] sm:$0xf] }
 0x777   :  { %9472 = vmatpush.bf16.msrb.mxu2 %v14856_v50  ;;  %9447 = vmatpush.bf16.msrb.mxu0 %v14584_v15  ;;  %v14664_v50 = vor.u32 %v16474_v41, %v14661_v55  ;;  %v15075_v15 = vld [vmem:[#allocation9 + $0x50] sm:$0xf]  ;;  %v15140_v23 = vor.u32 %v16596_v2, %v15139_v37  ;;  %v14424_v55 = vor.u32 %v16414_v12, %v14421_v31  ;;  %v15029_v32 = vld [vmem:[#allocation6 + $0x7f8] sm:$0xf0]  ;;  %v16554_v2 = vld [vmem:[#allocation6 + $0x78c] sm:$0xf] }
 0x778   :  { %v15069_v31 = vld [vmem:[#allocation9 + $0x48] sm:$0xf0]  ;;  %v16575_v45 = vld [vmem:[#allocation9 + $0x34] sm:$0xf] }
 0x779   :  { %9460 = vmatpush.bf16.msrb.mxu1 %v14712_v9  ;;  %9385 = vmatpush.bf16.msrb.mxu3 %v14916_v21  ;;  %v16580_v9 = vld [vmem:[#allocation9 + $0x54] sm:$0xf0] }
 0x77a   :  { %v15076_v36 = vor.u32 %v16580_v9, %v15075_v15  ;;  %v15013_v15 = vld [vmem:[#allocation6 + $0x7d8] sm:$0xf0] }
 0x77b   :  { %9473 = vmatpush.bf16.msrb.mxu2 %v14840_v62  ;;  %9448 = vmatpush.bf16.msrb.mxu0 %v14568_v20  ;;  %v14469_v62 = vld [vmem:[#allocation6 + $0x398] sm:$0xf0]  ;;  %v15068_v20 = vor.u32 %v16578_v40, %v15067_v57  ;;  %v15099_v40 = vld [vmem:[#allocation9 + $0x80] sm:$0xf] }
 0x77c   :  { %9386 = vmatmul.bf16.vlgmr.msrb.gmra.mxu3 %v17335_v54  ;;  %v14472_v3 = vor.u32 %v16426_v59, %v14469_v62  ;;  %v16562_v59 = vld [vmem:[#allocation6 + $0x7cc] sm:$0xf] }
 0x77d   :  { %9461 = vmatpush.bf16.msrb.mxu1 %v14696_v34  ;;  %9430 = vmatpush.bf16.msra.mxu3 %v14520_v47  ;;  %v16418_v34 = vld [vmem:[#allocation6 + $0x34c] sm:$0xf]  ;;  %v16572_v47 = vld [vmem:[#allocation9 + $0x14] sm:$0xf0] }
 0x77e   :  { %v14440_v39 = vor.u32 %v16418_v34, %v14437_v27  ;;  %v15157_v34 = vld [vmem:[#allocation9 + $0xf8] sm:$0xf0] }
 0x77f   :  { %9474 = vmatpush.bf16.msrb.mxu2 %v14824_v42  ;;  %9449 = vmatpush.bf16.msrb.mxu0 %v14552_v29  ;;  %v15059_v42 = vld [vmem:[#allocation9 + $0x30] sm:$0xf]  ;;  %v16574_v29 = vld [vmem:[#allocation9 + $0x24] sm:$0xf0]  ;;  %v15077_v27 = vld [vmem:[#allocation9 + $0x58] sm:$0xf0] }
 0x780   :  { %v15060_v56 = vor.u32 %v16576_v30, %v15059_v42  ;;  %v15052_v41 = vor.u32 %v16574_v29, %v15051_v53  ;;  %v16579_v30 = vld [vmem:[#allocation9 + $0x54] sm:$0xf]  ;;  %v16550_v53 = vld [vmem:[#allocation6 + $0x76c] sm:$0xf]  ;;  %v16577_v29 = vld [vmem:[#allocation9 + $0x44] sm:$0xf] }
 0x781   :  { %9462 = vmatpush.bf16.msrb.mxu1 %v14680_v26  ;;  %9431 = vmatpush.bf16.msra.mxu3 %v14504_v11  ;;  %v15131_v26 = vld [vmem:[#allocation9 + $0xc0] sm:$0xf]  ;;  %v16570_v11 = vld [vmem:[#allocation9 + $0x4] sm:$0xf0] }
 0x783   :  { %9475 = vmatpush.bf16.msrb.mxu2 %v14808_v24  ;;  %9450 = vmatpush.bf16.msrb.mxu0 %v14536_v33  ;;  %v17365_v14 = vpop.f32.mrf.mxu0  ;;  %v16594_v24 = vld [vmem:[#allocation9 + $0xc4] sm:$0xf0] }
 0x784   :  { %v15132_v60 = vor.u32 %v16594_v24, %v15131_v26  ;;  %v16566_v33 = vld [vmem:[#allocation6 + $0x7ec] sm:$0xf]  ;;  %v14965_v26 = vld [vmem:[#allocation6 + $0x778] sm:$0xf0]  ;;  %v16597_v24 = vld [vmem:[#allocation9 + $0xe4] sm:$0xf] }
 0x785   :  { %9463 = vmatpush.bf16.msrb.mxu1 %v14664_v50  ;;  %9432 = vmatpush.bf16.msra.mxu3 %v14488_v58  ;;  %v17367_v16 = vpop.f32.mrf.mxu1  ;;  %v15044_v50 = vor.u32 %v16572_v47, %v15043_v6  ;;  %v15032_v52 = vor.u32 %v16566_v33, %v15029_v32  ;;  %v16590_v58 = vld [vmem:[#allocation9 + $0xa4] sm:$0xf0]  ;;  %v15061_v33 = vld [vmem:[#allocation9 + $0x38] sm:$0xf0]  ;;  %v14949_v32 = vld [vmem:[#allocation6 + $0x758] sm:$0xf0] }
 0x786   :  { %9451 = vmatmul.bf16.vlgmr.msrb.gmra.mxu0 %v17295_v48  ;;  %v14453_v48 = vld [vmem:[#allocation6 + $0x378] sm:$0xf0]  ;;  %v15064_v51 = vor.u32 %v16575_v45, %v15061_v33  ;;  %v15203_v33 = vld [vmem:[#allocation9 + $0x150] sm:$0xf] }
 0x787   :  { %9476 = vmatpush.bf16.msrb.mxu2 %v14792_v5  ;;  %9893 = vmatpush.bf16.msra.mxu0 %v15092_v28  ;;  %v14408_v5 = vor.u32 %v16410_v61, %v14405_v4  ;;  %v15035_v28 = vld [vmem:[#allocation9] sm:$0xf]  ;;  %v14968_v4 = vor.u32 %v16550_v53, %v14965_v26 }
 0x788   :  { %9464 = vmatmul.bf16.vlgmr.msrb.gmra.mxu1 %v17297_v10  ;;  %v15148_v10 = vor.u32 %v16598_v44, %v15147_v19  ;;  %v15036_v62 = vor.u32 %v16570_v11, %v15035_v28  ;;  %v16558_v19 = vld [vmem:[#allocation6 + $0x7ac] sm:$0xf]  ;;  %v14997_v44 = vld [vmem:[#allocation6 + $0x7b8] sm:$0xf0] }
 0x789   :  { %9906 = vmatpush.bf16.msra.mxu1 %v15156_v0  ;;  %9433 = vmatpush.bf16.msra.mxu3 %v14472_v3  ;;  %v15107_v0 = vld [vmem:[#allocation9 + $0x90] sm:$0xf]  ;;  %v15016_v3 = vor.u32 %v16562_v59, %v15013_v15  ;;  %v15000_v42 = vor.u32 %v16558_v19, %v14997_v44  ;;  %v16593_v59 = vld [vmem:[#allocation9 + $0xc4] sm:$0xf]  ;;  %v15133_v15 = vld [vmem:[#allocation9 + $0xc8] sm:$0xf0] }
 0x78a   :  { %9477 = vmatmul.bf16.vlgmr.msrb.gmra.mxu2 %v17299_v49  ;;  %v14456_v49 = vor.u32 %v16422_v7, %v14453_v48  ;;  %v15085_v7 = vld [vmem:[#allocation9 + $0x68] sm:$0xf0]  ;;  %v16586_v48 = vld [vmem:[#allocation9 + $0x84] sm:$0xf0]  ;;  %v14917_v19 = vld [vmem:[#allocation6 + $0x718] sm:$0xf0] }
 0x78b   :  { %9894 = vmatpush.bf16.msra.mxu0 %v15084_v1  ;;  %v9246_v35 = vpop.f32.mrf.mxu0  ;;  %v15115_v1 = vld [vmem:[#allocation9 + $0xa0] sm:$0xf]  ;;  %v16591_v44 = vld [vmem:[#allocation9 + $0xb4] sm:$0xf] }
 0x78c   :  { %v15116_v9 = vor.u32 %v16590_v58, %v15115_v1  ;;  %v15149_v35 = vld [vmem:[#allocation9 + $0xe8] sm:$0xf0]  ;;  %v16573_v1 = vld [vmem:[#allocation9 + $0x24] sm:$0xf] }
 0x78d   :  { %9907 = vmatpush.bf16.msra.mxu1 %v15148_v10  ;;  %9434 = vmatpush.bf16.msra.mxu3 %v14456_v49  ;;  %v17369_v17 = vpop.f32.mrf.mxu2  ;;  %v9259_v21 = vpop.f32.mrf.mxu1  ;;  %v15088_v10 = vor.u32 %v16581_v22, %v15085_v7  ;;  %v16599_v49 = vld [vmem:[#allocation9 + $0xf4] sm:$0xf]  ;;  %v15053_v58 = vld [vmem:[#allocation9 + $0x28] sm:$0xf0] }
 0x78e   :  { %v15160_v37 = vor.u32 %v16599_v49, %v15157_v34  ;;  %v16569_v34 = vld [vmem:[#allocation9 + $0x4] sm:$0xf] }
 0x78f   :  { %9895 = vmatpush.bf16.msra.mxu0 %v15076_v36  ;;  %v16588_v36 = vld [vmem:[#allocation9 + $0x94] sm:$0xf0] }
 0x790   :  { %v15108_v57 = vor.u32 %v16588_v36, %v15107_v0  ;;  %v15056_v36 = vor.u32 %v16573_v1, %v15053_v58 }
 0x791   :  { %9908 = vmatpush.bf16.msra.mxu1 %v15140_v23  ;;  %9435 = vmatpush.bf16.msra.mxu3 %v14440_v39  ;;  %v14981_v23 = vld [vmem:[#allocation6 + $0x798] sm:$0xf0] }
 0x792   :  { %v14984_v12 = vor.u32 %v16554_v2, %v14981_v23  ;;  %v16587_v2 = vld [vmem:[#allocation9 + $0x94] sm:$0xf] }
 0x793   :  { %9896 = vmatpush.bf16.msra.mxu0 %v15068_v20  ;;  %v15100_v20 = vor.u32 %v16586_v48, %v15099_v40  ;;  %v16571_v40 = vld [vmem:[#allocation9 + $0x14] sm:$0xf]  ;;  %v15045_v48 = vld [vmem:[#allocation9 + $0x18] sm:$0xf0] }
 0x794   :  { %v15048_v49 = vor.u32 %v16571_v40, %v15045_v48  ;;  %v15221_v40 = vld [vmem:[#allocation9 + $0x178] sm:$0xf0] }
 0x795   :  { %9909 = vmatpush.bf16.msra.mxu1 %v15132_v60  ;;  %9436 = vmatpush.bf16.msra.mxu3 %v14424_v55  ;;  %v9272_v18 = vpop.f32.mrf.mxu2  ;;  %v15152_v60 = vor.u32 %v16597_v24, %v15149_v35  ;;  %v15072_v55 = vor.u32 %v16577_v29, %v15069_v31  ;;  %v16585_v35 = vld [vmem:[#allocation9 + $0x84] sm:$0xf] }
 0x797   :  { %9897 = vmatpush.bf16.msra.mxu0 %v15060_v56  ;;  %v17372_v56 = vld [vmem:[#allocation7] sm:$0xf] }
 0x798   :  { %v7793_v39 = vperm.slane %v17372_v56, 2 }
 0x799   :  { %9910 = vmatpush.bf16.msra.mxu1 %v15124_v46  ;;  %9437 = vmatpush.bf16.msra.mxu3 %v14408_v5  ;;  %v16595_v46 = vld [vmem:[#allocation9 + $0xd4] sm:$0xf] }
 0x79b   :  { %9898 = vmatpush.bf16.msra.mxu0 %v15052_v41  ;;  %v9179_v41 = vpop.f32.mrf.mxu3 }
 0x79c   :  { %9438 = vmatmul.bf16.vlgmr.msra.gmra.mxu3 %v17275_v63  ;;  %v15080_v63 = vor.u32 %v16579_v30, %v15077_v27  ;;  %v9180_v47 = vadd.f32 %v9179_v41, %v17352_v38  ;;  %v14933_v38 = vld [vmem:[#allocation6 + $0x738] sm:$0xf0]  ;;  %v16589_v27 = vld [vmem:[#allocation9 + $0xa4] sm:$0xf] }
 0x79d   :  { %9911 = vmatpush.bf16.msra.mxu1 %v15116_v9  ;;  %9482 = vmatpush.bf16.msrb.mxu3 %v15032_v52  ;;  %v14952_v52 = vor.u32 %v16546_v43, %v14949_v32  ;;  %v14936_v7 = vor.u32 %v16542_v8, %v14933_v38  ;;  %v16608_v8 = vld [vmem:[#allocation9 + $0x134] sm:$0xf0] }
 0x79e   :  { %v9495_v28 = vmax.f32 %v9180_v47, 0.0  ;;  %v16614_v47 = vld [vmem:[#allocation9 + $0x164] sm:$0xf0] }
 0x79f   :  { %9899 = vmatpush.bf16.msra.mxu0 %v15044_v50  ;;  %v15141_v50 = vld [vmem:[#allocation9 + $0xd8] sm:$0xf0] }
 0x7a0   :  { %v15144_v11 = vor.u32 %v16595_v46, %v15141_v50  ;;  %v9499_v18 = vpack.c.bf16 %v9495_v28, %v9495_v28 }
 0x7a1   :  { %9912 = vmatpush.bf16.msra.mxu1 %v15108_v57  ;;  %9483 = vmatpush.bf16.msrb.mxu3 %v15016_v3  ;;  %v16538_v57 = vld [vmem:[#allocation6 + $0x70c] sm:$0xf] }
 0x7a2   :  { %v14920_v30 = vor.u32 %v16538_v57, %v14917_v19  ;;  %v16615_v57 = vld [vmem:[#allocation9 + $0x174] sm:$0xf] }
 0x7a3   :  { %9900 = vmatpush.bf16.msra.mxu0 %v15036_v62  ;;  %v9296_v21 = vpop.f32.mrf.mxu0  ;;  %v15136_v62 = vor.u32 %v16593_v59, %v15133_v15  ;;  %v9181_v0 = vpop.f32.mrf.mxu3  ;;  %v16606_v15 = vld [vmem:[#allocation9 + $0x124] sm:$0xf0]  ;;  %v15224_v19 = vor.u32 %v16615_v57, %v15221_v40 }
 0x7a4   :  { %v9297_v61 = vadd.f32 %v9296_v21, %v7793_v39  ;;  %v15109_v39 = vld [vmem:[#allocation9 + $0x98] sm:$0xf0] }
 0x7a5   :  { %9913 = vmatpush.bf16.msra.mxu1 %v15100_v20  ;;  %9484 = vmatpush.bf16.msrb.mxu3 %v15000_v42  ;;  %v9309_v6 = vpop.f32.mrf.mxu1  ;;  %v15037_v42 = vld [vmem:[#allocation9 + $0x8] sm:$0xf0]  ;;  %v15112_v24 = vor.u32 %v16587_v2, %v15109_v39 }
 0x7a6   :  { %v9310_v5 = vadd.f32 %v9309_v6, %v9297_v61  ;;  %9901 = vmatmul.bf16.vlgmr.msra.gmra.mxu0 %v9499_v18  ;;  %v15040_v26 = vor.u32 %v16569_v34, %v15037_v42  ;;  %v15211_v6 = vld [vmem:[#allocation9 + $0x160] sm:$0xf]  ;;  %v16611_v34 = vld [vmem:[#allocation9 + $0x154] sm:$0xf]  ;;  %v15205_v42 = vld [vmem:[#allocation9 + $0x158] sm:$0xf0] }
 0x7a7   :  { %9945 = vmatpush.bf16.msrb.mxu0 %v15096_v25 }
 0x7a9   :  { %9958 = vmatpush.bf16.msrb.mxu1 %v15160_v37  ;;  %9485 = vmatpush.bf16.msrb.mxu3 %v14984_v12  ;;  %v15117_v37 = vld [vmem:[#allocation9 + $0xa8] sm:$0xf0]  ;;  %v16616_v12 = vld [vmem:[#allocation9 + $0x174] sm:$0xf0] }
 0x7aa   :  { %v15120_v23 = vor.u32 %v16589_v27, %v15117_v37  ;;  %v15208_v27 = vor.u32 %v16611_v34, %v15205_v42  ;;  %v15227_v34 = vld [vmem:[#allocation9 + $0x180] sm:$0xf]  ;;  %v16618_v42 = vld [vmem:[#allocation9 + $0x184] sm:$0xf0] }
 0x7ab   :  { %9946 = vmatpush.bf16.msrb.mxu0 %v15088_v10  ;;  %v9298_v22 = vpop.f32.mrf.mxu0  ;;  %v15125_v10 = vld [vmem:[#allocation9 + $0xb8] sm:$0xf0]  ;;  %v9231_v31 = vpop.f32.mrf.mxu3 }
 0x7ac   :  { %v15128_v20 = vor.u32 %v16591_v44, %v15125_v10  ;;  %v9232_v21 = vadd.f32 %v9231_v31, %v17359_v13  ;;  %v16604_v22 = vld [vmem:[#allocation9 + $0x114] sm:$0xf0]  ;;  %v16613_v44 = vld [vmem:[#allocation9 + $0x164] sm:$0xf]  ;;  %v15213_v10 = vld [vmem:[#allocation9 + $0x168] sm:$0xf0] }
 0x7ad   :  { %9959 = vmatpush.bf16.msrb.mxu1 %v15152_v60  ;;  %9486 = vmatpush.bf16.msrb.mxu3 %v14968_v4  ;;  %v9322_v9 = vpop.f32.mrf.mxu2  ;;  %v9311_v3 = vpop.f32.mrf.mxu1  ;;  %v15101_v60 = vld [vmem:[#allocation9 + $0x88] sm:$0xf0]  ;;  %v15212_v4 = vor.u32 %v16614_v47, %v15211_v6  ;;  %v16607_v31 = vld [vmem:[#allocation9 + $0x134] sm:$0xf]  ;;  %v15173_v47 = vld [vmem:[#allocation9 + $0x118] sm:$0xf0] }
 0x7ae   :  { %v17376_v25 = vadd.f32 %v9322_v9, %v9310_v5  ;;  %v15104_v41 = vor.u32 %v16585_v35, %v15101_v60  ;;  %v9245_v61 = vadd.f32 %v17365_v14, %v9232_v21  ;;  %v15195_v5 = vld [vmem:[#allocation9 + $0x140] sm:$0xf]  ;;  %v16610_v14 = vld [vmem:[#allocation9 + $0x144] sm:$0xf0]  ;;  %v16603_v6 = vld [vmem:[#allocation9 + $0x114] sm:$0xf] }
 0x7af   :  { %9947 = vmatpush.bf16.msrb.mxu0 %v15080_v63  ;;  %v15219_v63 = vld [vmem:[#allocation9 + $0x170] sm:$0xf]  ;;  %v15163_v3 = vld [vmem:[#allocation9 + $0x100] sm:$0xf] }
 0x7b0   :  { %v15220_v29 = vor.u32 %v16616_v12, %v15219_v63  ;;  %v9258_v43 = vadd.f32 %v17367_v16, %v9245_v61  ;;  %v16609_v63 = vld [vmem:[#allocation9 + $0x144] sm:$0xf]  ;;  %v15197_v12 = vld [vmem:[#allocation9 + $0x148] sm:$0xf0] }
 0x7b1   :  { %9960 = vmatpush.bf16.msrb.mxu1 %v15144_v11  ;;  %9487 = vmatpush.bf16.msrb.mxu3 %v14952_v52  ;;  %v15196_v11 = vor.u32 %v16610_v14, %v15195_v5  ;;  %v15187_v52 = vld [vmem:[#allocation9 + $0x130] sm:$0xf] }
 0x7b2   :  { %9919 = vmatpush.bf16.msra.mxu2 %v15220_v29  ;;  %v9271_v46 = vadd.f32 %v17369_v17, %v9258_v43  ;;  %v15188_v38 = vor.u32 %v16608_v8, %v15187_v52  ;;  %v15179_v17 = vld [vmem:[#allocation9 + $0x120] sm:$0xf]  ;;  %v15283_v43 = vld [vmem:[#allocation9 + $0x1f0] sm:$0xf] }
 0x7b3   :  { %9948 = vmatpush.bf16.msrb.mxu0 %v15072_v55  ;;  %v9233_v55 = vpop.f32.mrf.mxu3  ;;  %v15180_v9 = vor.u32 %v16606_v15, %v15179_v17  ;;  %v15267_v8 = vld [vmem:[#allocation9 + $0x1d0] sm:$0xf]  ;;  %v16626_v15 = vld [vmem:[#allocation9 + $0x1c4] sm:$0xf0] }
 0x7b4   :  { %v15181_v55 = vld [vmem:[#allocation9 + $0x128] sm:$0xf0] }
 0x7b5   :  { %9961 = vmatpush.bf16.msrb.mxu1 %v15136_v62  ;;  %9488 = vmatpush.bf16.msrb.mxu3 %v14936_v7  ;;  %v9324_v53 = vpop.f32.mrf.mxu2  ;;  %v15171_v62 = vld [vmem:[#allocation9 + $0x110] sm:$0xf]  ;;  %v16602_v7 = vld [vmem:[#allocation9 + $0x104] sm:$0xf0] }
 0x7b6   :  { %9920 = vmatpush.bf16.msra.mxu2 %v15212_v4  ;;  %v15164_v48 = vor.u32 %v16602_v7, %v15163_v3  ;;  %v15200_v53 = vor.u32 %v16609_v63, %v15197_v12  ;;  %v15176_v4 = vor.u32 %v16603_v6, %v15173_v47  ;;  %v15277_v63 = vld [vmem:[#allocation9 + $0x1e8] sm:$0xf0] }
 0x7b7   :  { %9949 = vmatpush.bf16.msrb.mxu0 %v15064_v51  ;;  %v15245_v6 = vld [vmem:[#allocation9 + $0x1a8] sm:$0xf0] }
 0x7b9   :  { %9962 = vmatpush.bf16.msrb.mxu1 %v15128_v20  ;;  %9489 = vmatpush.bf16.msrb.mxu3 %v14920_v30  ;;  %v15216_v20 = vor.u32 %v16613_v44, %v15213_v10  ;;  %v15235_v10 = vld [vmem:[#allocation9 + $0x190] sm:$0xf] }
 0x7bb   :  { %9950 = vmatpush.bf16.msrb.mxu0 %v15056_v36  ;;  %v15172_v36 = vor.u32 %v16604_v22, %v15171_v62 }
 0x7bc   :  { %9490 = vmatmul.bf16.vlgmr.msrb.gmra.mxu3 %v17335_v54  ;;  %v16612_v54 = vld [vmem:[#allocation9 + $0x154] sm:$0xf0]  ;;  %v9283_v50 = vpop.f32.mrf.mxu3 }
 0x7bd   :  { %9963 = vmatpush.bf16.msrb.mxu1 %v15120_v23  ;;  %v15204_v13 = vor.u32 %v16612_v54, %v15203_v33  ;;  %v9284_v28 = vadd.f32 %v9283_v50, %v9271_v46  ;;  %v16632_v33 = vld [vmem:[#allocation9 + $0x1f4] sm:$0xf0]  ;;  %v15165_v46 = vld [vmem:[#allocation9 + $0x108] sm:$0xf0] }
 0x7be   :  { %v15284_v50 = vor.u32 %v16632_v33, %v15283_v43  ;;  %v15237_v43 = vld [vmem:[#allocation9 + $0x198] sm:$0xf0] }
 0x7bf   :  { %9951 = vmatpush.bf16.msrb.mxu0 %v15048_v49  ;;  %9921 = vmatpush.bf16.msra.mxu2 %v15204_v13  ;;  %v9496_v51 = vmax.f32 %v9284_v28, 0.0  ;;  %v7794_v49 = vperm.slane %v17372_v56, 3  ;;  %v16601_v13 = vld [vmem:[#allocation9 + $0x104] sm:$0xf] }
 0x7c0   :  { %9932 = vmatpush.bf16.msra.mxu3 %v15284_v50  ;;  %v15168_v5 = vor.u32 %v16601_v13, %v15165_v46  ;;  %v16617_v46 = vld [vmem:[#allocation9 + $0x184] sm:$0xf]  ;;  %v15229_v50 = vld [vmem:[#allocation9 + $0x188] sm:$0xf0] }
 0x7c1   :  { %9964 = vmatpush.bf16.msrb.mxu1 %v15112_v24  ;;  %v9500_v1 = vpack.c.bf16 %v9496_v51, %v9496_v51  ;;  %v16630_v51 = vld [vmem:[#allocation9 + $0x1e4] sm:$0xf0] }
 0x7c3   :  { %9952 = vmatpush.bf16.msrb.mxu0 %v15040_v26  ;;  %v17382_v45 = vpop.f32.mrf.mxu0  ;;  %9922 = vmatpush.bf16.msra.mxu2 %v15196_v11  ;;  %v15189_v26 = vld [vmem:[#allocation9 + $0x138] sm:$0xf0]  ;;  %v15275_v11 = vld [vmem:[#allocation9 + $0x1e0] sm:$0xf] }
 0x7c4   :  { %9914 = vmatmul.bf16.vlgmr.msra.gmra.mxu1 %v9500_v1  ;;  %v9285_v59 = vpop.f32.mrf.mxu3  ;;  %v15192_v35 = vor.u32 %v16607_v31, %v15189_v26  ;;  %v16625_v26 = vld [vmem:[#allocation9 + $0x1c4] sm:$0xf] }
 0x7c5   :  { %9965 = vmatpush.bf16.msrb.mxu1 %v15104_v41  ;;  %v17384_v32 = vpop.f32.mrf.mxu1  ;;  %v16605_v41 = vld [vmem:[#allocation9 + $0x124] sm:$0xf] }
 0x7c6   :  { %9953 = vmatmul.bf16.vlgmr.msrb.gmra.mxu0 %v9499_v18  ;;  %v15184_v61 = vor.u32 %v16605_v41, %v15181_v55  ;;  %v15253_v41 = vld [vmem:[#allocation9 + $0x1b8] sm:$0xf0] }
 0x7c7   :  { %9923 = vmatpush.bf16.msra.mxu2 %v15188_v38 }
 0x7cb   :  { %v9350_v16 = vpop.f32.mrf.mxu0  ;;  %9924 = vmatpush.bf16.msra.mxu2 %v15180_v9 }
 0x7cc   :  { %v15276_v16 = vor.u32 %v16630_v51, %v15275_v11 }
 0x7cd   :  { %v17387_v18 = vpop.f32.mrf.mxu2  ;;  %v9363_v58 = vpop.f32.mrf.mxu1 }
 0x7ce   :  { %9933 = vmatpush.bf16.msra.mxu3 %v15276_v16 }
 0x7cf   :  { %9925 = vmatpush.bf16.msra.mxu2 %v15172_v36  ;;  %v16624_v36 = vld [vmem:[#allocation9 + $0x1b4] sm:$0xf0] }
 0x7d3   :  { %9926 = vmatpush.bf16.msra.mxu2 %v15164_v48  ;;  %v15243_v48 = vld [vmem:[#allocation9 + $0x1a0] sm:$0xf] }
 0x7d4   :  { %9966 = vmatmul.bf16.vlgmr.msrb.gmra.mxu1 %v9500_v1  ;;  %v16628_v1 = vld [vmem:[#allocation9 + $0x1d4] sm:$0xf0] }
 0x7d5   :  { %v9376_v0 = vpop.f32.mrf.mxu2  ;;  %v15268_v38 = vor.u32 %v16628_v1, %v15267_v8 }
 0x7d6   :  { %v15251_v0 = vld [vmem:[#allocation9 + $0x1b0] sm:$0xf] }
 0x7d7   :  { %9971 = vmatpush.bf16.msrb.mxu2 %v15224_v19  ;;  %9934 = vmatpush.bf16.msra.mxu3 %v15268_v38  ;;  %v15252_v7 = vor.u32 %v16624_v36, %v15251_v0  ;;  %v16622_v19 = vld [vmem:[#allocation9 + $0x1a4] sm:$0xf0] }
 0x7d8   :  { %v15244_v44 = vor.u32 %v16622_v19, %v15243_v48  ;;  %v16647_v48 = vld [vmem:[#allocation12 + $0x70] sm:$0xff]  ;;  %v16638_v19 = vld [vmem:[#allocation12 + $0x28] sm:$0xff] }
 0x7db   :  { %9972 = vmatpush.bf16.msrb.mxu2 %v15216_v20  ;;  %v16620_v20 = vld [vmem:[#allocation9 + $0x194] sm:$0xf0] }
 0x7dc   :  { %v9335_v39 = vpop.f32.mrf.mxu3 }
 0x7dd   :  { %v9336_v14 = vadd.f32 %v9335_v39, %v17376_v25  ;;  %v15259_v25 = vld [vmem:[#allocation9 + $0x1c0] sm:$0xf]  ;;  %v16629_v39 = vld [vmem:[#allocation9 + $0x1e4] sm:$0xf] }
 0x7de   :  { %v15280_v12 = vor.u32 %v16629_v39, %v15277_v63  ;;  %v16643_v39 = vld [vmem:[#allocation12 + $0x50] sm:$0xff]  ;;  %v16642_v63 = vld [vmem:[#allocation12 + $0x48] sm:$0xff] }
 0x7df   :  { %9973 = vmatpush.bf16.msrb.mxu2 %v15208_v27  ;;  %v9349_v28 = vadd.f32 %v17382_v45, %v9336_v14  ;;  %v15260_v45 = vor.u32 %v16626_v15, %v15259_v25  ;;  %v16631_v27 = vld [vmem:[#allocation9 + $0x1f4] sm:$0xf]  ;;  %v9567_v15 = vld [vmem:[#allocation10] sm:$0x3] }
 0x7e0   :  { %v9570_v36 = vperm.slane %v9567_v15, 1 }
 0x7e1   :  { %v9362_v52 = vadd.f32 %v17384_v32, %v9349_v28  ;;  %9935 = vmatpush.bf16.msra.mxu3 %v15260_v45  ;;  %v9569_v45 = vperm.slane %v9567_v15, 0 }
 0x7e3   :  { %v9400_v30 = vpop.f32.mrf.mxu0  ;;  %9974 = vmatpush.bf16.msrb.mxu2 %v15200_v53  ;;  %v9375_v17 = vadd.f32 %v17387_v18, %v9362_v52  ;;  %v16627_v53 = vld [vmem:[#allocation9 + $0x1d4] sm:$0xf] }
 0x7e4   :  { %v9401_v37 = vadd.f32 %v9400_v30, %v7794_v49  ;;  %v9337_v21 = vpop.f32.mrf.mxu3  ;;  %v15236_v49 = vor.u32 %v16620_v20, %v15235_v10  ;;  %v16636_v10 = vld [vmem:[#allocation12 + $0x18] sm:$0xff] }
 0x7e5   :  { %v9413_v2 = vpop.f32.mrf.mxu1  ;;  %9936 = vmatpush.bf16.msra.mxu3 %v15252_v7  ;;  %v16623_v21 = vld [vmem:[#allocation9 + $0x1b4] sm:$0xf] }
 0x7e6   :  { %v9414_v23 = vadd.f32 %v9413_v2, %v9401_v37  ;;  %v15285_v37 = vld [vmem:[#allocation9 + $0x1f8] sm:$0xf0]  ;;  %v15228_v2 = vor.u32 %v16618_v42, %v15227_v34  ;;  %v15256_v55 = vor.u32 %v16623_v21, %v15253_v41 }
 0x7e7   :  { %9975 = vmatpush.bf16.msrb.mxu2 %v15192_v35 }
 0x7e9   :  { %9937 = vmatpush.bf16.msra.mxu3 %v15244_v44 }
 0x7eb   :  { %v9402_v56 = vpop.f32.mrf.mxu0  ;;  %9976 = vmatpush.bf16.msrb.mxu2 %v15184_v61  ;;  %v16621_v61 = vld [vmem:[#allocation9 + $0x1a4] sm:$0xf] }
 0x7ec   :  { %v15261_v56 = vld [vmem:[#allocation9 + $0x1c8] sm:$0xf0]  ;;  %v15248_v47 = vor.u32 %v16621_v61, %v15245_v6 }
 0x7ed   :  { %v9426_v29 = vpop.f32.mrf.mxu2  ;;  %v9415_v60 = vpop.f32.mrf.mxu1  ;;  %9938 = vmatpush.bf16.msra.mxu3 %v15236_v49  ;;  %v16635_v49 = vld [vmem:[#allocation12 + $0x10] sm:$0xff] }
 0x7ee   :  { %v17390_v24 = vadd.f32 %v9426_v29, %v9414_v23  ;;  %v15288_v23 = vor.u32 %v16631_v27, %v15285_v37  ;;  %v15269_v29 = vld [vmem:[#allocation9 + $0x1d8] sm:$0xf0]  ;;  %v15264_v60 = vor.u32 %v16625_v26, %v15261_v56  ;;  %v16646_v27 = vld [vmem:[#allocation12 + $0x68] sm:$0xff]  ;;  %v16633_v37 = vld [vmem:[#allocation12] sm:$0xff] }
 0x7ef   :  { %9977 = vmatpush.bf16.msrb.mxu2 %v15176_v4  ;;  %v15272_v31 = vor.u32 %v16627_v53, %v15269_v29  ;;  %v16619_v4 = vld [vmem:[#allocation9 + $0x194] sm:$0xf] }
 0x7f0   :  { %v15240_v13 = vor.u32 %v16619_v4, %v15237_v43  ;;  %v16665_v43 = vld [vmem:[#allocation13] ss:$0 sm:$0xff] }
 0x7f1   :  { %9939 = vmatpush.bf16.msra.mxu3 %v15228_v2  ;;  %v16645_v2 = vld [vmem:[#allocation12 + $0x60] sm:$0xff] }
 0x7f3   :  { %9978 = vmatpush.bf16.msrb.mxu2 %v15168_v5  ;;  %v15232_v5 = vor.u32 %v16617_v46, %v15229_v50 }
 0x7f5   :  { %v9428_v54 = vpop.f32.mrf.mxu2  ;;  %9984 = vmatpush.bf16.msrb.mxu3 %v15288_v23  ;;  %v16644_v23 = vld [vmem:[#allocation12 + $0x58] sm:$0xff] }
 0x7f9   :  { %9985 = vmatpush.bf16.msrb.mxu3 %v15280_v12  ;;  %v16641_v12 = vld [vmem:[#allocation12 + $0x40] sm:$0xff] }
 0x7fd   :  { %9986 = vmatpush.bf16.msrb.mxu3 %v15272_v31 }
 0x7ff   :  { %v9387_v9 = vpop.f32.mrf.mxu3 }
 0x800   :  { %v9388_v62 = vadd.f32 %v9387_v9, %v9375_v17 }
 0x801   :  { %9987 = vmatpush.bf16.msrb.mxu3 %v15264_v60 }
 0x802   :  { %v9497_v22 = vmax.f32 %v9388_v62, 0.0 }
 0x803   :  { %v17395_v58 = vpop.f32.mrf.mxu0 }
 0x804   :  { %v9501_v57 = vpack.c.bf16 %v9497_v22, %v9497_v22 }
 0x805   :  { %v17397_v59 = vpop.f32.mrf.mxu1  ;;  %9988 = vmatpush.bf16.msrb.mxu3 %v15256_v55 }
 0x806   :  { %9927 = vmatmul.bf16.vlgmr.msra.gmra.mxu2 %v9501_v57 }
 0x807   :  { %v9389_v18 = vpop.f32.mrf.mxu3 }
 0x808   :  { %v16637_v18 = vld [vmem:[#allocation12 + $0x20] sm:$0xff] }
 0x809   :  { %9989 = vmatpush.bf16.msrb.mxu3 %v15248_v47 }
 0x80b   :  { %v9454_v3 = vpop.f32.mrf.mxu0 }
 0x80d   :  { %v9478_v32 = vpop.f32.mrf.mxu2  ;;  %v9467_v40 = vpop.f32.mrf.mxu1  ;;  %9990 = vmatpush.bf16.msrb.mxu3 %v15240_v13 }
 0x80e   :  { %v16639_v40 = vld [vmem:[#allocation12 + $0x30] sm:$0xff] }
 0x811   :  { %9991 = vmatpush.bf16.msrb.mxu3 %v15232_v5 }
 0x815   :  { %v9480_v30 = vpop.f32.mrf.mxu2 }
 0x816   :  { %9979 = vmatmul.bf16.vlgmr.msrb.gmra.mxu2 %v9501_v57  ;;  %v16648_v57 = vld [vmem:[#allocation12 + $0x78] sm:$0xff]  ;;  %v16634_v30 = vld [vmem:[#allocation12 + $0x8] sm:$0xff] }
 0x817   :  { %10146 = vmatpush.bf16.msra.mxu1 %v16648_v57 }
 0x81b   :  { %10147 = vmatpush.bf16.msra.mxu1 %v16647_v48 }
 0x81f   :  { %v9439_v35 = vpop.f32.mrf.mxu3  ;;  %10148 = vmatpush.bf16.msra.mxu1 %v16646_v27 }
 0x820   :  { %v9440_v14 = vadd.f32 %v9439_v35, %v17390_v24 }
 0x822   :  { %v9453_v11 = vadd.f32 %v17395_v58, %v9440_v14 }
 0x823   :  { %v9902_v54 = vpop.f32.mrf.mxu0  ;;  %10149 = vmatpush.bf16.msra.mxu1 %v16645_v2 }
 0x824   :  { %v9466_v51 = vadd.f32 %v17397_v59, %v9453_v11  ;;  %v9903_v62 = vadd.f32 %v9902_v54, %v9569_v45 }
 0x826   :  { %v9479_v52 = vadd.f32 %v9478_v32, %v9466_v51  ;;  %v16640_v32 = vld [vmem:[#allocation12 + $0x38] sm:$0xff] }
 0x827   :  { %v9441_v33 = vpop.f32.mrf.mxu3  ;;  %10133 = vmatpush.bf16.msra.mxu0 %v16640_v32  ;;  %10150 = vmatpush.bf16.msra.mxu1 %v16644_v23 }
 0x82b   :  { %v9904_v28 = vpop.f32.mrf.mxu0  ;;  %10134 = vmatpush.bf16.msra.mxu0 %v16639_v40  ;;  %10151 = vmatpush.bf16.msra.mxu1 %v16643_v39 }
 0x82f   :  { %10135 = vmatpush.bf16.msra.mxu0 %v16638_v19  ;;  %10152 = vmatpush.bf16.msra.mxu1 %v16642_v63 }
 0x833   :  { %10136 = vmatpush.bf16.msra.mxu0 %v16637_v18  ;;  %10153 = vmatpush.bf16.msra.mxu1 %v16641_v12 }
 0x837   :  { %10137 = vmatpush.bf16.msra.mxu0 %v16636_v10 }
 0x83b   :  { %10138 = vmatpush.bf16.msra.mxu0 %v16635_v49 }
 0x83f   :  { %v9491_v8 = vpop.f32.mrf.mxu3  ;;  %10139 = vmatpush.bf16.msra.mxu0 %v16634_v30 }
 0x840   :  { %v9492_v1 = vadd.f32 %v9491_v8, %v9479_v52 }
 0x841   :  { %v9915_v22 = vpop.f32.mrf.mxu1 }
 0x842   :  { %v9498_v38 = vmax.f32 %v9492_v1, 0.0  ;;  %v9916_v24 = vadd.f32 %v9915_v22, %v9903_v62 }
 0x843   :  { %v9954_v16 = vpop.f32.mrf.mxu0  ;;  %10140 = vmatpush.bf16.msra.mxu0 %v16633_v37 }
 0x844   :  { %v9502_v17 = vpack.c.bf16 %v9498_v38, %v9498_v38  ;;  %v9955_v58 = vadd.f32 %v9954_v16, %v9570_v36 }
 0x846   :  { %9940 = vmatmul.bf16.vlgmr.msra.gmra.mxu3 %v9502_v17 }
 0x847   :  { %v9493_v9 = vpop.f32.mrf.mxu3 }
 0x849   :  { %v9917_v0 = vpop.f32.mrf.mxu1 }
 0x84b   :  { %v9956_v25 = vpop.f32.mrf.mxu0 }
 0x851   :  { %v9967_v3 = vpop.f32.mrf.mxu1 }
 0x852   :  { %v9968_v59 = vadd.f32 %v9967_v3, %v9955_v58 }
 0x856   :  { %9992 = vmatmul.bf16.vlgmr.msrb.gmra.mxu3 %v9502_v17 }
 0x859   :  { %v9969_v7 = vpop.f32.mrf.mxu1 }
 0x889   :  { %v9928_v44 = vpop.f32.mrf.mxu2 }
 0x88a   :  { %v9929_v53 = vadd.f32 %v9928_v44, %v9916_v24 }
 0x891   :  { %v9930_v20 = vpop.f32.mrf.mxu2 }
 0x899   :  { %v9980_v34 = vpop.f32.mrf.mxu2 }
 0x89a   :  { %v9981_v60 = vadd.f32 %v9980_v34, %v9968_v59 }
 0x8a1   :  { %v9982_v42 = vpop.f32.mrf.mxu2 }
 0x8c9   :  { %v9941_v29 = vpop.f32.mrf.mxu3 }
 0x8ca   :  { %v9942_v31 = vadd.f32 %v9941_v29, %v9929_v53 }
 0x8cc   :  { %v9997_v26 = vmax.f32 %v9942_v31, 0.0 }
 0x8ce   :  { %v9999_v56 = vpack.c.bf16 %v9997_v26, %v9997_v26 }
 0x8d0   :  { %10141 = vmatmul.bf16.vlgmr.msra.gmra.mxu0 %v9999_v56 }
 0x8d1   :  { %v9943_v35 = vpop.f32.mrf.mxu3 }
 0x8d9   :  { %v9993_v21 = vpop.f32.mrf.mxu3 }
 0x8da   :  { %v9994_v41 = vadd.f32 %v9993_v21, %v9981_v60 }
 0x8dc   :  { %v9998_v55 = vmax.f32 %v9994_v41, 0.0 }
 0x8de   :  { %v10000_v61 = vpack.c.bf16 %v9998_v55, %v9998_v55 }
 0x8e0   :  { %10154 = vmatmul.bf16.vlgmr.msra.gmra.mxu1 %v10000_v61 }
 0x8e1   :  { %v9995_v6 = vpop.f32.mrf.mxu3 }
 0x94d   :  { %v10142_v47 = vpop.f32.mrf.mxu0 }
 0x94e   :  { %v10143_v33 = vadd.f32 %v16665_v43, %v10142_v47 }
 0x955   :  { %v10144_v4 = vpop.f32.mrf.mxu0 }
 0x95d   :  { %v10155_v54 = vpop.f32.mrf.mxu1 }
 0x95e   :  { %v10156_v13 = vadd.f32 %v10155_v54, %v10143_v33 }
 0x960   :  { %10159 = vst [vmem:[%s17415_s9] sm:$0xff] %v10156_v13 }
 0x965   :  { %v10157_v46 = vpop.f32.mrf.mxu1 }
 0x966   :  { %10164 = vsyncpa [#allocation3], 1 }
 0x967   :  { %10165 = vsyncpa [#allocation5], 1 }
 0x968   :  { %10166 = vsyncpa [#allocation8], 1 }
 0x969   :  { %10167 = vsyncpa [#allocation11], 1 }
 0x96a   :  { %10168 = vsyncpa [#allocation14], 1 }

</bundles_post_ra>
